<compile_context>
chip_gen: v6e
topology: v6e:2x2x1
jax: 0.10.0
libtpu: 0.0.40
codegen_flags: <defaults>
</compile_context>

<pallas_src>
import functools

import jax
import jax.numpy as jnp
from jax.experimental import pallas as pl
from jax.experimental.pallas import tpu as pltpu

EPS = 1e-5          # PyTorch GroupNorm default eps
NUM_CLASSES = 10
CLASS_PAD = 128     # lane-dense classifier output, sliced back to 10 outside


# ----------------------------- Pallas kernels ------------------------------

def _norm_relu_pool(y, g, beta, H, W, o_ref, half_ref):
    """InstanceNorm + ReLU + 2x2/stride-2 avg pool on an (H*W, C) f32 tile."""
    HW = H * W
    Ho, Wo = H // 2, W // 2
    # single-pass stats per channel over spatial positions
    inv_n = 1.0 / HW
    s1 = jnp.sum(y, axis=0, keepdims=True)
    s2 = jnp.sum(y * y, axis=0, keepdims=True)
    mean = s1 * inv_n
    var = s2 * inv_n - mean * mean
    y = (y - mean) * jax.lax.rsqrt(var + EPS) * g + beta
    y = jnp.maximum(y, 0.0)                                  # ReLU
    # 2x2 avg pool on the VPU (no pool matmul):
    #  - vertical (H) pairs: split rows (H*W,C)->(Ho,2,W,C) (W % 8 == 0, so
    #    this is a layout-friendly leading-dim split) and add the two slabs.
    #  - horizontal (W) pairs: write to a VMEM scratch and read the even/odd
    #    rows with a stride-2 sublane read.
    y4 = y.reshape(Ho, 2, W, -1)
    yh = y4[:, 0] + y4[:, 1]                                 # (Ho, W, C)
    half_ref[...] = yh.reshape(Ho * W, -1)
    even = half_ref[pl.ds(0, Ho * Wo, 2), :]
    odd = half_ref[pl.ds(1, Ho * Wo, 2), :]
    o_ref[0] = ((even + odd) * 0.25).astype(o_ref.dtype)     # rows = oi*Wo+oj


def conv_first_kernel(p_ref, w_ref, b_ref, g_ref, bt_ref, o_ref, half_ref,
                      *, H, W):
    # p_ref: (1, H*W, 9*Cin) bf16 im2col patches of one sample (Cin=3 -> K=27)
    # w_ref: (9*Cin, Cout) bf16;  b/g/bt: (1, Cout) f32
    y = jnp.dot(p_ref[0], w_ref[...], preferred_element_type=jnp.float32)
    y = y + b_ref[...]
    _norm_relu_pool(y, g_ref[...], bt_ref[...], H, W, o_ref, half_ref)


def conv_kernel(x_ref, w_ref, b_ref, g_ref, bt_ref, o_ref, half_ref, *, H, W):
    # x_ref: (1, H+2, W+2, Cin) f32 zero-padded NHWC activation of one sample
    # w_ref: (9, Cin, Cout) bf16 -- in-kernel im2col via shift-and-accumulate
    Cin = x_ref.shape[3]
    Cout = w_ref.shape[2]
    acc = jnp.zeros((H * W, Cout), jnp.float32)
    for kh in range(3):
        for kw in range(3):
            win = x_ref[0, pl.ds(kh, H), pl.ds(kw, W), :]    # (H, W, Cin) f32
            win = win.reshape(H * W, Cin).astype(jnp.bfloat16)
            acc = acc + jnp.dot(win, w_ref[kh * 3 + kw],
                                preferred_element_type=jnp.float32)
    y = acc + b_ref[...]   # conv bias (cancels in the norm, kept for fidelity)
    _norm_relu_pool(y, g_ref[...], bt_ref[...], H, W, o_ref, half_ref)


def linear_kernel(x_ref, w_ref, b_ref, o_ref):
    x = x_ref[...].astype(jnp.bfloat16)
    o_ref[...] = jnp.dot(x, w_ref[...],
                         preferred_element_type=jnp.float32) + b_ref[...]


# ------------------------------ Pallas wrappers -----------------------------

def conv_block_first(patches, w, b, gamma, beta, H, W):
    N, HW, KC = patches.shape
    Cout = w.shape[1]
    Ho, Wo = H // 2, W // 2
    kernel = functools.partial(conv_first_kernel, H=H, W=W)
    return pl.pallas_call(
        kernel,
        out_shape=jax.ShapeDtypeStruct((N, Ho * Wo, Cout), jnp.float32),
        grid=(N,),
        in_specs=[
            pl.BlockSpec((1, HW, KC), lambda n: (n, 0, 0)),
            pl.BlockSpec((KC, Cout), lambda n: (0, 0)),
            pl.BlockSpec((1, Cout), lambda n: (0, 0)),
            pl.BlockSpec((1, Cout), lambda n: (0, 0)),
            pl.BlockSpec((1, Cout), lambda n: (0, 0)),
        ],
        out_specs=pl.BlockSpec((1, Ho * Wo, Cout), lambda n: (n, 0, 0)),
        scratch_shapes=[pltpu.VMEM((Ho * W, Cout), jnp.float32)],
        compiler_params=pltpu.CompilerParams(
            dimension_semantics=("parallel",)),
    )(patches, w, b, gamma, beta)


def conv_block(x_pad, w, b, gamma, beta, H, W):
    N = x_pad.shape[0]
    Cin = x_pad.shape[3]
    Cout = w.shape[2]
    Ho, Wo = H // 2, W // 2
    kernel = functools.partial(conv_kernel, H=H, W=W)
    return pl.pallas_call(
        kernel,
        out_shape=jax.ShapeDtypeStruct((N, Ho * Wo, Cout), jnp.float32),
        grid=(N,),
        in_specs=[
            pl.BlockSpec((1, H + 2, W + 2, Cin), lambda n: (n, 0, 0, 0)),
            pl.BlockSpec((9, Cin, Cout), lambda n: (0, 0, 0)),
            pl.BlockSpec((1, Cout), lambda n: (0, 0)),
            pl.BlockSpec((1, Cout), lambda n: (0, 0)),
            pl.BlockSpec((1, Cout), lambda n: (0, 0)),
        ],
        out_specs=pl.BlockSpec((1, Ho * Wo, Cout), lambda n: (n, 0, 0)),
        scratch_shapes=[pltpu.VMEM((Ho * W, Cout), jnp.float32)],
        compiler_params=pltpu.CompilerParams(
            dimension_semantics=("parallel",)),
    )(x_pad, w, b, gamma, beta)


def linear(x, w, b):
    N = x.shape[0]
    Cp = w.shape[1]
    return pl.pallas_call(
        linear_kernel,
        out_shape=jax.ShapeDtypeStruct((N, Cp), jnp.float32),
    )(x, w, b)


# ------------------------------ JAX-side glue -------------------------------

def im2col(x_nhwc, k=3, pad=1):
    """3x3/pad-1/stride-1 patches: (N,H,W,C) -> (N, H*W, 9*C). Layer 1 only."""
    N, H, W, C = x_nhwc.shape
    xp = jnp.pad(x_nhwc, ((0, 0), (pad, pad), (pad, pad), (0, 0)))
    cols = [xp[:, kh:kh + H, kw:kw + W, :]
            for kh in range(k) for kw in range(k)]
    patches = jnp.concatenate(cols, axis=-1)                 # (N, H, W, 9*C)
    return patches.reshape(N, H * W, k * k * C)


def init_params(key, channel=3, net_width=128, net_depth=3,
                im_size=(32, 32), num_classes=NUM_CLASSES):
    """Deterministic synthetic parameters, same shapes as the PyTorch module."""
    params = {"convs": []}
    H, W = im_size
    cin = channel
    for d in range(net_depth):
        key, kw_, kb_ = jax.random.split(key, 3)
        fan_in = cin * 9
        w = jax.random.normal(kw_, (3, 3, cin, net_width), jnp.float32)
        w = w * (1.0 / jnp.sqrt(fan_in))
        b = jax.random.normal(kb_, (1, net_width), jnp.float32) * 0.01
        gamma = jnp.ones((1, net_width), jnp.float32)        # GroupNorm affine
        beta = jnp.zeros((1, net_width), jnp.float32)
        if d == 0:
            w_k = w.reshape(9 * cin, net_width).astype(jnp.bfloat16)   # (27,128)
        else:
            w_k = w.reshape(9, cin, net_width).astype(jnp.bfloat16)    # (9,Cin,Cout)
        params["convs"].append((w_k, b, gamma, beta))
        cin = net_width
        H //= 2
        W //= 2
    num_feat = net_width * H * W                             # 128*4*4 = 2048
    key, kw_, kb_ = jax.random.split(key, 3)
    # Classifier weight in "PyTorch order" (rows = NCHW flatten), then
    # pre-permuted once to NHWC flatten order and class-padded to 128 lanes.
    fc_w_pt = jax.random.normal(kw_, (num_feat, num_classes), jnp.float32)
    fc_w_pt = fc_w_pt * (1.0 / jnp.sqrt(num_feat))
    fc_b = jax.random.normal(kb_, (1, num_classes), jnp.float32) * 0.01
    hw = jnp.arange(H * W)
    c = jnp.arange(net_width)
    perm = (c[None, :] * (H * W) + hw[:, None]).reshape(-1)  # nhwc -> nchw idx
    fc_w = fc_w_pt[perm]
    params["fc_w"] = jnp.pad(
        fc_w, ((0, 0), (0, CLASS_PAD - num_classes))).astype(jnp.bfloat16)
    params["fc_b"] = jnp.pad(fc_b, ((0, 0), (0, CLASS_PAD - num_classes)))
    return params


@jax.jit
def convnet_forward(params, x_nchw):
    x = jnp.transpose(x_nchw, (0, 2, 3, 1)).astype(jnp.float32)  # NCHW -> NHWC
    N = x.shape[0]
    for d, (w, b, gamma, beta) in enumerate(params["convs"]):
        _, H, W, _ = x.shape
        Cout = w.shape[-1]
        if d == 0:
            patches = im2col(x).astype(jnp.bfloat16)         # (N, H*W, 27)
            out = conv_block_first(patches, w, b, gamma, beta, H, W)
        else:
            xp = jnp.pad(x, ((0, 0), (1, 1), (1, 1), (0, 0)))  # (N,H+2,W+2,C)
            out = conv_block(xp, w, b, gamma, beta, H, W)
        x = out.reshape(N, H // 2, W // 2, Cout)             # NHWC activation
    # NHWC flatten; fc_w rows were pre-permuted at init, so no transpose here.
    feat = x.reshape(N, -1)                                  # (N, 2048)
    logits = linear(feat, params["fc_w"], params["fc_b"])    # (N, 128) padded
    return logits[:, :NUM_CLASSES]                           # (N, 10)


if __name__ == "__main__":
    key = jax.random.PRNGKey(0)
    pkey, xkey = jax.random.split(key)
    params = init_params(pkey)
    # The module hardcodes channel=3, im_size=(32,32), width=128, depth=3.
    x = jax.random.normal(xkey, (2, 3, 32, 32), jnp.float32)
    out = convnet_forward(params, x)
    out = jax.block_until_ready(out)
    assert out.shape == (2, NUM_CLASSES) and out.dtype == jnp.float32
    print("KERNEL_OK")
</pallas_src>

<mosaic_0001>
module attributes {stable_mosaic.version = 11 : i64} {
  func.func @conv_first_kernel(%arg0: i32, %arg1: memref<1x1024x27xbf16, #tpu.memory_space<vmem>>, %arg2: memref<27x128xbf16, #tpu.memory_space<vmem>>, %arg3: memref<1x128xf32, #tpu.memory_space<vmem>>, %arg4: memref<1x128xf32, #tpu.memory_space<vmem>>, %arg5: memref<1x128xf32, #tpu.memory_space<vmem>>, %arg6: memref<1x256x128xf32, #tpu.memory_space<vmem>>, %arg7: memref<512x128xf32, #tpu.memory_space<vmem>>) attributes {dimension_semantics = [#tpu.dimension_semantics<parallel>], iteration_bounds = array<i64: 2>, scalar_prefetch = 0 : i64, scratch_operands = 1 : i64, tpu.core_type = #tpu.core_type<tc>, window_params = [{transform_indices = @transform_0, window_bounds = array<i64: 1, 1024, 27>}, {pipeline_mode = #tpu.pipeline_mode<synchronous>, transform_indices = @transform_1, window_bounds = array<i64: 27, 128>}, {pipeline_mode = #tpu.pipeline_mode<synchronous>, transform_indices = @transform_2, window_bounds = array<i64: 1, 128>}, {pipeline_mode = #tpu.pipeline_mode<synchronous>, transform_indices = @transform_3, window_bounds = array<i64: 1, 128>}, {pipeline_mode = #tpu.pipeline_mode<synchronous>, transform_indices = @transform_4, window_bounds = array<i64: 1, 128>}, {transform_indices = @transform_5, window_bounds = array<i64: 1, 256, 128>}]} {
    %c0 = arith.constant 0 : index
    %c0_0 = arith.constant 0 : index
    %c0_1 = arith.constant 0 : index
    %0 = vector.load %arg1[%c0, %c0_0, %c0_1] : memref<1x1024x27xbf16, #tpu.memory_space<vmem>>, vector<1x1024x27xbf16>
    %1 = vector.shape_cast %0 : vector<1x1024x27xbf16> to vector<1024x27xbf16>
    %c0_2 = arith.constant 0 : index
    %c0_3 = arith.constant 0 : index
    %2 = vector.load %arg2[%c0_2, %c0_3] : memref<27x128xbf16, #tpu.memory_space<vmem>>, vector<27x128xbf16>
    %cst = arith.constant dense<0.000000e+00> : vector<1024x128xf32>
    %3 = tpu.matmul %1, %2, %cst {dimension_numbers = #tpu.dot_dimension_numbers<[1], [0], [0], [1], [0, 0, 1, 1], [], []>} : vector<1024x27xbf16>, vector<27x128xbf16>, vector<1024x128xf32> -> vector<1024x128xf32>
    %c0_4 = arith.constant 0 : index
    %c0_5 = arith.constant 0 : index
    %4 = vector.load %arg3[%c0_4, %c0_5] : memref<1x128xf32, #tpu.memory_space<vmem>>, vector<1x128xf32>
    %5 = vector.broadcast %4 : vector<1x128xf32> to vector<1024x128xf32>
    %6 = arith.addf %3, %5 : vector<1024x128xf32>
    %c0_6 = arith.constant 0 : index
    %c0_7 = arith.constant 0 : index
    %7 = vector.load %arg4[%c0_6, %c0_7] : memref<1x128xf32, #tpu.memory_space<vmem>>, vector<1x128xf32>
    %c0_8 = arith.constant 0 : index
    %c0_9 = arith.constant 0 : index
    %8 = vector.load %arg5[%c0_8, %c0_9] : memref<1x128xf32, #tpu.memory_space<vmem>>, vector<1x128xf32>
    %cst_10 = arith.constant dense<0.000000e+00> : vector<128xf32>
    %9 = vector.multi_reduction <add>, %6, %cst_10 [0] : vector<1024x128xf32> to vector<128xf32>
    %10 = vector.shape_cast %9 : vector<128xf32> to vector<1x128xf32>
    %11 = arith.mulf %6, %6 : vector<1024x128xf32>
    %cst_11 = arith.constant dense<0.000000e+00> : vector<128xf32>
    %12 = vector.multi_reduction <add>, %11, %cst_11 [0] : vector<1024x128xf32> to vector<128xf32>
    %13 = vector.shape_cast %12 : vector<128xf32> to vector<1x128xf32>
    %cst_12 = arith.constant 9.765625E-4 : f32
    %14 = vector.broadcast %cst_12 : f32 to vector<1x128xf32>
    %15 = arith.mulf %10, %14 : vector<1x128xf32>
    %cst_13 = arith.constant 9.765625E-4 : f32
    %16 = vector.broadcast %cst_13 : f32 to vector<1x128xf32>
    %17 = arith.mulf %13, %16 : vector<1x128xf32>
    %18 = arith.mulf %15, %15 : vector<1x128xf32>
    %19 = arith.subf %17, %18 : vector<1x128xf32>
    %20 = vector.broadcast %15 : vector<1x128xf32> to vector<1024x128xf32>
    %21 = arith.subf %6, %20 : vector<1024x128xf32>
    %cst_14 = arith.constant 9.99999974E-6 : f32
    %22 = vector.broadcast %cst_14 : f32 to vector<1x128xf32>
    %23 = arith.addf %19, %22 : vector<1x128xf32>
    %24 = math.rsqrt %23 : vector<1x128xf32>
    %25 = vector.broadcast %24 : vector<1x128xf32> to vector<1024x128xf32>
    %26 = arith.mulf %21, %25 : vector<1024x128xf32>
    %27 = vector.broadcast %7 : vector<1x128xf32> to vector<1024x128xf32>
    %28 = arith.mulf %26, %27 : vector<1024x128xf32>
    %29 = vector.broadcast %8 : vector<1x128xf32> to vector<1024x128xf32>
    %30 = arith.addf %28, %29 : vector<1024x128xf32>
    %cst_15 = arith.constant 0.000000e+00 : f32
    %31 = vector.broadcast %cst_15 : f32 to vector<1024x128xf32>
    %32 = arith.maximumf %30, %31 : vector<1024x128xf32>
    %33 = vector.shape_cast %32 : vector<1024x128xf32> to vector<16x2x32x128xf32>
    %34 = vector.extract_strided_slice %33 {offsets = [0, 0, 0, 0], sizes = [16, 1, 32, 128], strides = [1, 1, 1, 1]} : vector<16x2x32x128xf32> to vector<16x1x32x128xf32>
    %35 = vector.shape_cast %34 : vector<16x1x32x128xf32> to vector<16x32x128xf32>
    %36 = vector.extract_strided_slice %33 {offsets = [0, 1, 0, 0], sizes = [16, 1, 32, 128], strides = [1, 1, 1, 1]} : vector<16x2x32x128xf32> to vector<16x1x32x128xf32>
    %37 = vector.shape_cast %36 : vector<16x1x32x128xf32> to vector<16x32x128xf32>
    %38 = arith.addf %35, %37 : vector<16x32x128xf32>
    %39 = vector.shape_cast %38 : vector<16x32x128xf32> to vector<512x128xf32>
    %c0_16 = arith.constant 0 : index
    %c0_17 = arith.constant 0 : index
    %40 = vector.load %arg7[%c0_16, %c0_17] : memref<512x128xf32, #tpu.memory_space<vmem>>, vector<512x128xf32>
    tpu.vector_store %arg7[%c0_16, %c0_17], %39 {strides = array<i32>} : memref<512x128xf32, #tpu.memory_space<vmem>>, vector<512x128xf32>,
    %c0_18 = arith.constant 0 : index
    %c0_19 = arith.constant 0 : index
    %41 = tpu.strided_load %arg7[%c0_18, %c0_19] {strides = array<i32: 2, 1>} : memref<512x128xf32, #tpu.memory_space<vmem>>, vector<256x128xf32>
    %c1 = arith.constant 1 : index
    %c0_20 = arith.constant 0 : index
    %42 = tpu.strided_load %arg7[%c1, %c0_20] {strides = array<i32: 2, 1>} : memref<512x128xf32, #tpu.memory_space<vmem>>, vector<256x128xf32>
    %43 = arith.addf %41, %42 : vector<256x128xf32>
    %cst_21 = arith.constant 2.500000e-01 : f32
    %44 = vector.broadcast %cst_21 : f32 to vector<256x128xf32>
    %45 = arith.mulf %43, %44 : vector<256x128xf32>
    %c0_22 = arith.constant 0 : index
    %c0_23 = arith.constant 0 : index
    %c0_24 = arith.constant 0 : index
    %46 = vector.load %arg6[%c0_22, %c0_23, %c0_24] : memref<1x256x128xf32, #tpu.memory_space<vmem>>, vector<1x256x128xf32>
    %47 = vector.shape_cast %46 : vector<1x256x128xf32> to vector<256x128xf32>
    %48 = vector.shape_cast %45 : vector<256x128xf32> to vector<1x256x128xf32>
    tpu.vector_store %arg6[%c0_22, %c0_23, %c0_24], %48 {strides = array<i32>} : memref<1x256x128xf32, #tpu.memory_space<vmem>>, vector<1x256x128xf32>,
    return
  }
  func.func @transform_0(%arg0: i32) -> (i32, i32, i32) {
    %c0_i32 = arith.constant 0 : i32
    %c0_i32_0 = arith.constant 0 : i32
    %c0_i32_1 = arith.constant 0 : i32
    return %arg0, %c0_i32, %c0_i32_0 : i32, i32, i32
  }
  func.func @transform_1(%arg0: i32) -> (i32, i32) {
    %c0_i32 = arith.constant 0 : i32
    %c0_i32_0 = arith.constant 0 : i32
    %c0_i32_1 = arith.constant 0 : i32
    return %c0_i32, %c0_i32_0 : i32, i32
  }
  func.func @transform_2(%arg0: i32) -> (i32, i32) {
    %c0_i32 = arith.constant 0 : i32
    %c0_i32_0 = arith.constant 0 : i32
    %c0_i32_1 = arith.constant 0 : i32
    return %c0_i32, %c0_i32_0 : i32, i32
  }
  func.func @transform_3(%arg0: i32) -> (i32, i32) {
    %c0_i32 = arith.constant 0 : i32
    %c0_i32_0 = arith.constant 0 : i32
    %c0_i32_1 = arith.constant 0 : i32
    return %c0_i32, %c0_i32_0 : i32, i32
  }
  func.func @transform_4(%arg0: i32) -> (i32, i32) {
    %c0_i32 = arith.constant 0 : i32
    %c0_i32_0 = arith.constant 0 : i32
    %c0_i32_1 = arith.constant 0 : i32
    return %c0_i32, %c0_i32_0 : i32, i32
  }
  func.func @transform_5(%arg0: i32) -> (i32, i32, i32) {
    %c0_i32 = arith.constant 0 : i32
    %c0_i32_0 = arith.constant 0 : i32
    %c0_i32_1 = arith.constant 0 : i32
    return %arg0, %c0_i32, %c0_i32_0 : i32, i32, i32
  }
}

module attributes {stable_mosaic.version = 11 : i64} {
  func.func @conv_kernel(%arg0: i32, %arg1: memref<1x18x18x128xf32, #tpu.memory_space<vmem>>, %arg2: memref<9x128x128xbf16, #tpu.memory_space<vmem>>, %arg3: memref<1x128xf32, #tpu.memory_space<vmem>>, %arg4: memref<1x128xf32, #tpu.memory_space<vmem>>, %arg5: memref<1x128xf32, #tpu.memory_space<vmem>>, %arg6: memref<1x64x128xf32, #tpu.memory_space<vmem>>, %arg7: memref<128x128xf32, #tpu.memory_space<vmem>>) attributes {dimension_semantics = [#tpu.dimension_semantics<parallel>], iteration_bounds = array<i64: 2>, scalar_prefetch = 0 : i64, scratch_operands = 1 : i64, tpu.core_type = #tpu.core_type<tc>, window_params = [{transform_indices = @transform_0, window_bounds = array<i64: 1, 18, 18, 128>}, {pipeline_mode = #tpu.pipeline_mode<synchronous>, transform_indices = @transform_1, window_bounds = array<i64: 9, 128, 128>}, {pipeline_mode = #tpu.pipeline_mode<synchronous>, transform_indices = @transform_2, window_bounds = array<i64: 1, 128>}, {pipeline_mode = #tpu.pipeline_mode<synchronous>, transform_indices = @transform_3, window_bounds = array<i64: 1, 128>}, {pipeline_mode = #tpu.pipeline_mode<synchronous>, transform_indices = @transform_4, window_bounds = array<i64: 1, 128>}, {transform_indices = @transform_5, window_bounds = array<i64: 1, 64, 128>}]} {
    %cst = arith.constant 0.000000e+00 : f32
    %0 = vector.broadcast %cst : f32 to vector<256x128xf32>
    %c0 = arith.constant 0 : index
    %c0_0 = arith.constant 0 : index
    %c0_1 = arith.constant 0 : index
    %c0_2 = arith.constant 0 : index
    %1 = vector.load %arg1[%c0, %c0_0, %c0_1, %c0_2] : memref<1x18x18x128xf32, #tpu.memory_space<vmem>>, vector<1x16x16x128xf32>
    %2 = vector.shape_cast %1 : vector<1x16x16x128xf32> to vector<16x16x128xf32>
    %3 = vector.shape_cast %2 : vector<16x16x128xf32> to vector<256x128xf32>
    %4 = arith.truncf %3 : vector<256x128xf32> to vector<256x128xbf16>
    %c0_3 = arith.constant 0 : index
    %c0_4 = arith.constant 0 : index
    %c0_5 = arith.constant 0 : index
    %5 = vector.load %arg2[%c0_3, %c0_4, %c0_5] : memref<9x128x128xbf16, #tpu.memory_space<vmem>>, vector<1x128x128xbf16>
    %6 = vector.shape_cast %5 : vector<1x128x128xbf16> to vector<128x128xbf16>
    %cst_6 = arith.constant dense<0.000000e+00> : vector<256x128xf32>
    %7 = tpu.matmul %4, %6, %cst_6 {dimension_numbers = #tpu.dot_dimension_numbers<[1], [0], [0], [1], [0, 0, 1, 1], [], []>} : vector<256x128xbf16>, vector<128x128xbf16>, vector<256x128xf32> -> vector<256x128xf32>
    %8 = arith.addf %0, %7 : vector<256x128xf32>
    %c0_7 = arith.constant 0 : index
    %c0_8 = arith.constant 0 : index
    %c1 = arith.constant 1 : index
    %c0_9 = arith.constant 0 : index
    %9 = vector.load %arg1[%c0_7, %c0_8, %c1, %c0_9] : memref<1x18x18x128xf32, #tpu.memory_space<vmem>>, vector<1x16x16x128xf32>
    %10 = vector.shape_cast %9 : vector<1x16x16x128xf32> to vector<16x16x128xf32>
    %11 = vector.shape_cast %10 : vector<16x16x128xf32> to vector<256x128xf32>
    %12 = arith.truncf %11 : vector<256x128xf32> to vector<256x128xbf16>
    %c1_10 = arith.constant 1 : index
    %c0_11 = arith.constant 0 : index
    %c0_12 = arith.constant 0 : index
    %13 = vector.load %arg2[%c1_10, %c0_11, %c0_12] : memref<9x128x128xbf16, #tpu.memory_space<vmem>>, vector<1x128x128xbf16>
    %14 = vector.shape_cast %13 : vector<1x128x128xbf16> to vector<128x128xbf16>
    %cst_13 = arith.constant dense<0.000000e+00> : vector<256x128xf32>
    %15 = tpu.matmul %12, %14, %cst_13 {dimension_numbers = #tpu.dot_dimension_numbers<[1], [0], [0], [1], [0, 0, 1, 1], [], []>} : vector<256x128xbf16>, vector<128x128xbf16>, vector<256x128xf32> -> vector<256x128xf32>
    %16 = arith.addf %8, %15 : vector<256x128xf32>
    %c0_14 = arith.constant 0 : index
    %c0_15 = arith.constant 0 : index
    %c2 = arith.constant 2 : index
    %c0_16 = arith.constant 0 : index
    %17 = vector.load %arg1[%c0_14, %c0_15, %c2, %c0_16] : memref<1x18x18x128xf32, #tpu.memory_space<vmem>>, vector<1x16x16x128xf32>
    %18 = vector.shape_cast %17 : vector<1x16x16x128xf32> to vector<16x16x128xf32>
    %19 = vector.shape_cast %18 : vector<16x16x128xf32> to vector<256x128xf32>
    %20 = arith.truncf %19 : vector<256x128xf32> to vector<256x128xbf16>
    %c2_17 = arith.constant 2 : index
    %c0_18 = arith.constant 0 : index
    %c0_19 = arith.constant 0 : index
    %21 = vector.load %arg2[%c2_17, %c0_18, %c0_19] : memref<9x128x128xbf16, #tpu.memory_space<vmem>>, vector<1x128x128xbf16>
    %22 = vector.shape_cast %21 : vector<1x128x128xbf16> to vector<128x128xbf16>
    %cst_20 = arith.constant dense<0.000000e+00> : vector<256x128xf32>
    %23 = tpu.matmul %20, %22, %cst_20 {dimension_numbers = #tpu.dot_dimension_numbers<[1], [0], [0], [1], [0, 0, 1, 1], [], []>} : vector<256x128xbf16>, vector<128x128xbf16>, vector<256x128xf32> -> vector<256x128xf32>
    %24 = arith.addf %16, %23 : vector<256x128xf32>
    %c0_21 = arith.constant 0 : index
    %c1_22 = arith.constant 1 : index
    %c0_23 = arith.constant 0 : index
    %c0_24 = arith.constant 0 : index
    %25 = vector.load %arg1[%c0_21, %c1_22, %c0_23, %c0_24] : memref<1x18x18x128xf32, #tpu.memory_space<vmem>>, vector<1x16x16x128xf32>
    %26 = vector.shape_cast %25 : vector<1x16x16x128xf32> to vector<16x16x128xf32>
    %27 = vector.shape_cast %26 : vector<16x16x128xf32> to vector<256x128xf32>
    %28 = arith.truncf %27 : vector<256x128xf32> to vector<256x128xbf16>
    %c3 = arith.constant 3 : index
    %c0_25 = arith.constant 0 : index
    %c0_26 = arith.constant 0 : index
    %29 = vector.load %arg2[%c3, %c0_25, %c0_26] : memref<9x128x128xbf16, #tpu.memory_space<vmem>>, vector<1x128x128xbf16>
    %30 = vector.shape_cast %29 : vector<1x128x128xbf16> to vector<128x128xbf16>
    %cst_27 = arith.constant dense<0.000000e+00> : vector<256x128xf32>
    %31 = tpu.matmul %28, %30, %cst_27 {dimension_numbers = #tpu.dot_dimension_numbers<[1], [0], [0], [1], [0, 0, 1, 1], [], []>} : vector<256x128xbf16>, vector<128x128xbf16>, vector<256x128xf32> -> vector<256x128xf32>
    %32 = arith.addf %24, %31 : vector<256x128xf32>
    %c0_28 = arith.constant 0 : index
    %c1_29 = arith.constant 1 : index
    %c1_30 = arith.constant 1 : index
    %c0_31 = arith.constant 0 : index
    %33 = vector.load %arg1[%c0_28, %c1_29, %c1_30, %c0_31] : memref<1x18x18x128xf32, #tpu.memory_space<vmem>>, vector<1x16x16x128xf32>
    %34 = vector.shape_cast %33 : vector<1x16x16x128xf32> to vector<16x16x128xf32>
    %35 = vector.shape_cast %34 : vector<16x16x128xf32> to vector<256x128xf32>
    %36 = arith.truncf %35 : vector<256x128xf32> to vector<256x128xbf16>
    %c4 = arith.constant 4 : index
    %c0_32 = arith.constant 0 : index
    %c0_33 = arith.constant 0 : index
    %37 = vector.load %arg2[%c4, %c0_32, %c0_33] : memref<9x128x128xbf16, #tpu.memory_space<vmem>>, vector<1x128x128xbf16>
    %38 = vector.shape_cast %37 : vector<1x128x128xbf16> to vector<128x128xbf16>
    %cst_34 = arith.constant dense<0.000000e+00> : vector<256x128xf32>
    %39 = tpu.matmul %36, %38, %cst_34 {dimension_numbers = #tpu.dot_dimension_numbers<[1], [0], [0], [1], [0, 0, 1, 1], [], []>} : vector<256x128xbf16>, vector<128x128xbf16>, vector<256x128xf32> -> vector<256x128xf32>
    %40 = arith.addf %32, %39 : vector<256x128xf32>
    %c0_35 = arith.constant 0 : index
    %c1_36 = arith.constant 1 : index
    %c2_37 = arith.constant 2 : index
    %c0_38 = arith.constant 0 : index
    %41 = vector.load %arg1[%c0_35, %c1_36, %c2_37, %c0_38] : memref<1x18x18x128xf32, #tpu.memory_space<vmem>>, vector<1x16x16x128xf32>
    %42 = vector.shape_cast %41 : vector<1x16x16x128xf32> to vector<16x16x128xf32>
    %43 = vector.shape_cast %42 : vector<16x16x128xf32> to vector<256x128xf32>
    %44 = arith.truncf %43 : vector<256x128xf32> to vector<256x128xbf16>
    %c5 = arith.constant 5 : index
    %c0_39 = arith.constant 0 : index
    %c0_40 = arith.constant 0 : index
    %45 = vector.load %arg2[%c5, %c0_39, %c0_40] : memref<9x128x128xbf16, #tpu.memory_space<vmem>>, vector<1x128x128xbf16>
    %46 = vector.shape_cast %45 : vector<1x128x128xbf16> to vector<128x128xbf16>
    %cst_41 = arith.constant dense<0.000000e+00> : vector<256x128xf32>
    %47 = tpu.matmul %44, %46, %cst_41 {dimension_numbers = #tpu.dot_dimension_numbers<[1], [0], [0], [1], [0, 0, 1, 1], [], []>} : vector<256x128xbf16>, vector<128x128xbf16>, vector<256x128xf32> -> vector<256x128xf32>
    %48 = arith.addf %40, %47 : vector<256x128xf32>
    %c0_42 = arith.constant 0 : index
    %c2_43 = arith.constant 2 : index
    %c0_44 = arith.constant 0 : index
    %c0_45 = arith.constant 0 : index
    %49 = vector.load %arg1[%c0_42, %c2_43, %c0_44, %c0_45] : memref<1x18x18x128xf32, #tpu.memory_space<vmem>>, vector<1x16x16x128xf32>
    %50 = vector.shape_cast %49 : vector<1x16x16x128xf32> to vector<16x16x128xf32>
    %51 = vector.shape_cast %50 : vector<16x16x128xf32> to vector<256x128xf32>
    %52 = arith.truncf %51 : vector<256x128xf32> to vector<256x128xbf16>
    %c6 = arith.constant 6 : index
    %c0_46 = arith.constant 0 : index
    %c0_47 = arith.constant 0 : index
    %53 = vector.load %arg2[%c6, %c0_46, %c0_47] : memref<9x128x128xbf16, #tpu.memory_space<vmem>>, vector<1x128x128xbf16>
    %54 = vector.shape_cast %53 : vector<1x128x128xbf16> to vector<128x128xbf16>
    %cst_48 = arith.constant dense<0.000000e+00> : vector<256x128xf32>
    %55 = tpu.matmul %52, %54, %cst_48 {dimension_numbers = #tpu.dot_dimension_numbers<[1], [0], [0], [1], [0, 0, 1, 1], [], []>} : vector<256x128xbf16>, vector<128x128xbf16>, vector<256x128xf32> -> vector<256x128xf32>
    %56 = arith.addf %48, %55 : vector<256x128xf32>
    %c0_49 = arith.constant 0 : index
    %c2_50 = arith.constant 2 : index
    %c1_51 = arith.constant 1 : index
    %c0_52 = arith.constant 0 : index
    %57 = vector.load %arg1[%c0_49, %c2_50, %c1_51, %c0_52] : memref<1x18x18x128xf32, #tpu.memory_space<vmem>>, vector<1x16x16x128xf32>
    %58 = vector.shape_cast %57 : vector<1x16x16x128xf32> to vector<16x16x128xf32>
    %59 = vector.shape_cast %58 : vector<16x16x128xf32> to vector<256x128xf32>
    %60 = arith.truncf %59 : vector<256x128xf32> to vector<256x128xbf16>
    %c7 = arith.constant 7 : index
    %c0_53 = arith.constant 0 : index
    %c0_54 = arith.constant 0 : index
    %61 = vector.load %arg2[%c7, %c0_53, %c0_54] : memref<9x128x128xbf16, #tpu.memory_space<vmem>>, vector<1x128x128xbf16>
    %62 = vector.shape_cast %61 : vector<1x128x128xbf16> to vector<128x128xbf16>
    %cst_55 = arith.constant dense<0.000000e+00> : vector<256x128xf32>
    %63 = tpu.matmul %60, %62, %cst_55 {dimension_numbers = #tpu.dot_dimension_numbers<[1], [0], [0], [1], [0, 0, 1, 1], [], []>} : vector<256x128xbf16>, vector<128x128xbf16>, vector<256x128xf32> -> vector<256x128xf32>
    %64 = arith.addf %56, %63 : vector<256x128xf32>
    %c0_56 = arith.constant 0 : index
    %c2_57 = arith.constant 2 : index
    %c2_58 = arith.constant 2 : index
    %c0_59 = arith.constant 0 : index
    %65 = vector.load %arg1[%c0_56, %c2_57, %c2_58, %c0_59] : memref<1x18x18x128xf32, #tpu.memory_space<vmem>>, vector<1x16x16x128xf32>
    %66 = vector.shape_cast %65 : vector<1x16x16x128xf32> to vector<16x16x128xf32>
    %67 = vector.shape_cast %66 : vector<16x16x128xf32> to vector<256x128xf32>
    %68 = arith.truncf %67 : vector<256x128xf32> to vector<256x128xbf16>
    %c8 = arith.constant 8 : index
    %c0_60 = arith.constant 0 : index
    %c0_61 = arith.constant 0 : index
    %69 = vector.load %arg2[%c8, %c0_60, %c0_61] : memref<9x128x128xbf16, #tpu.memory_space<vmem>>, vector<1x128x128xbf16>
    %70 = vector.shape_cast %69 : vector<1x128x128xbf16> to vector<128x128xbf16>
    %cst_62 = arith.constant dense<0.000000e+00> : vector<256x128xf32>
    %71 = tpu.matmul %68, %70, %cst_62 {dimension_numbers = #tpu.dot_dimension_numbers<[1], [0], [0], [1], [0, 0, 1, 1], [], []>} : vector<256x128xbf16>, vector<128x128xbf16>, vector<256x128xf32> -> vector<256x128xf32>
    %72 = arith.addf %64, %71 : vector<256x128xf32>
    %c0_63 = arith.constant 0 : index
    %c0_64 = arith.constant 0 : index
    %73 = vector.load %arg3[%c0_63, %c0_64] : memref<1x128xf32, #tpu.memory_space<vmem>>, vector<1x128xf32>
    %74 = vector.broadcast %73 : vector<1x128xf32> to vector<256x128xf32>
    %75 = arith.addf %72, %74 : vector<256x128xf32>
    %c0_65 = arith.constant 0 : index
    %c0_66 = arith.constant 0 : index
    %76 = vector.load %arg4[%c0_65, %c0_66] : memref<1x128xf32, #tpu.memory_space<vmem>>, vector<1x128xf32>
    %c0_67 = arith.constant 0 : index
    %c0_68 = arith.constant 0 : index
    %77 = vector.load %arg5[%c0_67, %c0_68] : memref<1x128xf32, #tpu.memory_space<vmem>>, vector<1x128xf32>
    %cst_69 = arith.constant dense<0.000000e+00> : vector<128xf32>
    %78 = vector.multi_reduction <add>, %75, %cst_69 [0] : vector<256x128xf32> to vector<128xf32>
    %79 = vector.shape_cast %78 : vector<128xf32> to vector<1x128xf32>
    %80 = arith.mulf %75, %75 : vector<256x128xf32>
    %cst_70 = arith.constant dense<0.000000e+00> : vector<128xf32>
    %81 = vector.multi_reduction <add>, %80, %cst_70 [0] : vector<256x128xf32> to vector<128xf32>
    %82 = vector.shape_cast %81 : vector<128xf32> to vector<1x128xf32>
    %cst_71 = arith.constant 3.906250e-03 : f32
    %83 = vector.broadcast %cst_71 : f32 to vector<1x128xf32>
    %84 = arith.mulf %79, %83 : vector<1x128xf32>
    %cst_72 = arith.constant 3.906250e-03 : f32
    %85 = vector.broadcast %cst_72 : f32 to vector<1x128xf32>
    %86 = arith.mulf %82, %85 : vector<1x128xf32>
    %87 = arith.mulf %84, %84 : vector<1x128xf32>
    %88 = arith.subf %86, %87 : vector<1x128xf32>
    %89 = vector.broadcast %84 : vector<1x128xf32> to vector<256x128xf32>
    %90 = arith.subf %75, %89 : vector<256x128xf32>
    %cst_73 = arith.constant 9.99999974E-6 : f32
    %91 = vector.broadcast %cst_73 : f32 to vector<1x128xf32>
    %92 = arith.addf %88, %91 : vector<1x128xf32>
    %93 = math.rsqrt %92 : vector<1x128xf32>
    %94 = vector.broadcast %93 : vector<1x128xf32> to vector<256x128xf32>
    %95 = arith.mulf %90, %94 : vector<256x128xf32>
    %96 = vector.broadcast %76 : vector<1x128xf32> to vector<256x128xf32>
    %97 = arith.mulf %95, %96 : vector<256x128xf32>
    %98 = vector.broadcast %77 : vector<1x128xf32> to vector<256x128xf32>
    %99 = arith.addf %97, %98 : vector<256x128xf32>
    %cst_74 = arith.constant 0.000000e+00 : f32
    %100 = vector.broadcast %cst_74 : f32 to vector<256x128xf32>
    %101 = arith.maximumf %99, %100 : vector<256x128xf32>
    %102 = vector.shape_cast %101 : vector<256x128xf32> to vector<8x2x16x128xf32>
    %103 = vector.extract_strided_slice %102 {offsets = [0, 0, 0, 0], sizes = [8, 1, 16, 128], strides = [1, 1, 1, 1]} : vector<8x2x16x128xf32> to vector<8x1x16x128xf32>
    %104 = vector.shape_cast %103 : vector<8x1x16x128xf32> to vector<8x16x128xf32>
    %105 = vector.extract_strided_slice %102 {offsets = [0, 1, 0, 0], sizes = [8, 1, 16, 128], strides = [1, 1, 1, 1]} : vector<8x2x16x128xf32> to vector<8x1x16x128xf32>
    %106 = vector.shape_cast %105 : vector<8x1x16x128xf32> to vector<8x16x128xf32>
    %107 = arith.addf %104, %106 : vector<8x16x128xf32>
    %108 = vector.shape_cast %107 : vector<8x16x128xf32> to vector<128x128xf32>
    %c0_75 = arith.constant 0 : index
    %c0_76 = arith.constant 0 : index
    %109 = vector.load %arg7[%c0_75, %c0_76] : memref<128x128xf32, #tpu.memory_space<vmem>>, vector<128x128xf32>
    tpu.vector_store %arg7[%c0_75, %c0_76], %108 {strides = array<i32>} : memref<128x128xf32, #tpu.memory_space<vmem>>, vector<128x128xf32>,
    %c0_77 = arith.constant 0 : index
    %c0_78 = arith.constant 0 : index
    %110 = tpu.strided_load %arg7[%c0_77, %c0_78] {strides = array<i32: 2, 1>} : memref<128x128xf32, #tpu.memory_space<vmem>>, vector<64x128xf32>
    %c1_79 = arith.constant 1 : index
    %c0_80 = arith.constant 0 : index
    %111 = tpu.strided_load %arg7[%c1_79, %c0_80] {strides = array<i32: 2, 1>} : memref<128x128xf32, #tpu.memory_space<vmem>>, vector<64x128xf32>
    %112 = arith.addf %110, %111 : vector<64x128xf32>
    %cst_81 = arith.constant 2.500000e-01 : f32
    %113 = vector.broadcast %cst_81 : f32 to vector<64x128xf32>
    %114 = arith.mulf %112, %113 : vector<64x128xf32>
    %c0_82 = arith.constant 0 : index
    %c0_83 = arith.constant 0 : index
    %c0_84 = arith.constant 0 : index
    %115 = vector.load %arg6[%c0_82, %c0_83, %c0_84] : memref<1x64x128xf32, #tpu.memory_space<vmem>>, vector<1x64x128xf32>
    %116 = vector.shape_cast %115 : vector<1x64x128xf32> to vector<64x128xf32>
    %117 = vector.shape_cast %114 : vector<64x128xf32> to vector<1x64x128xf32>
    tpu.vector_store %arg6[%c0_82, %c0_83, %c0_84], %117 {strides = array<i32>} : memref<1x64x128xf32, #tpu.memory_space<vmem>>, vector<1x64x128xf32>,
    return
  }
  func.func @transform_0(%arg0: i32) -> (i32, i32, i32, i32) {
    %c0_i32 = arith.constant 0 : i32
    %c0_i32_0 = arith.constant 0 : i32
    %c0_i32_1 = arith.constant 0 : i32
    %c0_i32_2 = arith.constant 0 : i32
    return %arg0, %c0_i32, %c0_i32_0, %c0_i32_1 : i32, i32, i32, i32
  }
  func.func @transform_1(%arg0: i32) -> (i32, i32, i32) {
    %c0_i32 = arith.constant 0 : i32
    %c0_i32_0 = arith.constant 0 : i32
    %c0_i32_1 = arith.constant 0 : i32
    %c0_i32_2 = arith.constant 0 : i32
    return %c0_i32, %c0_i32_0, %c0_i32_1 : i32, i32, i32
  }
  func.func @transform_2(%arg0: i32) -> (i32, i32) {
    %c0_i32 = arith.constant 0 : i32
    %c0_i32_0 = arith.constant 0 : i32
    %c0_i32_1 = arith.constant 0 : i32
    return %c0_i32, %c0_i32_0 : i32, i32
  }
  func.func @transform_3(%arg0: i32) -> (i32, i32) {
    %c0_i32 = arith.constant 0 : i32
    %c0_i32_0 = arith.constant 0 : i32
    %c0_i32_1 = arith.constant 0 : i32
    return %c0_i32, %c0_i32_0 : i32, i32
  }
  func.func @transform_4(%arg0: i32) -> (i32, i32) {
    %c0_i32 = arith.constant 0 : i32
    %c0_i32_0 = arith.constant 0 : i32
    %c0_i32_1 = arith.constant 0 : i32
    return %c0_i32, %c0_i32_0 : i32, i32
  }
  func.func @transform_5(%arg0: i32) -> (i32, i32, i32) {
    %c0_i32 = arith.constant 0 : i32
    %c0_i32_0 = arith.constant 0 : i32
    %c0_i32_1 = arith.constant 0 : i32
    return %arg0, %c0_i32, %c0_i32_0 : i32, i32, i32
  }
}

module attributes {stable_mosaic.version = 11 : i64} {
  func.func @conv_kernel(%arg0: i32, %arg1: memref<1x10x10x128xf32, #tpu.memory_space<vmem>>, %arg2: memref<9x128x128xbf16, #tpu.memory_space<vmem>>, %arg3: memref<1x128xf32, #tpu.memory_space<vmem>>, %arg4: memref<1x128xf32, #tpu.memory_space<vmem>>, %arg5: memref<1x128xf32, #tpu.memory_space<vmem>>, %arg6: memref<1x16x128xf32, #tpu.memory_space<vmem>>, %arg7: memref<32x128xf32, #tpu.memory_space<vmem>>) attributes {dimension_semantics = [#tpu.dimension_semantics<parallel>], iteration_bounds = array<i64: 2>, scalar_prefetch = 0 : i64, scratch_operands = 1 : i64, tpu.core_type = #tpu.core_type<tc>, window_params = [{transform_indices = @transform_0, window_bounds = array<i64: 1, 10, 10, 128>}, {pipeline_mode = #tpu.pipeline_mode<synchronous>, transform_indices = @transform_1, window_bounds = array<i64: 9, 128, 128>}, {pipeline_mode = #tpu.pipeline_mode<synchronous>, transform_indices = @transform_2, window_bounds = array<i64: 1, 128>}, {pipeline_mode = #tpu.pipeline_mode<synchronous>, transform_indices = @transform_3, window_bounds = array<i64: 1, 128>}, {pipeline_mode = #tpu.pipeline_mode<synchronous>, transform_indices = @transform_4, window_bounds = array<i64: 1, 128>}, {transform_indices = @transform_5, window_bounds = array<i64: 1, 16, 128>}]} {
    %cst = arith.constant 0.000000e+00 : f32
    %0 = vector.broadcast %cst : f32 to vector<64x128xf32>
    %c0 = arith.constant 0 : index
    %c0_0 = arith.constant 0 : index
    %c0_1 = arith.constant 0 : index
    %c0_2 = arith.constant 0 : index
    %1 = vector.load %arg1[%c0, %c0_0, %c0_1, %c0_2] : memref<1x10x10x128xf32, #tpu.memory_space<vmem>>, vector<1x8x8x128xf32>
    %2 = vector.shape_cast %1 : vector<1x8x8x128xf32> to vector<8x8x128xf32>
    %3 = vector.shape_cast %2 : vector<8x8x128xf32> to vector<64x128xf32>
    %4 = arith.truncf %3 : vector<64x128xf32> to vector<64x128xbf16>
    %c0_3 = arith.constant 0 : index
    %c0_4 = arith.constant 0 : index
    %c0_5 = arith.constant 0 : index
    %5 = vector.load %arg2[%c0_3, %c0_4, %c0_5] : memref<9x128x128xbf16, #tpu.memory_space<vmem>>, vector<1x128x128xbf16>
    %6 = vector.shape_cast %5 : vector<1x128x128xbf16> to vector<128x128xbf16>
    %cst_6 = arith.constant dense<0.000000e+00> : vector<64x128xf32>
    %7 = tpu.matmul %4, %6, %cst_6 {dimension_numbers = #tpu.dot_dimension_numbers<[1], [0], [0], [1], [0, 0, 1, 1], [], []>} : vector<64x128xbf16>, vector<128x128xbf16>, vector<64x128xf32> -> vector<64x128xf32>
    %8 = arith.addf %0, %7 : vector<64x128xf32>
    %c0_7 = arith.constant 0 : index
    %c0_8 = arith.constant 0 : index
    %c1 = arith.constant 1 : index
    %c0_9 = arith.constant 0 : index
    %9 = vector.load %arg1[%c0_7, %c0_8, %c1, %c0_9] : memref<1x10x10x128xf32, #tpu.memory_space<vmem>>, vector<1x8x8x128xf32>
    %10 = vector.shape_cast %9 : vector<1x8x8x128xf32> to vector<8x8x128xf32>
    %11 = vector.shape_cast %10 : vector<8x8x128xf32> to vector<64x128xf32>
    %12 = arith.truncf %11 : vector<64x128xf32> to vector<64x128xbf16>
    %c1_10 = arith.constant 1 : index
    %c0_11 = arith.constant 0 : index
    %c0_12 = arith.constant 0 : index
    %13 = vector.load %arg2[%c1_10, %c0_11, %c0_12] : memref<9x128x128xbf16, #tpu.memory_space<vmem>>, vector<1x128x128xbf16>
    %14 = vector.shape_cast %13 : vector<1x128x128xbf16> to vector<128x128xbf16>
    %cst_13 = arith.constant dense<0.000000e+00> : vector<64x128xf32>
    %15 = tpu.matmul %12, %14, %cst_13 {dimension_numbers = #tpu.dot_dimension_numbers<[1], [0], [0], [1], [0, 0, 1, 1], [], []>} : vector<64x128xbf16>, vector<128x128xbf16>, vector<64x128xf32> -> vector<64x128xf32>
    %16 = arith.addf %8, %15 : vector<64x128xf32>
    %c0_14 = arith.constant 0 : index
    %c0_15 = arith.constant 0 : index
    %c2 = arith.constant 2 : index
    %c0_16 = arith.constant 0 : index
    %17 = vector.load %arg1[%c0_14, %c0_15, %c2, %c0_16] : memref<1x10x10x128xf32, #tpu.memory_space<vmem>>, vector<1x8x8x128xf32>
    %18 = vector.shape_cast %17 : vector<1x8x8x128xf32> to vector<8x8x128xf32>
    %19 = vector.shape_cast %18 : vector<8x8x128xf32> to vector<64x128xf32>
    %20 = arith.truncf %19 : vector<64x128xf32> to vector<64x128xbf16>
    %c2_17 = arith.constant 2 : index
    %c0_18 = arith.constant 0 : index
    %c0_19 = arith.constant 0 : index
    %21 = vector.load %arg2[%c2_17, %c0_18, %c0_19] : memref<9x128x128xbf16, #tpu.memory_space<vmem>>, vector<1x128x128xbf16>
    %22 = vector.shape_cast %21 : vector<1x128x128xbf16> to vector<128x128xbf16>
    %cst_20 = arith.constant dense<0.000000e+00> : vector<64x128xf32>
    %23 = tpu.matmul %20, %22, %cst_20 {dimension_numbers = #tpu.dot_dimension_numbers<[1], [0], [0], [1], [0, 0, 1, 1], [], []>} : vector<64x128xbf16>, vector<128x128xbf16>, vector<64x128xf32> -> vector<64x128xf32>
    %24 = arith.addf %16, %23 : vector<64x128xf32>
    %c0_21 = arith.constant 0 : index
    %c1_22 = arith.constant 1 : index
    %c0_23 = arith.constant 0 : index
    %c0_24 = arith.constant 0 : index
    %25 = vector.load %arg1[%c0_21, %c1_22, %c0_23, %c0_24] : memref<1x10x10x128xf32, #tpu.memory_space<vmem>>, vector<1x8x8x128xf32>
    %26 = vector.shape_cast %25 : vector<1x8x8x128xf32> to vector<8x8x128xf32>
    %27 = vector.shape_cast %26 : vector<8x8x128xf32> to vector<64x128xf32>
    %28 = arith.truncf %27 : vector<64x128xf32> to vector<64x128xbf16>
    %c3 = arith.constant 3 : index
    %c0_25 = arith.constant 0 : index
    %c0_26 = arith.constant 0 : index
    %29 = vector.load %arg2[%c3, %c0_25, %c0_26] : memref<9x128x128xbf16, #tpu.memory_space<vmem>>, vector<1x128x128xbf16>
    %30 = vector.shape_cast %29 : vector<1x128x128xbf16> to vector<128x128xbf16>
    %cst_27 = arith.constant dense<0.000000e+00> : vector<64x128xf32>
    %31 = tpu.matmul %28, %30, %cst_27 {dimension_numbers = #tpu.dot_dimension_numbers<[1], [0], [0], [1], [0, 0, 1, 1], [], []>} : vector<64x128xbf16>, vector<128x128xbf16>, vector<64x128xf32> -> vector<64x128xf32>
    %32 = arith.addf %24, %31 : vector<64x128xf32>
    %c0_28 = arith.constant 0 : index
    %c1_29 = arith.constant 1 : index
    %c1_30 = arith.constant 1 : index
    %c0_31 = arith.constant 0 : index
    %33 = vector.load %arg1[%c0_28, %c1_29, %c1_30, %c0_31] : memref<1x10x10x128xf32, #tpu.memory_space<vmem>>, vector<1x8x8x128xf32>
    %34 = vector.shape_cast %33 : vector<1x8x8x128xf32> to vector<8x8x128xf32>
    %35 = vector.shape_cast %34 : vector<8x8x128xf32> to vector<64x128xf32>
    %36 = arith.truncf %35 : vector<64x128xf32> to vector<64x128xbf16>
    %c4 = arith.constant 4 : index
    %c0_32 = arith.constant 0 : index
    %c0_33 = arith.constant 0 : index
    %37 = vector.load %arg2[%c4, %c0_32, %c0_33] : memref<9x128x128xbf16, #tpu.memory_space<vmem>>, vector<1x128x128xbf16>
    %38 = vector.shape_cast %37 : vector<1x128x128xbf16> to vector<128x128xbf16>
    %cst_34 = arith.constant dense<0.000000e+00> : vector<64x128xf32>
    %39 = tpu.matmul %36, %38, %cst_34 {dimension_numbers = #tpu.dot_dimension_numbers<[1], [0], [0], [1], [0, 0, 1, 1], [], []>} : vector<64x128xbf16>, vector<128x128xbf16>, vector<64x128xf32> -> vector<64x128xf32>
    %40 = arith.addf %32, %39 : vector<64x128xf32>
    %c0_35 = arith.constant 0 : index
    %c1_36 = arith.constant 1 : index
    %c2_37 = arith.constant 2 : index
    %c0_38 = arith.constant 0 : index
    %41 = vector.load %arg1[%c0_35, %c1_36, %c2_37, %c0_38] : memref<1x10x10x128xf32, #tpu.memory_space<vmem>>, vector<1x8x8x128xf32>
    %42 = vector.shape_cast %41 : vector<1x8x8x128xf32> to vector<8x8x128xf32>
    %43 = vector.shape_cast %42 : vector<8x8x128xf32> to vector<64x128xf32>
    %44 = arith.truncf %43 : vector<64x128xf32> to vector<64x128xbf16>
    %c5 = arith.constant 5 : index
    %c0_39 = arith.constant 0 : index
    %c0_40 = arith.constant 0 : index
    %45 = vector.load %arg2[%c5, %c0_39, %c0_40] : memref<9x128x128xbf16, #tpu.memory_space<vmem>>, vector<1x128x128xbf16>
    %46 = vector.shape_cast %45 : vector<1x128x128xbf16> to vector<128x128xbf16>
    %cst_41 = arith.constant dense<0.000000e+00> : vector<64x128xf32>
    %47 = tpu.matmul %44, %46, %cst_41 {dimension_numbers = #tpu.dot_dimension_numbers<[1], [0], [0], [1], [0, 0, 1, 1], [], []>} : vector<64x128xbf16>, vector<128x128xbf16>, vector<64x128xf32> -> vector<64x128xf32>
    %48 = arith.addf %40, %47 : vector<64x128xf32>
    %c0_42 = arith.constant 0 : index
    %c2_43 = arith.constant 2 : index
    %c0_44 = arith.constant 0 : index
    %c0_45 = arith.constant 0 : index
    %49 = vector.load %arg1[%c0_42, %c2_43, %c0_44, %c0_45] : memref<1x10x10x128xf32, #tpu.memory_space<vmem>>, vector<1x8x8x128xf32>
    %50 = vector.shape_cast %49 : vector<1x8x8x128xf32> to vector<8x8x128xf32>
    %51 = vector.shape_cast %50 : vector<8x8x128xf32> to vector<64x128xf32>
    %52 = arith.truncf %51 : vector<64x128xf32> to vector<64x128xbf16>
    %c6 = arith.constant 6 : index
    %c0_46 = arith.constant 0 : index
    %c0_47 = arith.constant 0 : index
    %53 = vector.load %arg2[%c6, %c0_46, %c0_47] : memref<9x128x128xbf16, #tpu.memory_space<vmem>>, vector<1x128x128xbf16>
    %54 = vector.shape_cast %53 : vector<1x128x128xbf16> to vector<128x128xbf16>
    %cst_48 = arith.constant dense<0.000000e+00> : vector<64x128xf32>
    %55 = tpu.matmul %52, %54, %cst_48 {dimension_numbers = #tpu.dot_dimension_numbers<[1], [0], [0], [1], [0, 0, 1, 1], [], []>} : vector<64x128xbf16>, vector<128x128xbf16>, vector<64x128xf32> -> vector<64x128xf32>
    %56 = arith.addf %48, %55 : vector<64x128xf32>
    %c0_49 = arith.constant 0 : index
    %c2_50 = arith.constant 2 : index
    %c1_51 = arith.constant 1 : index
    %c0_52 = arith.constant 0 : index
    %57 = vector.load %arg1[%c0_49, %c2_50, %c1_51, %c0_52] : memref<1x10x10x128xf32, #tpu.memory_space<vmem>>, vector<1x8x8x128xf32>
    %58 = vector.shape_cast %57 : vector<1x8x8x128xf32> to vector<8x8x128xf32>
    %59 = vector.shape_cast %58 : vector<8x8x128xf32> to vector<64x128xf32>
    %60 = arith.truncf %59 : vector<64x128xf32> to vector<64x128xbf16>
    %c7 = arith.constant 7 : index
    %c0_53 = arith.constant 0 : index
    %c0_54 = arith.constant 0 : index
    %61 = vector.load %arg2[%c7, %c0_53, %c0_54] : memref<9x128x128xbf16, #tpu.memory_space<vmem>>, vector<1x128x128xbf16>
    %62 = vector.shape_cast %61 : vector<1x128x128xbf16> to vector<128x128xbf16>
    %cst_55 = arith.constant dense<0.000000e+00> : vector<64x128xf32>
    %63 = tpu.matmul %60, %62, %cst_55 {dimension_numbers = #tpu.dot_dimension_numbers<[1], [0], [0], [1], [0, 0, 1, 1], [], []>} : vector<64x128xbf16>, vector<128x128xbf16>, vector<64x128xf32> -> vector<64x128xf32>
    %64 = arith.addf %56, %63 : vector<64x128xf32>
    %c0_56 = arith.constant 0 : index
    %c2_57 = arith.constant 2 : index
    %c2_58 = arith.constant 2 : index
    %c0_59 = arith.constant 0 : index
    %65 = vector.load %arg1[%c0_56, %c2_57, %c2_58, %c0_59] : memref<1x10x10x128xf32, #tpu.memory_space<vmem>>, vector<1x8x8x128xf32>
    %66 = vector.shape_cast %65 : vector<1x8x8x128xf32> to vector<8x8x128xf32>
    %67 = vector.shape_cast %66 : vector<8x8x128xf32> to vector<64x128xf32>
    %68 = arith.truncf %67 : vector<64x128xf32> to vector<64x128xbf16>
    %c8 = arith.constant 8 : index
    %c0_60 = arith.constant 0 : index
    %c0_61 = arith.constant 0 : index
    %69 = vector.load %arg2[%c8, %c0_60, %c0_61] : memref<9x128x128xbf16, #tpu.memory_space<vmem>>, vector<1x128x128xbf16>
    %70 = vector.shape_cast %69 : vector<1x128x128xbf16> to vector<128x128xbf16>
    %cst_62 = arith.constant dense<0.000000e+00> : vector<64x128xf32>
    %71 = tpu.matmul %68, %70, %cst_62 {dimension_numbers = #tpu.dot_dimension_numbers<[1], [0], [0], [1], [0, 0, 1, 1], [], []>} : vector<64x128xbf16>, vector<128x128xbf16>, vector<64x128xf32> -> vector<64x128xf32>
    %72 = arith.addf %64, %71 : vector<64x128xf32>
    %c0_63 = arith.constant 0 : index
    %c0_64 = arith.constant 0 : index
    %73 = vector.load %arg3[%c0_63, %c0_64] : memref<1x128xf32, #tpu.memory_space<vmem>>, vector<1x128xf32>
    %74 = vector.broadcast %73 : vector<1x128xf32> to vector<64x128xf32>
    %75 = arith.addf %72, %74 : vector<64x128xf32>
    %c0_65 = arith.constant 0 : index
    %c0_66 = arith.constant 0 : index
    %76 = vector.load %arg4[%c0_65, %c0_66] : memref<1x128xf32, #tpu.memory_space<vmem>>, vector<1x128xf32>
    %c0_67 = arith.constant 0 : index
    %c0_68 = arith.constant 0 : index
    %77 = vector.load %arg5[%c0_67, %c0_68] : memref<1x128xf32, #tpu.memory_space<vmem>>, vector<1x128xf32>
    %cst_69 = arith.constant dense<0.000000e+00> : vector<128xf32>
    %78 = vector.multi_reduction <add>, %75, %cst_69 [0] : vector<64x128xf32> to vector<128xf32>
    %79 = vector.shape_cast %78 : vector<128xf32> to vector<1x128xf32>
    %80 = arith.mulf %75, %75 : vector<64x128xf32>
    %cst_70 = arith.constant dense<0.000000e+00> : vector<128xf32>
    %81 = vector.multi_reduction <add>, %80, %cst_70 [0] : vector<64x128xf32> to vector<128xf32>
    %82 = vector.shape_cast %81 : vector<128xf32> to vector<1x128xf32>
    %cst_71 = arith.constant 1.562500e-02 : f32
    %83 = vector.broadcast %cst_71 : f32 to vector<1x128xf32>
    %84 = arith.mulf %79, %83 : vector<1x128xf32>
    %cst_72 = arith.constant 1.562500e-02 : f32
    %85 = vector.broadcast %cst_72 : f32 to vector<1x128xf32>
    %86 = arith.mulf %82, %85 : vector<1x128xf32>
    %87 = arith.mulf %84, %84 : vector<1x128xf32>
    %88 = arith.subf %86, %87 : vector<1x128xf32>
    %89 = vector.broadcast %84 : vector<1x128xf32> to vector<64x128xf32>
    %90 = arith.subf %75, %89 : vector<64x128xf32>
    %cst_73 = arith.constant 9.99999974E-6 : f32
    %91 = vector.broadcast %cst_73 : f32 to vector<1x128xf32>
    %92 = arith.addf %88, %91 : vector<1x128xf32>
    %93 = math.rsqrt %92 : vector<1x128xf32>
    %94 = vector.broadcast %93 : vector<1x128xf32> to vector<64x128xf32>
    %95 = arith.mulf %90, %94 : vector<64x128xf32>
    %96 = vector.broadcast %76 : vector<1x128xf32> to vector<64x128xf32>
    %97 = arith.mulf %95, %96 : vector<64x128xf32>
    %98 = vector.broadcast %77 : vector<1x128xf32> to vector<64x128xf32>
    %99 = arith.addf %97, %98 : vector<64x128xf32>
    %cst_74 = arith.constant 0.000000e+00 : f32
    %100 = vector.broadcast %cst_74 : f32 to vector<64x128xf32>
    %101 = arith.maximumf %99, %100 : vector<64x128xf32>
    %102 = vector.shape_cast %101 : vector<64x128xf32> to vector<4x2x8x128xf32>
    %103 = vector.extract_strided_slice %102 {offsets = [0, 0, 0, 0], sizes = [4, 1, 8, 128], strides = [1, 1, 1, 1]} : vector<4x2x8x128xf32> to vector<4x1x8x128xf32>
    %104 = vector.shape_cast %103 : vector<4x1x8x128xf32> to vector<4x8x128xf32>
    %105 = vector.extract_strided_slice %102 {offsets = [0, 1, 0, 0], sizes = [4, 1, 8, 128], strides = [1, 1, 1, 1]} : vector<4x2x8x128xf32> to vector<4x1x8x128xf32>
    %106 = vector.shape_cast %105 : vector<4x1x8x128xf32> to vector<4x8x128xf32>
    %107 = arith.addf %104, %106 : vector<4x8x128xf32>
    %108 = vector.shape_cast %107 : vector<4x8x128xf32> to vector<32x128xf32>
    %c0_75 = arith.constant 0 : index
    %c0_76 = arith.constant 0 : index
    %109 = vector.load %arg7[%c0_75, %c0_76] : memref<32x128xf32, #tpu.memory_space<vmem>>, vector<32x128xf32>
    tpu.vector_store %arg7[%c0_75, %c0_76], %108 {strides = array<i32>} : memref<32x128xf32, #tpu.memory_space<vmem>>, vector<32x128xf32>,
    %c0_77 = arith.constant 0 : index
    %c0_78 = arith.constant 0 : index
    %110 = tpu.strided_load %arg7[%c0_77, %c0_78] {strides = array<i32: 2, 1>} : memref<32x128xf32, #tpu.memory_space<vmem>>, vector<16x128xf32>
    %c1_79 = arith.constant 1 : index
    %c0_80 = arith.constant 0 : index
    %111 = tpu.strided_load %arg7[%c1_79, %c0_80] {strides = array<i32: 2, 1>} : memref<32x128xf32, #tpu.memory_space<vmem>>, vector<16x128xf32>
    %112 = arith.addf %110, %111 : vector<16x128xf32>
    %cst_81 = arith.constant 2.500000e-01 : f32
    %113 = vector.broadcast %cst_81 : f32 to vector<16x128xf32>
    %114 = arith.mulf %112, %113 : vector<16x128xf32>
    %c0_82 = arith.constant 0 : index
    %c0_83 = arith.constant 0 : index
    %c0_84 = arith.constant 0 : index
    %115 = vector.load %arg6[%c0_82, %c0_83, %c0_84] : memref<1x16x128xf32, #tpu.memory_space<vmem>>, vector<1x16x128xf32>
    %116 = vector.shape_cast %115 : vector<1x16x128xf32> to vector<16x128xf32>
    %117 = vector.shape_cast %114 : vector<16x128xf32> to vector<1x16x128xf32>
    tpu.vector_store %arg6[%c0_82, %c0_83, %c0_84], %117 {strides = array<i32>} : memref<1x16x128xf32, #tpu.memory_space<vmem>>, vector<1x16x128xf32>,
    return
  }
  func.func @transform_0(%arg0: i32) -> (i32, i32, i32, i32) {
    %c0_i32 = arith.constant 0 : i32
    %c0_i32_0 = arith.constant 0 : i32
    %c0_i32_1 = arith.constant 0 : i32
    %c0_i32_2 = arith.constant 0 : i32
    return %arg0, %c0_i32, %c0_i32_0, %c0_i32_1 : i32, i32, i32, i32
  }
  func.func @transform_1(%arg0: i32) -> (i32, i32, i32) {
    %c0_i32 = arith.constant 0 : i32
    %c0_i32_0 = arith.constant 0 : i32
    %c0_i32_1 = arith.constant 0 : i32
    %c0_i32_2 = arith.constant 0 : i32
    return %c0_i32, %c0_i32_0, %c0_i32_1 : i32, i32, i32
  }
  func.func @transform_2(%arg0: i32) -> (i32, i32) {
    %c0_i32 = arith.constant 0 : i32
    %c0_i32_0 = arith.constant 0 : i32
    %c0_i32_1 = arith.constant 0 : i32
    return %c0_i32, %c0_i32_0 : i32, i32
  }
  func.func @transform_3(%arg0: i32) -> (i32, i32) {
    %c0_i32 = arith.constant 0 : i32
    %c0_i32_0 = arith.constant 0 : i32
    %c0_i32_1 = arith.constant 0 : i32
    return %c0_i32, %c0_i32_0 : i32, i32
  }
  func.func @transform_4(%arg0: i32) -> (i32, i32) {
    %c0_i32 = arith.constant 0 : i32
    %c0_i32_0 = arith.constant 0 : i32
    %c0_i32_1 = arith.constant 0 : i32
    return %c0_i32, %c0_i32_0 : i32, i32
  }
  func.func @transform_5(%arg0: i32) -> (i32, i32, i32) {
    %c0_i32 = arith.constant 0 : i32
    %c0_i32_0 = arith.constant 0 : i32
    %c0_i32_1 = arith.constant 0 : i32
    return %arg0, %c0_i32, %c0_i32_0 : i32, i32, i32
  }
}

module attributes {stable_mosaic.version = 11 : i64} {
  func.func @linear_kernel(%arg0: memref<2x2048xf32, #tpu.memory_space<vmem>>, %arg1: memref<2048x128xbf16, #tpu.memory_space<vmem>>, %arg2: memref<1x128xf32, #tpu.memory_space<vmem>>, %arg3: memref<2x128xf32, #tpu.memory_space<vmem>>) attributes {dimension_semantics = [], scalar_prefetch = 0 : i64, scratch_operands = 0 : i64, tpu.core_type = #tpu.core_type<tc>} {
    %c0 = arith.constant 0 : index
    %c0_0 = arith.constant 0 : index
    %0 = vector.load %arg0[%c0, %c0_0] : memref<2x2048xf32, #tpu.memory_space<vmem>>, vector<2x2048xf32>
    %1 = arith.truncf %0 : vector<2x2048xf32> to vector<2x2048xbf16>
    %c0_1 = arith.constant 0 : index
    %c0_2 = arith.constant 0 : index
    %2 = vector.load %arg1[%c0_1, %c0_2] : memref<2048x128xbf16, #tpu.memory_space<vmem>>, vector<2048x128xbf16>
    %cst = arith.constant dense<0.000000e+00> : vector<2x128xf32>
    %3 = tpu.matmul %1, %2, %cst {dimension_numbers = #tpu.dot_dimension_numbers<[1], [0], [0], [1], [0, 0, 1, 1], [], []>} : vector<2x2048xbf16>, vector<2048x128xbf16>, vector<2x128xf32> -> vector<2x128xf32>
    %c0_3 = arith.constant 0 : index
    %c0_4 = arith.constant 0 : index
    %4 = vector.load %arg2[%c0_3, %c0_4] : memref<1x128xf32, #tpu.memory_space<vmem>>, vector<1x128xf32>
    %5 = vector.broadcast %4 : vector<1x128xf32> to vector<2x128xf32>
    %6 = arith.addf %3, %5 : vector<2x128xf32>
    %c0_5 = arith.constant 0 : index
    %c0_6 = arith.constant 0 : index
    %7 = vector.load %arg3[%c0_5, %c0_6] : memref<2x128xf32, #tpu.memory_space<vmem>>, vector<2x128xf32>
    tpu.vector_store %arg3[%c0_5, %c0_6], %6 {strides = array<i32>} : memref<2x128xf32, #tpu.memory_space<vmem>>, vector<2x128xf32>,
    return
  }
}

</mosaic_0001>

<bundles_post_ra>
// kernel: convnet_forward.4
= control target key start
LH: loop header
LB: loop body
LE: loop exit
PB: predicated region body
PF: predicated region fallthrough
CT: control target
= control target key end

     0   :  { %s3366_s18 = smov 0   ;;  %s6953_s0 = inlined_call_operand.vmem [shape: bf16[2,1024,27], index: 0, kind: input, shape index: {}]   ;;  %s6954_s1 = inlined_call_operand.vmem [shape: bf16[27,128], index: 1, kind: input, shape index: {}]   ;;  %s6955_s2 = inlined_call_operand.vmem [shape: f32[1,128], index: 2, kind: input, shape index: {}]   ;;  %s6956_s3 = inlined_call_operand.vmem [shape: f32[1,128], index: 3, kind: input, shape index: {}]   ;;  %s6957_s4 = inlined_call_operand.vmem [shape: f32[1,128], index: 4, kind: input, shape index: {}]   ;;  %s6958_s5 = inlined_call_operand.vmem [shape: f32[2,256,128], index: 5, kind: output, shape index: {}]  }
   0x1 LB: > { %s2901_s19 = sadd.s32 4294967295, %s3333_s18   ;;  %p2905_p0 = scmp.ge.s32.totalorder %s3333_s18, 1  ;;  %s3333_s18 = sphi %s3366_s18, %s15_s18  }
   0x2   : > { %p187_p1 = scmp.lt.s32.totalorder %s3333_s18, 3 }
   0x4   : > { %p188_p2 = pnand %p2905_p0, %p187_p1 }
   0x6   : > { %191 = sbr.rel (%p188_p2) target bundleno = 812 (0x32c), region = 40 }
   0xb   : > { %v3258_v0 = vld [vmem:[%s6954_s1 + $0x8] sm:$0x3f]   ;;  %vm889_vm0 = vcmask 1044480   ;;  %vm890_vm1 = vcmask 1045504   ;;  %v3335_v1 = vmov 65535   ;;  %p215_p3 = scmp.lt.s32.totalorder %s2901_s19, 1 }
   0xc   : > { %v891_v2 = vsel %vm889_vm0, 4294967295, %v3335_v1  ;;  %v3259_v5 = vld [vmem:[%s6954_s1] sm:$0xff]   ;;  %vm696_vm2 = vcmask 220160  }
   0xd   : > { %v892_v3 = vsel %vm890_vm1, %v891_v2, 0  ;;  %s8355_s19 = smov (!%p215_p3, %s2901_s19), 1 }
   0xe   : > { %v894_v4 = vand.u32 %v3258_v0, %v892_v3  ;;  %s3045_s24 = sshll.u32 %s8355_s19, 9  ;;  %s3046_s11 = sshll.u32 %s8355_s19, 8 }
   0xf   : > { %s3386_s27 = scalar_lea.vmem %s6953_s0, %s3045_s24  ;;  %s6916_s14 = scalar_lea.vmem %s6958_s5, %s3046_s11 }
  0x10   : > { %3113 = vmatprep.subr.bf16.mxu0 %v894_v4  ;;  %3245 = vmatprep.subr.bf16.mxu1 %v894_v4  ;;  %v3260_v6 = vld [vmem:[%s3386_s27] sm:$0xff]   ;;  %v3261_v7 = vld [vmem:[%s3386_s27 + $0x8] sm:$0xff]   ;;  %v3262_v8 = vld [vmem:[%s3386_s27 + $0x10] sm:$0xff]  }
  0x11   : > { %3114 = vmatpush3.bf16.msra.mxu0 %v894_v4  ;;  %3247 = vmatpush3.bf16.msra.mxu1 %v894_v4  ;;  %v3263_v9 = vld [vmem:[%s3386_s27 + $0x18] sm:$0xff]   ;;  %v3264_v10 = vld [vmem:[%s3386_s27 + $0x20] sm:$0xff]   ;;  %v3265_v11 = vld [vmem:[%s3386_s27 + $0x28] sm:$0xff]  }
  0x12   : > { %3115 = vmatprep.subr.bf16.mxu0 %v3259_v5  ;;  %3246 = vmatprep.subr.bf16.mxu1 %v3259_v5  ;;  %v3266_v12 = vld [vmem:[%s3386_s27 + $0x30] sm:$0xff]   ;;  %v3267_v13 = vld [vmem:[%s3386_s27 + $0x38] sm:$0xff]   ;;  %v3268_v14 = vld [vmem:[%s3386_s27 + $0x40] sm:$0xff]  }
  0x13   : > { %3117 = vmatprep.mubr.msk.bf16.mxu0 %vm696_vm2, %v3260_v6  ;;  %v3269_v15 = vld [vmem:[%s3386_s27 + $0x48] sm:$0xff]   ;;  %v3292_v16 = vld [vmem:[%s3386_s27 + $0x100] sm:$0xff]   ;;  %v3294_v18 = vld [vmem:[%s3386_s27 + $0x110] sm:$0xff]  }
  0x14   : > { %v3293_v17 = vld [vmem:[%s3386_s27 + $0x108] sm:$0xff]   ;;  %3181 = vmatprep.mubr.msk.bf16.mxu1 %vm696_vm2, %v3292_v16  ;;  %v3270_v19 = vld [vmem:[%s3386_s27 + $0x50] sm:$0xff]   ;;  %v3295_v20 = vld [vmem:[%s3386_s27 + $0x118] sm:$0xff]  }
  0x15   : > { %3116 = vmatpush3.bf16.msra.mxu0 %v3259_v5  ;;  %3248 = vmatpush3.bf16.msra.mxu1 %v3259_v5  ;;  %v3296_v21 = vld [vmem:[%s3386_s27 + $0x120] sm:$0xff]   ;;  %v3271_v22 = vld [vmem:[%s3386_s27 + $0x58] sm:$0xff]   ;;  %v3297_v24 = vld [vmem:[%s3386_s27 + $0x128] sm:$0xff]  }
  0x16   : > { %v3272_v23 = vld [vmem:[%s3386_s27 + $0x60] sm:$0xff]   ;;  %v3273_v25 = vld [vmem:[%s3386_s27 + $0x68] sm:$0xff]   ;;  %v3298_v26 = vld [vmem:[%s3386_s27 + $0x130] sm:$0xff]  }
  0x17   : > { %v3274_v27 = vld [vmem:[%s3386_s27 + $0x70] sm:$0xff]   ;;  %v3299_v28 = vld [vmem:[%s3386_s27 + $0x138] sm:$0xff]   ;;  %v3300_v29 = vld [vmem:[%s3386_s27 + $0x140] sm:$0xff]  }
  0x18   : > { %3118 = vmatmul.mubr.msk.bf16.vlgmr.msra.gmra.mxu0 %vm696_vm2, %v3261_v7  ;;  %3182 = vmatmul.mubr.msk.bf16.vlgmr.msra.gmra.mxu1 %vm696_vm2, %v3293_v17  ;;  %v3275_v30 = vld [vmem:[%s3386_s27 + $0x78] sm:$0xff]   ;;  %v3276_v31 = vld [vmem:[%s3386_s27 + $0x80] sm:$0xff]   ;;  %v3301_v32 = vld [vmem:[%s3386_s27 + $0x148] sm:$0xff]  }
  0x19   : > { %3121 = vmatprep.mubr.msk.bf16.mxu0 %vm696_vm2, %v3262_v8  ;;  %3185 = vmatprep.mubr.msk.bf16.mxu1 %vm696_vm2, %v3294_v18  ;;  %v3302_v33 = vld [vmem:[%s3386_s27 + $0x150] sm:$0xff]   ;;  %v3277_v34 = vld [vmem:[%s3386_s27 + $0x88] sm:$0xff]   ;;  %v3303_v36 = vld [vmem:[%s3386_s27 + $0x158] sm:$0xff]  }
  0x1a   : > { %v3278_v35 = vld [vmem:[%s3386_s27 + $0x90] sm:$0xff]   ;;  %v3304_v37 = vld [vmem:[%s3386_s27 + $0x160] sm:$0xff]   ;;  %v3279_v38 = vld [vmem:[%s3386_s27 + $0x98] sm:$0xff]  }
  0x1b   : > { %v3280_v39 = vld [vmem:[%s3386_s27 + $0xa0] sm:$0xff]   ;;  %v3305_v40 = vld [vmem:[%s3386_s27 + $0x168] sm:$0xff]   ;;  %v3306_v41 = vld [vmem:[%s3386_s27 + $0x170] sm:$0xff]  }
  0x1c   : > { %v3281_v42 = vld [vmem:[%s3386_s27 + $0xa8] sm:$0xff]   ;;  %v3282_v43 = vld [vmem:[%s3386_s27 + $0xb0] sm:$0xff]   ;;  %v3307_v44 = vld [vmem:[%s3386_s27 + $0x178] sm:$0xff]  }
  0x1d   : > { %v3308_v45 = vld [vmem:[%s3386_s27 + $0x180] sm:$0xff]   ;;  %v3283_v46 = vld [vmem:[%s3386_s27 + $0xb8] sm:$0xff]   ;;  %v3309_v48 = vld [vmem:[%s3386_s27 + $0x188] sm:$0xff]  }
  0x1e   : > { %v3284_v47 = vld [vmem:[%s3386_s27 + $0xc0] sm:$0xff]   ;;  %v3310_v49 = vld [vmem:[%s3386_s27 + $0x190] sm:$0xff]   ;;  %v3285_v50 = vld [vmem:[%s3386_s27 + $0xc8] sm:$0xff]  }
  0x1f   : > { %v3286_v51 = vld [vmem:[%s3386_s27 + $0xd0] sm:$0xff]   ;;  %v3311_v52 = vld [vmem:[%s3386_s27 + $0x198] sm:$0xff]   ;;  %v3312_v53 = vld [vmem:[%s3386_s27 + $0x1a0] sm:$0xff]  }
  0x20   : > { %3122 = vmatmul.mubr.msk.bf16.gmra.mxu0 %vm696_vm2, %v3263_v9  ;;  %3186 = vmatmul.mubr.msk.bf16.gmra.mxu1 %vm696_vm2, %v3295_v20  ;;  %v3287_v54 = vld [vmem:[%s3386_s27 + $0xd8] sm:$0xff]   ;;  %v3288_v55 = vld [vmem:[%s3386_s27 + $0xe0] sm:$0xff]   ;;  %v3313_v56 = vld [vmem:[%s3386_s27 + $0x1a8] sm:$0xff]  }
  0x21   : > { %3125 = vmatprep.mubr.msk.bf16.mxu0 %vm696_vm2, %v3264_v10  ;;  %3189 = vmatprep.mubr.msk.bf16.mxu1 %vm696_vm2, %v3296_v21  ;;  %v3314_v57 = vld [vmem:[%s3386_s27 + $0x1b0] sm:$0xff]   ;;  %v3289_v58 = vld [vmem:[%s3386_s27 + $0xe8] sm:$0xff]   ;;  %v3315_v60 = vld [vmem:[%s3386_s27 + $0x1b8] sm:$0xff]  }
  0x22   : > { %v3290_v59 = vld [vmem:[%s3386_s27 + $0xf0] sm:$0xff]   ;;  %v3316_v61 = vld [vmem:[%s3386_s27 + $0x1c0] sm:$0xff]   ;;  %v3291_v62 = vld [vmem:[%s3386_s27 + $0xf8] sm:$0xff]  }
  0x23   : > { %v3317_v63 = vld [vmem:[%s3386_s27 + $0x1c8] sm:$0xff]   ;;  %v3318_v0 = vld [vmem:[%s3386_s27 + $0x1d0] sm:$0xff]   ;;  %v3319_v1 = vld [vmem:[%s3386_s27 + $0x1d8] sm:$0xff]  }
  0x24   : > { %v3320_v2 = vld [vmem:[%s3386_s27 + $0x1e0] sm:$0xff]   ;;  %v3321_v3 = vld [vmem:[%s3386_s27 + $0x1e8] sm:$0xff]   ;;  %v3322_v4 = vld [vmem:[%s3386_s27 + $0x1f0] sm:$0xff]  }
  0x25   : > { %v3323_v5 = vld [vmem:[%s3386_s27 + $0x1f8] sm:$0xff]   ;;  %v3519_v8 = vld [vmem:[%s6955_s2] ss:$0 sm:$0xff] }
  0x28   : > { %3126 = vmatmul.mubr.msk.bf16.gmra.mxu0 %vm696_vm2, %v3265_v11  ;;  %3190 = vmatmul.mubr.msk.bf16.gmra.mxu1 %vm696_vm2, %v3297_v24 }
  0x29   : > { %3129 = vmatprep.mubr.msk.bf16.mxu0 %vm696_vm2, %v3266_v12  ;;  %3193 = vmatprep.mubr.msk.bf16.mxu1 %vm696_vm2, %v3298_v26 }
  0x30   : > { %3130 = vmatmul.mubr.msk.bf16.gmra.mxu0 %vm696_vm2, %v3267_v13  ;;  %3194 = vmatmul.mubr.msk.bf16.gmra.mxu1 %vm696_vm2, %v3299_v28 }
  0x31   : > { %3133 = vmatprep.mubr.msk.bf16.mxu0 %vm696_vm2, %v3268_v14  ;;  %3197 = vmatprep.mubr.msk.bf16.mxu1 %vm696_vm2, %v3300_v29 }
  0x38   : > { %3134 = vmatmul.mubr.msk.bf16.gmra.mxu0 %vm696_vm2, %v3269_v15  ;;  %3198 = vmatmul.mubr.msk.bf16.gmra.mxu1 %vm696_vm2, %v3301_v32 }
  0x39   : > { %3137 = vmatprep.mubr.msk.bf16.mxu0 %vm696_vm2, %v3270_v19  ;;  %3201 = vmatprep.mubr.msk.bf16.mxu1 %vm696_vm2, %v3302_v33 }
  0x40   : > { %3138 = vmatmul.mubr.msk.bf16.gmra.mxu0 %vm696_vm2, %v3271_v22  ;;  %3202 = vmatmul.mubr.msk.bf16.gmra.mxu1 %vm696_vm2, %v3303_v36 }
  0x41   : > { %3141 = vmatprep.mubr.msk.bf16.mxu0 %vm696_vm2, %v3272_v23  ;;  %3205 = vmatprep.mubr.msk.bf16.mxu1 %vm696_vm2, %v3304_v37 }
  0x48   : > { %3142 = vmatmul.mubr.msk.bf16.gmra.mxu0 %vm696_vm2, %v3273_v25  ;;  %3206 = vmatmul.mubr.msk.bf16.gmra.mxu1 %vm696_vm2, %v3305_v40 }
  0x49   : > { %3145 = vmatprep.mubr.msk.bf16.mxu0 %vm696_vm2, %v3274_v27  ;;  %3209 = vmatprep.mubr.msk.bf16.mxu1 %vm696_vm2, %v3306_v41 }
  0x50   : > { %3146 = vmatmul.mubr.msk.bf16.gmra.mxu0 %vm696_vm2, %v3275_v30  ;;  %3210 = vmatmul.mubr.msk.bf16.gmra.mxu1 %vm696_vm2, %v3307_v44 }
  0x51   : > { %3149 = vmatprep.mubr.msk.bf16.mxu0 %vm696_vm2, %v3276_v31  ;;  %3213 = vmatprep.mubr.msk.bf16.mxu1 %vm696_vm2, %v3308_v45 }
  0x58   : > { %3150 = vmatmul.mubr.msk.bf16.gmra.mxu0 %vm696_vm2, %v3277_v34  ;;  %3214 = vmatmul.mubr.msk.bf16.gmra.mxu1 %vm696_vm2, %v3309_v48 }
  0x59   : > { %3153 = vmatprep.mubr.msk.bf16.mxu0 %vm696_vm2, %v3278_v35  ;;  %3217 = vmatprep.mubr.msk.bf16.mxu1 %vm696_vm2, %v3310_v49 }
  0x60   : > { %3154 = vmatmul.mubr.msk.bf16.gmra.mxu0 %vm696_vm2, %v3279_v38  ;;  %3218 = vmatmul.mubr.msk.bf16.gmra.mxu1 %vm696_vm2, %v3311_v52 }
  0x61   : > { %3157 = vmatprep.mubr.msk.bf16.mxu0 %vm696_vm2, %v3280_v39  ;;  %3221 = vmatprep.mubr.msk.bf16.mxu1 %vm696_vm2, %v3312_v53 }
  0x68   : > { %3158 = vmatmul.mubr.msk.bf16.gmra.mxu0 %vm696_vm2, %v3281_v42  ;;  %3222 = vmatmul.mubr.msk.bf16.gmra.mxu1 %vm696_vm2, %v3313_v56 }
  0x69   : > { %3161 = vmatprep.mubr.msk.bf16.mxu0 %vm696_vm2, %v3282_v43  ;;  %3225 = vmatprep.mubr.msk.bf16.mxu1 %vm696_vm2, %v3314_v57 }
  0x70   : > { %3162 = vmatmul.mubr.msk.bf16.gmra.mxu0 %vm696_vm2, %v3283_v46  ;;  %3226 = vmatmul.mubr.msk.bf16.gmra.mxu1 %vm696_vm2, %v3315_v60 }
  0x71   : > { %3165 = vmatprep.mubr.msk.bf16.mxu0 %vm696_vm2, %v3284_v47  ;;  %3229 = vmatprep.mubr.msk.bf16.mxu1 %vm696_vm2, %v3316_v61 }
  0x78   : > { %3166 = vmatmul.mubr.msk.bf16.gmra.mxu0 %vm696_vm2, %v3285_v50  ;;  %3230 = vmatmul.mubr.msk.bf16.gmra.mxu1 %vm696_vm2, %v3317_v63 }
  0x79   : > { %3169 = vmatprep.mubr.msk.bf16.mxu0 %vm696_vm2, %v3286_v51  ;;  %3233 = vmatprep.mubr.msk.bf16.mxu1 %vm696_vm2, %v3318_v0 }
  0x80   : > { %3170 = vmatmul.mubr.msk.bf16.gmra.mxu0 %vm696_vm2, %v3287_v54  ;;  %3234 = vmatmul.mubr.msk.bf16.gmra.mxu1 %vm696_vm2, %v3319_v1 }
  0x81   : > { %3173 = vmatprep.mubr.msk.bf16.mxu0 %vm696_vm2, %v3288_v55  ;;  %3237 = vmatprep.mubr.msk.bf16.mxu1 %vm696_vm2, %v3320_v2 }
  0x88   : > { %3174 = vmatmul.mubr.msk.bf16.gmra.mxu0 %vm696_vm2, %v3289_v58  ;;  %3238 = vmatmul.mubr.msk.bf16.gmra.mxu1 %vm696_vm2, %v3321_v3 }
  0x89   : > { %3177 = vmatprep.mubr.msk.bf16.mxu0 %vm696_vm2, %v3290_v59  ;;  %3241 = vmatprep.mubr.msk.bf16.mxu1 %vm696_vm2, %v3322_v4 }
  0x90   : > { %3178 = vmatmul.mubr.msk.bf16.gmra.mxu0 %vm696_vm2, %v3291_v62  ;;  %3242 = vmatmul.mubr.msk.bf16.gmra.mxu1 %vm696_vm2, %v3323_v5 }
  0xd8   : > { %v3119_v6 = vpop.f32.mrf.mxu0  ;;  %v3596_v4 = vpop.f32.mrf.mxu1 }
  0xd9   : > { %v3525_v12 = vadd.f32 %v3119_v6, %v3519_v8 }
  0xda   : > { %v930_v7 = vpop.f32.mrf.mxu0 }
  0xdb   : > { %v3522_v10 = vadd.f32 %v3519_v8, %v930_v7  ;;  %v1578_v20 = vmul.f32 %v3525_v12, %v3525_v12 }
  0xdc   : > { %v3120_v9 = vpop.f32.mrf.mxu0 }
  0xdd   : > { %v1576_v15 = vmul.f32 %v3522_v10, %v3522_v10  ;;  %v3533_v16 = vadd.f32 %v3120_v9, %v3519_v8 }
  0xde   : > { %v933_v11 = vpop.f32.mrf.mxu0 }
  0xdf   : > { %v3528_v13 = vadd.f32 %v3519_v8, %v933_v11  ;;  %v1579_v25 = vmul.f32 %v3533_v16, %v3533_v16 }
  0xe0   : > { %v3123_v14 = vpop.f32.mrf.mxu0 }
  0xe1   : > { %v1443_v17 = vadd.f32 %v3528_v13, %v3522_v10  ;;  %v1577_v18 = vmul.f32 %v3528_v13, %v3528_v13  ;;  %v3549_v28 = vadd.f32 %v3123_v14, %v3519_v8 }
  0xe2   : > { %v946_v19 = vpop.f32.mrf.mxu0 }
  0xe3   : > { %v1444_v21 = vadd.f32 %v1443_v17, %v3525_v12  ;;  %v1704_v22 = vadd.f32 %v1577_v18, %v1576_v15  ;;  %v3543_v23 = vadd.f32 %v3519_v8, %v946_v19  ;;  %v1582_v40 = vmul.f32 %v3549_v28, %v3549_v28  ;;  %v3607_v15 = vpop.f32.mrf.mxu1 }
  0xe4   : > { %v3124_v24 = vpop.f32.mrf.mxu0 }
  0xe5   : > { %v1445_v26 = vadd.f32 %v1444_v21, %v3533_v16  ;;  %v1705_v27 = vadd.f32 %v1704_v22, %v1578_v20  ;;  %v1580_v32 = vmul.f32 %v3543_v23, %v3543_v23  ;;  %v3558_v36 = vadd.f32 %v3124_v24, %v3519_v8  ;;  %v3615_v22 = vpop.f32.mrf.mxu1 }
  0xe6   : > { %v949_v29 = vpop.f32.mrf.mxu0 }
  0xe7   : > { %v1706_v30 = vadd.f32 %v1705_v27, %v1579_v25  ;;  %v1446_v31 = vadd.f32 %v1445_v26, %v3543_v23  ;;  %v3555_v33 = vadd.f32 %v3519_v8, %v949_v29  ;;  %v1583_v45 = vmul.f32 %v3558_v36, %v3558_v36 }
  0xe8   : > { %v3127_v34 = vpop.f32.mrf.mxu0 }
  0xe9   : > { %v1707_v35 = vadd.f32 %v1706_v30, %v1580_v32  ;;  %v1447_v37 = vadd.f32 %v1446_v31, %v3555_v33  ;;  %v1581_v38 = vmul.f32 %v3555_v33, %v3555_v33  ;;  %v3573_v48 = vadd.f32 %v3127_v34, %v3519_v8  ;;  %v3623_v30 = vpop.f32.mrf.mxu1 }
  0xea   : > { %v962_v39 = vpop.f32.mrf.mxu0 }
  0xeb   : > { %v1448_v41 = vadd.f32 %v1447_v37, %v3549_v28  ;;  %v1708_v42 = vadd.f32 %v1707_v35, %v1581_v38  ;;  %v3567_v43 = vadd.f32 %v3519_v8, %v962_v39  ;;  %v1586_v60 = vmul.f32 %v3573_v48, %v3573_v48  ;;  %v3628_v37 = vpop.f32.mrf.mxu1 }
  0xec   : > { %v3128_v44 = vpop.f32.mrf.mxu0 }
  0xed   : > { %v1449_v46 = vadd.f32 %v1448_v41, %v3558_v36  ;;  %v1709_v47 = vadd.f32 %v1708_v42, %v1582_v40  ;;  %v1584_v52 = vmul.f32 %v3567_v43, %v3567_v43  ;;  %v3582_v56 = vadd.f32 %v3128_v44, %v3519_v8 }
  0xee   : > { %v965_v49 = vpop.f32.mrf.mxu0 }
  0xef   : > { %v1710_v50 = vadd.f32 %v1709_v47, %v1583_v45  ;;  %v1450_v51 = vadd.f32 %v1449_v46, %v3567_v43  ;;  %v3579_v53 = vadd.f32 %v3519_v8, %v965_v49  ;;  %v1587_v1 = vmul.f32 %v3582_v56, %v3582_v56  ;;  %v3639_v45 = vpop.f32.mrf.mxu1 }
  0xf0   : > { %v3131_v54 = vpop.f32.mrf.mxu0 }
  0xf1   : > { %v1711_v55 = vadd.f32 %v1710_v50, %v1584_v52  ;;  %v1451_v57 = vadd.f32 %v1450_v51, %v3579_v53  ;;  %v1585_v58 = vmul.f32 %v3579_v53, %v3579_v53  ;;  %v3599_v5 = vadd.f32 %v3131_v54, %v3519_v8  ;;  %v3647_v52 = vpop.f32.mrf.mxu1 }
  0xf2   : > { %v978_v59 = vpop.f32.mrf.mxu0 }
  0xf3   : > { %v1452_v61 = vadd.f32 %v1451_v57, %v3573_v48  ;;  %v1712_v62 = vadd.f32 %v1711_v55, %v1585_v58  ;;  %v3591_v63 = vadd.f32 %v3519_v8, %v978_v59  ;;  %7261 = vst [vmem:[#allocation4_spill] sm:$0xff] %v3599_v5  ;;  %v1590_v25 = vmul.f32 %v3599_v5, %v3599_v5 }
  0xf4   : > { %v3132_v0 = vpop.f32.mrf.mxu0 }
  0xf5   : > { %7260 = vst [vmem:[#allocation3_spill] sm:$0xff] %v3591_v63  ;;  %v1453_v2 = vadd.f32 %v1452_v61, %v3582_v56  ;;  %v1713_v3 = vadd.f32 %v1712_v62, %v1586_v60  ;;  %v1588_v11 = vmul.f32 %v3591_v63, %v3591_v63  ;;  %v3610_v19 = vadd.f32 %v3132_v0, %v3519_v8  ;;  %v3655_v60 = vpop.f32.mrf.mxu1 }
  0xf6   : > { %v981_v6 = vpop.f32.mrf.mxu0 }
  0xf7   : > { %v1714_v7 = vadd.f32 %v1713_v3, %v1587_v1  ;;  %v1454_v9 = vadd.f32 %v1453_v2, %v3591_v63  ;;  %v3605_v14 = vadd.f32 %v3519_v8, %v981_v6  ;;  %7263 = vst [vmem:[#allocation6_spill] sm:$0xff] %v3610_v19  ;;  %v1591_v32 = vmul.f32 %v3610_v19, %v3610_v19  ;;  %v3660_v2 = vpop.f32.mrf.mxu1 }
  0xf8   : > { %v3135_v17 = vpop.f32.mrf.mxu0 }
  0xf9   : > { %7262 = vst [vmem:[#allocation5_spill] sm:$0xff] %v3605_v14  ;;  %v1715_v18 = vadd.f32 %v1714_v7, %v1588_v11  ;;  %v1455_v20 = vadd.f32 %v1454_v9, %v3605_v14  ;;  %v1589_v21 = vmul.f32 %v3605_v14, %v3605_v14  ;;  %v3631_v38 = vadd.f32 %v3135_v17, %v3519_v8 }
  0xfa   : > { %v994_v24 = vpop.f32.mrf.mxu0 }
  0xfb   : > { %v1456_v26 = vadd.f32 %v1455_v20, %v3599_v5  ;;  %v1716_v27 = vadd.f32 %v1715_v18, %v1589_v21  ;;  %v3621_v29 = vadd.f32 %v3519_v8, %v994_v24  ;;  %7265 = vst [vmem:[#allocation8_spill] sm:$0xff] %v3631_v38  ;;  %v1594_v55 = vmul.f32 %v3631_v38, %v3631_v38  ;;  %v3671_v18 = vpop.f32.mrf.mxu1 }
  0xfc   : > { %v3136_v31 = vpop.f32.mrf.mxu0 }
  0xfd   : > { %7264 = vst [vmem:[#allocation7_spill] sm:$0xff] %v3621_v29  ;;  %v1457_v34 = vadd.f32 %v1456_v26, %v3610_v19  ;;  %v1717_v35 = vadd.f32 %v1716_v27, %v1590_v25  ;;  %v1592_v42 = vmul.f32 %v3621_v29, %v3621_v29  ;;  %v3642_v49 = vadd.f32 %v3136_v31, %v3519_v8  ;;  %v3679_v27 = vpop.f32.mrf.mxu1 }
  0xfe   : > { %v997_v39 = vpop.f32.mrf.mxu0 }
  0xff   : > { %v1718_v40 = vadd.f32 %v1717_v35, %v1591_v32  ;;  %v1458_v41 = vadd.f32 %v1457_v34, %v3621_v29  ;;  %v3637_v44 = vadd.f32 %v3519_v8, %v997_v39  ;;  %7267 = vst [vmem:[#allocation10_spill] sm:$0xff] %v3642_v49  ;;  %v1595_v62 = vmul.f32 %v3642_v49, %v3642_v49 }
 0x100   : > { %v3139_v46 = vpop.f32.mrf.mxu0 }
 0x101   : > { %7266 = vst [vmem:[#allocation9_spill] sm:$0xff] %v3637_v44  ;;  %v1719_v47 = vadd.f32 %v1718_v40, %v1592_v42  ;;  %v1459_v50 = vadd.f32 %v1458_v41, %v3637_v44  ;;  %v1593_v51 = vmul.f32 %v3637_v44, %v3637_v44  ;;  %v3663_v3 = vadd.f32 %v3139_v46, %v3519_v8  ;;  %v3687_v40 = vpop.f32.mrf.mxu1 }
 0x102   : > { %v1010_v54 = vpop.f32.mrf.mxu0 }
 0x103   : > { %v1460_v57 = vadd.f32 %v1459_v50, %v3631_v38  ;;  %v1720_v58 = vadd.f32 %v1719_v47, %v1593_v51  ;;  %v3653_v59 = vadd.f32 %v3519_v8, %v1010_v54  ;;  %7269 = vst [vmem:[#allocation12_spill] sm:$0xff] %v3663_v3  ;;  %v1598_v32 = vmul.f32 %v3663_v3, %v3663_v3  ;;  %v3692_v50 = vpop.f32.mrf.mxu1 }
 0x104   : > { %v3140_v61 = vpop.f32.mrf.mxu0 }
 0x105   : > { %7268 = vst [vmem:[#allocation11_spill] sm:$0xff] %v3653_v59  ;;  %v1461_v0 = vadd.f32 %v1460_v57, %v3642_v49  ;;  %v1721_v1 = vadd.f32 %v1720_v58, %v1594_v55  ;;  %v1596_v11 = vmul.f32 %v3653_v59, %v3653_v59  ;;  %v3674_v24 = vadd.f32 %v3140_v61, %v3519_v8 }
 0x106   : > { %v1013_v6 = vpop.f32.mrf.mxu0 }
 0x107   : > { %v1722_v7 = vadd.f32 %v1721_v1, %v1595_v62  ;;  %v1462_v9 = vadd.f32 %v1461_v0, %v3653_v59  ;;  %v3669_v17 = vadd.f32 %v3519_v8, %v1013_v6  ;;  %7271 = vst [vmem:[#allocation14_spill] sm:$0xff] %v3674_v24  ;;  %v1599_v42 = vmul.f32 %v3674_v24, %v3674_v24  ;;  %v3703_v62 = vpop.f32.mrf.mxu1 }
 0x108   : > { %v3143_v20 = vpop.f32.mrf.mxu0 }
 0x109   : > { %7270 = vst [vmem:[#allocation13_spill] sm:$0xff] %v3669_v17  ;;  %v1723_v21 = vadd.f32 %v1722_v7, %v1596_v11  ;;  %v1463_v25 = vadd.f32 %v1462_v9, %v3669_v17  ;;  %v1597_v26 = vmul.f32 %v3669_v17, %v3669_v17  ;;  %v3695_v51 = vadd.f32 %v3143_v20, %v3519_v8  ;;  %v3711_v11 = vpop.f32.mrf.mxu1 }
 0x10a   : > { %v1026_v31 = vpop.f32.mrf.mxu0 }
 0x10b   : > { %v1464_v34 = vadd.f32 %v1463_v25, %v3663_v3  ;;  %v1724_v35 = vadd.f32 %v1723_v21, %v1597_v26  ;;  %v3685_v39 = vadd.f32 %v3519_v8, %v1026_v31  ;;  %7273 = vst [vmem:[#allocation16_spill] sm:$0xff] %v3695_v51  ;;  %v1602_v21 = vmul.f32 %v3695_v51, %v3695_v51 }
 0x10c   : > { %v3144_v41 = vpop.f32.mrf.mxu0 }
 0x10d   : > { %7272 = vst [vmem:[#allocation15_spill] sm:$0xff] %v3685_v39  ;;  %v1465_v46 = vadd.f32 %v1464_v34, %v3674_v24  ;;  %v1725_v47 = vadd.f32 %v1724_v35, %v1598_v32  ;;  %v1600_v58 = vmul.f32 %v3685_v39, %v3685_v39  ;;  %v3706_v6 = vadd.f32 %v3144_v41, %v3519_v8  ;;  %v3719_v32 = vpop.f32.mrf.mxu1 }
 0x10e   : > { %v1029_v54 = vpop.f32.mrf.mxu0 }
 0x10f   : > { %v1726_v55 = vadd.f32 %v1725_v47, %v1599_v42  ;;  %v1466_v57 = vadd.f32 %v1465_v46, %v3685_v39  ;;  %v3701_v61 = vadd.f32 %v3519_v8, %v1029_v54  ;;  %7275 = vst [vmem:[#allocation18_spill] sm:$0xff] %v3706_v6  ;;  %v1603_v35 = vmul.f32 %v3706_v6, %v3706_v6  ;;  %v3727_v54 = vpop.f32.mrf.mxu1 }
 0x110   : > { %v3147_v0 = vpop.f32.mrf.mxu0 }
 0x111   : > { %7274 = vst [vmem:[#allocation17_spill] sm:$0xff] %v3701_v61  ;;  %v1727_v1 = vadd.f32 %v1726_v55, %v1600_v58  ;;  %v1467_v7 = vadd.f32 %v1466_v57, %v3701_v61  ;;  %v1601_v9 = vmul.f32 %v3701_v61, %v3701_v61  ;;  %v3725_v46 = vadd.f32 %v3147_v0, %v3519_v8 }
 0x112   : > { %v1042_v20 = vpop.f32.mrf.mxu0 }
 0x113   : > { %v1468_v25 = vadd.f32 %v1467_v7, %v3695_v51  ;;  %v1728_v26 = vadd.f32 %v1727_v1, %v1601_v9  ;;  %v3717_v31 = vadd.f32 %v3519_v8, %v1042_v20  ;;  %7277 = vst [vmem:[#allocation20_spill] sm:$0xff] %v3725_v46 }
 0x114   : > { %v3148_v34 = vpop.f32.mrf.mxu0 }
 0x115   : > { %7276 = vst [vmem:[#allocation19_spill] sm:$0xff] %v3717_v31  ;;  %v1469_v41 = vadd.f32 %v1468_v25, %v3706_v6  ;;  %v1729_v42 = vadd.f32 %v1728_v26, %v1602_v21  ;;  %v1604_v58 = vmul.f32 %v3717_v31, %v3717_v31  ;;  %v3736_v20 = vadd.f32 %v3148_v34, %v3519_v8  ;;  %v3741_v26 = vpop.f32.mrf.mxu1 }
 0x116   : > { %v1045_v47 = vpop.f32.mrf.mxu0 }
 0x117   : > { %v1730_v55 = vadd.f32 %v1729_v42, %v1603_v35  ;;  %v1470_v57 = vadd.f32 %v1469_v41, %v3717_v31  ;;  %v3733_v1 = vadd.f32 %v3519_v8, %v1045_v47  ;;  %7279 = vst [vmem:[#allocation22_spill] sm:$0xff] %v3736_v20  ;;  %v1606_v35 = vmul.f32 %v3725_v46, %v3725_v46  ;;  %v3755_v6 = vpop.f32.mrf.mxu1 }
 0x118   : > { %v3151_v7 = vpop.f32.mrf.mxu0  ;;  %v1607_v34 = vmul.f32 %v3736_v20, %v3736_v20 }
 0x119   : > { %7278 = vst [vmem:[#allocation21_spill] sm:$0xff] %v3733_v1  ;;  %v1731_v9 = vadd.f32 %v1730_v55, %v1604_v58  ;;  %v1471_v0 = vadd.f32 %v1470_v57, %v3733_v1  ;;  %v1605_v21 = vmul.f32 %v3733_v1, %v3733_v1  ;;  %v3753_v1 = vadd.f32 %v3151_v7, %v3519_v8 }
 0x11a   : > { %v1058_v25 = vpop.f32.mrf.mxu0 }
 0x11b   : > { %v1472_v41 = vadd.f32 %v1471_v0, %v3725_v46  ;;  %v1732_v42 = vadd.f32 %v1731_v9, %v1605_v21  ;;  %v3747_v47 = vadd.f32 %v3519_v8, %v1058_v25  ;;  %7281 = vst [vmem:[#allocation24_spill] sm:$0xff] %v3753_v1 }
 0x11c   : > { %v3152_v55 = vpop.f32.mrf.mxu0 }
 0x11d   : > { %7280 = vst [vmem:[#allocation23_spill] sm:$0xff] %v3747_v47  ;;  %v1473_v57 = vadd.f32 %v1472_v41, %v3736_v20  ;;  %v1733_v58 = vadd.f32 %v1732_v42, %v1606_v35  ;;  %v1608_v9 = vmul.f32 %v3747_v47, %v3747_v47  ;;  %v3764_v41 = vadd.f32 %v3152_v55, %v3519_v8 }
 0x11e   : > { %v1061_v31 = vpop.f32.mrf.mxu0 }
 0x11f   : > { %v1734_v51 = vadd.f32 %v1733_v58, %v1607_v34  ;;  %v1474_v0 = vadd.f32 %v1473_v57, %v3747_v47  ;;  %v3761_v21 = vadd.f32 %v3519_v8, %v1061_v31  ;;  %7283 = vst [vmem:[#allocation26_spill] sm:$0xff] %v3764_v41  ;;  %v3769_v34 = vpop.f32.mrf.mxu1  ;;  %v1610_v57 = vmul.f32 %v3753_v1, %v3753_v1 }
 0x120   : > { %v3155_v25 = vpop.f32.mrf.mxu0  ;;  %v1611_v55 = vmul.f32 %v3764_v41, %v3764_v41 }
 0x121   : > { %7282 = vst [vmem:[#allocation25_spill] sm:$0xff] %v3761_v21  ;;  %v1735_v46 = vadd.f32 %v1734_v51, %v1608_v9  ;;  %v1475_v7 = vadd.f32 %v1474_v0, %v3761_v21  ;;  %v1609_v35 = vmul.f32 %v3761_v21, %v3761_v21  ;;  %v3781_v21 = vadd.f32 %v3155_v25, %v3519_v8  ;;  %v3783_v61 = vpop.f32.mrf.mxu1 }
 0x122   : > { %v1074_v42 = vpop.f32.mrf.mxu0 }
 0x123   : > { %v1476_v58 = vadd.f32 %v1475_v7, %v3753_v1  ;;  %v1736_v31 = vadd.f32 %v1735_v46, %v1609_v35  ;;  %v3775_v47 = vadd.f32 %v3519_v8, %v1074_v42  ;;  %7285 = vst [vmem:[#allocation28_spill] sm:$0xff] %v3781_v21 }
 0x124   : > { %v3156_v51 = vpop.f32.mrf.mxu0 }
 0x125   : > { %7284 = vst [vmem:[#allocation27_spill] sm:$0xff] %v3775_v47  ;;  %v1477_v0 = vadd.f32 %v1476_v58, %v3764_v41  ;;  %v1737_v9 = vadd.f32 %v1736_v31, %v1610_v57  ;;  %v1612_v46 = vmul.f32 %v3775_v47, %v3775_v47  ;;  %v3792_v58 = vadd.f32 %v3156_v51, %v3519_v8 }
 0x126   : > { %v1077_v20 = vpop.f32.mrf.mxu0 }
 0x127   : > { %v1738_v39 = vadd.f32 %v1737_v9, %v1611_v55  ;;  %v1478_v7 = vadd.f32 %v1477_v0, %v3775_v47  ;;  %v3789_v35 = vadd.f32 %v3519_v8, %v1077_v20  ;;  %7287 = vst [vmem:[#allocation30_spill] sm:$0xff] %v3792_v58  ;;  %v3797_v55 = vpop.f32.mrf.mxu1  ;;  %v1614_v0 = vmul.f32 %v3781_v21, %v3781_v21 }
 0x128   : > { %v3159_v42 = vpop.f32.mrf.mxu0  ;;  %v1615_v51 = vmul.f32 %v3792_v58, %v3792_v58 }
 0x129   : > { %7286 = vst [vmem:[#allocation29_spill] sm:$0xff] %v3789_v35  ;;  %v1739_v1 = vadd.f32 %v1738_v39, %v1612_v46  ;;  %v1479_v25 = vadd.f32 %v1478_v7, %v3789_v35  ;;  %v1613_v57 = vmul.f32 %v3789_v35, %v3789_v35  ;;  %v3809_v35 = vadd.f32 %v3159_v42, %v3519_v8  ;;  %v3811_v24 = vpop.f32.mrf.mxu1 }
 0x12a   : > { %v1090_v31 = vpop.f32.mrf.mxu0 }
 0x12b   : > { %v1480_v9 = vadd.f32 %v1479_v25, %v3781_v21  ;;  %v1740_v20 = vadd.f32 %v1739_v1, %v1613_v57  ;;  %v3803_v47 = vadd.f32 %v3519_v8, %v1090_v31  ;;  %7289 = vst [vmem:[#allocation32_spill] sm:$0xff] %v3809_v35 }
 0x12c   : > { %v3160_v39 = vpop.f32.mrf.mxu0 }
 0x12d   : > { %7288 = vst [vmem:[#allocation31_spill] sm:$0xff] %v3803_v47  ;;  %v1481_v7 = vadd.f32 %v1480_v9, %v3792_v58  ;;  %v1741_v46 = vadd.f32 %v1740_v20, %v1614_v0  ;;  %v1616_v1 = vmul.f32 %v3803_v47, %v3803_v47  ;;  %v3820_v9 = vadd.f32 %v3160_v39, %v3519_v8 }
 0x12e   : > { %v1093_v41 = vpop.f32.mrf.mxu0 }
 0x12f   : > { %v1742_v3 = vadd.f32 %v1741_v46, %v1615_v51  ;;  %v1482_v25 = vadd.f32 %v1481_v7, %v3803_v47  ;;  %v3817_v57 = vadd.f32 %v3519_v8, %v1093_v41  ;;  %7291 = vst [vmem:[#allocation34_spill] sm:$0xff] %v3820_v9  ;;  %v3825_v51 = vpop.f32.mrf.mxu1  ;;  %v1618_v7 = vmul.f32 %v3809_v35, %v3809_v35 }
 0x130   : > { %v3163_v31 = vpop.f32.mrf.mxu0  ;;  %v1619_v39 = vmul.f32 %v3820_v9, %v3820_v9 }
 0x131   : > { %7290 = vst [vmem:[#allocation33_spill] sm:$0xff] %v3817_v57  ;;  %v1743_v21 = vadd.f32 %v1742_v3, %v1616_v1  ;;  %v1483_v42 = vadd.f32 %v1482_v25, %v3817_v57  ;;  %v1617_v0 = vmul.f32 %v3817_v57, %v3817_v57  ;;  %v3837_v57 = vadd.f32 %v3163_v31, %v3519_v8  ;;  %v3839_v17 = vpop.f32.mrf.mxu1 }
 0x132   : > { %v1106_v20 = vpop.f32.mrf.mxu0 }
 0x133   : > { %v1484_v46 = vadd.f32 %v1483_v42, %v3809_v35  ;;  %v1744_v41 = vadd.f32 %v1743_v21, %v1617_v0  ;;  %v3831_v47 = vadd.f32 %v3519_v8, %v1106_v20  ;;  %7293 = vst [vmem:[#allocation36_spill] sm:$0xff] %v3837_v57 }
 0x134   : > { %v3164_v3 = vpop.f32.mrf.mxu0 }
 0x135   : > { %7292 = vst [vmem:[#allocation35_spill] sm:$0xff] %v3831_v47  ;;  %v1485_v25 = vadd.f32 %v1484_v46, %v3820_v9  ;;  %v1745_v1 = vadd.f32 %v1744_v41, %v1618_v7  ;;  %v1620_v21 = vmul.f32 %v3831_v47, %v3831_v47  ;;  %v3848_v46 = vadd.f32 %v3164_v3, %v3519_v8 }
 0x136   : > { %v1109_v58 = vpop.f32.mrf.mxu0 }
 0x137   : > { %v1746_v59 = vadd.f32 %v1745_v1, %v1619_v39  ;;  %v1486_v42 = vadd.f32 %v1485_v25, %v3831_v47  ;;  %v3845_v0 = vadd.f32 %v3519_v8, %v1109_v58  ;;  %7295 = vst [vmem:[#allocation38_spill] sm:$0xff] %v3848_v46  ;;  %v3853_v39 = vpop.f32.mrf.mxu1  ;;  %v1622_v25 = vmul.f32 %v3837_v57, %v3837_v57 }
 0x138   : > { %v3167_v20 = vpop.f32.mrf.mxu0  ;;  %v1623_v3 = vmul.f32 %v3848_v46, %v3848_v46 }
 0x139   : > { %7294 = vst [vmem:[#allocation37_spill] sm:$0xff] %v3845_v0  ;;  %v1747_v35 = vadd.f32 %v1746_v59, %v1620_v21  ;;  %v1487_v31 = vadd.f32 %v1486_v42, %v3845_v0  ;;  %v1621_v7 = vmul.f32 %v3845_v0, %v3845_v0  ;;  %v3865_v0 = vadd.f32 %v3167_v20, %v3519_v8  ;;  %v3867_v49 = vpop.f32.mrf.mxu1 }
 0x13a   : > { %v1122_v41 = vpop.f32.mrf.mxu0 }
 0x13b   : > { %v1488_v1 = vadd.f32 %v1487_v31, %v3837_v57  ;;  %v1748_v58 = vadd.f32 %v1747_v35, %v1621_v7  ;;  %v3859_v47 = vadd.f32 %v3519_v8, %v1122_v41  ;;  %7297 = vst [vmem:[#allocation40_spill] sm:$0xff] %v3865_v0 }
 0x13c   : > { %v3168_v59 = vpop.f32.mrf.mxu0 }
 0x13d   : > { %7296 = vst [vmem:[#allocation39_spill] sm:$0xff] %v3859_v47  ;;  %v1489_v42 = vadd.f32 %v1488_v1, %v3848_v46  ;;  %v1749_v21 = vadd.f32 %v1748_v58, %v1622_v25  ;;  %v1624_v35 = vmul.f32 %v3859_v47, %v3859_v47  ;;  %v3876_v1 = vadd.f32 %v3168_v59, %v3519_v8 }
 0x13e   : > { %v1125_v9 = vpop.f32.mrf.mxu0 }
 0x13f   : > { %v1750_v38 = vadd.f32 %v1749_v21, %v1623_v3  ;;  %v1490_v31 = vadd.f32 %v1489_v42, %v3859_v47  ;;  %v3873_v7 = vadd.f32 %v3519_v8, %v1125_v9  ;;  %7299 = vst [vmem:[#allocation42_spill] sm:$0xff] %v3876_v1  ;;  %v3881_v3 = vpop.f32.mrf.mxu1  ;;  %v1626_v42 = vmul.f32 %v3865_v0, %v3865_v0 }
 0x140   : > { %v3171_v41 = vpop.f32.mrf.mxu0  ;;  %v1627_v59 = vmul.f32 %v3876_v1, %v3876_v1 }
 0x141   : > { %7298 = vst [vmem:[#allocation41_spill] sm:$0xff] %v3873_v7  ;;  %v1751_v57 = vadd.f32 %v1750_v38, %v1624_v35  ;;  %v1491_v20 = vadd.f32 %v1490_v31, %v3873_v7  ;;  %v1625_v25 = vmul.f32 %v3873_v7, %v3873_v7  ;;  %v3893_v7 = vadd.f32 %v3171_v41, %v3519_v8  ;;  %v3895_v44 = vpop.f32.mrf.mxu1 }
 0x142   : > { %v1138_v58 = vpop.f32.mrf.mxu0 }
 0x143   : > { %v1492_v21 = vadd.f32 %v1491_v20, %v3865_v0  ;;  %v1752_v9 = vadd.f32 %v1751_v57, %v1625_v25  ;;  %v3887_v47 = vadd.f32 %v3519_v8, %v1138_v58  ;;  %7301 = vst [vmem:[#allocation44_spill] sm:$0xff] %v3893_v7 }
 0x144   : > { %v3172_v38 = vpop.f32.mrf.mxu0 }
 0x145   : > { %7300 = vst [vmem:[#allocation43_spill] sm:$0xff] %v3887_v47  ;;  %v1493_v31 = vadd.f32 %v1492_v21, %v3876_v1  ;;  %v1753_v35 = vadd.f32 %v1752_v9, %v1626_v42  ;;  %v1628_v57 = vmul.f32 %v3887_v47, %v3887_v47  ;;  %v3904_v21 = vadd.f32 %v3172_v38, %v3519_v8 }
 0x146   : > { %v1141_v46 = vpop.f32.mrf.mxu0 }
 0x147   : > { %v1754_v29 = vadd.f32 %v1753_v35, %v1627_v59  ;;  %v1494_v20 = vadd.f32 %v1493_v31, %v3887_v47  ;;  %v3901_v25 = vadd.f32 %v3519_v8, %v1141_v46  ;;  %7303 = vst [vmem:[#allocation46_spill] sm:$0xff] %v3904_v21  ;;  %v3909_v59 = vpop.f32.mrf.mxu1  ;;  %v1630_v31 = vmul.f32 %v3893_v7, %v3893_v7 }
 0x148   : > { %v3175_v58 = vpop.f32.mrf.mxu0  ;;  %v1631_v38 = vmul.f32 %v3904_v21, %v3904_v21 }
 0x149   : > { %7302 = vst [vmem:[#allocation45_spill] sm:$0xff] %v3901_v25  ;;  %v1755_v0 = vadd.f32 %v1754_v29, %v1628_v57  ;;  %v1495_v41 = vadd.f32 %v1494_v20, %v3901_v25  ;;  %v1629_v42 = vmul.f32 %v3901_v25, %v3901_v25  ;;  %v3921_v25 = vadd.f32 %v3175_v58, %v3519_v8  ;;  %v3923_v19 = vpop.f32.mrf.mxu1 }
 0x14a   : > { %v1154_v9 = vpop.f32.mrf.mxu0 }
 0x14b   : > { %v1496_v35 = vadd.f32 %v1495_v41, %v3893_v7  ;;  %v1756_v46 = vadd.f32 %v1755_v0, %v1629_v42  ;;  %v3915_v47 = vadd.f32 %v3519_v8, %v1154_v9  ;;  %7305 = vst [vmem:[#allocation48_spill] sm:$0xff] %v3921_v25 }
 0x14c   : > { %v3176_v29 = vpop.f32.mrf.mxu0 }
 0x14d   : > { %7304 = vst [vmem:[#allocation47_spill] sm:$0xff] %v3915_v47  ;;  %v1497_v20 = vadd.f32 %v1496_v35, %v3904_v21  ;;  %v1757_v57 = vadd.f32 %v1756_v46, %v1630_v31  ;;  %v1632_v0 = vmul.f32 %v3915_v47, %v3915_v47  ;;  %v3932_v35 = vadd.f32 %v3176_v29, %v3519_v8 }
 0x14e   : > { %v1157_v1 = vpop.f32.mrf.mxu0 }
 0x14f   : > { %v1758_v5 = vadd.f32 %v1757_v57, %v1631_v38  ;;  %v1498_v41 = vadd.f32 %v1497_v20, %v3915_v47  ;;  %v3929_v42 = vadd.f32 %v3519_v8, %v1157_v1  ;;  %v3937_v38 = vpop.f32.mrf.mxu1  ;;  %v1634_v20 = vmul.f32 %v3921_v25, %v3921_v25 }
 0x150   : > { %v3179_v9 = vpop.f32.mrf.mxu0  ;;  %v1635_v29 = vmul.f32 %v3932_v35, %v3932_v35 }
 0x151   : > { %7306 = vst [vmem:[#allocation49_spill] sm:$0xff] %v3929_v42  ;;  %v1759_v7 = vadd.f32 %v1758_v5, %v1632_v0  ;;  %v1499_v58 = vadd.f32 %v1498_v41, %v3929_v42  ;;  %v1633_v31 = vmul.f32 %v3929_v42, %v3929_v42  ;;  %v3949_v42 = vadd.f32 %v3179_v9, %v3519_v8  ;;  %v3951_v14 = vpop.f32.mrf.mxu1 }
 0x152   : > { %v1170_v46 = vpop.f32.mrf.mxu0 }
 0x153   : > { %v1500_v57 = vadd.f32 %v1499_v58, %v3921_v25  ;;  %v1760_v1 = vadd.f32 %v1759_v7, %v1633_v31  ;;  %v3943_v47 = vadd.f32 %v3519_v8, %v1170_v46  ;;  %7308 = vst [vmem:[#allocation51_spill] sm:$0xff] %v3949_v42 }
 0x154   : > { %v3180_v5 = vpop.f32.mrf.mxu0 }
 0x155   : > { %7307 = vst [vmem:[#allocation50_spill] sm:$0xff] %v3943_v47  ;;  %v1501_v41 = vadd.f32 %v1500_v57, %v3932_v35  ;;  %v1761_v0 = vadd.f32 %v1760_v1, %v1634_v20  ;;  %v1636_v7 = vmul.f32 %v3943_v47, %v3943_v47  ;;  %v3960_v25 = vadd.f32 %v3180_v5, %v3519_v8  ;;  %v3965_v57 = vpop.f32.mrf.mxu1 }
 0x156   : > { %v1173_v21 = vpop.f32.mrf.mxu0  ;;  %v1638_v1 = vmul.f32 %v3949_v42, %v3949_v42 }
 0x157   : > { %v1762_v63 = vadd.f32 %v1761_v0, %v1635_v29  ;;  %v1502_v58 = vadd.f32 %v1501_v41, %v3943_v47  ;;  %v3957_v31 = vadd.f32 %v3519_v8, %v1173_v21  ;;  %7310 = vst [vmem:[#allocation53_spill] sm:$0xff] %v3960_v25  ;;  %v3971_v29 = vadd.f32 %v3519_v8, %v3607_v15 }
 0x158   : > { %v1639_v5 = vmul.f32 %v3960_v25, %v3960_v25 }
 0x159   : > { %7309 = vst [vmem:[#allocation52_spill] sm:$0xff] %v3957_v31  ;;  %v1763_v46 = vadd.f32 %v1762_v63, %v1636_v7  ;;  %v1503_v20 = vadd.f32 %v1502_v58, %v3957_v31  ;;  %v1637_v9 = vmul.f32 %v3957_v31, %v3957_v31  ;;  %7311 = vst [vmem:[#allocation54_spill] sm:$0xff] %v3971_v29  ;;  %v3981_v7 = vpop.f32.mrf.mxu1 }
 0x15a   : > { %v3979_v58 = vadd.f32 %v3519_v8, %v3623_v30  ;;  %v3985_v31 = vadd.f32 %v3596_v4, %v3519_v8  ;;  %v1640_v15 = vmul.f32 %v3971_v29, %v3971_v29 }
 0x15b   : > { %v1504_v21 = vadd.f32 %v1503_v20, %v3949_v42  ;;  %v1764_v63 = vadd.f32 %v1763_v46, %v1637_v9 }
 0x15c   : > { %7312 = vst [vmem:[#allocation55_spill] sm:$0xff] %v3979_v58  ;;  %v1642_v4 = vmul.f32 %v3985_v31, %v3985_v31 }
 0x15d   : > { %v1505_v41 = vadd.f32 %v1504_v21, %v3960_v25  ;;  %v1765_v0 = vadd.f32 %v1764_v63, %v1638_v1  ;;  %v3992_v1 = vadd.f32 %v3615_v22, %v3519_v8  ;;  %v1641_v21 = vmul.f32 %v3979_v58, %v3979_v58  ;;  %v3997_v63 = vpop.f32.mrf.mxu1 }
 0x15f   : > { %v1506_v46 = vadd.f32 %v1505_v41, %v3971_v29  ;;  %v1766_v20 = vadd.f32 %v1765_v0, %v1639_v5  ;;  %7313 = vst [vmem:[#allocation56_spill] sm:$0xff] %v3992_v1  ;;  %v4004_v5 = vadd.f32 %v3519_v8, %v3639_v45  ;;  %v1643_v22 = vmul.f32 %v3992_v1, %v3992_v1 }
 0x161   : > { %v1767_v9 = vadd.f32 %v1766_v20, %v1640_v15  ;;  %v1507_v30 = vadd.f32 %v1506_v46, %v3979_v58  ;;  %7314 = vst [vmem:[#allocation57_spill] sm:$0xff] %v4004_v5  ;;  %v4011_v15 = vadd.f32 %v3519_v8, %v3655_v60  ;;  %v4013_v46 = vpop.f32.mrf.mxu1  ;;  %v4017_v20 = vadd.f32 %v3628_v37, %v3519_v8 }
 0x162   : > { %v1644_v45 = vmul.f32 %v4004_v5, %v4004_v5 }
 0x163   : > { %v1508_v25 = vadd.f32 %v1507_v30, %v3985_v31  ;;  %v1768_v42 = vadd.f32 %v1767_v9, %v1641_v21  ;;  %7315 = vst [vmem:[#allocation58_spill] sm:$0xff] %v4017_v20  ;;  %v1646_v37 = vmul.f32 %v4017_v20, %v4017_v20 }
 0x165   : > { %v1769_v41 = vadd.f32 %v1768_v42, %v1642_v4  ;;  %v1509_v0 = vadd.f32 %v1508_v25, %v3992_v1  ;;  %v4024_v25 = vadd.f32 %v3647_v52, %v3519_v8  ;;  %v1645_v42 = vmul.f32 %v4011_v15, %v4011_v15  ;;  %v4029_v4 = vpop.f32.mrf.mxu1 }
 0x167   : > { %v1510_v9 = vadd.f32 %v1509_v0, %v4004_v5  ;;  %v1770_v30 = vadd.f32 %v1769_v41, %v1643_v22  ;;  %7316 = vst [vmem:[#allocation59_spill] sm:$0xff] %v4024_v25  ;;  %v4036_v22 = vadd.f32 %v3519_v8, %v3671_v18  ;;  %v1647_v52 = vmul.f32 %v4024_v25, %v4024_v25 }
 0x169   : > { %v1771_v21 = vadd.f32 %v1770_v30, %v1644_v45  ;;  %v1511_v60 = vadd.f32 %v1510_v9, %v4011_v15  ;;  %7317 = vst [vmem:[#allocation60_spill] sm:$0xff] %v4036_v22  ;;  %v4043_v45 = vadd.f32 %v3519_v8, %v3687_v40  ;;  %v4045_v30 = vpop.f32.mrf.mxu1  ;;  %v1648_v18 = vmul.f32 %v4036_v22, %v4036_v22 }
 0x16b   : > { %v1512_v0 = vadd.f32 %v1511_v60, %v4017_v20  ;;  %v1772_v1 = vadd.f32 %v1771_v21, %v1645_v42  ;;  %v4049_v60 = vadd.f32 %v3660_v2, %v3519_v8 }
 0x16d   : > { %v1773_v41 = vadd.f32 %v1772_v1, %v1646_v37  ;;  %v1513_v9 = vadd.f32 %v1512_v0, %v4024_v25  ;;  %7318 = vst [vmem:[#allocation61_spill] sm:$0xff] %v4049_v60  ;;  %v4056_v1 = vadd.f32 %v3679_v27, %v3519_v8  ;;  %v1649_v37 = vmul.f32 %v4043_v45, %v4043_v45  ;;  %v4061_v0 = vpop.f32.mrf.mxu1 }
 0x16e   : > { %v1650_v2 = vmul.f32 %v4049_v60, %v4049_v60 }
 0x16f   : > { %v1514_v21 = vadd.f32 %v1513_v9, %v4036_v22  ;;  %v1774_v42 = vadd.f32 %v1773_v41, %v1647_v52  ;;  %7319 = vst [vmem:[#allocation62_spill] sm:$0xff] %v4056_v1  ;;  %v4068_v52 = vadd.f32 %v3519_v8, %v3703_v62  ;;  %v1651_v27 = vmul.f32 %v4056_v1, %v4056_v1 }
 0x171   : > { %v1775_v20 = vadd.f32 %v1774_v42, %v1648_v18  ;;  %v1515_v40 = vadd.f32 %v1514_v21, %v4043_v45  ;;  %7320 = vst [vmem:[#allocation63_spill] sm:$0xff] %v4068_v52  ;;  %v4075_v18 = vadd.f32 %v3519_v8, %v3719_v32  ;;  %v4077_v42 = vpop.f32.mrf.mxu1  ;;  %v1652_v62 = vmul.f32 %v4068_v52, %v4068_v52 }
 0x173   : > { %v1516_v9 = vadd.f32 %v1515_v40, %v4049_v60  ;;  %v1776_v25 = vadd.f32 %v1775_v20, %v1649_v37  ;;  %v4081_v40 = vadd.f32 %v3692_v50, %v3519_v8 }
 0x175   : > { %v1777_v41 = vadd.f32 %v1776_v25, %v1650_v2  ;;  %v1517_v21 = vadd.f32 %v1516_v9, %v4056_v1  ;;  %7321 = vst [vmem:[#allocation64_spill] sm:$0xff] %v4081_v40  ;;  %v4088_v25 = vadd.f32 %v3711_v11, %v3519_v8  ;;  %v1653_v2 = vmul.f32 %v4075_v18, %v4075_v18  ;;  %v4093_v9 = vpop.f32.mrf.mxu1 }
 0x176   : > { %v1654_v50 = vmul.f32 %v4081_v40, %v4081_v40 }
 0x177   : > { %v1518_v20 = vadd.f32 %v1517_v21, %v4068_v52  ;;  %v1778_v37 = vadd.f32 %v1777_v41, %v1651_v27  ;;  %7322 = vst [vmem:[#allocation65_spill] sm:$0xff] %v4088_v25  ;;  %v4100_v27 = vadd.f32 %v3519_v8, %v3741_v26  ;;  %v1655_v11 = vmul.f32 %v4088_v25, %v4088_v25 }
 0x179   : > { %v1779_v60 = vadd.f32 %v1778_v37, %v1652_v62  ;;  %v1519_v32 = vadd.f32 %v1518_v20, %v4075_v18  ;;  %7323 = vst [vmem:[#allocation66_spill] sm:$0xff] %v4100_v27  ;;  %v4107_v62 = vadd.f32 %v3519_v8, %v3769_v34  ;;  %v4109_v37 = vpop.f32.mrf.mxu1  ;;  %v1656_v26 = vmul.f32 %v4100_v27, %v4100_v27 }
 0x17b   : > { %v1520_v21 = vadd.f32 %v1519_v32, %v4081_v40  ;;  %v1780_v1 = vadd.f32 %v1779_v60, %v1653_v2  ;;  %v4113_v32 = vadd.f32 %v3727_v54, %v3519_v8 }
 0x17c   : > { %v7419_v58 = vld [vmem:[#allocation64_spill] sm:$0xff] }
 0x17d   : > { %v1781_v41 = vadd.f32 %v1780_v1, %v1654_v50  ;;  %v1521_v20 = vadd.f32 %v1520_v21, %v4088_v25  ;;  %7324 = vst [vmem:[#allocation67_spill] sm:$0xff] %v4113_v32  ;;  %v4120_v1 = vadd.f32 %v3755_v6, %v3519_v8  ;;  %v1657_v50 = vmul.f32 %v4107_v62, %v4107_v62  ;;  %v4125_v21 = vpop.f32.mrf.mxu1 }
 0x17e   : > { %v1658_v54 = vmul.f32 %v4113_v32, %v4113_v32 }
 0x17f   : > { %v1522_v60 = vadd.f32 %v1521_v20, %v4100_v27  ;;  %v1782_v2 = vadd.f32 %v1781_v41, %v1655_v11  ;;  %7325 = vst [vmem:[#allocation68_spill] sm:$0xff] %v4120_v1  ;;  %v4132_v11 = vadd.f32 %v3519_v8, %v3797_v55  ;;  %v1659_v6 = vmul.f32 %v4120_v1, %v4120_v1 }
 0x181   : > { %v1783_v40 = vadd.f32 %v1782_v2, %v1656_v26  ;;  %v1523_v34 = vadd.f32 %v1522_v60, %v4107_v62  ;;  %7326 = vst [vmem:[#allocation69_spill] sm:$0xff] %v4132_v11  ;;  %v4139_v26 = vadd.f32 %v3519_v8, %v3825_v51  ;;  %v4141_v2 = vpop.f32.mrf.mxu1  ;;  %v1660_v55 = vmul.f32 %v4132_v11, %v4132_v11 }
 0x183   : > { %v1524_v20 = vadd.f32 %v1523_v34, %v4113_v32  ;;  %v1784_v25 = vadd.f32 %v1783_v40, %v1657_v50  ;;  %v4145_v34 = vadd.f32 %v3783_v61, %v3519_v8 }
 0x185   : > { %v1785_v41 = vadd.f32 %v1784_v25, %v1658_v54  ;;  %v1525_v60 = vadd.f32 %v1524_v20, %v4120_v1  ;;  %7327 = vst [vmem:[#allocation70_spill] sm:$0xff] %v4145_v34  ;;  %v4152_v25 = vadd.f32 %v3811_v24, %v3519_v8  ;;  %v1661_v54 = vmul.f32 %v4139_v26, %v4139_v26  ;;  %v4157_v20 = vpop.f32.mrf.mxu1 }
 0x186   : > { %v1662_v61 = vmul.f32 %v4145_v34, %v4145_v34 }
 0x187   : > { %v1526_v40 = vadd.f32 %v1525_v60, %v4132_v11  ;;  %v1786_v50 = vadd.f32 %v1785_v41, %v1659_v6  ;;  %7328 = vst [vmem:[#allocation71_spill] sm:$0xff] %v4152_v25  ;;  %v4164_v6 = vadd.f32 %v3519_v8, %v3853_v39  ;;  %v1663_v24 = vmul.f32 %v4152_v25, %v4152_v25 }
 0x189   : > { %v1787_v32 = vadd.f32 %v1786_v50, %v1660_v55  ;;  %v1527_v51 = vadd.f32 %v1526_v40, %v4139_v26  ;;  %7329 = vst [vmem:[#allocation72_spill] sm:$0xff] %v4164_v6  ;;  %v4171_v55 = vadd.f32 %v3519_v8, %v3881_v3  ;;  %v4173_v50 = vpop.f32.mrf.mxu1  ;;  %v1664_v39 = vmul.f32 %v4164_v6, %v4164_v6 }
 0x18b   : > { %v1528_v60 = vadd.f32 %v1527_v51, %v4145_v34  ;;  %v1788_v1 = vadd.f32 %v1787_v32, %v1661_v54  ;;  %v4177_v51 = vadd.f32 %v3839_v17, %v3519_v8 }
 0x18c   : > { %v7423_v22 = vld [vmem:[#allocation70_spill] sm:$0xff] }
 0x18d   : > { %v1789_v41 = vadd.f32 %v1788_v1, %v1662_v61  ;;  %v1529_v40 = vadd.f32 %v1528_v60, %v4152_v25  ;;  %7330 = vst [vmem:[#allocation73_spill] sm:$0xff] %v4177_v51  ;;  %v4184_v1 = vadd.f32 %v3867_v49, %v3519_v8  ;;  %v1665_v61 = vmul.f32 %v4171_v55, %v4171_v55  ;;  %v4189_v60 = vpop.f32.mrf.mxu1 }
 0x18e   : > { %v1666_v17 = vmul.f32 %v4177_v51, %v4177_v51 }
 0x18f   : > { %v1530_v32 = vadd.f32 %v1529_v40, %v4164_v6  ;;  %v1790_v54 = vadd.f32 %v1789_v41, %v1663_v24  ;;  %7331 = vst [vmem:[#allocation74_spill] sm:$0xff] %v4184_v1  ;;  %v4196_v24 = vadd.f32 %v3519_v8, %v3909_v59  ;;  %v1667_v49 = vmul.f32 %v4184_v1, %v4184_v1 }
 0x191   : > { %v1791_v34 = vadd.f32 %v1790_v54, %v1664_v39  ;;  %v1531_v3 = vadd.f32 %v1530_v32, %v4171_v55  ;;  %7332 = vst [vmem:[#allocation75_spill] sm:$0xff] %v4196_v24  ;;  %v4203_v39 = vadd.f32 %v3519_v8, %v3937_v38  ;;  %v4205_v54 = vpop.f32.mrf.mxu1  ;;  %v1668_v59 = vmul.f32 %v4196_v24, %v4196_v24 }
 0x193   : > { %v1532_v40 = vadd.f32 %v1531_v3, %v4177_v51  ;;  %v1792_v25 = vadd.f32 %v1791_v34, %v1665_v61  ;;  %v4209_v3 = vadd.f32 %v3895_v44, %v3519_v8 }
 0x194   : > { %v7425_v52 = vld [vmem:[#allocation73_spill] sm:$0xff] }
 0x195   : > { %v1793_v41 = vadd.f32 %v1792_v25, %v1666_v17  ;;  %v1533_v32 = vadd.f32 %v1532_v40, %v4184_v1  ;;  %7333 = vst [vmem:[#allocation76_spill] sm:$0xff] %v4209_v3  ;;  %v4216_v25 = vadd.f32 %v3923_v19, %v3519_v8  ;;  %v1669_v17 = vmul.f32 %v4203_v39, %v4203_v39  ;;  %v4221_v40 = vpop.f32.mrf.mxu1 }
 0x196   : > { %v1670_v44 = vmul.f32 %v4209_v3, %v4209_v3 }
 0x197   : > { %v1534_v34 = vadd.f32 %v1533_v32, %v4196_v24  ;;  %v1794_v61 = vadd.f32 %v1793_v41, %v1667_v49  ;;  %7334 = vst [vmem:[#allocation77_spill] sm:$0xff] %v4216_v25  ;;  %v4228_v49 = vadd.f32 %v3519_v8, %v3965_v57  ;;  %v1671_v19 = vmul.f32 %v4216_v25, %v4216_v25 }
 0x199   : > { %v1795_v51 = vadd.f32 %v1794_v61, %v1668_v59  ;;  %v1535_v38 = vadd.f32 %v1534_v34, %v4203_v39  ;;  %7335 = vst [vmem:[#allocation78_spill] sm:$0xff] %v4228_v49  ;;  %v4235_v59 = vadd.f32 %v3519_v8, %v3997_v63  ;;  %v4237_v61 = vpop.f32.mrf.mxu1  ;;  %v1672_v57 = vmul.f32 %v4228_v49, %v4228_v49 }
 0x19b   : > { %v1536_v32 = vadd.f32 %v1535_v38, %v4209_v3  ;;  %v1796_v1 = vadd.f32 %v1795_v51, %v1669_v17  ;;  %v4241_v38 = vadd.f32 %v3951_v14, %v3519_v8 }
 0x19d   : > { %v1797_v41 = vadd.f32 %v1796_v1, %v1670_v44  ;;  %v1537_v34 = vadd.f32 %v1536_v32, %v4216_v25  ;;  %7336 = vst [vmem:[#allocation79_spill] sm:$0xff] %v4241_v38  ;;  %v4248_v1 = vadd.f32 %v3981_v7, %v3519_v8  ;;  %v1673_v44 = vmul.f32 %v4235_v59, %v4235_v59  ;;  %v4253_v32 = vpop.f32.mrf.mxu1 }
 0x19e   : > { %v1674_v14 = vmul.f32 %v4241_v38, %v4241_v38  ;;  %v7428_v5 = vld [vmem:[#allocation77_spill] sm:$0xff] }
 0x19f   : > { %v1538_v51 = vadd.f32 %v1537_v34, %v4228_v49  ;;  %v1798_v17 = vadd.f32 %v1797_v41, %v1671_v19  ;;  %7337 = vst [vmem:[#allocation80_spill] sm:$0xff] %v4248_v1  ;;  %v4260_v19 = vadd.f32 %v3519_v8, %v4029_v4  ;;  %v1675_v7 = vmul.f32 %v4248_v1, %v4248_v1 }
 0x1a1   : > { %v1799_v3 = vadd.f32 %v1798_v17, %v1672_v57  ;;  %v1539_v63 = vadd.f32 %v1538_v51, %v4235_v59  ;;  %7338 = vst [vmem:[#allocation81_spill] sm:$0xff] %v4260_v19  ;;  %v4268_v57 = vld [vmem:[%s6955_s2] ss:$0 sm:$0xff] }
 0x1a2   : > { %v4272_v17 = vadd.f32 %v4268_v57, %v4061_v0  ;;  %v4278_v8 = vadd.f32 %v4268_v57, %v4013_v46 }
 0x1a3   : > { %v1540_v34 = vadd.f32 %v1539_v63, %v4241_v38  ;;  %v1800_v25 = vadd.f32 %v1799_v3, %v1673_v44  ;;  %v4274_v3 = vpop.f32.mrf.mxu1 }
 0x1a4   : > { %7339 = vst [vmem:[#allocation82_spill] sm:$0xff] %v4272_v17  ;;  %7340 = vst [vmem:[#allocation83_spill] sm:$0xff] %v4278_v8  ;;  %v1678_v46 = vmul.f32 %v4278_v8, %v4278_v8 }
 0x1a5   : > { %v1801_v41 = vadd.f32 %v1800_v25, %v1674_v14  ;;  %v1541_v51 = vadd.f32 %v1540_v34, %v4248_v1  ;;  %v1676_v25 = vmul.f32 %v4260_v19, %v4260_v19  ;;  %v4285_v14 = vadd.f32 %v4268_v57, %v4045_v30  ;;  %v1394_v1 = vpop.f32.mrf.mxu1 }
 0x1a6   : > { %v1677_v34 = vmul.f32 %v4272_v17, %v4272_v17 }
 0x1a7   : > { %v1542_v4 = vadd.f32 %v1541_v51, %v4260_v19  ;;  %v1802_v63 = vadd.f32 %v1801_v41, %v1675_v7  ;;  %7341 = vst [vmem:[#allocation84_spill] sm:$0xff] %v4285_v14  ;;  %v4295_v7 = vadd.f32 %v4268_v57, %v4093_v9  ;;  %v1679_v30 = vmul.f32 %v4285_v14, %v4285_v14 }
 0x1a9   : > { %v1803_v44 = vadd.f32 %v1802_v63, %v1676_v25  ;;  %v1543_v0 = vadd.f32 %v1542_v4, %v4272_v17  ;;  %7342 = vst [vmem:[#allocation85_spill] sm:$0xff] %v4295_v7  ;;  %v4302_v25 = vadd.f32 %v4268_v57, %v4125_v21  ;;  %v3236_v63 = vpop.f32.mrf.mxu1  ;;  %v4306_v17 = vadd.f32 %v4268_v57, %v4077_v42 }
 0x1aa   : > { %v1680_v9 = vmul.f32 %v4295_v7, %v4295_v7 }
 0x1ab   : > { %v1544_v51 = vadd.f32 %v1543_v0, %v4278_v8  ;;  %v1804_v38 = vadd.f32 %v1803_v44, %v1677_v34  ;;  %7343 = vst [vmem:[#allocation86_spill] sm:$0xff] %v4302_v25  ;;  %v1681_v21 = vmul.f32 %v4302_v25, %v4302_v25  ;;  %v1682_v42 = vmul.f32 %v4306_v17, %v4306_v17  ;;  %v7431_v47 = vld [vmem:[#allocation82_spill] sm:$0xff] }
 0x1ad   : > { %v1805_v41 = vadd.f32 %v1804_v38, %v1678_v46  ;;  %v1545_v4 = vadd.f32 %v1544_v51, %v4285_v14  ;;  %v4313_v38 = vadd.f32 %v4268_v57, %v4109_v37  ;;  %v1397_v51 = vpop.f32.mrf.mxu1 }
 0x1af   : > { %v1546_v44 = vadd.f32 %v1545_v4, %v4295_v7  ;;  %v1806_v0 = vadd.f32 %v1805_v41, %v1679_v30  ;;  %7344 = vst [vmem:[#allocation87_spill] sm:$0xff] %v4313_v38  ;;  %v4323_v30 = vadd.f32 %v4268_v57, %v4157_v20  ;;  %v1683_v37 = vmul.f32 %v4313_v38, %v4313_v38 }
 0x1b1   : > { %v1807_v34 = vadd.f32 %v1806_v0, %v1680_v9  ;;  %v1547_v46 = vadd.f32 %v1546_v44, %v4302_v25  ;;  %7345 = vst [vmem:[#allocation88_spill] sm:$0xff] %v4323_v30  ;;  %v4330_v9 = vadd.f32 %v4268_v57, %v4189_v60  ;;  %v3239_v0 = vpop.f32.mrf.mxu1  ;;  %v4334_v25 = vadd.f32 %v4268_v57, %v4141_v2 }
 0x1b2   : > { %v1684_v20 = vmul.f32 %v4323_v30, %v4323_v30 }
 0x1b3   : > { %v1548_v4 = vadd.f32 %v1547_v46, %v4306_v17  ;;  %v1808_v14 = vadd.f32 %v1807_v34, %v1681_v21  ;;  %7346 = vst [vmem:[#allocation89_spill] sm:$0xff] %v4330_v9  ;;  %7347 = vst [vmem:[#allocation90_spill] sm:$0xff] %v4334_v25  ;;  %v1685_v60 = vmul.f32 %v4330_v9, %v4330_v9 }
 0x1b4   : > { %v1686_v2 = vmul.f32 %v4334_v25, %v4334_v25 }
 0x1b5   : > { %v1809_v41 = vadd.f32 %v1808_v14, %v1682_v42  ;;  %v1549_v44 = vadd.f32 %v1548_v4, %v4313_v38  ;;  %v4341_v14 = vadd.f32 %v4268_v57, %v4173_v50  ;;  %v1410_v4 = vpop.f32.mrf.mxu1 }
 0x1b7   : > { %v1550_v34 = vadd.f32 %v1549_v44, %v4323_v30  ;;  %v1810_v46 = vadd.f32 %v1809_v41, %v1683_v37  ;;  %7348 = vst [vmem:[#allocation91_spill] sm:$0xff] %v4341_v14  ;;  %v4351_v37 = vadd.f32 %v4268_v57, %v4221_v40  ;;  %v1687_v50 = vmul.f32 %v4341_v14, %v4341_v14 }
 0x1b9   : > { %v1811_v21 = vadd.f32 %v1810_v46, %v1684_v20  ;;  %v1551_v42 = vadd.f32 %v1550_v34, %v4330_v9  ;;  %7349 = vst [vmem:[#allocation92_spill] sm:$0xff] %v4351_v37  ;;  %v4358_v20 = vadd.f32 %v4268_v57, %v4253_v32  ;;  %v3240_v46 = vpop.f32.mrf.mxu1  ;;  %v4362_v9 = vadd.f32 %v4268_v57, %v4205_v54 }
 0x1ba   : > { %v1688_v40 = vmul.f32 %v4351_v37, %v4351_v37 }
 0x1bb   : > { %v1552_v44 = vadd.f32 %v1551_v42, %v4334_v25  ;;  %v1812_v38 = vadd.f32 %v1811_v21, %v1685_v60  ;;  %7350 = vst [vmem:[#allocation93_spill] sm:$0xff] %v4358_v20  ;;  %7351 = vst [vmem:[#allocation94_spill] sm:$0xff] %v4362_v9  ;;  %v1689_v32 = vmul.f32 %v4358_v20, %v4358_v20 }
 0x1bc   : > { %v1690_v54 = vmul.f32 %v4362_v9, %v4362_v9 }
 0x1bd   : > { %v1813_v41 = vadd.f32 %v1812_v38, %v1686_v2  ;;  %v1553_v34 = vadd.f32 %v1552_v44, %v4341_v14  ;;  %v4369_v38 = vadd.f32 %v4268_v57, %v4237_v61  ;;  %v1413_v44 = vpop.f32.mrf.mxu1 }
 0x1bf   : > { %v1554_v21 = vadd.f32 %v1553_v34, %v4351_v37  ;;  %v1814_v42 = vadd.f32 %v1813_v41, %v1687_v50  ;;  %7352 = vst [vmem:[#allocation95_spill] sm:$0xff] %v4369_v38  ;;  %v4378_v37 = vadd.f32 %v4268_v57, %v1394_v1  ;;  %v1691_v50 = vmul.f32 %v4369_v38, %v4369_v38 }
 0x1c1   : > { %v1815_v60 = vadd.f32 %v1814_v42, %v1688_v40  ;;  %v1555_v2 = vadd.f32 %v1554_v21, %v4358_v20  ;;  %7353 = vst [vmem:[#allocation96_spill] sm:$0xff] %v4378_v37  ;;  %v4384_v21 = vadd.f32 %v4268_v57, %v1397_v51  ;;  %v3243_v40 = vpop.f32.mrf.mxu1  ;;  %v4388_v42 = vadd.f32 %v4268_v57, %v4274_v3 }
 0x1c2   : > { %v1692_v1 = vmul.f32 %v4378_v37, %v4378_v37 }
 0x1c3   : > { %v1556_v34 = vadd.f32 %v1555_v2, %v4362_v9  ;;  %v1816_v14 = vadd.f32 %v1815_v60, %v1689_v32  ;;  %7354 = vst [vmem:[#allocation97_spill] sm:$0xff] %v4384_v21  ;;  %7355 = vst [vmem:[#allocation98_spill] sm:$0xff] %v4388_v42  ;;  %v4394_v9 = vadd.f32 %v4268_v57, %v3236_v63 }
 0x1c4   : > { %v1693_v51 = vmul.f32 %v4384_v21, %v4384_v21  ;;  %v1694_v3 = vmul.f32 %v4388_v42, %v4388_v42 }
 0x1c5   : > { %v1817_v61 = vadd.f32 %v1816_v14, %v1690_v54  ;;  %v1557_v41 = vadd.f32 %v1556_v34, %v4369_v38  ;;  %7356 = vst [vmem:[#allocation99_spill] sm:$0xff] %v4394_v9  ;;  %v1426_v54 = vpop.f32.mrf.mxu1  ;;  %v4403_v38 = vadd.f32 %v4268_v57, %v1410_v4 }
 0x1c7   : > { %v1558_v2 = vadd.f32 %v1557_v41, %v4378_v37  ;;  %v1818_v60 = vadd.f32 %v1817_v61, %v1691_v50  ;;  %7357 = vst [vmem:[#allocation100_spill] sm:$0xff] %v4403_v38  ;;  %v1695_v50 = vmul.f32 %v4394_v9, %v4394_v9 }
 0x1c9   : > { %v1819_v32 = vadd.f32 %v1818_v60, %v1692_v1  ;;  %v1559_v14 = vadd.f32 %v1558_v2, %v4384_v21  ;;  %v4409_v2 = vadd.f32 %v4268_v57, %v1413_v44  ;;  %v3244_v1 = vpop.f32.mrf.mxu1  ;;  %v4412_v60 = vadd.f32 %v4268_v57, %v3239_v0 }
 0x1ca   : > { %v7440_v49 = vld [vmem:[#allocation97_spill] sm:$0xff] }
 0x1cb   : > { %v1560_v34 = vadd.f32 %v1559_v14, %v4388_v42  ;;  %v1820_v41 = vadd.f32 %v1819_v32, %v1693_v51  ;;  %7358 = vst [vmem:[#allocation101_spill] sm:$0xff] %v4409_v2  ;;  %7359 = vst [vmem:[#allocation102_spill] sm:$0xff] %v4412_v60  ;;  %v1696_v32 = vmul.f32 %v4403_v38, %v4403_v38 }
 0x1cc   : > { %v4418_v51 = vadd.f32 %v4268_v57, %v3240_v46  ;;  %v1697_v44 = vmul.f32 %v4409_v2, %v4409_v2  ;;  %v1698_v0 = vmul.f32 %v4412_v60, %v4412_v60  ;;  %v7442_v29 = vld [vmem:[#allocation99_spill] sm:$0xff] }
 0x1cd   : > { %v1821_v63 = vadd.f32 %v1820_v41, %v1694_v3  ;;  %v1561_v61 = vadd.f32 %v1560_v34, %v4394_v9  ;;  %v1429_v34 = vpop.f32.mrf.mxu1  ;;  %v4427_v9 = vadd.f32 %v4268_v57, %v1426_v54 }
 0x1ce   : > { %7360 = vst [vmem:[#allocation103_spill] sm:$0xff] %v4418_v51  ;;  %v7443_v24 = vld [vmem:[#allocation100_spill] sm:$0xff] }
 0x1cf   : > { %v1562_v21 = vadd.f32 %v1561_v61, %v4403_v38  ;;  %v1822_v4 = vadd.f32 %v1821_v63, %v1695_v50  ;;  %7361 = vst [vmem:[#allocation104_spill] sm:$0xff] %v4427_v9  ;;  %v1699_v50 = vmul.f32 %v4418_v51, %v4418_v51 }
 0x1d1   : > { %v1823_v14 = vadd.f32 %v1822_v4, %v1696_v32  ;;  %v1563_v3 = vadd.f32 %v1562_v21, %v4409_v2  ;;  %v4433_v21 = vadd.f32 %v4268_v57, %v1429_v34  ;;  %v4436_v32 = vadd.f32 %v4268_v57, %v3243_v40 }
 0x1d3   : > { %v1564_v41 = vadd.f32 %v1563_v3, %v4412_v60  ;;  %v1824_v61 = vadd.f32 %v1823_v14, %v1697_v44  ;;  %7362 = vst [vmem:[#allocation105_spill] sm:$0xff] %v4433_v21  ;;  %v1700_v14 = vmul.f32 %v4427_v9, %v4427_v9  ;;  %v4442_v44 = vadd.f32 %v4268_v57, %v3244_v1 }
 0x1d4   : > { %v1702_v34 = vmul.f32 %v4436_v32, %v4436_v32 }
 0x1d5   : > { %v1825_v46 = vadd.f32 %v1824_v61, %v1698_v0  ;;  %v1565_v63 = vadd.f32 %v1564_v41, %v4418_v51  ;;  %v1701_v41 = vmul.f32 %v4433_v21, %v4433_v21  ;;  %v7446_v8 = vld [vmem:[#allocation103_spill] sm:$0xff] }
 0x1d6   : > { %v7447_v25 = vld [vmem:[#allocation104_spill] sm:$0xff] }
 0x1d7   : > { %v1566_v4 = vadd.f32 %v1565_v63, %v4427_v9  ;;  %v1826_v3 = vadd.f32 %v1825_v46, %v1699_v50  ;;  %v1703_v63 = vmul.f32 %v4442_v44, %v4442_v44 }
 0x1d9   : > { %v1827_v54 = vadd.f32 %v1826_v3, %v1700_v14  ;;  %v1567_v0 = vadd.f32 %v1566_v4, %v4433_v21 }
 0x1da   : > { %v7448_v7 = vld [vmem:[#allocation105_spill] sm:$0xff] }
 0x1db   : > { %v1568_v40 = vadd.f32 %v1567_v0, %v4436_v32  ;;  %v1828_v61 = vadd.f32 %v1827_v54, %v1701_v41 }
 0x1dd   : > { %v1569_v50 = vadd.f32 %v1568_v40, %v4442_v44  ;;  %v1829_v46 = vadd.f32 %v1828_v61, %v1702_v34  ;;  %v7430_v40 = vld [vmem:[#allocation80_spill] sm:$0xff] }
 0x1df   : > { %v1570_v14 = vrot.slane %v1569_v50, 4  ;;  %v1830_v57 = vadd.f32 %v1829_v46, %v1703_v63  ;;  %v7366_v63 = vld [vmem:[#allocation6_spill] sm:$0xff]  ;;  %v7444_v46 = vld [vmem:[#allocation101_spill] sm:$0xff] }
 0x1e1   : > { %v1571_v1 = vadd.f32 %v1570_v14, %v1569_v50  ;;  %v1831_v3 = vrot.slane %v1830_v57, 4  ;;  %v7409_v50 = vld [vmem:[#allocation48_spill] sm:$0xff] }
 0x1e2   : > { %v7413_v14 = vld [vmem:[#allocation56_spill] sm:$0xff] }
 0x1e3   : > { %v1572_v4 = vrot.slane %v1571_v1, 2  ;;  %v1832_v9 = vadd.f32 %v1831_v3, %v1830_v57  ;;  %v7363_v57 = vld [vmem:[#allocation3_spill] sm:$0xff]  ;;  %v7364_v3 = vld [vmem:[#allocation5_spill] sm:$0xff] }
 0x1e5   : > { %v1573_v51 = vadd.f32 %v1572_v4, %v1571_v1  ;;  %v1833_v21 = vrot.slane %v1832_v9, 2  ;;  %v7410_v1 = vld [vmem:[#allocation52_spill] sm:$0xff] }
 0x1e7   : > { %v1574_v60 = vrot.slane %v1573_v51, 1  ;;  %v1834_v2 = vadd.f32 %v1833_v21, %v1832_v9  ;;  %v7412_v21 = vld [vmem:[#allocation53_spill] sm:$0xff] }
 0x1e8   : > { %v7417_v9 = vld [vmem:[#allocation61_spill] sm:$0xff] }
 0x1e9   : > { %v1575_v38 = vadd.f32 %v1574_v60, %v1573_v51  ;;  %v1835_v42 = vrot.slane %v1834_v2, 1  ;;  %v7415_v51 = vld [vmem:[#allocation58_spill] sm:$0xff]  ;;  %v7416_v60 = vld [vmem:[#allocation59_spill] sm:$0xff] }
 0x1eb   : > { %v1836_v0 = vadd.f32 %v1835_v42, %v1834_v2  ;;  %v4453_v54 = vmul.f32 0.0009765625, %v1575_v38  ;;  %v7403_v2 = vld [vmem:[#allocation43_spill] sm:$0xff]  ;;  %v7404_v38 = vld [vmem:[#allocation45_spill] sm:$0xff] }
 0x1ec   : > { %v7408_v42 = vld [vmem:[#allocation49_spill] sm:$0xff] }
 0x1ed   : > { %v4455_v41 = vmul.f32 0.0009765625, %v1836_v0  ;;  %v4459_v34 = vmul.f32 %v4453_v54, %v4453_v54  ;;  %v7365_v0 = vld [vmem:[#allocation4_spill] sm:$0xff]  ;;  %v7449_v27 = vsub.f32 %v3522_v10, %v4453_v54  ;;  %v7450_v37 = vsub.f32 %v3528_v13, %v4453_v54 }
 0x1ee   : > { %v7451_v11 = vsub.f32 %v3525_v12, %v4453_v54  ;;  %v7452_v19 = vsub.f32 %v3533_v16, %v4453_v54 }
 0x1ef   : > { %v7414_v61 = vsub.f32 %v4455_v41, %v4459_v34  ;;  %v7418_v41 = vld [vmem:[#allocation62_spill] sm:$0xff]  ;;  %v7432_v34 = vld [vmem:[#allocation84_spill] sm:$0xff] }
 0x1f1   : > { %v1969_v4 = vadd.f32 1e-05, %v7414_v61 }
 0x1f3   : > { %3324 = vrsqrt.f32 %v1969_v4  ;;  %v7421_v4 = vld [vmem:[#allocation67_spill] sm:$0xff] }
 0x200   : > { %v4714_v6 = vpop.eup %3324 }
 0x201   : > { %v4728_v30 = vmul.f32 %v4714_v6, %v7449_v27  ;;  %v4734_v61 = vmul.f32 %v4714_v6, %v7450_v37  ;;  %v4740_v20 = vmul.f32 %v4714_v6, %v7451_v11  ;;  %v4746_v10 = vmul.f32 %v4714_v6, %v7452_v19 }
 0x202   : > { %v7453_v27 = vsub.f32 %v3543_v23, %v4453_v54  ;;  %v7454_v37 = vsub.f32 %v3555_v33, %v4453_v54  ;;  %v7455_v11 = vsub.f32 %v3549_v28, %v4453_v54  ;;  %v7456_v19 = vsub.f32 %v3558_v36, %v4453_v54 }
 0x204   : > { %v4752_v13 = vmul.f32 %v4714_v6, %v7453_v27  ;;  %v4758_v12 = vmul.f32 %v4714_v6, %v7454_v37  ;;  %v4764_v16 = vmul.f32 %v4714_v6, %v7455_v11  ;;  %v4770_v23 = vmul.f32 %v4714_v6, %v7456_v19 }
 0x205   : > { %v7457_v27 = vsub.f32 %v3567_v43, %v4453_v54  ;;  %v7458_v37 = vsub.f32 %v3579_v53, %v4453_v54  ;;  %v7459_v11 = vsub.f32 %v3573_v48, %v4453_v54  ;;  %v7460_v19 = vsub.f32 %v3582_v56, %v4453_v54 }
 0x207   : > { %v4776_v33 = vmul.f32 %v4714_v6, %v7457_v27  ;;  %v4782_v28 = vmul.f32 %v4714_v6, %v7458_v37  ;;  %v4788_v36 = vmul.f32 %v4714_v6, %v7459_v11  ;;  %v4794_v43 = vmul.f32 %v4714_v6, %v7460_v19 }
 0x208   : > { %v7461_v27 = vsub.f32 %v7363_v57, %v4453_v54  ;;  %v7463_v37 = vsub.f32 %v7364_v3, %v4453_v54  ;;  %v7465_v11 = vsub.f32 %v7365_v0, %v4453_v54  ;;  %v7467_v19 = vsub.f32 %v7366_v63, %v4453_v54 }
 0x20a   : > { %v4800_v53 = vmul.f32 %v4714_v6, %v7461_v27  ;;  %v4806_v48 = vmul.f32 %v4714_v6, %v7463_v37  ;;  %v4812_v56 = vmul.f32 %v4714_v6, %v7465_v11  ;;  %v4818_v57 = vmul.f32 %v4714_v6, %v7467_v19  ;;  %v7469_v27 = vld [vmem:[#allocation7_spill] sm:$0xff]  ;;  %v7472_v37 = vld [vmem:[#allocation9_spill] sm:$0xff]  ;;  %v7475_v11 = vld [vmem:[#allocation8_spill] sm:$0xff] }
 0x20b   : > { %v7478_v19 = vld [vmem:[#allocation10_spill] sm:$0xff] }
 0x20c   : > { %7462 = vst [vmem:[#allocation3_spill] sm:$0xff] %v4800_v53  ;;  %7464 = vst [vmem:[#allocation5_spill] sm:$0xff] %v4806_v48  ;;  %v7470_v53 = vsub.f32 %v7469_v27, %v4453_v54  ;;  %v7473_v48 = vsub.f32 %v7472_v37, %v4453_v54 }
 0x20d   : > { %7466 = vst [vmem:[#allocation4_spill] sm:$0xff] %v4812_v56  ;;  %7468 = vst [vmem:[#allocation6_spill] sm:$0xff] %v4818_v57  ;;  %v7476_v56 = vsub.f32 %v7475_v11, %v4453_v54  ;;  %v7479_v57 = vsub.f32 %v7478_v19, %v4453_v54 }
 0x20e   : > { %v4824_v3 = vmul.f32 %v4714_v6, %v7470_v53  ;;  %v4830_v0 = vmul.f32 %v4714_v6, %v7473_v48  ;;  %v7481_v53 = vld [vmem:[#allocation11_spill] sm:$0xff]  ;;  %v7484_v48 = vld [vmem:[#allocation13_spill] sm:$0xff] }
 0x20f   : > { %v4836_v63 = vmul.f32 %v4714_v6, %v7476_v56  ;;  %v4842_v27 = vmul.f32 %v4714_v6, %v7479_v57  ;;  %v7487_v56 = vld [vmem:[#allocation12_spill] sm:$0xff]  ;;  %v7490_v57 = vld [vmem:[#allocation14_spill] sm:$0xff] }
 0x210   : > { %7471 = vst [vmem:[#allocation43_spill] sm:$0xff] %v4824_v3  ;;  %7474 = vst [vmem:[#allocation45_spill] sm:$0xff] %v4830_v0  ;;  %v7482_v3 = vsub.f32 %v7481_v53, %v4453_v54  ;;  %v7485_v0 = vsub.f32 %v7484_v48, %v4453_v54 }
 0x211   : > { %7477 = vst [vmem:[#allocation49_spill] sm:$0xff] %v4836_v63  ;;  %7480 = vst [vmem:[#allocation48_spill] sm:$0xff] %v4842_v27  ;;  %v7488_v63 = vsub.f32 %v7487_v56, %v4453_v54  ;;  %v7491_v27 = vsub.f32 %v7490_v57, %v4453_v54 }
 0x212   : > { %v4848_v37 = vmul.f32 %v4714_v6, %v7482_v3  ;;  %v4854_v11 = vmul.f32 %v4714_v6, %v7485_v0  ;;  %v7493_v3 = vld [vmem:[#allocation15_spill] sm:$0xff]  ;;  %v7496_v0 = vld [vmem:[#allocation17_spill] sm:$0xff] }
 0x213   : > { %v4860_v19 = vmul.f32 %v4714_v6, %v7488_v63  ;;  %v4866_v53 = vmul.f32 %v4714_v6, %v7491_v27  ;;  %v7499_v63 = vld [vmem:[#allocation16_spill] sm:$0xff]  ;;  %v7502_v27 = vld [vmem:[#allocation18_spill] sm:$0xff] }
 0x214   : > { %7483 = vst [vmem:[#allocation52_spill] sm:$0xff] %v4848_v37  ;;  %7486 = vst [vmem:[#allocation53_spill] sm:$0xff] %v4854_v11  ;;  %v7494_v37 = vsub.f32 %v7493_v3, %v4453_v54  ;;  %v7497_v11 = vsub.f32 %v7496_v0, %v4453_v54 }
 0x215   : > { %7489 = vst [vmem:[#allocation56_spill] sm:$0xff] %v4860_v19  ;;  %7492 = vst [vmem:[#allocation58_spill] sm:$0xff] %v4866_v53  ;;  %v7500_v19 = vsub.f32 %v7499_v63, %v4453_v54  ;;  %v7503_v53 = vsub.f32 %v7502_v27, %v4453_v54 }
 0x216   : > { %v4872_v48 = vmul.f32 %v4714_v6, %v7494_v37  ;;  %v4878_v56 = vmul.f32 %v4714_v6, %v7497_v11  ;;  %v7505_v37 = vld [vmem:[#allocation19_spill] sm:$0xff]  ;;  %v7508_v11 = vld [vmem:[#allocation21_spill] sm:$0xff] }
 0x217   : > { %v4884_v57 = vmul.f32 %v4714_v6, %v7500_v19  ;;  %v4890_v3 = vmul.f32 %v4714_v6, %v7503_v53  ;;  %v7511_v19 = vld [vmem:[#allocation20_spill] sm:$0xff]  ;;  %v7514_v53 = vld [vmem:[#allocation22_spill] sm:$0xff] }
 0x218   : > { %7495 = vst [vmem:[#allocation59_spill] sm:$0xff] %v4872_v48  ;;  %7498 = vst [vmem:[#allocation61_spill] sm:$0xff] %v4878_v56  ;;  %v7506_v48 = vsub.f32 %v7505_v37, %v4453_v54  ;;  %v7509_v56 = vsub.f32 %v7508_v11, %v4453_v54 }
 0x219   : > { %7501 = vst [vmem:[#allocation62_spill] sm:$0xff] %v4884_v57  ;;  %7504 = vst [vmem:[#allocation64_spill] sm:$0xff] %v4890_v3  ;;  %v7512_v57 = vsub.f32 %v7511_v19, %v4453_v54  ;;  %v7515_v3 = vsub.f32 %v7514_v53, %v4453_v54 }
 0x21a   : > { %v4896_v0 = vmul.f32 %v4714_v6, %v7506_v48  ;;  %v4902_v63 = vmul.f32 %v4714_v6, %v7509_v56  ;;  %v7517_v48 = vld [vmem:[#allocation23_spill] sm:$0xff]  ;;  %v7520_v56 = vld [vmem:[#allocation25_spill] sm:$0xff] }
 0x21b   : > { %v4908_v27 = vmul.f32 %v4714_v6, %v7512_v57  ;;  %v4914_v37 = vmul.f32 %v4714_v6, %v7515_v3  ;;  %v7523_v57 = vld [vmem:[#allocation24_spill] sm:$0xff]  ;;  %v7526_v3 = vld [vmem:[#allocation26_spill] sm:$0xff] }
 0x21c   : > { %7507 = vst [vmem:[#allocation67_spill] sm:$0xff] %v4896_v0  ;;  %7510 = vst [vmem:[#allocation70_spill] sm:$0xff] %v4902_v63  ;;  %v7518_v0 = vsub.f32 %v7517_v48, %v4453_v54  ;;  %v7521_v63 = vsub.f32 %v7520_v56, %v4453_v54 }
 0x21d   : > { %7513 = vst [vmem:[#allocation73_spill] sm:$0xff] %v4908_v27  ;;  %7516 = vst [vmem:[#allocation77_spill] sm:$0xff] %v4914_v37  ;;  %v7524_v27 = vsub.f32 %v7523_v57, %v4453_v54  ;;  %v7527_v37 = vsub.f32 %v7526_v3, %v4453_v54 }
 0x21e   : > { %v4920_v11 = vmul.f32 %v4714_v6, %v7518_v0  ;;  %v4926_v19 = vmul.f32 %v4714_v6, %v7521_v63  ;;  %v7529_v0 = vld [vmem:[#allocation27_spill] sm:$0xff]  ;;  %v7532_v63 = vld [vmem:[#allocation29_spill] sm:$0xff] }
 0x21f   : > { %v4932_v53 = vmul.f32 %v4714_v6, %v7524_v27  ;;  %v4938_v48 = vmul.f32 %v4714_v6, %v7527_v37  ;;  %v7535_v27 = vld [vmem:[#allocation28_spill] sm:$0xff]  ;;  %v7538_v37 = vld [vmem:[#allocation30_spill] sm:$0xff] }
 0x220   : > { %7519 = vst [vmem:[#allocation80_spill] sm:$0xff] %v4920_v11  ;;  %7522 = vst [vmem:[#allocation82_spill] sm:$0xff] %v4926_v19  ;;  %v7530_v11 = vsub.f32 %v7529_v0, %v4453_v54  ;;  %v7533_v19 = vsub.f32 %v7532_v63, %v4453_v54 }
 0x221   : > { %7525 = vst [vmem:[#allocation84_spill] sm:$0xff] %v4932_v53  ;;  %7528 = vst [vmem:[#allocation97_spill] sm:$0xff] %v4938_v48  ;;  %v7536_v53 = vsub.f32 %v7535_v27, %v4453_v54  ;;  %v7539_v48 = vsub.f32 %v7538_v37, %v4453_v54 }
 0x222   : > { %v4944_v56 = vmul.f32 %v4714_v6, %v7530_v11  ;;  %v4950_v57 = vmul.f32 %v4714_v6, %v7533_v19  ;;  %v7541_v11 = vld [vmem:[#allocation31_spill] sm:$0xff]  ;;  %v7544_v19 = vld [vmem:[#allocation33_spill] sm:$0xff] }
 0x223   : > { %v4956_v3 = vmul.f32 %v4714_v6, %v7536_v53  ;;  %v4962_v0 = vmul.f32 %v4714_v6, %v7539_v48  ;;  %v7547_v53 = vld [vmem:[#allocation32_spill] sm:$0xff]  ;;  %v7550_v48 = vld [vmem:[#allocation34_spill] sm:$0xff] }
 0x224   : > { %7531 = vst [vmem:[#allocation99_spill] sm:$0xff] %v4944_v56  ;;  %7534 = vst [vmem:[#allocation100_spill] sm:$0xff] %v4950_v57  ;;  %v7542_v56 = vsub.f32 %v7541_v11, %v4453_v54  ;;  %v7545_v57 = vsub.f32 %v7544_v19, %v4453_v54 }
 0x225   : > { %7537 = vst [vmem:[#allocation101_spill] sm:$0xff] %v4956_v3  ;;  %7540 = vst [vmem:[#allocation103_spill] sm:$0xff] %v4962_v0  ;;  %v7548_v3 = vsub.f32 %v7547_v53, %v4453_v54  ;;  %v7551_v0 = vsub.f32 %v7550_v48, %v4453_v54 }
 0x226   : > { %v4968_v63 = vmul.f32 %v4714_v6, %v7542_v56  ;;  %v4974_v27 = vmul.f32 %v4714_v6, %v7545_v57  ;;  %v7553_v56 = vld [vmem:[#allocation35_spill] sm:$0xff]  ;;  %v7556_v57 = vld [vmem:[#allocation37_spill] sm:$0xff] }
 0x227   : > { %v4980_v37 = vmul.f32 %v4714_v6, %v7548_v3  ;;  %v4986_v11 = vmul.f32 %v4714_v6, %v7551_v0  ;;  %v7559_v3 = vld [vmem:[#allocation36_spill] sm:$0xff]  ;;  %v7562_v0 = vld [vmem:[#allocation38_spill] sm:$0xff] }
 0x228   : > { %7543 = vst [vmem:[#allocation104_spill] sm:$0xff] %v4968_v63  ;;  %7546 = vst [vmem:[#allocation105_spill] sm:$0xff] %v4974_v27  ;;  %v7554_v63 = vsub.f32 %v7553_v56, %v4453_v54  ;;  %v7557_v27 = vsub.f32 %v7556_v57, %v4453_v54 }
 0x229   : > { %7549 = vst [vmem:[#allocation7_spill] sm:$0xff] %v4980_v37  ;;  %7552 = vst [vmem:[#allocation9_spill] sm:$0xff] %v4986_v11  ;;  %v7560_v37 = vsub.f32 %v7559_v3, %v4453_v54  ;;  %v7563_v11 = vsub.f32 %v7562_v0, %v4453_v54 }
 0x22a   : > { %v4992_v19 = vmul.f32 %v4714_v6, %v7554_v63  ;;  %v4998_v53 = vmul.f32 %v4714_v6, %v7557_v27  ;;  %v7565_v63 = vld [vmem:[#allocation39_spill] sm:$0xff]  ;;  %v7567_v27 = vld [vmem:[#allocation41_spill] sm:$0xff] }
 0x22b   : > { %v5004_v48 = vmul.f32 %v4714_v6, %v7560_v37  ;;  %v5010_v56 = vmul.f32 %v4714_v6, %v7563_v11  ;;  %v7569_v37 = vld [vmem:[#allocation40_spill] sm:$0xff]  ;;  %v7572_v11 = vld [vmem:[#allocation42_spill] sm:$0xff] }
 0x22c   : > { %7555 = vst [vmem:[#allocation8_spill] sm:$0xff] %v4992_v19  ;;  %7558 = vst [vmem:[#allocation10_spill] sm:$0xff] %v4998_v53  ;;  %v7566_v19 = vsub.f32 %v7565_v63, %v4453_v54  ;;  %v7568_v53 = vsub.f32 %v7567_v27, %v4453_v54 }
 0x22d   : > { %7561 = vst [vmem:[#allocation11_spill] sm:$0xff] %v5004_v48  ;;  %7564 = vst [vmem:[#allocation13_spill] sm:$0xff] %v5010_v56  ;;  %v7570_v48 = vsub.f32 %v7569_v37, %v4453_v54  ;;  %v7573_v56 = vsub.f32 %v7572_v11, %v4453_v54 }
 0x22e   : > { %v5016_v57 = vmul.f32 %v4714_v6, %v7566_v19  ;;  %v5022_v3 = vmul.f32 %v4714_v6, %v7568_v53  ;;  %v7575_v19 = vsub.f32 %v7403_v2, %v4453_v54  ;;  %v7577_v53 = vsub.f32 %v7404_v38, %v4453_v54 }
 0x22f   : > { %v5028_v0 = vmul.f32 %v4714_v6, %v7570_v48  ;;  %v5034_v63 = vmul.f32 %v4714_v6, %v7573_v56  ;;  %v7578_v48 = vld [vmem:[#allocation44_spill] sm:$0xff]  ;;  %v7580_v56 = vld [vmem:[#allocation46_spill] sm:$0xff] }
 0x230   : > { %v5040_v27 = vmul.f32 %v4714_v6, %v7575_v19  ;;  %v5046_v37 = vmul.f32 %v4714_v6, %v7577_v53  ;;  %v7582_v19 = vld [vmem:[#allocation47_spill] sm:$0xff]  ;;  %v7585_v53 = vsub.f32 %v7408_v42, %v4453_v54 }
 0x231   : > { %7571 = vst [vmem:[#allocation12_spill] sm:$0xff] %v5028_v0  ;;  %7574 = vst [vmem:[#allocation14_spill] sm:$0xff] %v5034_v63  ;;  %v7579_v0 = vsub.f32 %v7578_v48, %v4453_v54  ;;  %v7581_v63 = vsub.f32 %v7580_v56, %v4453_v54 }
 0x232   : > { %7576 = vst [vmem:[#allocation15_spill] sm:$0xff] %v5040_v27  ;;  %v7583_v27 = vsub.f32 %v7582_v19, %v4453_v54  ;;  %v5070_v48 = vmul.f32 %v4714_v6, %v7585_v53  ;;  %v7592_v53 = vsub.f32 %v7410_v1, %v4453_v54 }
 0x233   : > { %v5052_v11 = vmul.f32 %v4714_v6, %v7579_v0  ;;  %v5058_v2 = vmul.f32 %v4714_v6, %v7581_v63  ;;  %v7586_v0 = vsub.f32 %v7409_v50, %v4453_v54  ;;  %v7588_v63 = vsub.f32 %v3932_v35, %v4453_v54 }
 0x234   : > { %v5064_v38 = vmul.f32 %v4714_v6, %v7583_v27  ;;  %v7589_v27 = vld [vmem:[#allocation50_spill] sm:$0xff]  ;;  %v5094_v50 = vmul.f32 %v4714_v6, %v7592_v53  ;;  %v7600_v53 = vld [vmem:[#allocation55_spill] sm:$0xff] }
 0x235   : > { %v5076_v56 = vmul.f32 %v4714_v6, %v7586_v0  ;;  %v5082_v19 = vmul.f32 %v4714_v6, %v7588_v63  ;;  %v7594_v0 = vld [vmem:[#allocation51_spill] sm:$0xff]  ;;  %v7596_v63 = vsub.f32 %v7412_v21, %v4453_v54 }
 0x236   : > { %7584 = vst [vmem:[#allocation17_spill] sm:$0xff] %v5064_v38  ;;  %v7590_v38 = vsub.f32 %v7589_v27, %v4453_v54  ;;  %7593 = vst [vmem:[#allocation19_spill] sm:$0xff] %v5094_v50  ;;  %v7601_v50 = vsub.f32 %v7600_v53, %v4453_v54 }
 0x237   : > { %7587 = vst [vmem:[#allocation16_spill] sm:$0xff] %v5076_v56  ;;  %v7595_v56 = vsub.f32 %v7594_v0, %v4453_v54  ;;  %v5106_v27 = vmul.f32 %v4714_v6, %v7596_v63  ;;  %v7603_v63 = vsub.f32 %v7413_v14, %v4453_v54 }
 0x238   : > { %v5088_v42 = vmul.f32 %v4714_v6, %v7590_v38  ;;  %v7597_v38 = vld [vmem:[#allocation54_spill] sm:$0xff]  ;;  %v5118_v0 = vmul.f32 %v4714_v6, %v7601_v50  ;;  %v7607_v50 = vsub.f32 %v4011_v15, %v4453_v54 }
 0x239   : > { %v5100_v35 = vmul.f32 %v4714_v6, %v7595_v56  ;;  %v7602_v56 = vsub.f32 %v3985_v31, %v4453_v54 }
 0x23a   : > { %7591 = vst [vmem:[#allocation18_spill] sm:$0xff] %v5088_v42  ;;  %v7598_v42 = vsub.f32 %v7597_v38, %v4453_v54  ;;  %v5130_v38 = vmul.f32 %v4714_v6, %v7603_v63  ;;  %v5142_v31 = vmul.f32 %v4714_v6, %v7607_v50  ;;  %v7609_v63 = vsub.f32 %v7416_v60, %v4453_v54 }
 0x23b   : > { %v5124_v21 = vmul.f32 %v4714_v6, %v7602_v56  ;;  %v7608_v56 = vsub.f32 %v7415_v51, %v4453_v54  ;;  %v7613_v50 = vsub.f32 %v4043_v45, %v4453_v54 }
 0x23c   : > { %v5112_v1 = vmul.f32 %v4714_v6, %v7598_v42  ;;  %v7604_v42 = vld [vmem:[#allocation57_spill] sm:$0xff] }
 0x23d   : > { %v5148_v14 = vmul.f32 %v4714_v6, %v7608_v56  ;;  %v5166_v51 = vmul.f32 %v4714_v6, %v7613_v50  ;;  %v7614_v56 = vsub.f32 %v7417_v9, %v4453_v54  ;;  %v7620_v50 = vsub.f32 %v4075_v18, %v4453_v54 }
 0x23e   : > { %7599 = vst [vmem:[#allocation21_spill] sm:$0xff] %v5112_v1  ;;  %v7605_v1 = vsub.f32 %v7604_v42, %v4453_v54  ;;  %v5154_v42 = vmul.f32 %v4714_v6, %v7609_v63  ;;  %v7615_v63 = vsub.f32 %v7418_v41, %v4453_v54 }
 0x23f   : > { %v5172_v60 = vmul.f32 %v4714_v6, %v7614_v56  ;;  %v5190_v9 = vmul.f32 %v4714_v6, %v7620_v50  ;;  %v7621_v56 = vsub.f32 %v7419_v58, %v4453_v54  ;;  %v7628_v50 = vsub.f32 %v4107_v62, %v4453_v54 }
 0x240   : > { %v5136_v53 = vmul.f32 %v4714_v6, %v7605_v1  ;;  %v7610_v1 = vld [vmem:[#allocation60_spill] sm:$0xff] }
 0x241   : > { %v5196_v41 = vmul.f32 %v4714_v6, %v7621_v56  ;;  %v5214_v58 = vmul.f32 %v4714_v6, %v7628_v50  ;;  %v7629_v56 = vsub.f32 %v7421_v4, %v4453_v54  ;;  %v7636_v50 = vsub.f32 %v4139_v26, %v4453_v54 }
 0x242   : > { %7606 = vst [vmem:[#allocation20_spill] sm:$0xff] %v5136_v53  ;;  %v7611_v53 = vsub.f32 %v7610_v1, %v4453_v54  ;;  %v5178_v1 = vmul.f32 %v4714_v6, %v7615_v63  ;;  %v7622_v63 = vld [vmem:[#allocation65_spill] sm:$0xff] }
 0x243   : > { %v5238_v4 = vmul.f32 %v4714_v6, %v7636_v50  ;;  %v7644_v50 = vsub.f32 %v4171_v55, %v4453_v54 }
 0x244   : > { %v5160_v15 = vmul.f32 %v4714_v6, %v7611_v53  ;;  %7616 = vst [vmem:[#allocation23_spill] sm:$0xff] %v5178_v1  ;;  %v7617_v53 = vld [vmem:[#allocation63_spill] sm:$0xff]  ;;  %v7623_v1 = vsub.f32 %v7622_v63, %v4453_v54  ;;  %v5220_v63 = vmul.f32 %v4714_v6, %v7629_v56  ;;  %v7637_v56 = vsub.f32 %v7423_v22, %v4453_v54 }
 0x245   : > { %v5262_v22 = vmul.f32 %v4714_v6, %v7644_v50  ;;  %v7652_v50 = vsub.f32 %v4203_v39, %v4453_v54 }
 0x246   : > { %7612 = vst [vmem:[#allocation22_spill] sm:$0xff] %v5160_v15  ;;  %v7618_v15 = vsub.f32 %v7617_v53, %v4453_v54  ;;  %v5202_v53 = vmul.f32 %v4714_v6, %v7623_v1  ;;  %v7630_v1 = vld [vmem:[#allocation68_spill] sm:$0xff] }
 0x248   : > { %v5184_v45 = vmul.f32 %v4714_v6, %v7618_v15  ;;  %7624 = vst [vmem:[#allocation24_spill] sm:$0xff] %v5202_v53  ;;  %v7625_v15 = vld [vmem:[#allocation66_spill] sm:$0xff]  ;;  %v7631_v53 = vsub.f32 %v7630_v1, %v4453_v54  ;;  %v5244_v1 = vmul.f32 %v4714_v6, %v7637_v56  ;;  %v7645_v56 = vsub.f32 %v7425_v52, %v4453_v54 }
 0x249   : > { %v5286_v52 = vmul.f32 %v4714_v6, %v7652_v50  ;;  %v7660_v50 = vsub.f32 %v4235_v59, %v4453_v54 }
 0x24a   : > { %7619 = vst [vmem:[#allocation25_spill] sm:$0xff] %v5184_v45  ;;  %v7626_v45 = vsub.f32 %v7625_v15, %v4453_v54  ;;  %v5226_v15 = vmul.f32 %v4714_v6, %v7631_v53  ;;  %v7638_v53 = vld [vmem:[#allocation71_spill] sm:$0xff] }
 0x24c   : > { %v5208_v18 = vmul.f32 %v4714_v6, %v7626_v45  ;;  %7632 = vst [vmem:[#allocation27_spill] sm:$0xff] %v5226_v15  ;;  %v7633_v45 = vld [vmem:[#allocation69_spill] sm:$0xff]  ;;  %v7639_v15 = vsub.f32 %v7638_v53, %v4453_v54  ;;  %v5268_v53 = vmul.f32 %v4714_v6, %v7645_v56  ;;  %v7653_v56 = vld [vmem:[#allocation76_spill] sm:$0xff] }
 0x24e   : > { %7627 = vst [vmem:[#allocation26_spill] sm:$0xff] %v5208_v18  ;;  %v7634_v18 = vsub.f32 %v7633_v45, %v4453_v54  ;;  %v5250_v45 = vmul.f32 %v4714_v6, %v7639_v15  ;;  %7646 = vst [vmem:[#allocation31_spill] sm:$0xff] %v5268_v53  ;;  %v7647_v15 = vld [vmem:[#allocation74_spill] sm:$0xff]  ;;  %v7654_v53 = vsub.f32 %v7653_v56, %v4453_v54 }
 0x24f   : > { %v5310_v56 = vmul.f32 %v4714_v6, %v7660_v50  ;;  %v7668_v50 = vsub.f32 %v7431_v47, %v4453_v54 }
 0x250   : > { %v5232_v62 = vmul.f32 %v4714_v6, %v7634_v18  ;;  %7640 = vst [vmem:[#allocation28_spill] sm:$0xff] %v5250_v45  ;;  %v7641_v18 = vld [vmem:[#allocation72_spill] sm:$0xff]  ;;  %v7648_v45 = vsub.f32 %v7647_v15, %v4453_v54  ;;  %v5292_v15 = vmul.f32 %v4714_v6, %v7654_v53  ;;  %v7661_v53 = vld [vmem:[#allocation79_spill] sm:$0xff] }
 0x252   : > { %7635 = vst [vmem:[#allocation29_spill] sm:$0xff] %v5232_v62  ;;  %v7642_v62 = vsub.f32 %v7641_v18, %v4453_v54  ;;  %v5274_v18 = vmul.f32 %v4714_v6, %v7648_v45  ;;  %7655 = vst [vmem:[#allocation32_spill] sm:$0xff] %v5292_v15  ;;  %v7656_v45 = vsub.f32 %v7428_v5, %v4453_v54 }
 0x253   : > { %v7662_v15 = vsub.f32 %v7661_v53, %v4453_v54  ;;  %v5334_v53 = vmul.f32 %v4714_v6, %v7668_v50  ;;  %v7677_v50 = vld [vmem:[#allocation86_spill] sm:$0xff] }
 0x254   : > { %v5256_v26 = vmul.f32 %v4714_v6, %v7642_v62  ;;  %v7649_v62 = vld [vmem:[#allocation75_spill] sm:$0xff] }
 0x255   : > { %v5316_v5 = vmul.f32 %v4714_v6, %v7662_v15  ;;  %7669 = vst [vmem:[#allocation36_spill] sm:$0xff] %v5334_v53  ;;  %v7670_v15 = vld [vmem:[#allocation83_spill] sm:$0xff]  ;;  %v7678_v53 = vsub.f32 %v7677_v50, %v4453_v54 }
 0x256   : > { %7643 = vst [vmem:[#allocation30_spill] sm:$0xff] %v5256_v26  ;;  %v7650_v26 = vsub.f32 %v7649_v62, %v4453_v54  ;;  %v5298_v62 = vmul.f32 %v4714_v6, %v7656_v45  ;;  %v7664_v45 = vsub.f32 %v7430_v40, %v4453_v54 }
 0x257   : > { %7663 = vst [vmem:[#allocation35_spill] sm:$0xff] %v5316_v5  ;;  %v7671_v5 = vsub.f32 %v7670_v15, %v4453_v54  ;;  %v5358_v15 = vmul.f32 %v4714_v6, %v7678_v53  ;;  %v7688_v53 = vld [vmem:[#allocation89_spill] sm:$0xff] }
 0x258   : > { %v5280_v55 = vmul.f32 %v4714_v6, %v7650_v26  ;;  %v7657_v26 = vld [vmem:[#allocation78_spill] sm:$0xff] }
 0x259   : > { %v5340_v40 = vmul.f32 %v4714_v6, %v7671_v5  ;;  %7679 = vst [vmem:[#allocation41_spill] sm:$0xff] %v5358_v15  ;;  %v7680_v5 = vsub.f32 %v4306_v17, %v4453_v54  ;;  %v7689_v15 = vsub.f32 %v7688_v53, %v4453_v54 }
 0x25a   : > { %7651 = vst [vmem:[#allocation33_spill] sm:$0xff] %v5280_v55  ;;  %v7658_v55 = vsub.f32 %v7657_v26, %v4453_v54  ;;  %v5322_v26 = vmul.f32 %v4714_v6, %v7664_v45  ;;  %v7672_v45 = vsub.f32 %v7432_v34, %v4453_v54 }
 0x25b   : > { %v5364_v34 = vmul.f32 %v4714_v6, %v7680_v5  ;;  %v5382_v17 = vmul.f32 %v4714_v6, %v7689_v15  ;;  %v7691_v5 = vld [vmem:[#allocation90_spill] sm:$0xff]  ;;  %v7699_v15 = vld [vmem:[#allocation93_spill] sm:$0xff] }
 0x25c   : > { %v5304_v39 = vmul.f32 %v4714_v6, %v7658_v55  ;;  %v7665_v55 = vld [vmem:[#allocation81_spill] sm:$0xff] }
 0x25d   : > { %7681 = vst [vmem:[#allocation40_spill] sm:$0xff] %v5364_v34  ;;  %7690 = vst [vmem:[#allocation46_spill] sm:$0xff] %v5382_v17  ;;  %v7692_v34 = vsub.f32 %v7691_v5, %v4453_v54  ;;  %v7700_v17 = vsub.f32 %v7699_v15, %v4453_v54  ;;  %v7708_v15 = vld [vmem:[#allocation96_spill] sm:$0xff] }
 0x25e   : > { %7659 = vst [vmem:[#allocation34_spill] sm:$0xff] %v5304_v39  ;;  %v7666_v39 = vsub.f32 %v7665_v55, %v4453_v54  ;;  %v5346_v55 = vmul.f32 %v4714_v6, %v7672_v45  ;;  %v7682_v45 = vld [vmem:[#allocation87_spill] sm:$0xff] }
 0x25f   : > { %v5406_v5 = vmul.f32 %v4714_v6, %v7700_v17  ;;  %v7709_v17 = vsub.f32 %v7708_v15, %v4453_v54 }
 0x260   : > { %v5328_v59 = vmul.f32 %v4714_v6, %v7666_v39  ;;  %7673 = vst [vmem:[#allocation38_spill] sm:$0xff] %v5346_v55  ;;  %v7674_v39 = vld [vmem:[#allocation85_spill] sm:$0xff]  ;;  %v7683_v55 = vsub.f32 %v7682_v45, %v4453_v54  ;;  %v5388_v45 = vmul.f32 %v4714_v6, %v7692_v34  ;;  %v7702_v34 = vld [vmem:[#allocation94_spill] sm:$0xff] }
 0x261   : > { %7701 = vst [vmem:[#allocation51_spill] sm:$0xff] %v5406_v5  ;;  %v5429_v5 = vmul.f32 %v4714_v6, %v7709_v17  ;;  %v7715_v17 = vsub.f32 %v7443_v24, %v4453_v54 }
 0x262   : > { %7667 = vst [vmem:[#allocation37_spill] sm:$0xff] %v5328_v59  ;;  %v7675_v59 = vsub.f32 %v7674_v39, %v4453_v54  ;;  %v5370_v39 = vmul.f32 %v4714_v6, %v7683_v55  ;;  %7693 = vst [vmem:[#allocation47_spill] sm:$0xff] %v5388_v45  ;;  %v7694_v55 = vld [vmem:[#allocation91_spill] sm:$0xff]  ;;  %v7703_v45 = vsub.f32 %v7702_v34, %v4453_v54 }
 0x264   : > { %v5352_v47 = vmul.f32 %v4714_v6, %v7675_v59  ;;  %7684 = vst [vmem:[#allocation42_spill] sm:$0xff] %v5370_v39  ;;  %v7685_v59 = vld [vmem:[#allocation88_spill] sm:$0xff]  ;;  %v7695_v39 = vsub.f32 %v7694_v55, %v4453_v54  ;;  %v5412_v55 = vmul.f32 %v4714_v6, %v7703_v45  ;;  %v7710_v45 = vsub.f32 %v7440_v49, %v4453_v54 }
 0x265   : > { %v5453_v49 = vmul.f32 %v4714_v6, %v7715_v17  ;;  %v7720_v17 = vsub.f32 %v7447_v25, %v4453_v54 }
 0x266   : > { %7676 = vst [vmem:[#allocation39_spill] sm:$0xff] %v5352_v47  ;;  %v7686_v47 = vsub.f32 %v7685_v59, %v4453_v54  ;;  %v5394_v59 = vmul.f32 %v4714_v6, %v7695_v39  ;;  %7704 = vst [vmem:[#allocation54_spill] sm:$0xff] %v5412_v55  ;;  %v7705_v39 = vld [vmem:[#allocation95_spill] sm:$0xff]  ;;  %v5435_v34 = vmul.f32 %v4714_v6, %v7710_v45 }
 0x267   : > { %v7714_v55 = vsub.f32 %v7442_v29, %v4453_v54  ;;  %v7716_v45 = vsub.f32 %v7444_v46, %v4453_v54  ;;  %v5477_v46 = vmul.f32 %v4714_v6, %v7720_v17 }
 0x268   : > { %v5376_v50 = vmul.f32 %v4714_v6, %v7686_v47  ;;  %7696 = vst [vmem:[#allocation50_spill] sm:$0xff] %v5394_v59  ;;  %v7697_v47 = vld [vmem:[#allocation92_spill] sm:$0xff]  ;;  %v7706_v59 = vsub.f32 %v7705_v39, %v4453_v54  ;;  %v7711_v39 = vld [vmem:[#allocation98_spill] sm:$0xff] }
 0x269   : > { %v5447_v15 = vmul.f32 %v4714_v6, %v7714_v55  ;;  %v7719_v55 = vsub.f32 %v7446_v8, %v4453_v54 }
 0x26a   : > { %7687 = vst [vmem:[#allocation44_spill] sm:$0xff] %v5376_v50  ;;  %v7698_v50 = vsub.f32 %v7697_v47, %v4453_v54  ;;  %v5418_v47 = vmul.f32 %v4714_v6, %v7706_v59  ;;  %v7712_v59 = vsub.f32 %v7711_v39, %v4453_v54  ;;  %v5459_v39 = vmul.f32 %v4714_v6, %v7716_v45 }
 0x26b   : > { %v5471_v24 = vmul.f32 %v4714_v6, %v7719_v55  ;;  %v7721_v45 = vsub.f32 %v7448_v7, %v4453_v54  ;;  %v7723_v55 = vsub.f32 %v4442_v44, %v4453_v54 }
 0x26c   : > { %v5400_v53 = vmul.f32 %v4714_v6, %v7698_v50  ;;  %7707 = vst [vmem:[#allocation55_spill] sm:$0xff] %v5418_v47  ;;  %v5423_v50 = vld [vmem:[%s6956_s3] ss:$0 sm:$0xff]  ;;  %v5441_v47 = vmul.f32 %v4714_v6, %v7712_v59  ;;  %v7717_v59 = vld [vmem:[#allocation102_spill] sm:$0xff] }
 0x26d   : > { %v5495_v25 = vmul.f32 %v4714_v6, %v7723_v55  ;;  %v5499_v17 = vmul.f32 %v5423_v50, %v4728_v30  ;;  %v5503_v7 = vmul.f32 %v5423_v50, %v4734_v61  ;;  %v5519_v30 = vmul.f32 %v5423_v50, %v4758_v12  ;;  %v7726_v12 = vld [vmem:[#allocation3_spill] sm:$0xff]  ;;  %v7732_v55 = vld [vmem:[#allocation6_spill] sm:$0xff] }
 0x26e   : > { %7713 = vst [vmem:[#allocation57_spill] sm:$0xff] %v5441_v47  ;;  %v7718_v47 = vsub.f32 %v7717_v59, %v4453_v54  ;;  %v5483_v59 = vmul.f32 %v4714_v6, %v7721_v45  ;;  %v5511_v45 = vmul.f32 %v5423_v50, %v4746_v10  ;;  %v5523_v44 = vmul.f32 %v5423_v50, %v4764_v16 }
 0x26f   : > { %v5535_v61 = vmul.f32 %v5423_v50, %v4782_v28  ;;  %v5539_v10 = vmul.f32 %v5423_v50, %v4788_v36  ;;  %v5547_v16 = vmul.f32 %v5423_v50, %v7726_v12  ;;  %v5559_v36 = vmul.f32 %v5423_v50, %v7732_v55 }
 0x270   : > { %v5465_v29 = vmul.f32 %v4714_v6, %v7718_v47  ;;  %v7722_v47 = vsub.f32 %v4436_v32, %v4453_v54  ;;  %v5507_v32 = vmul.f32 %v5423_v50, %v4740_v20  ;;  %v5527_v20 = vmul.f32 %v5423_v50, %v4770_v23  ;;  %v7728_v23 = vld [vmem:[#allocation5_spill] sm:$0xff] }
 0x271   : > { %v5531_v54 = vmul.f32 %v5423_v50, %v4776_v33  ;;  %7724 = vst [vmem:[#allocation60_spill] sm:$0xff] %v5539_v10  ;;  %7727 = vst [vmem:[#allocation65_spill] sm:$0xff] %v5547_v16  ;;  %v5551_v33 = vmul.f32 %v5423_v50, %v7728_v23  ;;  %v7734_v10 = vld [vmem:[#allocation43_spill] sm:$0xff]  ;;  %v7738_v16 = vld [vmem:[#allocation49_spill] sm:$0xff] }
 0x272   : > { %v5489_v8 = vmul.f32 %v4714_v6, %v7722_v47  ;;  %v5515_v6 = vmul.f32 %v5423_v50, %v4752_v13  ;;  %v5543_v13 = vmul.f32 %v5423_v50, %v4794_v43  ;;  %v7730_v47 = vld [vmem:[#allocation4_spill] sm:$0xff]  ;;  %7733 = vst [vmem:[#allocation69_spill] sm:$0xff] %v5559_v36  ;;  %v5563_v43 = vmul.f32 %v5423_v50, %v7734_v10  ;;  %v7744_v36 = vld [vmem:[#allocation53_spill] sm:$0xff] }
 0x273   : > { %7729 = vst [vmem:[#allocation66_spill] sm:$0xff] %v5551_v33  ;;  %v5555_v28 = vmul.f32 %v5423_v50, %v7730_v47  ;;  %v5571_v23 = vmul.f32 %v5423_v50, %v7738_v16  ;;  %v7740_v33 = vld [vmem:[#allocation48_spill] sm:$0xff]  ;;  %v5583_v10 = vmul.f32 %v5423_v50, %v7744_v36 }
 0x274   : > { %7725 = vst [vmem:[#allocation63_spill] sm:$0xff] %v5543_v13  ;;  %7735 = vst [vmem:[#allocation71_spill] sm:$0xff] %v5563_v43  ;;  %v7736_v13 = vld [vmem:[#allocation45_spill] sm:$0xff]  ;;  %v5575_v47 = vmul.f32 %v5423_v50, %v7740_v33  ;;  %v7746_v43 = vld [vmem:[#allocation56_spill] sm:$0xff] }
 0x275   : > { %7731 = vst [vmem:[#allocation68_spill] sm:$0xff] %v5555_v28  ;;  %v5567_v12 = vmul.f32 %v5423_v50, %v7736_v13  ;;  %7739 = vst [vmem:[#allocation74_spill] sm:$0xff] %v5571_v23  ;;  %v7742_v28 = vld [vmem:[#allocation52_spill] sm:$0xff]  ;;  %v5587_v13 = vmul.f32 %v5423_v50, %v7746_v43  ;;  %v7750_v23 = vld [vmem:[#allocation59_spill] sm:$0xff] }
 0x276   : > { %7741 = vst [vmem:[#allocation75_spill] sm:$0xff] %v5575_v47  ;;  %v5579_v55 = vmul.f32 %v5423_v50, %v7742_v28  ;;  %7745 = vst [vmem:[#allocation78_spill] sm:$0xff] %v5583_v10  ;;  %v5595_v33 = vmul.f32 %v5423_v50, %v7750_v23  ;;  %v7752_v47 = vld [vmem:[#allocation61_spill] sm:$0xff]  ;;  %v7756_v10 = vld [vmem:[#allocation64_spill] sm:$0xff] }
 0x277   : > { %7737 = vst [vmem:[#allocation72_spill] sm:$0xff] %v5567_v12  ;;  %7747 = vst [vmem:[#allocation79_spill] sm:$0xff] %v5587_v13  ;;  %v7748_v12 = vld [vmem:[#allocation58_spill] sm:$0xff]  ;;  %v5599_v28 = vmul.f32 %v5423_v50, %v7752_v47  ;;  %v5607_v43 = vmul.f32 %v5423_v50, %v7756_v10  ;;  %v7758_v13 = vld [vmem:[#allocation67_spill] sm:$0xff] }
 0x278   : > { %7743 = vst [vmem:[#allocation76_spill] sm:$0xff] %v5579_v55  ;;  %v5591_v16 = vmul.f32 %v5423_v50, %v7748_v12  ;;  %7751 = vst [vmem:[#allocation83_spill] sm:$0xff] %v5595_v33  ;;  %v7754_v55 = vld [vmem:[#allocation62_spill] sm:$0xff]  ;;  %v5611_v12 = vmul.f32 %v5423_v50, %v7758_v13  ;;  %v7762_v33 = vld [vmem:[#allocation73_spill] sm:$0xff] }
 0x279   : > { %7753 = vst [vmem:[#allocation85_spill] sm:$0xff] %v5599_v28  ;;  %v5603_v36 = vmul.f32 %v5423_v50, %v7754_v55  ;;  %7757 = vst [vmem:[#allocation87_spill] sm:$0xff] %v5607_v43  ;;  %v5619_v47 = vmul.f32 %v5423_v50, %v7762_v33  ;;  %v7764_v28 = vld [vmem:[#allocation77_spill] sm:$0xff]  ;;  %v7768_v43 = vld [vmem:[#allocation82_spill] sm:$0xff] }
 0x27a   : > { %7749 = vst [vmem:[#allocation81_spill] sm:$0xff] %v5591_v16  ;;  %7759 = vst [vmem:[#allocation88_spill] sm:$0xff] %v5611_v12  ;;  %v7760_v16 = vld [vmem:[#allocation70_spill] sm:$0xff]  ;;  %v5623_v55 = vmul.f32 %v5423_v50, %v7764_v28  ;;  %v5631_v13 = vmul.f32 %v5423_v50, %v7768_v43  ;;  %v7770_v12 = vld [vmem:[#allocation84_spill] sm:$0xff] }
 0x27b   : > { %7755 = vst [vmem:[#allocation86_spill] sm:$0xff] %v5603_v36  ;;  %v5615_v23 = vmul.f32 %v5423_v50, %v7760_v16  ;;  %7763 = vst [vmem:[#allocation90_spill] sm:$0xff] %v5619_v47  ;;  %v7766_v36 = vld [vmem:[#allocation80_spill] sm:$0xff]  ;;  %v5635_v16 = vmul.f32 %v5423_v50, %v7770_v12  ;;  %v7774_v47 = vld [vmem:[#allocation99_spill] sm:$0xff] }
 0x27c   : > { %7765 = vst [vmem:[#allocation91_spill] sm:$0xff] %v5623_v55  ;;  %v5627_v10 = vmul.f32 %v5423_v50, %v7766_v36  ;;  %7769 = vst [vmem:[#allocation93_spill] sm:$0xff] %v5631_v13  ;;  %v5643_v28 = vmul.f32 %v5423_v50, %v7774_v47  ;;  %v7776_v55 = vld [vmem:[#allocation100_spill] sm:$0xff]  ;;  %v7780_v13 = vld [vmem:[#allocation103_spill] sm:$0xff] }
 0x27d   : > { %7761 = vst [vmem:[#allocation89_spill] sm:$0xff] %v5615_v23  ;;  %7771 = vst [vmem:[#allocation94_spill] sm:$0xff] %v5635_v16  ;;  %v7772_v23 = vld [vmem:[#allocation97_spill] sm:$0xff]  ;;  %v5647_v36 = vmul.f32 %v5423_v50, %v7776_v55  ;;  %v5655_v12 = vmul.f32 %v5423_v50, %v7780_v13  ;;  %v7782_v16 = vld [vmem:[#allocation104_spill] sm:$0xff] }
 0x27e   : > { %7767 = vst [vmem:[#allocation92_spill] sm:$0xff] %v5627_v10  ;;  %v5639_v33 = vmul.f32 %v5423_v50, %v7772_v23  ;;  %7775 = vst [vmem:[#allocation96_spill] sm:$0xff] %v5643_v28  ;;  %v7778_v10 = vld [vmem:[#allocation101_spill] sm:$0xff]  ;;  %v5659_v23 = vmul.f32 %v5423_v50, %v7782_v16  ;;  %v7786_v28 = vld [vmem:[#allocation7_spill] sm:$0xff] }
 0x27f   : > { %7777 = vst [vmem:[#allocation98_spill] sm:$0xff] %v5647_v36  ;;  %v5651_v43 = vmul.f32 %v5423_v50, %v7778_v10  ;;  %7781 = vst [vmem:[#allocation3_spill] sm:$0xff] %v5655_v12  ;;  %v5667_v55 = vmul.f32 %v5423_v50, %v7786_v28  ;;  %v7787_v36 = vld [vmem:[#allocation9_spill] sm:$0xff]  ;;  %v7790_v12 = vld [vmem:[#allocation10_spill] sm:$0xff] }
 0x280   : > { %7773 = vst [vmem:[#allocation95_spill] sm:$0xff] %v5639_v33  ;;  %7783 = vst [vmem:[#allocation5_spill] sm:$0xff] %v5659_v23  ;;  %v7784_v33 = vld [vmem:[#allocation105_spill] sm:$0xff]  ;;  %v5671_v10 = vmul.f32 %v5423_v50, %v7787_v36  ;;  %v5679_v16 = vmul.f32 %v5423_v50, %v7790_v12  ;;  %v7792_v23 = vld [vmem:[#allocation11_spill] sm:$0xff]  ;;  %v5691_v36 = vmul.f32 %v5423_v50, %v5016_v57 }
 0x281   : > { %7779 = vst [vmem:[#allocation102_spill] sm:$0xff] %v5651_v43  ;;  %v5663_v47 = vmul.f32 %v5423_v50, %v7784_v33  ;;  %v7788_v43 = vld [vmem:[#allocation8_spill] sm:$0xff]  ;;  %v5683_v33 = vmul.f32 %v5423_v50, %v7792_v23  ;;  %v5711_v57 = vmul.f32 %v5423_v50, %v5046_v37 }
 0x282   : > { %v5675_v13 = vmul.f32 %v5423_v50, %v7788_v43  ;;  %7791 = vst [vmem:[#allocation43_spill] sm:$0xff] %v5679_v16  ;;  %v5695_v43 = vmul.f32 %v5423_v50, %v5022_v3  ;;  %v7797_v16 = vld [vmem:[#allocation14_spill] sm:$0xff]  ;;  %v5715_v3 = vmul.f32 %v5423_v50, %v5052_v11  ;;  %v5735_v11 = vmul.f32 %v5423_v50, %v5082_v19 }
 0x283   : > { %7785 = vst [vmem:[#allocation4_spill] sm:$0xff] %v5663_v47  ;;  %7793 = vst [vmem:[#allocation45_spill] sm:$0xff] %v5683_v33  ;;  %v7794_v47 = vld [vmem:[#allocation13_spill] sm:$0xff]  ;;  %v5703_v23 = vmul.f32 %v5423_v50, %v7797_v16  ;;  %v7798_v33 = vld [vmem:[#allocation15_spill] sm:$0xff] }
 0x284   : > { %7789 = vst [vmem:[#allocation6_spill] sm:$0xff] %v5675_v13  ;;  %v5687_v28 = vmul.f32 %v5423_v50, %v7794_v47  ;;  %v7795_v13 = vld [vmem:[#allocation12_spill] sm:$0xff]  ;;  %v5707_v47 = vmul.f32 %v5423_v50, %v7798_v33  ;;  %7800 = vst [vmem:[#allocation52_spill] sm:$0xff] %v5715_v3  ;;  %v5727_v33 = vmul.f32 %v5423_v50, %v5070_v48  ;;  %v7805_v3 = vld [vmem:[#allocation18_spill] sm:$0xff] }
 0x285   : > { %v5699_v12 = vmul.f32 %v5423_v50, %v7795_v13  ;;  %v5719_v13 = vmul.f32 %v5423_v50, %v5058_v2  ;;  %v5739_v2 = vmul.f32 %v5423_v50, %v7805_v3  ;;  %v5747_v48 = vmul.f32 %v5423_v50, %v5100_v35 }
 0x286   : > { %7799 = vst [vmem:[#allocation48_spill] sm:$0xff] %v5707_v47  ;;  %v7803_v47 = vld [vmem:[#allocation16_spill] sm:$0xff]  ;;  %v5759_v3 = vmul.f32 %v5423_v50, %v5118_v0  ;;  %v5767_v35 = vmul.f32 %v5423_v50, %v5130_v38  ;;  %v5779_v0 = vmul.f32 %v5423_v50, %v5148_v14 }
 0x287   : > { %7796 = vst [vmem:[#allocation49_spill] sm:$0xff] %v5699_v12  ;;  %7801 = vst [vmem:[#allocation53_spill] sm:$0xff] %v5719_v13  ;;  %v7802_v12 = vld [vmem:[#allocation17_spill] sm:$0xff]  ;;  %v5731_v37 = vmul.f32 %v5423_v50, %v7803_v47  ;;  %v7806_v13 = vld [vmem:[#allocation19_spill] sm:$0xff]  ;;  %v5751_v47 = vmul.f32 %v5423_v50, %v5106_v27 }
 0x288   : > { %v5723_v16 = vmul.f32 %v5423_v50, %v7802_v12  ;;  %v5743_v12 = vmul.f32 %v5423_v50, %v7806_v13  ;;  %7807 = vst [vmem:[#allocation58_spill] sm:$0xff] %v5747_v48  ;;  %v5763_v13 = vmul.f32 %v5423_v50, %v5124_v21  ;;  %v7810_v48 = vld [vmem:[#allocation20_spill] sm:$0xff]  ;;  %7812 = vst [vmem:[#allocation62_spill] sm:$0xff] %v5779_v0  ;;  %v7817_v0 = vld [vmem:[#allocation25_spill] sm:$0xff] }
 0x289   : > { %7804 = vst [vmem:[#allocation56_spill] sm:$0xff] %v5731_v37  ;;  %v7808_v37 = vld [vmem:[#allocation21_spill] sm:$0xff]  ;;  %v5771_v27 = vmul.f32 %v5423_v50, %v7810_v48  ;;  %v5783_v21 = vmul.f32 %v5423_v50, %v5154_v42  ;;  %v5791_v48 = vmul.f32 %v5423_v50, %v5166_v51  ;;  %v5803_v42 = vmul.f32 %v5423_v50, %v7817_v0 }
 0x28a   : > { %v5755_v19 = vmul.f32 %v5423_v50, %v7808_v37  ;;  %7809 = vst [vmem:[#allocation59_spill] sm:$0xff] %v5763_v13  ;;  %v5775_v37 = vmul.f32 %v5423_v50, %v5142_v31  ;;  %v7813_v13 = vld [vmem:[#allocation22_spill] sm:$0xff]  ;;  %v5795_v31 = vmul.f32 %v5423_v50, %v5172_v60  ;;  %v5811_v51 = vmul.f32 %v5423_v50, %v5196_v41 }
 0x28b   : > { %v5787_v38 = vmul.f32 %v5423_v50, %v7813_v13  ;;  %7814 = vst [vmem:[#allocation64_spill] sm:$0xff] %v5791_v48  ;;  %v5807_v13 = vmul.f32 %v5423_v50, %v5190_v9  ;;  %v7820_v48 = vld [vmem:[#allocation24_spill] sm:$0xff]  ;;  %v5823_v0 = vmul.f32 %v5423_v50, %v5214_v58  ;;  %v5827_v9 = vmul.f32 %v5423_v50, %v5220_v63 }
 0x28c   : > { %7811 = vst [vmem:[#allocation61_spill] sm:$0xff] %v5775_v37  ;;  %7815 = vst [vmem:[#allocation67_spill] sm:$0xff] %v5795_v31  ;;  %v7816_v37 = vld [vmem:[#allocation23_spill] sm:$0xff]  ;;  %v5815_v60 = vmul.f32 %v5423_v50, %v7820_v48  ;;  %v7821_v31 = vld [vmem:[#allocation26_spill] sm:$0xff]  ;;  %v5843_v58 = vmul.f32 %v5423_v50, %v5244_v1  ;;  %v5863_v1 = vmul.f32 %v5423_v50, %v5274_v18 }
 0x28d   : > { %v5799_v14 = vmul.f32 %v5423_v50, %v7816_v37  ;;  %7818 = vst [vmem:[#allocation70_spill] sm:$0xff] %v5807_v13  ;;  %7819 = vst [vmem:[#allocation73_spill] sm:$0xff] %v5811_v51  ;;  %v5819_v37 = vmul.f32 %v5423_v50, %v7821_v31  ;;  %v7824_v13 = vld [vmem:[#allocation27_spill] sm:$0xff]  ;;  %v7825_v51 = vld [vmem:[#allocation29_spill] sm:$0xff]  ;;  %v5839_v31 = vmul.f32 %v5423_v50, %v5238_v4 }
 0x28e   : > { %7822 = vst [vmem:[#allocation77_spill] sm:$0xff] %v5823_v0  ;;  %7823 = vst [vmem:[#allocation80_spill] sm:$0xff] %v5827_v9  ;;  %v5831_v41 = vmul.f32 %v5423_v50, %v7824_v13  ;;  %v5835_v48 = vmul.f32 %v5423_v50, %v7825_v51  ;;  %v7828_v0 = vld [vmem:[#allocation28_spill] sm:$0xff]  ;;  %v7829_v9 = vld [vmem:[#allocation30_spill] sm:$0xff]  ;;  %v5855_v51 = vmul.f32 %v5423_v50, %v5262_v22 }
 0x28f   : > { %7827 = vst [vmem:[#allocation84_spill] sm:$0xff] %v5843_v58  ;;  %v5847_v63 = vmul.f32 %v5423_v50, %v7828_v0  ;;  %v5851_v13 = vmul.f32 %v5423_v50, %v7829_v9  ;;  %v7833_v58 = vld [vmem:[#allocation33_spill] sm:$0xff]  ;;  %v5871_v9 = vmul.f32 %v5423_v50, %v5286_v52 }
 0x290   : > { %7826 = vst [vmem:[#allocation82_spill] sm:$0xff] %v5835_v48  ;;  %v7831_v48 = vld [vmem:[#allocation31_spill] sm:$0xff]  ;;  %v5867_v0 = vmul.f32 %v5423_v50, %v7833_v58  ;;  %v5887_v58 = vmul.f32 %v5423_v50, %v5310_v56  ;;  %v5907_v56 = vmul.f32 %v5423_v50, %v5340_v40 }
 0x291   : > { %7830 = vst [vmem:[#allocation97_spill] sm:$0xff] %v5851_v13  ;;  %v5859_v4 = vmul.f32 %v5423_v50, %v7831_v48  ;;  %v7835_v13 = vld [vmem:[#allocation32_spill] sm:$0xff]  ;;  %v5879_v48 = vmul.f32 %v5423_v50, %v5298_v62 }
 0x292   : > { %7834 = vst [vmem:[#allocation100_spill] sm:$0xff] %v5867_v0  ;;  %v5875_v22 = vmul.f32 %v5423_v50, %v7835_v13  ;;  %7839 = vst [vmem:[#allocation104_spill] sm:$0xff] %v5887_v58  ;;  %v7840_v0 = vld [vmem:[#allocation35_spill] sm:$0xff]  ;;  %v5895_v13 = vmul.f32 %v5423_v50, %v5322_v26  ;;  %v7848_v58 = vld [vmem:[#allocation38_spill] sm:$0xff] }
 0x293   : > { %7832 = vst [vmem:[#allocation99_spill] sm:$0xff] %v5859_v4  ;;  %7837 = vst [vmem:[#allocation103_spill] sm:$0xff] %v5879_v48  ;;  %v7838_v4 = vld [vmem:[#allocation34_spill] sm:$0xff]  ;;  %v5891_v52 = vmul.f32 %v5423_v50, %v7840_v0  ;;  %v7845_v48 = vld [vmem:[#allocation36_spill] sm:$0xff]  ;;  %v5911_v0 = vmul.f32 %v5423_v50, %v7848_v58 }
 0x294   : > { %7836 = vst [vmem:[#allocation101_spill] sm:$0xff] %v5875_v22  ;;  %v5883_v18 = vmul.f32 %v5423_v50, %v7838_v4  ;;  %7842 = vst [vmem:[#allocation7_spill] sm:$0xff] %v5895_v13  ;;  %v7843_v22 = vld [vmem:[#allocation37_spill] sm:$0xff]  ;;  %v5903_v4 = vmul.f32 %v5423_v50, %v7845_v48 }
 0x295   : > { %7841 = vst [vmem:[#allocation105_spill] sm:$0xff] %v5891_v52  ;;  %v5899_v62 = vmul.f32 %v5423_v50, %v7843_v22  ;;  %7847 = vst [vmem:[#allocation10_spill] sm:$0xff] %v5907_v56  ;;  %v7850_v52 = vld [vmem:[#allocation39_spill] sm:$0xff]  ;;  %v7852_v13 = vld [vmem:[#allocation41_spill] sm:$0xff] }
 0x296   : > { %7846 = vst [vmem:[#allocation8_spill] sm:$0xff] %v5903_v4  ;;  %7849 = vst [vmem:[#allocation11_spill] sm:$0xff] %v5911_v0  ;;  %v5915_v26 = vmul.f32 %v5423_v50, %v7850_v52  ;;  %v5919_v22 = vmul.f32 %v5423_v50, %v7852_v13  ;;  %v7855_v4 = vld [vmem:[#allocation42_spill] sm:$0xff]  ;;  %v7857_v56 = vld [vmem:[#allocation44_spill] sm:$0xff] }
 0x297   : > { %7844 = vst [vmem:[#allocation9_spill] sm:$0xff] %v5899_v62  ;;  %v7854_v62 = vld [vmem:[#allocation40_spill] sm:$0xff]  ;;  %v5927_v40 = vmul.f32 %v5423_v50, %v7855_v4  ;;  %v5931_v58 = vmul.f32 %v5423_v50, %v7857_v56  ;;  %v7859_v0 = vld [vmem:[#allocation46_spill] sm:$0xff]  ;;  %v5947_v4 = vmul.f32 %v5423_v50, %v5400_v53  ;;  %v5968_v53 = vmul.f32 %v5423_v50, %v5429_v5 }
 0x298   : > { %7851 = vst [vmem:[#allocation13_spill] sm:$0xff] %v5915_v26  ;;  %7853 = vst [vmem:[#allocation12_spill] sm:$0xff] %v5919_v22  ;;  %v5923_v48 = vmul.f32 %v5423_v50, %v7854_v62  ;;  %v5935_v52 = vmul.f32 %v5423_v50, %v7859_v0  ;;  %v7861_v26 = vld [vmem:[#allocation47_spill] sm:$0xff]  ;;  %v7862_v22 = vld [vmem:[#allocation50_spill] sm:$0xff]  ;;  %v5988_v5 = vmul.f32 %v5423_v50, %v5459_v39 }
 0x299   : > { %7856 = vst [vmem:[#allocation14_spill] sm:$0xff] %v5927_v40  ;;  %7858 = vst [vmem:[#allocation15_spill] sm:$0xff] %v5931_v58  ;;  %v5939_v13 = vmul.f32 %v5423_v50, %v7861_v26  ;;  %v5943_v62 = vmul.f32 %v5423_v50, %v7862_v22  ;;  %v7863_v40 = vld [vmem:[#allocation51_spill] sm:$0xff]  ;;  %v7865_v58 = vld [vmem:[#allocation54_spill] sm:$0xff]  ;;  %v6008_v39 = vmul.f32 %v5423_v50, %v5489_v8 }
 0x29a   : > { %7860 = vst [vmem:[#allocation17_spill] sm:$0xff] %v5935_v52  ;;  %v5951_v56 = vmul.f32 %v5423_v50, %v7863_v40  ;;  %v5955_v0 = vmul.f32 %v5423_v50, %v7865_v58  ;;  %v7866_v52 = vld [vmem:[#allocation55_spill] sm:$0xff]  ;;  %v5972_v40 = vmul.f32 %v5423_v50, %v5435_v34  ;;  %v5992_v34 = vmul.f32 %v5423_v50, %v5465_v29 }
 0x29b   : > { %v5959_v26 = vmul.f32 %v5423_v50, %v7866_v52  ;;  %v5964_v22 = vld [vmem:[%s6957_s4] ss:$0 sm:$0xff]  ;;  %v5980_v52 = vmul.f32 %v5423_v50, %v5447_v15  ;;  %v6000_v15 = vmul.f32 %v5423_v50, %v5477_v46  ;;  %v6012_v29 = vmul.f32 %v5423_v50, %v5495_v25 }
 0x29c   : > { %7864 = vst [vmem:[#allocation16_spill] sm:$0xff] %v5951_v56  ;;  %v7868_v56 = vld [vmem:[#allocation57_spill] sm:$0xff]  ;;  %v6020_v46 = vadd.f32 %v5964_v22, %v5503_v7  ;;  %v6028_v8 = vadd.f32 %v5964_v22, %v5511_v45  ;;  %v6036_v25 = vadd.f32 %v5964_v22, %v5519_v30  ;;  %v6044_v7 = vadd.f32 %v5964_v22, %v5527_v20 }
 0x29d   : > { %7867 = vst [vmem:[#allocation18_spill] sm:$0xff] %v5959_v26  ;;  %v5976_v58 = vmul.f32 %v5423_v50, %v7868_v56  ;;  %v5984_v26 = vmul.f32 %v5423_v50, %v5453_v49  ;;  %v5996_v56 = vmul.f32 %v5423_v50, %v5471_v24  ;;  %v6004_v49 = vmul.f32 %v5423_v50, %v5483_v59 }
 0x29e   : > { %v6016_v24 = vadd.f32 %v5964_v22, %v5499_v17  ;;  %7870 = vst [vmem:[#allocation21_spill] sm:$0xff] %v6020_v46  ;;  %v6024_v59 = vadd.f32 %v5964_v22, %v5507_v32  ;;  %7872 = vst [vmem:[#allocation22_spill] sm:$0xff] %v6028_v8  ;;  %v6032_v50 = vadd.f32 %v5964_v22, %v5515_v6  ;;  %v7879_v6 = vld [vmem:[#allocation60_spill] sm:$0xff] }
 0x29f   : > { %7874 = vst [vmem:[#allocation25_spill] sm:$0xff] %v6036_v25  ;;  %v6040_v17 = vadd.f32 %v5964_v22, %v5523_v44  ;;  %7876 = vst [vmem:[#allocation26_spill] sm:$0xff] %v6044_v7  ;;  %v6048_v32 = vadd.f32 %v5964_v22, %v5531_v54  ;;  %v6052_v45 = vadd.f32 %v5964_v22, %v5535_v61  ;;  %v7881_v25 = vld [vmem:[#allocation63_spill] sm:$0xff]  ;;  %v7885_v7 = vld [vmem:[#allocation66_spill] sm:$0xff] }
 0x2a0   : > { %7869 = vst [vmem:[#allocation19_spill] sm:$0xff] %v6016_v24  ;;  %7871 = vst [vmem:[#allocation20_spill] sm:$0xff] %v6024_v59  ;;  %v6056_v30 = vadd.f32 %v5964_v22, %v7879_v6  ;;  %v6060_v44 = vadd.f32 %v5964_v22, %v7881_v25  ;;  %v6068_v54 = vadd.f32 %v5964_v22, %v7885_v7 }
 0x2a1   : > { %7873 = vst [vmem:[#allocation23_spill] sm:$0xff] %v6032_v50  ;;  %7875 = vst [vmem:[#allocation24_spill] sm:$0xff] %v6040_v17  ;;  %v7883_v17 = vld [vmem:[#allocation65_spill] sm:$0xff] }
 0x2a2   : > { %7877 = vst [vmem:[#allocation27_spill] sm:$0xff] %v6048_v32  ;;  %7878 = vst [vmem:[#allocation29_spill] sm:$0xff] %v6052_v45  ;;  %v6064_v20 = vadd.f32 %v5964_v22, %v7883_v17  ;;  %v7887_v32 = vld [vmem:[#allocation68_spill] sm:$0xff]  ;;  %v7889_v45 = vld [vmem:[#allocation69_spill] sm:$0xff] }
 0x2a3   : > { %7880 = vst [vmem:[#allocation28_spill] sm:$0xff] %v6056_v30  ;;  %7882 = vst [vmem:[#allocation30_spill] sm:$0xff] %v6060_v44  ;;  %v6072_v61 = vadd.f32 %v5964_v22, %v7887_v32  ;;  %v6076_v6 = vadd.f32 %v5964_v22, %v7889_v45  ;;  %v7891_v30 = vld [vmem:[#allocation71_spill] sm:$0xff]  ;;  %v7893_v44 = vld [vmem:[#allocation72_spill] sm:$0xff] }
 0x2a4   : > { %7884 = vst [vmem:[#allocation31_spill] sm:$0xff] %v6064_v20  ;;  %7886 = vst [vmem:[#allocation33_spill] sm:$0xff] %v6068_v54  ;;  %v6080_v25 = vadd.f32 %v5964_v22, %v7891_v30  ;;  %v6084_v17 = vadd.f32 %v5964_v22, %v7893_v44  ;;  %v7895_v20 = vld [vmem:[#allocation74_spill] sm:$0xff]  ;;  %v7897_v54 = vld [vmem:[#allocation75_spill] sm:$0xff] }
 0x2a5   : > { %7888 = vst [vmem:[#allocation32_spill] sm:$0xff] %v6072_v61  ;;  %7890 = vst [vmem:[#allocation34_spill] sm:$0xff] %v6076_v6  ;;  %v6088_v7 = vadd.f32 %v5964_v22, %v7895_v20  ;;  %v6092_v32 = vadd.f32 %v5964_v22, %v7897_v54  ;;  %v7899_v61 = vld [vmem:[#allocation76_spill] sm:$0xff]  ;;  %v7901_v6 = vld [vmem:[#allocation78_spill] sm:$0xff] }
 0x2a6   : > { %7892 = vst [vmem:[#allocation35_spill] sm:$0xff] %v6080_v25  ;;  %7894 = vst [vmem:[#allocation37_spill] sm:$0xff] %v6084_v17  ;;  %v6096_v45 = vadd.f32 %v5964_v22, %v7899_v61  ;;  %v6100_v30 = vadd.f32 %v5964_v22, %v7901_v6  ;;  %v7903_v25 = vld [vmem:[#allocation79_spill] sm:$0xff]  ;;  %v7905_v17 = vld [vmem:[#allocation81_spill] sm:$0xff] }
 0x2a7   : > { %7896 = vst [vmem:[#allocation36_spill] sm:$0xff] %v6088_v7  ;;  %7898 = vst [vmem:[#allocation38_spill] sm:$0xff] %v6092_v32  ;;  %v6104_v44 = vadd.f32 %v5964_v22, %v7903_v25  ;;  %v6108_v20 = vadd.f32 %v5964_v22, %v7905_v17  ;;  %v7907_v7 = vld [vmem:[#allocation83_spill] sm:$0xff]  ;;  %v7909_v32 = vld [vmem:[#allocation85_spill] sm:$0xff] }
 0x2a8   : > { %7900 = vst [vmem:[#allocation39_spill] sm:$0xff] %v6096_v45  ;;  %7902 = vst [vmem:[#allocation41_spill] sm:$0xff] %v6100_v30  ;;  %v6112_v54 = vadd.f32 %v5964_v22, %v7907_v7  ;;  %v6116_v61 = vadd.f32 %v5964_v22, %v7909_v32  ;;  %v7911_v45 = vld [vmem:[#allocation86_spill] sm:$0xff]  ;;  %v7913_v30 = vld [vmem:[#allocation87_spill] sm:$0xff] }
 0x2a9   : > { %7904 = vst [vmem:[#allocation40_spill] sm:$0xff] %v6104_v44  ;;  %7906 = vst [vmem:[#allocation42_spill] sm:$0xff] %v6108_v20  ;;  %v6120_v6 = vadd.f32 %v5964_v22, %v7911_v45  ;;  %v6124_v25 = vadd.f32 %v5964_v22, %v7913_v30  ;;  %v7915_v44 = vld [vmem:[#allocation88_spill] sm:$0xff]  ;;  %v7917_v20 = vld [vmem:[#allocation89_spill] sm:$0xff] }
 0x2aa   : > { %7908 = vst [vmem:[#allocation44_spill] sm:$0xff] %v6112_v54  ;;  %7910 = vst [vmem:[#allocation46_spill] sm:$0xff] %v6116_v61  ;;  %v6128_v17 = vadd.f32 %v5964_v22, %v7915_v44  ;;  %v6132_v7 = vadd.f32 %v5964_v22, %v7917_v20  ;;  %v7919_v54 = vld [vmem:[#allocation90_spill] sm:$0xff]  ;;  %v7921_v61 = vld [vmem:[#allocation91_spill] sm:$0xff] }
 0x2ab   : > { %7912 = vst [vmem:[#allocation47_spill] sm:$0xff] %v6120_v6  ;;  %7914 = vst [vmem:[#allocation50_spill] sm:$0xff] %v6124_v25  ;;  %v6136_v32 = vadd.f32 %v5964_v22, %v7919_v54  ;;  %v6140_v45 = vadd.f32 %v5964_v22, %v7921_v61  ;;  %v7923_v6 = vld [vmem:[#allocation92_spill] sm:$0xff]  ;;  %v7925_v25 = vld [vmem:[#allocation93_spill] sm:$0xff] }
 0x2ac   : > { %7916 = vst [vmem:[#allocation51_spill] sm:$0xff] %v6128_v17  ;;  %7918 = vst [vmem:[#allocation54_spill] sm:$0xff] %v6132_v7  ;;  %v6144_v30 = vadd.f32 %v5964_v22, %v7923_v6  ;;  %v6148_v44 = vadd.f32 %v5964_v22, %v7925_v25  ;;  %v7927_v17 = vld [vmem:[#allocation94_spill] sm:$0xff]  ;;  %v7929_v7 = vld [vmem:[#allocation95_spill] sm:$0xff] }
 0x2ad   : > { %7920 = vst [vmem:[#allocation55_spill] sm:$0xff] %v6136_v32  ;;  %7922 = vst [vmem:[#allocation57_spill] sm:$0xff] %v6140_v45  ;;  %v6152_v20 = vadd.f32 %v5964_v22, %v7927_v17  ;;  %v6156_v54 = vadd.f32 %v5964_v22, %v7929_v7  ;;  %v7931_v32 = vld [vmem:[#allocation96_spill] sm:$0xff]  ;;  %v7932_v45 = vld [vmem:[#allocation98_spill] sm:$0xff] }
 0x2ae   : > { %7924 = vst [vmem:[#allocation60_spill] sm:$0xff] %v6144_v30  ;;  %7926 = vst [vmem:[#allocation63_spill] sm:$0xff] %v6148_v44  ;;  %v6160_v61 = vadd.f32 %v5964_v22, %v7931_v32  ;;  %v6164_v6 = vadd.f32 %v5964_v22, %v7932_v45  ;;  %v7933_v30 = vld [vmem:[#allocation102_spill] sm:$0xff]  ;;  %v7935_v44 = vld [vmem:[#allocation3_spill] sm:$0xff]  ;;  %v6184_v45 = vadd.f32 %v5964_v22, %v5667_v55 }
 0x2af   : > { %7928 = vst [vmem:[#allocation65_spill] sm:$0xff] %v6152_v20  ;;  %7930 = vst [vmem:[#allocation66_spill] sm:$0xff] %v6156_v54  ;;  %v6168_v25 = vadd.f32 %v5964_v22, %v7933_v30  ;;  %v6172_v17 = vadd.f32 %v5964_v22, %v7935_v44  ;;  %v7937_v20 = vld [vmem:[#allocation5_spill] sm:$0xff]  ;;  %v7939_v54 = vld [vmem:[#allocation4_spill] sm:$0xff]  ;;  %v6188_v30 = vadd.f32 %v5964_v22, %v5671_v10 }
 0x2b0   : > { %v6176_v7 = vadd.f32 %v5964_v22, %v7937_v20  ;;  %v6180_v32 = vadd.f32 %v5964_v22, %v7939_v54  ;;  %v6204_v55 = vadd.f32 %v5964_v22, %v5687_v28  ;;  %v6208_v10 = vadd.f32 %v5964_v22, %v5691_v36 }
 0x2b1   : > { %7934 = vst [vmem:[#allocation68_spill] sm:$0xff] %v6168_v25  ;;  %7936 = vst [vmem:[#allocation69_spill] sm:$0xff] %v6172_v17  ;;  %v7942_v25 = vld [vmem:[#allocation6_spill] sm:$0xff]  ;;  %v7944_v17 = vld [vmem:[#allocation43_spill] sm:$0xff]  ;;  %v6228_v36 = vadd.f32 %v5964_v22, %v5711_v57 }
 0x2b2   : > { %7938 = vst [vmem:[#allocation71_spill] sm:$0xff] %v6176_v7  ;;  %7940 = vst [vmem:[#allocation72_spill] sm:$0xff] %v6180_v32  ;;  %v6192_v44 = vadd.f32 %v5964_v22, %v7942_v25  ;;  %v6196_v20 = vadd.f32 %v5964_v22, %v7944_v17  ;;  %v7945_v7 = vld [vmem:[#allocation45_spill] sm:$0xff]  ;;  %v6212_v25 = vadd.f32 %v5964_v22, %v5695_v43  ;;  %v8073_v8 = vld [vmem:[#allocation46_spill] sm:$0xff] }
 0x2b3   : > { %7941 = vst [vmem:[#allocation74_spill] sm:$0xff] %v6188_v30  ;;  %v6200_v54 = vadd.f32 %v5964_v22, %v7945_v7  ;;  %7947 = vst [vmem:[#allocation78_spill] sm:$0xff] %v6208_v10  ;;  %v6220_v7 = vadd.f32 %v5964_v22, %v5703_v23  ;;  %v7954_v10 = vld [vmem:[#allocation52_spill] sm:$0xff]  ;;  %v6240_v23 = vadd.f32 %v5964_v22, %v5723_v16  ;;  %v8163_v30 = vld [vmem:[#allocation34_spill] sm:$0xff] }
 0x2b4   : > { %7943 = vst [vmem:[#allocation75_spill] sm:$0xff] %v6192_v44  ;;  %7948 = vst [vmem:[#allocation79_spill] sm:$0xff] %v6212_v25  ;;  %v7949_v44 = vld [vmem:[#allocation49_spill] sm:$0xff]  ;;  %v6232_v43 = vadd.f32 %v5964_v22, %v7954_v10  ;;  %v6252_v10 = vadd.f32 %v5964_v22, %v5735_v11  ;;  %v6260_v16 = vadd.f32 %v5964_v22, %v5743_v12 }
 0x2b5   : > { %7946 = vst [vmem:[#allocation76_spill] sm:$0xff] %v6200_v54  ;;  %v6216_v17 = vadd.f32 %v5964_v22, %v7949_v44  ;;  %7951 = vst [vmem:[#allocation83_spill] sm:$0xff] %v6220_v7  ;;  %v7952_v54 = vld [vmem:[#allocation48_spill] sm:$0xff]  ;;  %v7955_v25 = vld [vmem:[#allocation53_spill] sm:$0xff]  ;;  %v6272_v11 = vadd.f32 %v5964_v22, %v5755_v19 }
 0x2b6   : > { %v6224_v28 = vadd.f32 %v5964_v22, %v7952_v54  ;;  %v6236_v44 = vadd.f32 %v5964_v22, %v7955_v25  ;;  %7956 = vst [vmem:[#allocation86_spill] sm:$0xff] %v6240_v23  ;;  %v6244_v54 = vadd.f32 %v5964_v22, %v5727_v33  ;;  %7960 = vst [vmem:[#allocation89_spill] sm:$0xff] %v6252_v10  ;;  %v7962_v23 = vld [vmem:[#allocation58_spill] sm:$0xff] }
 0x2b7   : > { %7950 = vst [vmem:[#allocation81_spill] sm:$0xff] %v6216_v17  ;;  %v6256_v25 = vadd.f32 %v5964_v22, %v5739_v2  ;;  %v6264_v33 = vadd.f32 %v5964_v22, %v7962_v23  ;;  %7964 = vst [vmem:[#allocation92_spill] sm:$0xff] %v6272_v11  ;;  %v6276_v2 = vadd.f32 %v5964_v22, %v5759_v3  ;;  %v7971_v11 = vld [vmem:[#allocation62_spill] sm:$0xff] }
 0x2b8   : > { %7953 = vst [vmem:[#allocation85_spill] sm:$0xff] %v6224_v28  ;;  %7957 = vst [vmem:[#allocation87_spill] sm:$0xff] %v6244_v54  ;;  %v7958_v28 = vld [vmem:[#allocation56_spill] sm:$0xff]  ;;  %v6284_v23 = vadd.f32 %v5964_v22, %v5767_v35  ;;  %v6296_v3 = vadd.f32 %v5964_v22, %v7971_v11  ;;  %v6304_v35 = vadd.f32 %v5964_v22, %v5787_v38  ;;  %v8085_v50 = vld [vmem:[#allocation69_spill] sm:$0xff] }
 0x2b9   : > { %v6248_v57 = vadd.f32 %v5964_v22, %v7958_v28  ;;  %7961 = vst [vmem:[#allocation90_spill] sm:$0xff] %v6256_v25  ;;  %v6268_v28 = vadd.f32 %v5964_v22, %v5751_v47  ;;  %7965 = vst [vmem:[#allocation93_spill] sm:$0xff] %v6276_v2  ;;  %v7966_v25 = vld [vmem:[#allocation59_spill] sm:$0xff]  ;;  %v6288_v47 = vadd.f32 %v5964_v22, %v5771_v27  ;;  %v8179_v17 = vld [vmem:[#allocation42_spill] sm:$0xff] }
 0x2ba   : > { %v6280_v12 = vadd.f32 %v5964_v22, %v7966_v25  ;;  %7968 = vst [vmem:[#allocation95_spill] sm:$0xff] %v6284_v23  ;;  %v6300_v25 = vadd.f32 %v5964_v22, %v5783_v21  ;;  %7973 = vst [vmem:[#allocation102_spill] sm:$0xff] %v6304_v35  ;;  %v7974_v23 = vld [vmem:[#allocation64_spill] sm:$0xff]  ;;  %v6316_v11 = vadd.f32 %v5964_v22, %v5799_v14  ;;  %v7981_v35 = vld [vmem:[#allocation73_spill] sm:$0xff] }
 0x2bb   : > { %7959 = vst [vmem:[#allocation88_spill] sm:$0xff] %v6248_v57  ;;  %7963 = vst [vmem:[#allocation91_spill] sm:$0xff] %v6268_v28  ;;  %v7970_v28 = vld [vmem:[#allocation61_spill] sm:$0xff]  ;;  %v6308_v27 = vadd.f32 %v5964_v22, %v7974_v23  ;;  %v6320_v21 = vadd.f32 %v5964_v22, %v5803_v42  ;;  %v6328_v23 = vadd.f32 %v5964_v22, %v7981_v35  ;;  %v8087_v24 = vld [vmem:[#allocation75_spill] sm:$0xff] }
 0x2bc   : > { %7967 = vst [vmem:[#allocation94_spill] sm:$0xff] %v6280_v12  ;;  %7969 = vst [vmem:[#allocation96_spill] sm:$0xff] %v6288_v47  ;;  %v6292_v19 = vadd.f32 %v5964_v22, %v7970_v28  ;;  %v7976_v47 = vld [vmem:[#allocation67_spill] sm:$0xff]  ;;  %v6336_v14 = vadd.f32 %v5964_v22, %v5819_v37  ;;  %v6348_v35 = vadd.f32 %v5964_v22, %v5831_v41  ;;  %v8088_v59 = vld [vmem:[#allocation76_spill] sm:$0xff] }
 0x2bd   : > { %7972 = vst [vmem:[#allocation98_spill] sm:$0xff] %v6300_v25  ;;  %7975 = vst [vmem:[#allocation3_spill] sm:$0xff] %v6308_v27  ;;  %v6312_v28 = vadd.f32 %v5964_v22, %v7976_v47  ;;  %v7980_v25 = vld [vmem:[#allocation70_spill] sm:$0xff]  ;;  %v6332_v47 = vadd.f32 %v5964_v22, %v5815_v60  ;;  %v6356_v37 = vadd.f32 %v5964_v22, %v5839_v31  ;;  %v8171_v12 = vld [vmem:[#allocation41_spill] sm:$0xff] }
 0x2be   : > { %7978 = vst [vmem:[#allocation4_spill] sm:$0xff] %v6316_v11  ;;  %7979 = vst [vmem:[#allocation6_spill] sm:$0xff] %v6320_v21  ;;  %v6324_v38 = vadd.f32 %v5964_v22, %v7980_v25  ;;  %v7984_v11 = vld [vmem:[#allocation77_spill] sm:$0xff]  ;;  %v7986_v21 = vld [vmem:[#allocation80_spill] sm:$0xff] }
 0x2bf   : > { %7977 = vst [vmem:[#allocation5_spill] sm:$0xff] %v6312_v28  ;;  %7982 = vst [vmem:[#allocation43_spill] sm:$0xff] %v6328_v23  ;;  %v6340_v42 = vadd.f32 %v5964_v22, %v7984_v11  ;;  %v6344_v25 = vadd.f32 %v5964_v22, %v7986_v21  ;;  %v7989_v23 = vld [vmem:[#allocation82_spill] sm:$0xff]  ;;  %v6364_v21 = vadd.f32 %v5964_v22, %v5847_v63  ;;  %v8091_v32 = vld [vmem:[#allocation85_spill] sm:$0xff] }
 0x2c0   : > { %7983 = vst [vmem:[#allocation45_spill] sm:$0xff] %v6336_v14  ;;  %7988 = vst [vmem:[#allocation52_spill] sm:$0xff] %v6348_v35  ;;  %v6352_v60 = vadd.f32 %v5964_v22, %v7989_v23  ;;  %v7992_v14 = vld [vmem:[#allocation84_spill] sm:$0xff]  ;;  %v6372_v23 = vadd.f32 %v5964_v22, %v5855_v51  ;;  %v8089_v46 = vld [vmem:[#allocation78_spill] sm:$0xff] }
 0x2c1   : > { %7985 = vst [vmem:[#allocation49_spill] sm:$0xff] %v6340_v42  ;;  %7987 = vst [vmem:[#allocation48_spill] sm:$0xff] %v6344_v25  ;;  %v6360_v11 = vadd.f32 %v5964_v22, %v7992_v14  ;;  %v7995_v25 = vld [vmem:[#allocation97_spill] sm:$0xff]  ;;  %v6380_v14 = vadd.f32 %v5964_v22, %v5863_v1  ;;  %v6400_v1 = vadd.f32 %v5964_v22, %v5883_v18  ;;  %v8099_v57 = vld [vmem:[#allocation102_spill] sm:$0xff] }
 0x2c2   : > { %7990 = vst [vmem:[#allocation53_spill] sm:$0xff] %v6352_v60  ;;  %7991 = vst [vmem:[#allocation56_spill] sm:$0xff] %v6356_v37  ;;  %v6368_v41 = vadd.f32 %v5964_v22, %v7995_v25  ;;  %v7998_v60 = vld [vmem:[#allocation99_spill] sm:$0xff]  ;;  %v6388_v25 = vadd.f32 %v5964_v22, %v5871_v9 }
 0x2c3   : > { %7993 = vst [vmem:[#allocation58_spill] sm:$0xff] %v6360_v11  ;;  %7994 = vst [vmem:[#allocation59_spill] sm:$0xff] %v6364_v21  ;;  %v6376_v31 = vadd.f32 %v5964_v22, %v7998_v60  ;;  %v8001_v11 = vld [vmem:[#allocation100_spill] sm:$0xff]  ;;  %v8094_v7 = vld [vmem:[#allocation91_spill] sm:$0xff] }
 0x2c4   : > { %7996 = vst [vmem:[#allocation61_spill] sm:$0xff] %v6368_v41  ;;  %7997 = vst [vmem:[#allocation62_spill] sm:$0xff] %v6372_v23  ;;  %v6384_v63 = vadd.f32 %v5964_v22, %v8001_v11  ;;  %v8004_v41 = vld [vmem:[#allocation101_spill] sm:$0xff]  ;;  %v8006_v23 = vld [vmem:[#allocation103_spill] sm:$0xff] }
 0x2c5   : > { %7999 = vst [vmem:[#allocation64_spill] sm:$0xff] %v6376_v31  ;;  %8000 = vst [vmem:[#allocation67_spill] sm:$0xff] %v6380_v14  ;;  %v6392_v51 = vadd.f32 %v5964_v22, %v8004_v41  ;;  %v6396_v60 = vadd.f32 %v5964_v22, %v8006_v23  ;;  %v8009_v14 = vld [vmem:[#allocation104_spill] sm:$0xff]  ;;  %v8101_v2 = vld [vmem:[#allocation6_spill] sm:$0xff] }
 0x2c6   : > { %8002 = vst [vmem:[#allocation70_spill] sm:$0xff] %v6384_v63  ;;  %8003 = vst [vmem:[#allocation73_spill] sm:$0xff] %v6388_v25  ;;  %v6404_v11 = vadd.f32 %v5964_v22, %v8009_v14  ;;  %v8011_v63 = vld [vmem:[#allocation105_spill] sm:$0xff]  ;;  %v8013_v25 = vld [vmem:[#allocation7_spill] sm:$0xff] }
 0x2c7   : > { %8005 = vst [vmem:[#allocation77_spill] sm:$0xff] %v6392_v51  ;;  %8007 = vst [vmem:[#allocation80_spill] sm:$0xff] %v6396_v60  ;;  %v6408_v9 = vadd.f32 %v5964_v22, %v8011_v63  ;;  %v6412_v41 = vadd.f32 %v5964_v22, %v8013_v25  ;;  %v8015_v51 = vld [vmem:[#allocation9_spill] sm:$0xff]  ;;  %v8016_v60 = vld [vmem:[#allocation8_spill] sm:$0xff] }
 0x2c8   : > { %8008 = vst [vmem:[#allocation82_spill] sm:$0xff] %v6400_v1  ;;  %8010 = vst [vmem:[#allocation84_spill] sm:$0xff] %v6404_v11  ;;  %v6416_v23 = vadd.f32 %v5964_v22, %v8015_v51  ;;  %v6420_v18 = vadd.f32 %v5964_v22, %v8016_v60  ;;  %v8018_v1 = vld [vmem:[#allocation10_spill] sm:$0xff]  ;;  %v8020_v11 = vld [vmem:[#allocation11_spill] sm:$0xff]  ;;  %v6440_v60 = vadd.f32 %v5964_v22, %v5923_v48 }
 0x2c9   : > { %8012 = vst [vmem:[#allocation97_spill] sm:$0xff] %v6408_v9  ;;  %8014 = vst [vmem:[#allocation99_spill] sm:$0xff] %v6412_v41  ;;  %v6424_v14 = vadd.f32 %v5964_v22, %v8018_v1  ;;  %v6428_v63 = vadd.f32 %v5964_v22, %v8020_v11  ;;  %v8022_v9 = vld [vmem:[#allocation13_spill] sm:$0xff]  ;;  %v8024_v41 = vld [vmem:[#allocation12_spill] sm:$0xff]  ;;  %v6460_v48 = vadd.f32 %v5964_v22, %v5943_v62 }
 0x2ca   : > { %8017 = vst [vmem:[#allocation100_spill] sm:$0xff] %v6420_v18  ;;  %v6432_v25 = vadd.f32 %v5964_v22, %v8022_v9  ;;  %v6436_v51 = vadd.f32 %v5964_v22, %v8024_v41  ;;  %8026 = vst [vmem:[#allocation7_spill] sm:$0xff] %v6440_v60  ;;  %v8027_v18 = vld [vmem:[#allocation14_spill] sm:$0xff]  ;;  %v6456_v41 = vadd.f32 %v5964_v22, %v5939_v13  ;;  %v8097_v54 = vld [vmem:[#allocation96_spill] sm:$0xff] }
 0x2cb   : > { %8019 = vst [vmem:[#allocation101_spill] sm:$0xff] %v6424_v14  ;;  %8021 = vst [vmem:[#allocation103_spill] sm:$0xff] %v6428_v63  ;;  %v6444_v1 = vadd.f32 %v5964_v22, %v8027_v18  ;;  %v8029_v14 = vld [vmem:[#allocation15_spill] sm:$0xff]  ;;  %v8031_v63 = vld [vmem:[#allocation17_spill] sm:$0xff]  ;;  %v6464_v18 = vadd.f32 %v5964_v22, %v5947_v4  ;;  %v6480_v62 = vadd.f32 %v5964_v22, %v5968_v53 }
 0x2cc   : > { %8023 = vst [vmem:[#allocation104_spill] sm:$0xff] %v6432_v25  ;;  %8025 = vst [vmem:[#allocation105_spill] sm:$0xff] %v6436_v51  ;;  %v6448_v11 = vadd.f32 %v5964_v22, %v8029_v14  ;;  %v6452_v9 = vadd.f32 %v5964_v22, %v8031_v63  ;;  %v6472_v63 = vadd.f32 %v5964_v22, %v5955_v0  ;;  %v8135_v37 = vld [vmem:[#allocation23_spill] sm:$0xff]  ;;  %v8159_v25 = vld [vmem:[#allocation32_spill] sm:$0xff] }
 0x2cd   : > { %8028 = vst [vmem:[#allocation9_spill] sm:$0xff] %v6444_v1  ;;  %8033 = vst [vmem:[#allocation11_spill] sm:$0xff] %v6456_v41  ;;  %v8036_v1 = vld [vmem:[#allocation16_spill] sm:$0xff]  ;;  %v6484_v4 = vadd.f32 %v5964_v22, %v5972_v40  ;;  %v6492_v0 = vadd.f32 %v5964_v22, %v5980_v52  ;;  %v6500_v53 = vadd.f32 %v5964_v22, %v5988_v5  ;;  %v8110_v42 = vld [vmem:[#allocation70_spill] sm:$0xff] }
 0x2ce   : > { %8030 = vst [vmem:[#allocation8_spill] sm:$0xff] %v6448_v11  ;;  %8032 = vst [vmem:[#allocation10_spill] sm:$0xff] %v6452_v9  ;;  %v6468_v14 = vadd.f32 %v5964_v22, %v8036_v1  ;;  %v8039_v9 = vld [vmem:[#allocation18_spill] sm:$0xff]  ;;  %v6488_v1 = vadd.f32 %v5964_v22, %v5976_v58  ;;  %v6504_v40 = vadd.f32 %v5964_v22, %v5992_v34  ;;  %v8111_v10 = vld [vmem:[#allocation73_spill] sm:$0xff] }
 0x2cf   : > { %8034 = vst [vmem:[#allocation13_spill] sm:$0xff] %v6460_v48  ;;  %8035 = vst [vmem:[#allocation12_spill] sm:$0xff] %v6464_v18  ;;  %v6476_v13 = vadd.f32 %v5964_v22, %v8039_v9  ;;  %v6496_v9 = vadd.f32 %v5964_v22, %v5984_v26  ;;  %v6508_v58 = vadd.f32 %v5964_v22, %v5996_v56  ;;  %v8112_v35 = vld [vmem:[#allocation77_spill] sm:$0xff]  ;;  %v8113_v27 = vld [vmem:[#allocation80_spill] sm:$0xff] }
 0x2d0   : > { %8037 = vst [vmem:[#allocation14_spill] sm:$0xff] %v6468_v14  ;;  %8038 = vst [vmem:[#allocation15_spill] sm:$0xff] %v6472_v63  ;;  %v6512_v52 = vadd.f32 %v5964_v22, %v6000_v15  ;;  %v6516_v26 = vadd.f32 %v5964_v22, %v6004_v49  ;;  %v6520_v5 = vadd.f32 %v5964_v22, %v6008_v39  ;;  %v8086_v39 = vld [vmem:[#allocation71_spill] sm:$0xff]  ;;  %v8093_v49 = vld [vmem:[#allocation90_spill] sm:$0xff] }
 0x2d1   : > { %8040 = vst [vmem:[#allocation17_spill] sm:$0xff] %v6476_v13  ;;  %8041 = vst [vmem:[#allocation16_spill] sm:$0xff] %v6480_v62  ;;  %v6524_v34 = vadd.f32 %v5964_v22, %v6012_v29  ;;  %v8079_v22 = vld [vmem:[#allocation57_spill] sm:$0xff]  ;;  %v8136_v29 = vmax.f32 %v8135_v37, 0.0  ;;  %v8141_v48 = vld [vmem:[#allocation20_spill] sm:$0xff] }
 0x2d2   : > { %8042 = vst [vmem:[#allocation18_spill] sm:$0xff] %v6484_v4  ;;  %8043 = vst [vmem:[#allocation106_spill] sm:$0xff] %v6488_v1  ;;  %v8133_v4 = vld [vmem:[#allocation19_spill] sm:$0xff]  ;;  %v8139_v56 = vld [vmem:[#allocation25_spill] sm:$0xff]  ;;  %v8142_v15 = vmax.f32 %v8141_v48, 0.0 }
 0x2d3   : > { %8044 = vst [vmem:[#allocation107_spill] sm:$0xff] %v6492_v0  ;;  %8045 = vst [vmem:[#allocation108_spill] sm:$0xff] %v6496_v9  ;;  %v8078_v0 = vld [vmem:[#allocation55_spill] sm:$0xff]  ;;  %v8134_v1 = vmax.f32 %v8133_v4, 0.0  ;;  %v8140_v41 = vmax.f32 %v8139_v56, 0.0  ;;  %v8143_v18 = vld [vmem:[#allocation24_spill] sm:$0xff] }
 0x2d4   : > { %8046 = vst [vmem:[#allocation109_spill] sm:$0xff] %v6500_v53  ;;  %8047 = vst [vmem:[#allocation110_spill] sm:$0xff] %v6504_v40  ;;  %v8076_v53 = vld [vmem:[#allocation51_spill] sm:$0xff]  ;;  %v8137_v40 = vld [vmem:[#allocation21_spill] sm:$0xff] }
 0x2d5   : > { %8048 = vst [vmem:[#allocation111_spill] sm:$0xff] %v6508_v58  ;;  %8049 = vst [vmem:[#allocation112_spill] sm:$0xff] %v6512_v52  ;;  %v2495_v60 = vadd.f32 %v8136_v29, %v8134_v1  ;;  %v8138_v21 = vmax.f32 %v8137_v40, 0.0  ;;  %v8144_v52 = vmax.f32 %v8143_v18, 0.0  ;;  %v8147_v9 = vld [vmem:[#allocation26_spill] sm:$0xff]  ;;  %v8149_v62 = vld [vmem:[#allocation27_spill] sm:$0xff] }
 0x2d6   : > { %8050 = vst [vmem:[#allocation113_spill] sm:$0xff] %v6516_v26  ;;  %8051 = vst [vmem:[#allocation114_spill] sm:$0xff] %v6520_v5  ;;  %v8145_v26 = vld [vmem:[#allocation22_spill] sm:$0xff]  ;;  %v8148_v13 = vmax.f32 %v8147_v9, 0.0  ;;  %v8150_v4 = vmax.f32 %v8149_v62, 0.0  ;;  %v8151_v51 = vld [vmem:[#allocation31_spill] sm:$0xff] }
 0x2d7   : > { %8052 = vst [vmem:[#allocation115_spill] sm:$0xff] %v6524_v34  ;;  %v8080_v34 = vld [vmem:[#allocation60_spill] sm:$0xff]  ;;  %v2496_v58 = vadd.f32 %v8140_v41, %v8138_v21  ;;  %v2497_v14 = vadd.f32 %v8144_v52, %v8142_v15  ;;  %v8146_v63 = vmax.f32 %v8145_v26, 0.0  ;;  %v8152_v37 = vmax.f32 %v8151_v51, 0.0  ;;  %v8153_v29 = vld [vmem:[#allocation29_spill] sm:$0xff]  ;;  %v8161_v15 = vld [vmem:[#allocation30_spill] sm:$0xff] }
 0x2d8   : > { %v8154_v40 = vmax.f32 %v8153_v29, 0.0  ;;  %v8155_v11 = vld [vmem:[#allocation33_spill] sm:$0xff]  ;;  %v8157_v41 = vld [vmem:[#allocation28_spill] sm:$0xff]  ;;  %v8160_v18 = vmax.f32 %v8159_v25, 0.0  ;;  %v8162_v26 = vmax.f32 %v8161_v15, 0.0  ;;  %v8164_v9 = vmax.f32 %v8163_v30, 0.0 }
 0x2d9   : > { %v2498_v5 = vadd.f32 %v8148_v13, %v8146_v63  ;;  %v2499_v1 = vadd.f32 %v8152_v37, %v8150_v4  ;;  %v8156_v56 = vmax.f32 %v8155_v11, 0.0  ;;  %v8158_v48 = vmax.f32 %v8157_v41, 0.0  ;;  %v8165_v13 = vld [vmem:[#allocation35_spill] sm:$0xff]  ;;  %v8169_v37 = vld [vmem:[#allocation37_spill] sm:$0xff]  ;;  %v8175_v31 = vld [vmem:[#allocation40_spill] sm:$0xff]  ;;  %2559 = vst [vmem:[#allocation2] sm:$0xff] %v2495_v60 }
 0x2da   : > { %v2502_v63 = vadd.f32 %v8164_v9, %v8162_v26  ;;  %v8166_v62 = vmax.f32 %v8165_v13, 0.0  ;;  %v8167_v28 = vld [vmem:[#allocation39_spill] sm:$0xff]  ;;  %v8170_v29 = vmax.f32 %v8169_v37, 0.0  ;;  %v8172_v11 = vmax.f32 %v8171_v12, 0.0  ;;  %2560 = vst [vmem:[#allocation2 + $0x8] sm:$0xff] %v2496_v58  ;;  %2561 = vst [vmem:[#allocation2 + $0x10] sm:$0xff] %v2497_v14 }
 0x2db   : > { %v2500_v21 = vadd.f32 %v8156_v56, %v8154_v40  ;;  %v2501_v52 = vadd.f32 %v8160_v18, %v8158_v48  ;;  %v8168_v51 = vmax.f32 %v8167_v28, 0.0  ;;  %v8173_v56 = vld [vmem:[#allocation36_spill] sm:$0xff]  ;;  %v8176_v25 = vmax.f32 %v8175_v31, 0.0  ;;  %v8177_v18 = vld [vmem:[#allocation38_spill] sm:$0xff]  ;;  %2562 = vst [vmem:[#allocation2 + $0x18] sm:$0xff] %v2498_v5  ;;  %2563 = vst [vmem:[#allocation2 + $0x20] sm:$0xff] %v2499_v1 }
 0x2dc   : > { %v2504_v40 = vadd.f32 %v8172_v11, %v8170_v29  ;;  %v8174_v41 = vmax.f32 %v8173_v56, 0.0  ;;  %v8178_v15 = vmax.f32 %v8177_v18, 0.0  ;;  %v8180_v30 = vmax.f32 %v8179_v17, 0.0  ;;  %v8181_v28 = vld [vmem:[#allocation44_spill] sm:$0xff]  ;;  %v8187_v29 = vld [vmem:[#allocation47_spill] sm:$0xff]  ;;  %2566 = vst [vmem:[#allocation2 + $0x38] sm:$0xff] %v2502_v63 }
 0x2dd   : > { %v2503_v4 = vadd.f32 %v8168_v51, %v8166_v62  ;;  %v8182_v9 = vmax.f32 %v8181_v28, 0.0  ;;  %v8183_v13 = vmax.f32 %v8076_v53, 0.0  ;;  %v8184_v62 = vmax.f32 %v8073_v8, 0.0  ;;  %v8185_v51 = vld [vmem:[#allocation54_spill] sm:$0xff]  ;;  %2564 = vst [vmem:[#allocation2 + $0x28] sm:$0xff] %v2500_v21  ;;  %2565 = vst [vmem:[#allocation2 + $0x30] sm:$0xff] %v2501_v52 }
 0x2de   : > { %v2505_v48 = vadd.f32 %v8176_v25, %v8174_v41  ;;  %v2506_v26 = vadd.f32 %v8180_v30, %v8178_v15  ;;  %v8186_v37 = vmax.f32 %v8185_v51, 0.0  ;;  %v8188_v11 = vmax.f32 %v8187_v29, 0.0  ;;  %v8190_v41 = vld [vmem:[#allocation50_spill] sm:$0xff]  ;;  %v8195_v25 = vld [vmem:[#allocation63_spill] sm:$0xff]  ;;  %v8198_v30 = vld [vmem:[#allocation65_spill] sm:$0xff]  ;;  %2568 = vst [vmem:[#allocation2 + $0x48] sm:$0xff] %v2504_v40 }
 0x2df   : > { %v2507_v12 = vadd.f32 %v8183_v13, %v8182_v9  ;;  %v8189_v56 = vmax.f32 %v8078_v0, 0.0  ;;  %v8191_v60 = vmax.f32 %v8190_v41, 0.0  ;;  %v8192_v14 = vmax.f32 %v8079_v22, 0.0  ;;  %v8200_v9 = vld [vmem:[#allocation68_spill] sm:$0xff]  ;;  %2567 = vst [vmem:[#allocation2 + $0x40] sm:$0xff] %v2503_v4  ;;  %v8212_v41 = vld [vmem:[#allocation74_spill] sm:$0xff] }
 0x2e0   : > { %v2508_v31 = vadd.f32 %v8186_v37, %v8184_v62  ;;  %v8193_v53 = vmax.f32 %v8080_v34, 0.0  ;;  %v8194_v8 = vmax.f32 %v6160_v61, 0.0  ;;  %v8196_v18 = vmax.f32 %v8195_v25, 0.0  ;;  %v8202_v62 = vld [vmem:[#allocation66_spill] sm:$0xff]  ;;  %2569 = vst [vmem:[#allocation2 + $0x50] sm:$0xff] %v2505_v48  ;;  %2570 = vst [vmem:[#allocation2 + $0x58] sm:$0xff] %v2506_v26 }
 0x2e1   : > { %v2509_v17 = vadd.f32 %v8189_v56, %v8188_v11  ;;  %v2510_v58 = vadd.f32 %v8192_v14, %v8191_v60  ;;  %v8197_v15 = vmax.f32 %v6164_v6, 0.0  ;;  %v8199_v28 = vmax.f32 %v8198_v30, 0.0  ;;  %v8207_v63 = vld [vmem:[#allocation72_spill] sm:$0xff]  ;;  %2571 = vst [vmem:[#allocation2 + $0x60] sm:$0xff] %v2507_v12  ;;  %v8217_v26 = vld [vmem:[#allocation79_spill] sm:$0xff]  ;;  %v8220_v14 = vld [vmem:[#allocation81_spill] sm:$0xff] }
 0x2e2   : > { %v2511_v5 = vadd.f32 %v8194_v8, %v8193_v53  ;;  %v8201_v13 = vmax.f32 %v8200_v9, 0.0  ;;  %v8203_v1 = vmax.f32 %v8202_v62, 0.0  ;;  %v8204_v21 = vmax.f32 %v8085_v50, 0.0  ;;  %2572 = vst [vmem:[#allocation2 + $0x68] sm:$0xff] %v2508_v31  ;;  %v8223_v25 = vld [vmem:[#allocation83_spill] sm:$0xff]  ;;  %v8235_v62 = vld [vmem:[#allocation89_spill] sm:$0xff] }
 0x2e3   : > { %v2512_v0 = vadd.f32 %v8197_v15, %v8196_v18  ;;  %v8205_v61 = vmax.f32 %v8086_v39, 0.0  ;;  %v8206_v34 = vmax.f32 %v8087_v24, 0.0  ;;  %v8208_v51 = vmax.f32 %v8207_v63, 0.0  ;;  %2573 = vst [vmem:[#allocation2 + $0x70] sm:$0xff] %v2509_v17  ;;  %2574 = vst [vmem:[#allocation2 + $0x78] sm:$0xff] %v2510_v58  ;;  %v8229_v18 = vld [vmem:[#allocation87_spill] sm:$0xff] }
 0x2e4   : > { %v2513_v22 = vadd.f32 %v8201_v13, %v8199_v28  ;;  %v2514_v52 = vadd.f32 %v8204_v21, %v8203_v1  ;;  %v8209_v37 = vmax.f32 %v6196_v20, 0.0  ;;  %v8210_v11 = vmax.f32 %v6184_v45, 0.0  ;;  %2575 = vst [vmem:[#allocation2 + $0x80] sm:$0xff] %v2511_v5  ;;  %v8232_v28 = vld [vmem:[#allocation88_spill] sm:$0xff]  ;;  %v8244_v63 = vld [vmem:[#allocation94_spill] sm:$0xff] }
 0x2e5   : > { %v2515_v6 = vadd.f32 %v8206_v34, %v8205_v61  ;;  %v8211_v56 = vmax.f32 %v8088_v59, 0.0  ;;  %v8213_v4 = vmax.f32 %v8212_v41, 0.0  ;;  %v8214_v40 = vmax.f32 %v6204_v55, 0.0  ;;  %2576 = vst [vmem:[#allocation2 + $0x88] sm:$0xff] %v2512_v0 }
 0x2e6   : > { %v2516_v29 = vadd.f32 %v8209_v37, %v8208_v51  ;;  %v8215_v24 = vmax.f32 %v8089_v46, 0.0  ;;  %v8216_v39 = vmax.f32 %v8091_v32, 0.0  ;;  %v8218_v60 = vmax.f32 %v8217_v26, 0.0  ;;  %2577 = vst [vmem:[#allocation2 + $0x90] sm:$0xff] %v2513_v22  ;;  %2578 = vst [vmem:[#allocation2 + $0x98] sm:$0xff] %v2514_v52  ;;  %v8226_v46 = vld [vmem:[#allocation86_spill] sm:$0xff] }
 0x2e7   : > { %v2517_v50 = vadd.f32 %v8211_v56, %v8210_v11  ;;  %v2518_v48 = vadd.f32 %v8214_v40, %v8213_v4  ;;  %v8219_v45 = vmax.f32 %v6228_v36, 0.0  ;;  %v8221_v53 = vmax.f32 %v8220_v14, 0.0  ;;  %2579 = vst [vmem:[#allocation2 + $0xa0] sm:$0xff] %v2515_v6  ;;  %v8241_v52 = vld [vmem:[#allocation93_spill] sm:$0xff]  ;;  %v8247_v11 = vld [vmem:[#allocation95_spill] sm:$0xff]  ;;  %v8260_v14 = vld [vmem:[#allocation4_spill] sm:$0xff] }
 0x2e8   : > { %v2519_v20 = vadd.f32 %v8216_v39, %v8215_v24  ;;  %v8222_v8 = vmax.f32 %v6232_v43, 0.0  ;;  %v8224_v12 = vmax.f32 %v8223_v25, 0.0  ;;  %v8225_v31 = vmax.f32 %v6236_v44, 0.0  ;;  %2580 = vst [vmem:[#allocation2 + $0xa8] sm:$0xff] %v2516_v29  ;;  %v8249_v29 = vld [vmem:[#allocation98_spill] sm:$0xff]  ;;  %v8253_v4 = vld [vmem:[#allocation3_spill] sm:$0xff] }
 0x2e9   : > { %v2520_v59 = vadd.f32 %v8219_v45, %v8218_v60  ;;  %v8227_v32 = vmax.f32 %v8226_v46, 0.0  ;;  %v8228_v58 = vmax.f32 %v8093_v49, 0.0  ;;  %v8230_v15 = vmax.f32 %v8229_v18, 0.0  ;;  %2581 = vst [vmem:[#allocation2 + $0xb0] sm:$0xff] %v2517_v50  ;;  %2582 = vst [vmem:[#allocation2 + $0xb8] sm:$0xff] %v2518_v48  ;;  %v8238_v49 = vld [vmem:[#allocation92_spill] sm:$0xff] }
 0x2ea   : > { %v2521_v55 = vadd.f32 %v8222_v8, %v8221_v53  ;;  %v2522_v17 = vadd.f32 %v8225_v31, %v8224_v12  ;;  %v8231_v30 = vmax.f32 %v6260_v16, 0.0  ;;  %v8233_v9 = vmax.f32 %v8232_v28, 0.0  ;;  %2583 = vst [vmem:[#allocation2 + $0xc0] sm:$0xff] %v2519_v20  ;;  %v8256_v24 = vld [vmem:[#allocation5_spill] sm:$0xff]  ;;  %v8258_v26 = vld [vmem:[#allocation43_spill] sm:$0xff]  ;;  %v8269_v31 = vld [vmem:[#allocation56_spill] sm:$0xff] }
 0x2eb   : > { %v2523_v36 = vadd.f32 %v8228_v58, %v8227_v32  ;;  %v8234_v13 = vmax.f32 %v6264_v33, 0.0  ;;  %v8236_v5 = vmax.f32 %v8235_v62, 0.0  ;;  %v8237_v0 = vmax.f32 %v8094_v7, 0.0  ;;  %2584 = vst [vmem:[#allocation2 + $0xc8] sm:$0xff] %v2520_v59  ;;  %v8265_v8 = vld [vmem:[#allocation53_spill] sm:$0xff]  ;;  %v8271_v32 = vld [vmem:[#allocation48_spill] sm:$0xff] }
 0x2ec   : > { %v2524_v43 = vadd.f32 %v8231_v30, %v8230_v15  ;;  %v8239_v1 = vmax.f32 %v8238_v49, 0.0  ;;  %v8240_v21 = vmax.f32 %v8097_v54, 0.0  ;;  %v8242_v61 = vmax.f32 %v8241_v52, 0.0  ;;  %2585 = vst [vmem:[#allocation2 + $0xd0] sm:$0xff] %v2521_v55  ;;  %2586 = vst [vmem:[#allocation2 + $0xd8] sm:$0xff] %v2522_v17  ;;  %v8267_v25 = vld [vmem:[#allocation49_spill] sm:$0xff] }
 0x2ed   : > { %v2525_v44 = vadd.f32 %v8234_v13, %v8233_v9  ;;  %v2526_v22 = vadd.f32 %v8237_v0, %v8236_v5  ;;  %v8243_v34 = vmax.f32 %v6292_v19, 0.0  ;;  %v8245_v51 = vmax.f32 %v8244_v63, 0.0  ;;  %2587 = vst [vmem:[#allocation2 + $0xe0] sm:$0xff] %v2523_v36  ;;  %v8273_v18 = vld [vmem:[#allocation58_spill] sm:$0xff]  ;;  %v8275_v30 = vld [vmem:[#allocation52_spill] sm:$0xff]  ;;  %v8279_v13 = vld [vmem:[#allocation61_spill] sm:$0xff] }
 0x2ee   : > { %v2527_v16 = vadd.f32 %v8240_v21, %v8239_v1  ;;  %v8246_v37 = vmax.f32 %v6296_v3, 0.0  ;;  %v8248_v6 = vmax.f32 %v8247_v11, 0.0  ;;  %v8250_v56 = vmax.f32 %v8249_v29, 0.0  ;;  %2588 = vst [vmem:[#allocation2 + $0xe8] sm:$0xff] %v2524_v43  ;;  %v8277_v43 = vld [vmem:[#allocation59_spill] sm:$0xff]  ;;  %v8282_v0 = vld [vmem:[#allocation62_spill] sm:$0xff] }
 0x2ef   : > { %v2528_v33 = vadd.f32 %v8243_v34, %v8242_v61  ;;  %v8251_v54 = vmax.f32 %v8099_v57, 0.0  ;;  %v8252_v41 = vmax.f32 %v8101_v2, 0.0  ;;  %v8254_v40 = vmax.f32 %v8253_v4, 0.0  ;;  %2589 = vst [vmem:[#allocation2 + $0xf0] sm:$0xff] %v2525_v44  ;;  %2590 = vst [vmem:[#allocation2 + $0xf8] sm:$0xff] %v2526_v22  ;;  %v8263_v57 = vld [vmem:[#allocation45_spill] sm:$0xff] }
 0x2f0   : > { %v2529_v7 = vadd.f32 %v8246_v37, %v8245_v51  ;;  %v2530_v50 = vadd.f32 %v8250_v56, %v8248_v6  ;;  %v8255_v48 = vmax.f32 %v6324_v38, 0.0  ;;  %v8257_v39 = vmax.f32 %v8256_v24, 0.0  ;;  %2591 = vst [vmem:[#allocation2 + $0x100] sm:$0xff] %v2527_v16  ;;  %v8285_v21 = vld [vmem:[#allocation64_spill] sm:$0xff]  ;;  %v8288_v63 = vld [vmem:[#allocation67_spill] sm:$0xff] }
 0x2f1   : > { %v2531_v19 = vadd.f32 %v8252_v41, %v8251_v54  ;;  %v8259_v60 = vmax.f32 %v8258_v26, 0.0  ;;  %v8261_v20 = vmax.f32 %v8260_v14, 0.0  ;;  %v8262_v59 = vmax.f32 %v6332_v47, 0.0  ;;  %2592 = vst [vmem:[#allocation2 + $0x108] sm:$0xff] %v2528_v33  ;;  %v8294_v11 = vld [vmem:[#allocation84_spill] sm:$0xff]  ;;  %v8300_v41 = vld [vmem:[#allocation101_spill] sm:$0xff] }
 0x2f2   : > { %v2532_v3 = vadd.f32 %v8255_v48, %v8254_v40  ;;  %v8264_v2 = vmax.f32 %v8263_v57, 0.0  ;;  %v8266_v55 = vmax.f32 %v8265_v8, 0.0  ;;  %v8268_v12 = vmax.f32 %v8267_v25, 0.0  ;;  %2593 = vst [vmem:[#allocation2 + $0x110] sm:$0xff] %v2529_v7  ;;  %2594 = vst [vmem:[#allocation2 + $0x118] sm:$0xff] %v2530_v50  ;;  %v8296_v29 = vld [vmem:[#allocation100_spill] sm:$0xff] }
 0x2f3   : > { %v2533_v45 = vadd.f32 %v8259_v60, %v8257_v39  ;;  %v2534_v53 = vadd.f32 %v8262_v59, %v8261_v20  ;;  %v8270_v17 = vmax.f32 %v8269_v31, 0.0  ;;  %v8272_v58 = vmax.f32 %v8271_v32, 0.0  ;;  %2595 = vst [vmem:[#allocation2 + $0x120] sm:$0xff] %v2531_v19  ;;  %v8298_v50 = vld [vmem:[#allocation97_spill] sm:$0xff]  ;;  %v8302_v40 = vld [vmem:[#allocation99_spill] sm:$0xff]  ;;  %v8308_v26 = vld [vmem:[#allocation8_spill] sm:$0xff] }
 0x2f4   : > { %v2535_v38 = vadd.f32 %v8266_v55, %v8264_v2  ;;  %v8274_v15 = vmax.f32 %v8273_v18, 0.0  ;;  %v8276_v36 = vmax.f32 %v8275_v30, 0.0  ;;  %v8278_v28 = vmax.f32 %v8277_v43, 0.0  ;;  %2596 = vst [vmem:[#allocation2 + $0x128] sm:$0xff] %v2532_v3  ;;  %v8304_v48 = vld [vmem:[#allocation103_spill] sm:$0xff]  ;;  %v8310_v14 = vld [vmem:[#allocation105_spill] sm:$0xff] }
 0x2f5   : > { %v2536_v46 = vadd.f32 %v8270_v17, %v8268_v12  ;;  %v8280_v44 = vmax.f32 %v8279_v13, 0.0  ;;  %v8281_v62 = vmax.f32 %v8110_v42, 0.0  ;;  %v8283_v22 = vmax.f32 %v8282_v0, 0.0  ;;  %2597 = vst [vmem:[#allocation2 + $0x130] sm:$0xff] %v2533_v45  ;;  %2598 = vst [vmem:[#allocation2 + $0x138] sm:$0xff] %v2534_v53  ;;  %v8291_v42 = vld [vmem:[#allocation82_spill] sm:$0xff] }
 0x2f6   : > { %v2537_v47 = vadd.f32 %v8274_v15, %v8272_v58  ;;  %v2538_v9 = vadd.f32 %v8278_v28, %v8276_v36  ;;  %v8284_v49 = vmax.f32 %v8111_v10, 0.0  ;;  %v8286_v52 = vmax.f32 %v8285_v21, 0.0  ;;  %2599 = vst [vmem:[#allocation2 + $0x140] sm:$0xff] %v2535_v38  ;;  %v8312_v59 = vld [vmem:[#allocation10_spill] sm:$0xff]  ;;  %v8314_v2 = vld [vmem:[#allocation7_spill] sm:$0xff]  ;;  %v8318_v31 = vld [vmem:[#allocation9_spill] sm:$0xff] }
 0x2f7   : > { %v2539_v5 = vadd.f32 %v8281_v62, %v8280_v44  ;;  %v8287_v61 = vmax.f32 %v8112_v35, 0.0  ;;  %v8289_v16 = vmax.f32 %v8288_v63, 0.0  ;;  %v8290_v33 = vmax.f32 %v8113_v27, 0.0  ;;  %2600 = vst [vmem:[#allocation2 + $0x148] sm:$0xff] %v2536_v46  ;;  %v8316_v55 = vld [vmem:[#allocation11_spill] sm:$0xff]  ;;  %v8320_v17 = vld [vmem:[#allocation13_spill] sm:$0xff] }
 0x2f8   : > { %v2540_v1 = vadd.f32 %v8284_v49, %v8283_v22  ;;  %v8292_v37 = vmax.f32 %v8291_v42, 0.0  ;;  %v8293_v7 = vmax.f32 %v6416_v23, 0.0  ;;  %v8295_v6 = vmax.f32 %v8294_v11, 0.0  ;;  %2601 = vst [vmem:[#allocation2 + $0x150] sm:$0xff] %v2537_v47  ;;  %2602 = vst [vmem:[#allocation2 + $0x158] sm:$0xff] %v2538_v9  ;;  %v8306_v23 = vld [vmem:[#allocation104_spill] sm:$0xff] }
 0x2f9   : > { %v2541_v34 = vadd.f32 %v8287_v61, %v8286_v52  ;;  %v2542_v51 = vadd.f32 %v8290_v33, %v8289_v16  ;;  %v8297_v56 = vmax.f32 %v8296_v29, 0.0  ;;  %v8299_v54 = vmax.f32 %v8298_v50, 0.0  ;;  %2603 = vst [vmem:[#allocation2 + $0x160] sm:$0xff] %v2539_v5  ;;  %v8322_v58 = vld [vmem:[#allocation12_spill] sm:$0xff]  ;;  %v8326_v36 = vld [vmem:[#allocation14_spill] sm:$0xff]  ;;  %v8330_v44 = vld [vmem:[#allocation15_spill] sm:$0xff] }
 0x2fa   : > { %v2543_v10 = vadd.f32 %v8293_v7, %v8292_v37  ;;  %v8301_v4 = vmax.f32 %v8300_v41, 0.0  ;;  %v8303_v19 = vmax.f32 %v8302_v40, 0.0  ;;  %v8305_v3 = vmax.f32 %v8304_v48, 0.0  ;;  %2604 = vst [vmem:[#allocation2 + $0x168] sm:$0xff] %v2540_v1  ;;  %v8324_v15 = vld [vmem:[#allocation16_spill] sm:$0xff]  ;;  %v8328_v28 = vld [vmem:[#allocation18_spill] sm:$0xff] }
 0x2fb   : > { %v2544_v35 = vadd.f32 %v8297_v56, %v8295_v6  ;;  %v8307_v39 = vmax.f32 %v8306_v23, 0.0  ;;  %v8309_v60 = vmax.f32 %v8308_v26, 0.0  ;;  %v8311_v20 = vmax.f32 %v8310_v14, 0.0  ;;  %2605 = vst [vmem:[#allocation2 + $0x170] sm:$0xff] %v2541_v34  ;;  %2606 = vst [vmem:[#allocation2 + $0x178] sm:$0xff] %v2542_v51  ;;  %v8332_v0 = vld [vmem:[#allocation106_spill] sm:$0xff] }
 0x2fc   : > { %v2545_v27 = vadd.f32 %v8301_v4, %v8299_v54  ;;  %v2546_v24 = vadd.f32 %v8305_v3, %v8303_v19  ;;  %v8313_v53 = vmax.f32 %v8312_v59, 0.0  ;;  %v8315_v8 = vmax.f32 %v8314_v2, 0.0  ;;  %v8334_v21 = vld [vmem:[#allocation17_spill] sm:$0xff]  ;;  %v8336_v1 = vld [vmem:[#allocation107_spill] sm:$0xff]  ;;  %2607 = vst [vmem:[#allocation2 + $0x180] sm:$0xff] %v2543_v10  ;;  %v8338_v34 = vld [vmem:[#allocation108_spill] sm:$0xff] }
 0x2fd   : > { %v2547_v45 = vadd.f32 %v8309_v60, %v8307_v39  ;;  %v8317_v25 = vmax.f32 %v8316_v55, 0.0  ;;  %v8319_v38 = vmax.f32 %v8318_v31, 0.0  ;;  %v8321_v46 = vmax.f32 %v8320_v17, 0.0  ;;  %2608 = vst [vmem:[#allocation2 + $0x188] sm:$0xff] %v2544_v35  ;;  %v8340_v16 = vld [vmem:[#allocation112_spill] sm:$0xff]  ;;  %v8342_v42 = vld [vmem:[#allocation109_spill] sm:$0xff] }
 0x2fe   : > { %v2548_v57 = vadd.f32 %v8313_v53, %v8311_v20  ;;  %v8323_v18 = vmax.f32 %v8322_v58, 0.0  ;;  %v8325_v47 = vmax.f32 %v8324_v15, 0.0  ;;  %v8327_v43 = vmax.f32 %v8326_v36, 0.0  ;;  %2609 = vst [vmem:[#allocation2 + $0x190] sm:$0xff] %v2545_v27  ;;  %2610 = vst [vmem:[#allocation2 + $0x198] sm:$0xff] %v2546_v24  ;;  %v8344_v7 = vld [vmem:[#allocation113_spill] sm:$0xff] }
 0x2ff   : > { %v2549_v12 = vadd.f32 %v8317_v25, %v8315_v8  ;;  %v2550_v32 = vadd.f32 %v8321_v46, %v8319_v38  ;;  %v8329_v9 = vmax.f32 %v8328_v28, 0.0  ;;  %v8331_v62 = vmax.f32 %v8330_v44, 0.0  ;;  %v8346_v29 = vld [vmem:[#allocation110_spill] sm:$0xff]  ;;  %v8350_v10 = vld [vmem:[#allocation111_spill] sm:$0xff]  ;;  %2611 = vst [vmem:[#allocation2 + $0x1a0] sm:$0xff] %v2547_v45 }
 0x300   : > { %v2551_v30 = vadd.f32 %v8325_v47, %v8323_v18  ;;  %v8333_v22 = vmax.f32 %v8332_v0, 0.0  ;;  %v8335_v5 = vmax.f32 %v8334_v21, 0.0  ;;  %v8337_v52 = vmax.f32 %v8336_v1, 0.0  ;;  %v8348_v50 = vld [vmem:[#allocation114_spill] sm:$0xff]  ;;  %v8352_v35 = vld [vmem:[#allocation115_spill] sm:$0xff]  ;;  %2612 = vst [vmem:[#allocation2 + $0x1a8] sm:$0xff] %v2548_v57 }
 0x301   : > { %v2552_v13 = vadd.f32 %v8329_v9, %v8327_v43  ;;  %v8339_v63 = vmax.f32 %v8338_v34, 0.0  ;;  %v8341_v33 = vmax.f32 %v8340_v16, 0.0  ;;  %v8343_v37 = vmax.f32 %v8342_v42, 0.0  ;;  %2613 = vst [vmem:[#allocation2 + $0x1b0] sm:$0xff] %v2549_v12  ;;  %2614 = vst [vmem:[#allocation2 + $0x1b8] sm:$0xff] %v2550_v32 }
 0x302   : > { %v2553_v49 = vadd.f32 %v8333_v22, %v8331_v62  ;;  %v2554_v61 = vadd.f32 %v8337_v52, %v8335_v5  ;;  %v8345_v11 = vmax.f32 %v8344_v7, 0.0  ;;  %v8347_v56 = vmax.f32 %v8346_v29, 0.0  ;;  %2615 = vst [vmem:[#allocation2 + $0x1c0] sm:$0xff] %v2551_v30  ;;  %v2623_v19 = vld [vmem:[#allocation2] ss:$2 sm:$0xff] }
 0x303   : > { %v2555_v51 = vadd.f32 %v8341_v33, %v8339_v63  ;;  %v8349_v54 = vmax.f32 %v8348_v50, 0.0  ;;  %v8351_v4 = vmax.f32 %v8350_v10, 0.0  ;;  %v8353_v27 = vmax.f32 %v8352_v35, 0.0  ;;  %2616 = vst [vmem:[#allocation2 + $0x1c8] sm:$0xff] %v2552_v13  ;;  %v2625_v48 = vld [vmem:[#allocation2 + $0x10] ss:$2 sm:$0xff] }
 0x304   : > { %v2556_v6 = vadd.f32 %v8345_v11, %v8343_v37  ;;  %2617 = vst [vmem:[#allocation2 + $0x1d0] sm:$0xff] %v2553_v49  ;;  %2618 = vst [vmem:[#allocation2 + $0x1d8] sm:$0xff] %v2554_v61  ;;  %v2627_v3 = vld [vmem:[#allocation2 + $0x20] ss:$2 sm:$0xff]  ;;  %v2629_v24 = vld [vmem:[#allocation2 + $0x30] ss:$2 sm:$0xff] }
 0x305   : > { %v2557_v41 = vadd.f32 %v8349_v54, %v8347_v56  ;;  %v2558_v40 = vadd.f32 %v8353_v27, %v8351_v4  ;;  %2619 = vst [vmem:[#allocation2 + $0x1e0] sm:$0xff] %v2555_v51  ;;  %v2687_v23 = vld [vmem:[#allocation2 + $0x1] ss:$2 sm:$0xff]  ;;  %v2689_v39 = vld [vmem:[#allocation2 + $0x11] ss:$2 sm:$0xff] }
 0x306   : > { %2620 = vst [vmem:[#allocation2 + $0x1e8] sm:$0xff] %v2556_v6  ;;  %v2691_v26 = vld [vmem:[#allocation2 + $0x21] ss:$2 sm:$0xff]  ;;  %v2631_v60 = vld [vmem:[#allocation2 + $0x40] ss:$2 sm:$0xff]  ;;  %v2750_v21 = vadd.f32 %v2687_v23, %v2623_v19  ;;  %v2751_v5 = vadd.f32 %v2689_v39, %v2625_v48 }
 0x307   : > { %2621 = vst [vmem:[#allocation2 + $0x1f0] sm:$0xff] %v2557_v41  ;;  %2622 = vst [vmem:[#allocation2 + $0x1f8] sm:$0xff] %v2558_v40  ;;  %v2633_v45 = vld [vmem:[#allocation2 + $0x50] ss:$2 sm:$0xff]  ;;  %v2635_v14 = vld [vmem:[#allocation2 + $0x60] ss:$2 sm:$0xff]  ;;  %v2752_v1 = vadd.f32 %v2691_v26, %v2627_v3 }
 0x308   : > { %v2637_v20 = vld [vmem:[#allocation2 + $0x70] ss:$2 sm:$0xff]  ;;  %v2693_v59 = vld [vmem:[#allocation2 + $0x31] ss:$2 sm:$0xff]  ;;  %v2695_v53 = vld [vmem:[#allocation2 + $0x41] ss:$2 sm:$0xff] }
 0x309   : > { %v2639_v57 = vld [vmem:[#allocation2 + $0x80] ss:$2 sm:$0xff]  ;;  %v2641_v2 = vld [vmem:[#allocation2 + $0x90] ss:$2 sm:$0xff]  ;;  %v2697_v25 = vld [vmem:[#allocation2 + $0x51] ss:$2 sm:$0xff]  ;;  %v2753_v52 = vadd.f32 %v2693_v59, %v2629_v24  ;;  %v2754_v51 = vadd.f32 %v2695_v53, %v2631_v60 }
 0x30a   : > { %v2643_v8 = vld [vmem:[#allocation2 + $0xa0] ss:$2 sm:$0xff]  ;;  %v2645_v55 = vld [vmem:[#allocation2 + $0xb0] ss:$2 sm:$0xff]  ;;  %v2699_v12 = vld [vmem:[#allocation2 + $0x61] ss:$2 sm:$0xff]  ;;  %v2755_v42 = vadd.f32 %v2697_v25, %v2633_v45 }
 0x30b   : > { %v2647_v31 = vld [vmem:[#allocation2 + $0xc0] ss:$2 sm:$0xff]  ;;  %v2649_v38 = vld [vmem:[#allocation2 + $0xd0] ss:$2 sm:$0xff]  ;;  %v2701_v32 = vld [vmem:[#allocation2 + $0x71] ss:$2 sm:$0xff]  ;;  %v2756_v37 = vadd.f32 %v2699_v12, %v2635_v14 }
 0x30c   : > { %v2651_v17 = vld [vmem:[#allocation2 + $0xe0] ss:$2 sm:$0xff]  ;;  %v2653_v46 = vld [vmem:[#allocation2 + $0xf0] ss:$2 sm:$0xff]  ;;  %v2703_v58 = vld [vmem:[#allocation2 + $0x81] ss:$2 sm:$0xff]  ;;  %v2757_v7 = vadd.f32 %v2701_v32, %v2637_v20 }
 0x30d   : > { %v2655_v18 = vld [vmem:[#allocation2 + $0x100] ss:$2 sm:$0xff]  ;;  %v2657_v15 = vld [vmem:[#allocation2 + $0x110] ss:$2 sm:$0xff]  ;;  %v2705_v36 = vld [vmem:[#allocation2 + $0x91] ss:$2 sm:$0xff]  ;;  %v2758_v41 = vadd.f32 %v2703_v58, %v2639_v57 }
 0x30e   : > { %v2659_v47 = vld [vmem:[#allocation2 + $0x120] ss:$2 sm:$0xff]  ;;  %v2661_v30 = vld [vmem:[#allocation2 + $0x130] ss:$2 sm:$0xff]  ;;  %v2707_v43 = vld [vmem:[#allocation2 + $0xa1] ss:$2 sm:$0xff]  ;;  %v2759_v10 = vadd.f32 %v2705_v36, %v2641_v2 }
 0x30f   : > { %v2709_v28 = vld [vmem:[#allocation2 + $0xb1] ss:$2 sm:$0xff]  ;;  %v2663_v9 = vld [vmem:[#allocation2 + $0x140] ss:$2 sm:$0xff]  ;;  %v2665_v13 = vld [vmem:[#allocation2 + $0x150] ss:$2 sm:$0xff]  ;;  %v2760_v4 = vadd.f32 %v2707_v43, %v2643_v8 }
 0x310   : > { %v2667_v44 = vld [vmem:[#allocation2 + $0x160] ss:$2 sm:$0xff]  ;;  %v2669_v62 = vld [vmem:[#allocation2 + $0x170] ss:$2 sm:$0xff]  ;;  %v2711_v0 = vld [vmem:[#allocation2 + $0xc1] ss:$2 sm:$0xff]  ;;  %v2761_v35 = vadd.f32 %v2709_v28, %v2645_v55 }
 0x311   : > { %v2713_v22 = vld [vmem:[#allocation2 + $0xd1] ss:$2 sm:$0xff]  ;;  %v2715_v49 = vld [vmem:[#allocation2 + $0xe1] ss:$2 sm:$0xff]  ;;  %v2671_v61 = vld [vmem:[#allocation2 + $0x180] ss:$2 sm:$0xff]  ;;  %v2762_v3 = vadd.f32 %v2711_v0, %v2647_v31 }
 0x312   : > { %v2673_v34 = vld [vmem:[#allocation2 + $0x190] ss:$2 sm:$0xff]  ;;  %v2675_v63 = vld [vmem:[#allocation2 + $0x1a0] ss:$2 sm:$0xff]  ;;  %v2717_v33 = vld [vmem:[#allocation2 + $0xf1] ss:$2 sm:$0xff]  ;;  %v2763_v24 = vadd.f32 %v2713_v22, %v2649_v38  ;;  %v2764_v23 = vadd.f32 %v2715_v49, %v2651_v17 }
 0x313   : > { %v2677_v16 = vld [vmem:[#allocation2 + $0x1b0] ss:$2 sm:$0xff]  ;;  %v2679_v11 = vld [vmem:[#allocation2 + $0x1c0] ss:$2 sm:$0xff]  ;;  %v2719_v56 = vld [vmem:[#allocation2 + $0x101] ss:$2 sm:$0xff]  ;;  %v2765_v39 = vadd.f32 %v2717_v33, %v2653_v46 }
 0x314   : > { %v2681_v6 = vld [vmem:[#allocation2 + $0x1d0] ss:$2 sm:$0xff]  ;;  %v2683_v29 = vld [vmem:[#allocation2 + $0x1e0] ss:$2 sm:$0xff]  ;;  %v2721_v50 = vld [vmem:[#allocation2 + $0x111] ss:$2 sm:$0xff]  ;;  %v2766_v14 = vadd.f32 %v2719_v56, %v2655_v18 }
 0x315   : > { %v2723_v54 = vld [vmem:[#allocation2 + $0x121] ss:$2 sm:$0xff]  ;;  %v2685_v27 = vld [vmem:[#allocation2 + $0x1f0] ss:$2 sm:$0xff]  ;;  %v2725_v40 = vld [vmem:[#allocation2 + $0x131] ss:$2 sm:$0xff]  ;;  %v2767_v20 = vadd.f32 %v2721_v50, %v2657_v15 }
 0x316   : > { %v2727_v19 = vld [vmem:[#allocation2 + $0x141] ss:$2 sm:$0xff]  ;;  %v2729_v48 = vld [vmem:[#allocation2 + $0x151] ss:$2 sm:$0xff]  ;;  %v2768_v59 = vadd.f32 %v2723_v54, %v2659_v47  ;;  %v2769_v53 = vadd.f32 %v2725_v40, %v2661_v30  ;;  %v2782_v28 = vmul.f32 0.25, %v2750_v21  ;;  %v2786_v0 = vmul.f32 0.25, %v2754_v51 }
 0x317   : > { %v2731_v26 = vld [vmem:[#allocation2 + $0x161] ss:$2 sm:$0xff]  ;;  %v2733_v60 = vld [vmem:[#allocation2 + $0x171] ss:$2 sm:$0xff]  ;;  %v2770_v55 = vadd.f32 %v2727_v19, %v2663_v9  ;;  %v2771_v25 = vadd.f32 %v2729_v48, %v2665_v13  ;;  %v2783_v13 = vmul.f32 0.25, %v2751_v5  ;;  %v2787_v22 = vmul.f32 0.25, %v2755_v42 }
 0x318   : > { %v2735_v45 = vld [vmem:[#allocation2 + $0x181] ss:$2 sm:$0xff]  ;;  %v2737_v57 = vld [vmem:[#allocation2 + $0x191] ss:$2 sm:$0xff]  ;;  %v2772_v12 = vadd.f32 %v2731_v26, %v2667_v44  ;;  %v2773_v32 = vadd.f32 %v2733_v60, %v2669_v62  ;;  %v2784_v44 = vmul.f32 0.25, %v2752_v1  ;;  %v2785_v62 = vmul.f32 0.25, %v2753_v52  ;;  %2814 = vst [vmem:[%s6916_s14] sm:$0xff] %v2782_v28 }
 0x319   : > { %v2739_v2 = vld [vmem:[#allocation2 + $0x1a1] ss:$2 sm:$0xff]  ;;  %v2741_v8 = vld [vmem:[#allocation2 + $0x1b1] ss:$2 sm:$0xff]  ;;  %v2774_v46 = vadd.f32 %v2735_v45, %v2671_v61  ;;  %v2775_v58 = vadd.f32 %v2737_v57, %v2673_v34  ;;  %v2788_v49 = vmul.f32 0.25, %v2756_v37  ;;  %v2789_v61 = vmul.f32 0.25, %v2757_v7 }
 0x31a   : > { %v2743_v31 = vld [vmem:[#allocation2 + $0x1c1] ss:$2 sm:$0xff]  ;;  %v2745_v38 = vld [vmem:[#allocation2 + $0x1d1] ss:$2 sm:$0xff]  ;;  %v2776_v18 = vadd.f32 %v2739_v2, %v2675_v63  ;;  %v2777_v15 = vadd.f32 %v2741_v8, %v2677_v16  ;;  %v2790_v34 = vmul.f32 0.25, %v2758_v41  ;;  %v2791_v63 = vmul.f32 0.25, %v2759_v10 }
 0x31b   : > { %v2747_v17 = vld [vmem:[#allocation2 + $0x1e1] ss:$2 sm:$0xff]  ;;  %v2749_v47 = vld [vmem:[#allocation2 + $0x1f1] ss:$2 sm:$0xff]  ;;  %v2778_v30 = vadd.f32 %v2743_v31, %v2679_v11  ;;  %v2779_v36 = vadd.f32 %v2745_v38, %v2681_v6  ;;  %v2792_v16 = vmul.f32 0.25, %v2760_v4  ;;  %v2793_v33 = vmul.f32 0.25, %v2761_v35 }
 0x31c   : > { %v2780_v43 = vadd.f32 %v2747_v17, %v2683_v29  ;;  %v2781_v9 = vadd.f32 %v2749_v47, %v2685_v27  ;;  %2815 = vst [vmem:[%s6916_s14 + $0x8] sm:$0xff] %v2783_v13  ;;  %2816 = vst [vmem:[%s6916_s14 + $0x10] sm:$0xff] %v2784_v44  ;;  %v2794_v21 = vmul.f32 0.25, %v2762_v3  ;;  %v2795_v5 = vmul.f32 0.25, %v2763_v24 }
 0x31d   : > { %2817 = vst [vmem:[%s6916_s14 + $0x18] sm:$0xff] %v2785_v62  ;;  %v2796_v1 = vmul.f32 0.25, %v2764_v23  ;;  %v2797_v52 = vmul.f32 0.25, %v2765_v39  ;;  %2818 = vst [vmem:[%s6916_s14 + $0x20] sm:$0xff] %v2786_v0  ;;  %v2798_v51 = vmul.f32 0.25, %v2766_v14  ;;  %v2799_v42 = vmul.f32 0.25, %v2767_v20 }
 0x31e   : > { %2819 = vst [vmem:[%s6916_s14 + $0x28] sm:$0xff] %v2787_v22  ;;  %2820 = vst [vmem:[%s6916_s14 + $0x30] sm:$0xff] %v2788_v49  ;;  %v2800_v37 = vmul.f32 0.25, %v2768_v59  ;;  %v2801_v7 = vmul.f32 0.25, %v2769_v53  ;;  %v2802_v11 = vmul.f32 0.25, %v2770_v55  ;;  %v2803_v6 = vmul.f32 0.25, %v2771_v25 }
 0x31f   : > { %2821 = vst [vmem:[%s6916_s14 + $0x38] sm:$0xff] %v2789_v61  ;;  %2822 = vst [vmem:[%s6916_s14 + $0x40] sm:$0xff] %v2790_v34  ;;  %v2804_v29 = vmul.f32 0.25, %v2772_v12  ;;  %v2805_v56 = vmul.f32 0.25, %v2773_v32  ;;  %v2806_v50 = vmul.f32 0.25, %v2774_v46  ;;  %v2807_v54 = vmul.f32 0.25, %v2775_v58 }
 0x320   : > { %2823 = vst [vmem:[%s6916_s14 + $0x48] sm:$0xff] %v2791_v63  ;;  %2824 = vst [vmem:[%s6916_s14 + $0x50] sm:$0xff] %v2792_v16  ;;  %v2808_v41 = vmul.f32 0.25, %v2776_v18  ;;  %v2809_v10 = vmul.f32 0.25, %v2777_v15  ;;  %v2810_v4 = vmul.f32 0.25, %v2778_v30  ;;  %v2811_v35 = vmul.f32 0.25, %v2779_v36 }
 0x321   : > { %2825 = vst [vmem:[%s6916_s14 + $0x58] sm:$0xff] %v2793_v33  ;;  %2826 = vst [vmem:[%s6916_s14 + $0x60] sm:$0xff] %v2794_v21  ;;  %v2812_v27 = vmul.f32 0.25, %v2780_v43  ;;  %v2813_v40 = vmul.f32 0.25, %v2781_v9 }
 0x322   : > { %2827 = vst [vmem:[%s6916_s14 + $0x68] sm:$0xff] %v2795_v5  ;;  %2828 = vst [vmem:[%s6916_s14 + $0x70] sm:$0xff] %v2796_v1 }
 0x323   : > { %2829 = vst [vmem:[%s6916_s14 + $0x78] sm:$0xff] %v2797_v52  ;;  %2830 = vst [vmem:[%s6916_s14 + $0x80] sm:$0xff] %v2798_v51 }
 0x324   : > { %2831 = vst [vmem:[%s6916_s14 + $0x88] sm:$0xff] %v2799_v42  ;;  %2832 = vst [vmem:[%s6916_s14 + $0x90] sm:$0xff] %v2800_v37 }
 0x325   : > { %2833 = vst [vmem:[%s6916_s14 + $0x98] sm:$0xff] %v2801_v7  ;;  %2834 = vst [vmem:[%s6916_s14 + $0xa0] sm:$0xff] %v2802_v11 }
 0x326   : > { %2835 = vst [vmem:[%s6916_s14 + $0xa8] sm:$0xff] %v2803_v6  ;;  %2836 = vst [vmem:[%s6916_s14 + $0xb0] sm:$0xff] %v2804_v29 }
 0x327   : > { %2837 = vst [vmem:[%s6916_s14 + $0xb8] sm:$0xff] %v2805_v56  ;;  %2838 = vst [vmem:[%s6916_s14 + $0xc0] sm:$0xff] %v2806_v50 }
 0x328   : > { %2839 = vst [vmem:[%s6916_s14 + $0xc8] sm:$0xff] %v2807_v54  ;;  %2840 = vst [vmem:[%s6916_s14 + $0xd0] sm:$0xff] %v2808_v41 }
 0x329   : > { %2841 = vst [vmem:[%s6916_s14 + $0xd8] sm:$0xff] %v2809_v10  ;;  %2842 = vst [vmem:[%s6916_s14 + $0xe0] sm:$0xff] %v2810_v4 }
 0x32a   : > { %2843 = vst [vmem:[%s6916_s14 + $0xe8] sm:$0xff] %v2811_v35  ;;  %2844 = vst [vmem:[%s6916_s14 + $0xf0] sm:$0xff] %v2812_v27 }
 0x32b   : > { %2845 = vst [vmem:[%s6916_s14 + $0xf8] sm:$0xff] %v2813_v40 }
 0x32c PF: > { %s15_s18 = sadd.s32 1, %s3333_s18  }
 0x32d   : > { %p12_p4 = scmp.ge.s32.totalorder %s15_s18, 4  }
 0x32f   :  { %14 = sbr.rel (!%p12_p4) target bundleno = 1 (0x1), region = 133 }

// kernel: convnet_forward.6
= control target key start
LH: loop header
LB: loop body
LE: loop exit
PB: predicated region body
PF: predicated region fallthrough
CT: control target
= control target key end

     0   :  { %s2469_s18 = smov 0   ;;  %s2925_s0 = inlined_call_operand.vmem [shape: f32[2,10,10,128], index: 0, kind: input, shape index: {}]   ;;  %s2926_s1 = inlined_call_operand.vmem [shape: bf16[9,128,128], index: 1, kind: input, shape index: {}]   ;;  %s2927_s2 = inlined_call_operand.vmem [shape: f32[1,128], index: 2, kind: input, shape index: {}]   ;;  %s2928_s3 = inlined_call_operand.vmem [shape: f32[1,128], index: 3, kind: input, shape index: {}]   ;;  %s2929_s4 = inlined_call_operand.vmem [shape: f32[1,128], index: 4, kind: input, shape index: {}]   ;;  %s2930_s5 = inlined_call_operand.vmem [shape: f32[2,16,128], index: 5, kind: output, shape index: {}]  }
   0x1 LB: > { %s1746_s19 = sadd.s32 4294967295, %s2437_s18   ;;  %p1750_p0 = scmp.ge.s32.totalorder %s2437_s18, 1  ;;  %s2437_s18 = sphi %s2469_s18, %s15_s18  }
   0x2   : > { %p187_p1 = scmp.lt.s32.totalorder %s2437_s18, 3 }
   0x4   : > { %p188_p2 = pnand %p1750_p0, %p187_p1 }
   0x6   : > { %191 = sbr.rel (%p188_p2) target bundleno = 447 (0x1bf), region = 40 }
   0xb   : > { %v2357_v0 = vld [vmem:[%s2926_s1 + $0x78] sm:$0xff]   ;;  %p215_p3 = scmp.lt.s32.totalorder %s1746_s19, 1  ;;  %v2359_v2 = vld [vmem:[%s2926_s1 + $0x70] sm:$0xff]   ;;  %v2361_v4 = vld [vmem:[%s2926_s1 + $0x68] sm:$0xff]  }
   0xc   : > { %v2358_v1 = vld [vmem:[%s2926_s1 + $0x38] sm:$0xff]   ;;  %2116 = vmatprep.subr.bf16.mxu0 %v2357_v0  ;;  %v2360_v3 = vld [vmem:[%s2926_s1 + $0x30] sm:$0xff]   ;;  %v2362_v5 = vld [vmem:[%s2926_s1 + $0x28] sm:$0xff]  }
   0xd   : > { %2140 = vmatprep.subr.bf16.mxu1 %v2358_v1  ;;  %2117 = vmatpush3.bf16.msra.mxu0 %v2357_v0  ;;  %s2950_s19 = smov (!%p215_p3, %s1746_s19), 1  ;;  %v2363_v6 = vld [vmem:[%s2926_s1 + $0x60] sm:$0xff]   ;;  %v2365_v8 = vld [vmem:[%s2926_s1 + $0x58] sm:$0xff]   ;;  %v2367_v10 = vld [vmem:[%s2926_s1 + $0x50] sm:$0xff]  }
   0xe   : > { %2141 = vmatpush3.bf16.msra.mxu1 %v2358_v1  ;;  %2118 = vmatprep.subr.bf16.mxu0 %v2359_v2  ;;  %v2364_v7 = vld [vmem:[%s2926_s1 + $0x20] sm:$0xff]   ;;  %s2348_s11 = smul.u32 160, %s2950_s19  ;;  %v2366_v9 = vld [vmem:[%s2926_s1 + $0x18] sm:$0xff]   ;;  %v2368_v14 = vld [vmem:[%s2926_s1 + $0x10] sm:$0xff]   ;;  %s2007_s15 = sshll.u32 %s2950_s19, 4 }
   0xf   : > { %2142 = vmatprep.subr.bf16.mxu1 %v2360_v3  ;;  %v2369_v18 = vld [vmem:[%s2926_s1 + $0x48] sm:$0xff]   ;;  %v2371_v20 = vld [vmem:[%s2926_s1 + $0x40] sm:$0xff]   ;;  %v2373_v26 = vld [vmem:[%s2926_s1 + $0xb8] sm:$0xff]   ;;  %s224_s21 = scalar_lea.vmem %s2930_s5, %s2007_s15 }
  0x10   : > { %s2513_s20 = scalar_lea.vmem %s2925_s0, %s2348_s11  ;;  %v2370_v19 = vld [vmem:[%s2926_s1 + $0x8] sm:$0xff]   ;;  %v2372_v21 = vld [vmem:[%s2926_s1] sm:$0xff]   ;;  %v2374_v27 = vld [vmem:[%s2926_s1 + $0xf8] sm:$0xff]  }
  0x11   : > { %2119 = vmatpush3.bf16.msra.mxu0 %v2359_v2  ;;  %v254_v11 = vld [vmem:[%s2513_s20 + $0x1] sm:$0xff]  ;;  %v2520_v12 = vld [vmem:[%s2513_s20 + $0x11] sm:$0xff] }
  0x12   : > { %2143 = vmatpush3.bf16.msra.mxu1 %v2360_v3  ;;  %2120 = vmatprep.subr.bf16.mxu0 %v2361_v4  ;;  %v226_v13 = vld [vmem:[%s2513_s20] sm:$0xff]  ;;  %v262_v15 = vpack.c.bf16 %v2520_v12, %v254_v11  ;;  %v2528_v16 = vld [vmem:[%s2513_s20 + $0x10] sm:$0xff]  ;;  %v2377_v38 = vld [vmem:[%s2926_s1 + $0xa8] sm:$0xff]  }
  0x13   : > { %2144 = vmatprep.subr.bf16.mxu1 %v2362_v5  ;;  %v234_v17 = vpack.c.bf16 %v2528_v16, %v226_v13  ;;  %v2544_v22 = vld [vmem:[%s2513_s20 + $0x21] sm:$0xff]  ;;  %v2547_v23 = vld [vmem:[%s2513_s20 + $0x31] sm:$0xff] }
  0x14   : > { %2132 = vmatprep.mubr.bf16.mxu0 %v262_v15  ;;  %v228_v24 = vld [vmem:[%s2513_s20 + $0x20] sm:$0xff]  ;;  %v2551_v25 = vld [vmem:[%s2513_s20 + $0x30] sm:$0xff]  ;;  %v2561_v28 = vpack.c.bf16 %v2547_v23, %v2544_v22  ;;  %v2378_v43 = vld [vmem:[%s2926_s1 + $0xe8] sm:$0xff]  }
  0x15   : > { %2121 = vmatpush3.bf16.msra.mxu0 %v2361_v4  ;;  %2156 = vmatprep.mubr.bf16.mxu1 %v234_v17  ;;  %v2375_v29 = vld [vmem:[%s2926_s1 + $0xb0] sm:$0xff]   ;;  %v2567_v30 = vld [vmem:[%s2513_s20 + $0x41] sm:$0xff]  ;;  %v2576_v33 = vpack.c.bf16 %v2551_v25, %v228_v24  ;;  %v668_v51 = vpack.c.bf16 %v228_v24, %v2528_v16  ;;  %v2381_v52 = vld [vmem:[%s2926_s1 + $0x98] sm:$0xff]  }
  0x16   : > { %2145 = vmatpush3.bf16.msra.mxu1 %v2362_v5  ;;  %2122 = vmatprep.subr.bf16.mxu0 %v2363_v6  ;;  %v2570_v31 = vld [vmem:[%s2513_s20 + $0x51] sm:$0xff]  ;;  %v2573_v32 = vld [vmem:[%s2513_s20 + $0x40] sm:$0xff]  ;;  %v2385_v56 = vld [vmem:[%s2926_s1 + $0x88] sm:$0xff]  }
  0x17   : > { %2146 = vmatprep.subr.bf16.mxu1 %v2364_v7  ;;  %v2579_v34 = vld [vmem:[%s2513_s20 + $0x50] sm:$0xff]  ;;  %v2586_v36 = vpack.c.bf16 %v2570_v31, %v2567_v30  ;;  %v2589_v37 = vld [vmem:[%s2513_s20 + $0x61] sm:$0xff]  ;;  %v2382_v53 = vld [vmem:[%s2926_s1 + $0xd8] sm:$0xff]   ;;  %v669_v3 = vpack.c.bf16 %v2573_v32, %v2551_v25 }
  0x18   : > { %v2376_v35 = vld [vmem:[%s2926_s1 + $0xf0] sm:$0xff]   ;;  %v2597_v39 = vpack.c.bf16 %v2579_v34, %v2573_v32  ;;  %v2604_v41 = vld [vmem:[%s2513_s20 + $0x60] sm:$0xff]  ;;  %v2386_v57 = vld [vmem:[%s2926_s1 + $0xc8] sm:$0xff]  }
  0x19   : > { %2123 = vmatpush3.bf16.msra.mxu0 %v2363_v6  ;;  %v2600_v40 = vld [vmem:[%s2513_s20 + $0x71] sm:$0xff]  ;;  %v509_v45 = vld [vmem:[%s2513_s20 + $0x2] sm:$0xff] }
  0x1a   : > { %2147 = vmatpush3.bf16.msra.mxu1 %v2364_v7  ;;  %2124 = vmatprep.subr.bf16.mxu0 %v2365_v8  ;;  %v2607_v42 = vld [vmem:[%s2513_s20 + $0x70] sm:$0xff]  ;;  %v2616_v44 = vpack.c.bf16 %v2600_v40, %v2589_v37  ;;  %v2379_v48 = vld [vmem:[%s2926_s1 + $0xa0] sm:$0xff]   ;;  %v2389_v62 = vld [vmem:[%s2926_s1 + $0x138] sm:$0xff]  }
  0x1b   : > { %2148 = vmatprep.subr.bf16.mxu1 %v2366_v9  ;;  %v2620_v46 = vld [vmem:[%s2513_s20 + $0x12] sm:$0xff]  ;;  %v2624_v47 = vpack.c.bf16 %v2607_v42, %v2604_v41  ;;  %v2380_v49 = vld [vmem:[%s2926_s1 + $0xe0] sm:$0xff]   ;;  %v2394_v13 = vld [vmem:[%s2926_s1 + $0x168] sm:$0xff]  }
  0x1c   : > { %v517_v50 = vpack.c.bf16 %v2620_v46, %v509_v45  ;;  %v2383_v54 = vld [vmem:[%s2926_s1 + $0x90] sm:$0xff]   ;;  %v2387_v58 = vld [vmem:[%s2926_s1 + $0x80] sm:$0xff]   ;;  %v2390_v63 = vld [vmem:[%s2926_s1 + $0x178] sm:$0xff]  }
  0x1d   : > { %2125 = vmatpush3.bf16.msra.mxu0 %v2365_v8  ;;  %v2384_v55 = vld [vmem:[%s2926_s1 + $0xd0] sm:$0xff]   ;;  %v2388_v59 = vld [vmem:[%s2926_s1 + $0xc0] sm:$0xff]   ;;  %v2401_v24 = vld [vmem:[%s2926_s1 + $0x108] sm:$0xff]  }
  0x1e   : > { %2149 = vmatpush3.bf16.msra.mxu1 %v2366_v9  ;;  %2126 = vmatprep.subr.bf16.mxu0 %v2367_v10  ;;  %v511_v60 = vld [vmem:[%s2513_s20 + $0x22] sm:$0xff]  ;;  %v2662_v61 = vld [vmem:[%s2513_s20 + $0x32] sm:$0xff]  ;;  %v670_v9 = vpack.c.bf16 %v2604_v41, %v2579_v34  ;;  %v819_v34 = vpack.c.bf16 %v2567_v30, %v2547_v23 }
  0x1f   : > { %2150 = vmatprep.subr.bf16.mxu1 %v2368_v14  ;;  %v2671_v0 = vpack.c.bf16 %v2662_v61, %v511_v60  ;;  %v2674_v1 = vld [vmem:[%s2513_s20 + $0x42] sm:$0xff]  ;;  %v2677_v2 = vld [vmem:[%s2513_s20 + $0x52] sm:$0xff] }
  0x20   : > { %v2391_v4 = vld [vmem:[%s2926_s1 + $0x130] sm:$0xff]   ;;  %v2689_v6 = vpack.c.bf16 %v2677_v2, %v2674_v1  ;;  %v2692_v7 = vld [vmem:[%s2513_s20 + $0x62] sm:$0xff]  ;;  %v2406_v32 = vld [vmem:[%s2926_s1 + $0x1f8] sm:$0xff]  }
  0x21   : > { %2127 = vmatpush3.bf16.msra.mxu0 %v2367_v10  ;;  %v2392_v5 = vld [vmem:[%s2926_s1 + $0x170] sm:$0xff]   ;;  %v2393_v10 = vld [vmem:[%s2926_s1 + $0x128] sm:$0xff]   ;;  %v2704_v11 = vld [vmem:[%s2513_s20 + $0x80] sm:$0xff]  ;;  %v970_v23 = vpack.c.bf16 %v2692_v7, %v2677_v2 }
  0x22   : > { %2151 = vmatpush3.bf16.msra.mxu1 %v2368_v14  ;;  %2128 = vmatprep.subr.bf16.mxu0 %v2369_v18  ;;  %v2696_v8 = vld [vmem:[%s2513_s20 + $0x72] sm:$0xff]  ;;  %v671_v15 = vpack.c.bf16 %v2704_v11, %v2607_v42  ;;  %v2395_v16 = vld [vmem:[%s2926_s1 + $0x120] sm:$0xff]   ;;  %v2402_v25 = vld [vmem:[%s2926_s1 + $0x148] sm:$0xff]   ;;  %v820_v42 = vpack.c.bf16 %v2589_v37, %v2570_v31 }
  0x23   : > { %2152 = vmatprep.subr.bf16.mxu1 %v2370_v19  ;;  %v2712_v14 = vpack.c.bf16 %v2696_v8, %v2692_v7  ;;  %v2396_v17 = vld [vmem:[%s2926_s1 + $0x160] sm:$0xff]   ;;  %v2408_v41 = vld [vmem:[%s2926_s1 + $0x1f0] sm:$0xff]   ;;  %v2410_v31 = vld [vmem:[%s2926_s1 + $0x1e8] sm:$0xff]  }
  0x24   : > { %v2771_v30 = vld [vmem:[%s2513_s20 + $0x81] sm:$0xff] }
  0x25   : > { %2129 = vmatpush3.bf16.msra.mxu0 %v2369_v18  ;;  %v818_v18 = vpack.c.bf16 %v2544_v22, %v2520_v12  ;;  %v2399_v12 = vld [vmem:[%s2926_s1 + $0x110] sm:$0xff]   ;;  %v2777_v45 = vld [vmem:[%s2513_s20 + $0x82] sm:$0xff]  ;;  %v821_v37 = vpack.c.bf16 %v2771_v30, %v2600_v40  ;;  %v2413_v40 = vld [vmem:[%s2926_s1 + $0x198] sm:$0xff]  }
  0x26   : > { %2153 = vmatpush3.bf16.msra.mxu1 %v2370_v19  ;;  %2130 = vmatprep.subr.bf16.mxu0 %v2371_v20  ;;  %v968_v19 = vpack.c.bf16 %v511_v60, %v2620_v46  ;;  %v2400_v22 = vld [vmem:[%s2926_s1 + $0x150] sm:$0xff]   ;;  %v971_v46 = vpack.c.bf16 %v2777_v45, %v2696_v8 }
  0x27   : > { %2154 = vmatprep.subr.bf16.mxu1 %v2372_v21 }
  0x29   : > { %2131 = vmatpush3.bf16.msra.mxu0 %v2371_v20  ;;  %v2397_v20 = vld [vmem:[%s2926_s1 + $0x118] sm:$0xff]  }
  0x2a   : > { %2155 = vmatpush3.bf16.msra.mxu1 %v2372_v21  ;;  %2164 = vmatprep.subr.bf16.mxu0 %v2373_v26  ;;  %v2398_v21 = vld [vmem:[%s2926_s1 + $0x158] sm:$0xff]  }
  0x2b   : > { %2188 = vmatprep.subr.bf16.mxu1 %v2374_v27 }
  0x2c   : > { %2133 = vmatmul.mubr.bf16.vlgmr.msra.gmra.mxu0 %v2561_v28 }
  0x2d   : > { %2157 = vmatmul.mubr.bf16.vlgmr.msra.gmra.mxu1 %v2576_v33  ;;  %2165 = vmatpush3.bf16.msra.mxu0 %v2373_v26  ;;  %v2403_v26 = vld [vmem:[%s2926_s1 + $0x100] sm:$0xff]  }
  0x2e   : > { %2189 = vmatpush3.bf16.msra.mxu1 %v2374_v27  ;;  %2166 = vmatprep.subr.bf16.mxu0 %v2375_v29  ;;  %v2404_v27 = vld [vmem:[%s2926_s1 + $0x140] sm:$0xff]  }
  0x2f   : > { %2190 = vmatprep.subr.bf16.mxu1 %v2376_v35  ;;  %2136 = vmatprep.mubr.bf16.mxu0 %v2586_v36 }
  0x30   : > { %2160 = vmatprep.mubr.bf16.mxu1 %v2597_v39 }
  0x31   : > { %2167 = vmatpush3.bf16.msra.mxu0 %v2375_v29  ;;  %v2405_v29 = vld [vmem:[%s2926_s1 + $0x1b8] sm:$0xff]  }
  0x32   : > { %2191 = vmatpush3.bf16.msra.mxu1 %v2376_v35  ;;  %2168 = vmatprep.subr.bf16.mxu0 %v2377_v38  ;;  %v969_v35 = vpack.c.bf16 %v2674_v1, %v2662_v61  ;;  %v2427_v61 = vld [vmem:[%s2926_s1 + $0x208] sm:$0xff]  }
  0x33   : > { %2192 = vmatprep.subr.bf16.mxu1 %v2378_v43 }
  0x34   : > { %2137 = vmatmul.mubr.bf16.gmra.mxu0 %v2616_v44 }
  0x35   : > { %2169 = vmatpush3.bf16.msra.mxu0 %v2377_v38  ;;  %2161 = vmatmul.mubr.bf16.gmra.mxu1 %v2624_v47  ;;  %v2407_v38 = vld [vmem:[%s2926_s1 + $0x1b0] sm:$0xff]  }
  0x36   : > { %2193 = vmatpush3.bf16.msra.mxu1 %v2378_v43  ;;  %2170 = vmatprep.subr.bf16.mxu0 %v2379_v48  ;;  %v2409_v43 = vld [vmem:[%s2926_s1 + $0x1a8] sm:$0xff]  }
  0x37   : > { %2194 = vmatprep.subr.bf16.mxu1 %v2380_v49  ;;  %2180 = vmatprep.mubr.bf16.mxu0 %v517_v50  ;;  %v2414_v50 = vld [vmem:[%s2926_s1 + $0x1d8] sm:$0xff]  }
  0x38   : > { %2204 = vmatprep.mubr.bf16.mxu1 %v668_v51  ;;  %v2415_v51 = vld [vmem:[%s2926_s1 + $0x190] sm:$0xff]  }
  0x39   : > { %2171 = vmatpush3.bf16.msra.mxu0 %v2379_v48  ;;  %v2411_v48 = vld [vmem:[%s2926_s1 + $0x1a0] sm:$0xff]  }
  0x3a   : > { %2195 = vmatpush3.bf16.msra.mxu1 %v2380_v49  ;;  %2172 = vmatprep.subr.bf16.mxu0 %v2381_v52  ;;  %v2412_v49 = vld [vmem:[%s2926_s1 + $0x1e0] sm:$0xff]  }
  0x3b   : > { %2196 = vmatprep.subr.bf16.mxu1 %v2382_v53 }
  0x3d   : > { %2173 = vmatpush3.bf16.msra.mxu0 %v2381_v52  ;;  %v2416_v52 = vld [vmem:[%s2926_s1 + $0x1d0] sm:$0xff]  }
  0x3e   : > { %2197 = vmatpush3.bf16.msra.mxu1 %v2382_v53  ;;  %2174 = vmatprep.subr.bf16.mxu0 %v2383_v54  ;;  %v2419_v53 = vld [vmem:[%s2926_s1 + $0x180] sm:$0xff]  }
  0x3f   : > { %2198 = vmatprep.subr.bf16.mxu1 %v2384_v55 }
  0x41   : > { %2175 = vmatpush3.bf16.msra.mxu0 %v2383_v54  ;;  %v2420_v54 = vld [vmem:[%s2926_s1 + $0x1c0] sm:$0xff]  }
  0x42   : > { %2199 = vmatpush3.bf16.msra.mxu1 %v2384_v55  ;;  %2176 = vmatprep.subr.bf16.mxu0 %v2385_v56  ;;  %v2421_v55 = vld [vmem:[%s2926_s1 + $0x238] sm:$0xff]  }
  0x43   : > { %2200 = vmatprep.subr.bf16.mxu1 %v2386_v57 }
  0x45   : > { %2177 = vmatpush3.bf16.msra.mxu0 %v2385_v56  ;;  %v2422_v56 = vld [vmem:[%s2926_s1 + $0x230] sm:$0xff]  }
  0x46   : > { %2201 = vmatpush3.bf16.msra.mxu1 %v2386_v57  ;;  %2178 = vmatprep.subr.bf16.mxu0 %v2387_v58  ;;  %v1913_v57 = vld [vmem:[%s2513_s20 + $0x90] sm:$0xff] }
  0x47   : > { %2202 = vmatprep.subr.bf16.mxu1 %v2388_v59  ;;  %v1122_v60 = vpack.c.bf16 %v1913_v57, %v2704_v11 }
  0x49   : > { %2179 = vmatpush3.bf16.msra.mxu0 %v2387_v58  ;;  %v2423_v58 = vld [vmem:[%s2926_s1 + $0x228] sm:$0xff]  }
  0x4a   : > { %2203 = vmatpush3.bf16.msra.mxu1 %v2388_v59  ;;  %2212 = vmatprep.subr.bf16.mxu0 %v2389_v62  ;;  %v1945_v59 = vld [vmem:[%s2513_s20 + $0x91] sm:$0xff] }
  0x4b   : > { %2236 = vmatprep.subr.bf16.mxu1 %v2390_v63 }
  0x4c   : > { %2181 = vmatmul.mubr.bf16.vlgmr.msra.gmra.mxu0 %v2671_v0 }
  0x4d   : > { %2205 = vmatmul.mubr.bf16.vlgmr.msra.gmra.mxu1 %v669_v3  ;;  %2213 = vmatpush3.bf16.msra.mxu0 %v2389_v62  ;;  %v2428_v62 = vld [vmem:[%s2926_s1 + $0x200] sm:$0xff]  }
  0x4e   : > { %2237 = vmatpush3.bf16.msra.mxu1 %v2390_v63  ;;  %2214 = vmatprep.subr.bf16.mxu0 %v2391_v4  ;;  %v1977_v63 = vld [vmem:[%s2513_s20 + $0x92] sm:$0xff] }
  0x4f   : > { %2238 = vmatprep.subr.bf16.mxu1 %v2392_v5  ;;  %2184 = vmatprep.mubr.bf16.mxu0 %v2689_v6 }
  0x50   : > { %2208 = vmatprep.mubr.bf16.mxu1 %v670_v9 }
  0x51   : > { %2215 = vmatpush3.bf16.msra.mxu0 %v2391_v4 }
  0x52   : > { %2239 = vmatpush3.bf16.msra.mxu1 %v2392_v5  ;;  %2216 = vmatprep.subr.bf16.mxu0 %v2393_v10 }
  0x53   : > { %2240 = vmatprep.subr.bf16.mxu1 %v2394_v13 }
  0x54   : > { %2185 = vmatmul.mubr.bf16.gmra.mxu0 %v2712_v14 }
  0x55   : > { %2217 = vmatpush3.bf16.msra.mxu0 %v2393_v10  ;;  %2209 = vmatmul.mubr.bf16.gmra.mxu1 %v671_v15 }
  0x56   : > { %2241 = vmatpush3.bf16.msra.mxu1 %v2394_v13  ;;  %2218 = vmatprep.subr.bf16.mxu0 %v2395_v16 }
  0x57   : > { %2242 = vmatprep.subr.bf16.mxu1 %v2396_v17  ;;  %2228 = vmatprep.mubr.bf16.mxu0 %v818_v18 }
  0x58   : > { %2252 = vmatprep.mubr.bf16.mxu1 %v968_v19 }
  0x59   : > { %2219 = vmatpush3.bf16.msra.mxu0 %v2395_v16 }
  0x5a   : > { %2243 = vmatpush3.bf16.msra.mxu1 %v2396_v17  ;;  %2220 = vmatprep.subr.bf16.mxu0 %v2397_v20 }
  0x5b   : > { %2244 = vmatprep.subr.bf16.mxu1 %v2398_v21 }
  0x5d   : > { %2221 = vmatpush3.bf16.msra.mxu0 %v2397_v20 }
  0x5e   : > { %2245 = vmatpush3.bf16.msra.mxu1 %v2398_v21  ;;  %2222 = vmatprep.subr.bf16.mxu0 %v2399_v12 }
  0x5f   : > { %2246 = vmatprep.subr.bf16.mxu1 %v2400_v22 }
  0x61   : > { %2223 = vmatpush3.bf16.msra.mxu0 %v2399_v12 }
  0x62   : > { %2247 = vmatpush3.bf16.msra.mxu1 %v2400_v22  ;;  %2224 = vmatprep.subr.bf16.mxu0 %v2401_v24 }
  0x63   : > { %2248 = vmatprep.subr.bf16.mxu1 %v2402_v25 }
  0x65   : > { %2225 = vmatpush3.bf16.msra.mxu0 %v2401_v24 }
  0x66   : > { %2249 = vmatpush3.bf16.msra.mxu1 %v2402_v25  ;;  %2226 = vmatprep.subr.bf16.mxu0 %v2403_v26 }
  0x67   : > { %2250 = vmatprep.subr.bf16.mxu1 %v2404_v27 }
  0x69   : > { %2227 = vmatpush3.bf16.msra.mxu0 %v2403_v26 }
  0x6a   : > { %2251 = vmatpush3.bf16.msra.mxu1 %v2404_v27  ;;  %2260 = vmatprep.subr.bf16.mxu0 %v2405_v29 }
  0x6b   : > { %2284 = vmatprep.subr.bf16.mxu1 %v2406_v32 }
  0x6c   : > { %2229 = vmatmul.mubr.bf16.vlgmr.msra.gmra.mxu0 %v819_v34 }
  0x6d   : > { %2253 = vmatmul.mubr.bf16.vlgmr.msra.gmra.mxu1 %v969_v35  ;;  %2261 = vmatpush3.bf16.msra.mxu0 %v2405_v29 }
  0x6e   : > { %2285 = vmatpush3.bf16.msra.mxu1 %v2406_v32  ;;  %2262 = vmatprep.subr.bf16.mxu0 %v2407_v38 }
  0x6f   : > { %2286 = vmatprep.subr.bf16.mxu1 %v2408_v41  ;;  %2232 = vmatprep.mubr.bf16.mxu0 %v820_v42 }
  0x70   : > { %2256 = vmatprep.mubr.bf16.mxu1 %v970_v23 }
  0x71   : > { %2263 = vmatpush3.bf16.msra.mxu0 %v2407_v38 }
  0x72   : > { %2287 = vmatpush3.bf16.msra.mxu1 %v2408_v41  ;;  %2264 = vmatprep.subr.bf16.mxu0 %v2409_v43 }
  0x73   : > { %2288 = vmatprep.subr.bf16.mxu1 %v2410_v31 }
  0x74   : > { %2233 = vmatmul.mubr.bf16.gmra.mxu0 %v821_v37 }
  0x75   : > { %2265 = vmatpush3.bf16.msra.mxu0 %v2409_v43  ;;  %2257 = vmatmul.mubr.bf16.gmra.mxu1 %v971_v46 }
  0x76   : > { %2289 = vmatpush3.bf16.msra.mxu1 %v2410_v31  ;;  %2266 = vmatprep.subr.bf16.mxu0 %v2411_v48 }
  0x77   : > { %2290 = vmatprep.subr.bf16.mxu1 %v2412_v49  ;;  %2276 = vmatprep.mubr.bf16.mxu0 %v2576_v33  ;;  %v2417_v33 = vld [vmem:[%s2926_s1 + $0x188] sm:$0xff]  }
  0x78   : > { %2300 = vmatprep.mubr.bf16.mxu1 %v2561_v28  ;;  %v2418_v28 = vld [vmem:[%s2926_s1 + $0x1c8] sm:$0xff]  }
  0x79   : > { %2267 = vmatpush3.bf16.msra.mxu0 %v2411_v48 }
  0x7a   : > { %2291 = vmatpush3.bf16.msra.mxu1 %v2412_v49  ;;  %2268 = vmatprep.subr.bf16.mxu0 %v2413_v40 }
  0x7b   : > { %2292 = vmatprep.subr.bf16.mxu1 %v2414_v50 }
  0x7d   : > { %2269 = vmatpush3.bf16.msra.mxu0 %v2413_v40 }
  0x7e   : > { %2293 = vmatpush3.bf16.msra.mxu1 %v2414_v50  ;;  %2270 = vmatprep.subr.bf16.mxu0 %v2415_v51 }
  0x7f   : > { %2294 = vmatprep.subr.bf16.mxu1 %v2416_v52 }
  0x81   : > { %2271 = vmatpush3.bf16.msra.mxu0 %v2415_v51 }
  0x82   : > { %2295 = vmatpush3.bf16.msra.mxu1 %v2416_v52  ;;  %2272 = vmatprep.subr.bf16.mxu0 %v2417_v33 }
  0x83   : > { %2296 = vmatprep.subr.bf16.mxu1 %v2418_v28 }
  0x85   : > { %2273 = vmatpush3.bf16.msra.mxu0 %v2417_v33 }
  0x86   : > { %2297 = vmatpush3.bf16.msra.mxu1 %v2418_v28  ;;  %2274 = vmatprep.subr.bf16.mxu0 %v2419_v53 }
  0x87   : > { %2298 = vmatprep.subr.bf16.mxu1 %v2420_v54 }
  0x89   : > { %2275 = vmatpush3.bf16.msra.mxu0 %v2419_v53 }
  0x8a   : > { %2299 = vmatpush3.bf16.msra.mxu1 %v2420_v54  ;;  %2308 = vmatprep.subr.bf16.mxu0 %v2421_v55 }
  0x8b   : > { %2332 = vmatprep.subr.bf16.mxu1 %v2421_v55 }
  0x8c   : > { %2277 = vmatmul.mubr.bf16.vlgmr.msra.gmra.mxu0 %v2597_v39  ;;  %v1272_v39 = vpack.c.bf16 %v1945_v59, %v2771_v30 }
  0x8d   : > { %2301 = vmatmul.mubr.bf16.vlgmr.msra.gmra.mxu1 %v2586_v36  ;;  %2309 = vmatpush3.bf16.msra.mxu0 %v2421_v55  ;;  %v2424_v36 = vld [vmem:[%s2926_s1 + $0x220] sm:$0xff]  }
  0x8e   : > { %2340 = vmatpush3.bf16.msra.mxu1 %v2421_v55  ;;  %2310 = vmatprep.subr.bf16.mxu0 %v2422_v56 }
  0x8f   : > { %2333 = vmatprep.subr.bf16.mxu1 %v2422_v56  ;;  %2280 = vmatprep.mubr.bf16.mxu0 %v2624_v47  ;;  %v2425_v47 = vld [vmem:[%s2926_s1 + $0x218] sm:$0xff]  }
  0x90   : > { %2304 = vmatprep.mubr.bf16.mxu1 %v2616_v44  ;;  %v2426_v44 = vld [vmem:[%s2926_s1 + $0x210] sm:$0xff]  }
  0x91   : > { %2311 = vmatpush3.bf16.msra.mxu0 %v2422_v56 }
  0x92   : > { %2341 = vmatpush3.bf16.msra.mxu1 %v2422_v56  ;;  %2312 = vmatprep.subr.bf16.mxu0 %v2423_v58 }
  0x93   : > { %2334 = vmatprep.subr.bf16.mxu1 %v2423_v58 }
  0x94   : > { %2281 = vmatmul.mubr.bf16.gmra.mxu0 %v1122_v60 }
  0x95   : > { %2313 = vmatpush3.bf16.msra.mxu0 %v2423_v58  ;;  %2305 = vmatmul.mubr.bf16.gmra.mxu1 %v1272_v39 }
  0x96   : > { %2342 = vmatpush3.bf16.msra.mxu1 %v2423_v58  ;;  %2314 = vmatprep.subr.bf16.mxu0 %v2424_v36 }
  0x97   : > { %2335 = vmatprep.subr.bf16.mxu1 %v2424_v36  ;;  %2324 = vmatprep.mubr.bf16.mxu0 %v2671_v0  ;;  %v1422_v0 = vpack.c.bf16 %v1977_v63, %v2777_v45 }
  0x98   : > { %2328 = vmatprep.mubr.bf16.mxu1 %v2712_v14 }
  0x99   : > { %2315 = vmatpush3.bf16.msra.mxu0 %v2424_v36 }
  0x9a   : > { %2343 = vmatpush3.bf16.msra.mxu1 %v2424_v36  ;;  %2316 = vmatprep.subr.bf16.mxu0 %v2425_v47 }
  0x9b   : > { %2336 = vmatprep.subr.bf16.mxu1 %v2425_v47 }
  0x9d   : > { %2317 = vmatpush3.bf16.msra.mxu0 %v2425_v47 }
  0x9e   : > { %2344 = vmatpush3.bf16.msra.mxu1 %v2425_v47  ;;  %2318 = vmatprep.subr.bf16.mxu0 %v2426_v44 }
  0x9f   : > { %2337 = vmatprep.subr.bf16.mxu1 %v2426_v44 }
  0xa1   : > { %2319 = vmatpush3.bf16.msra.mxu0 %v2426_v44 }
  0xa2   : > { %2345 = vmatpush3.bf16.msra.mxu1 %v2426_v44  ;;  %2320 = vmatprep.subr.bf16.mxu0 %v2427_v61 }
  0xa3   : > { %2338 = vmatprep.subr.bf16.mxu1 %v2427_v61 }
  0xa5   : > { %2321 = vmatpush3.bf16.msra.mxu0 %v2427_v61 }
  0xa6   : > { %2346 = vmatpush3.bf16.msra.mxu1 %v2427_v61  ;;  %2322 = vmatprep.subr.bf16.mxu0 %v2428_v62 }
  0xa7   : > { %2339 = vmatprep.subr.bf16.mxu1 %v2428_v62 }
  0xa9   : > { %2323 = vmatpush3.bf16.msra.mxu0 %v2428_v62 }
  0xaa   : > { %2347 = vmatpush3.bf16.msra.mxu1 %v2428_v62 }
  0xac   : > { %2325 = vmatmul.mubr.bf16.vlgmr.msra.gmra.mxu0 %v2689_v6 }
  0xad   : > { %2329 = vmatmul.mubr.bf16.vlgmr.msra.gmra.mxu1 %v1422_v0 }
  0xec   : > { %v2134_v1 = vpop.f32.mrf.mxu0 }
  0xed   : > { %v2158_v2 = vpop.f32.mrf.mxu1 }
  0xee   : > { %v365_v3 = vpop.f32.mrf.mxu0  ;;  %v487_v36 = vadd.f32 %v2158_v2, %v2134_v1 }
  0xef   : > { %v478_v4 = vpop.f32.mrf.mxu1 }
  0xf0   : > { %v2135_v5 = vpop.f32.mrf.mxu0  ;;  %v479_v60 = vadd.f32 %v478_v4, %v365_v3 }
  0xf1   : > { %v2159_v7 = vpop.f32.mrf.mxu1 }
  0xf2   : > { %v368_v8 = vpop.f32.mrf.mxu0  ;;  %v490_v61 = vadd.f32 %v2159_v7, %v2135_v5 }
  0xf3   : > { %v481_v9 = vpop.f32.mrf.mxu1 }
  0xf4   : > { %v2855_v10 = vpop.f32.mrf.mxu0  ;;  %v482_v62 = vadd.f32 %v481_v9, %v368_v8 }
  0xf5   : > { %v2857_v11 = vpop.f32.mrf.mxu1 }
  0xf6   : > { %2931 = vst [vmem:[#allocation3_spill] sm:$0xff] %v2857_v11  ;;  %v381_v13 = vpop.f32.mrf.mxu0 }
  0xf7   : > { %v494_v14 = vpop.f32.mrf.mxu1 }
  0xf8   : > { %v2859_v15 = vpop.f32.mrf.mxu0 }
  0xf9   : > { %2932 = vst [vmem:[#allocation4_spill] sm:$0xff] %v2859_v15  ;;  %v2861_v16 = vpop.f32.mrf.mxu1 }
  0xfa   : > { %2933 = vst [vmem:[#allocation5_spill] sm:$0xff] %v2861_v16  ;;  %v384_v6 = vpop.f32.mrf.mxu0 }
  0xfb   : > { %v497_v17 = vpop.f32.mrf.mxu1 }
  0xfc   : > { %v498_v16 = vadd.f32 %v497_v17, %v384_v6 }
  0xfd   : > { %v2940_v1 = vld [vmem:[#allocation3_spill] sm:$0xff] }
  0xfe   : > { %v503_v2 = vadd.f32 %v2940_v1, %v2855_v10 }
 0x100   : > { %v2941_v8 = vld [vmem:[#allocation4_spill] sm:$0xff] }
 0x101   : > { %v2942_v9 = vld [vmem:[#allocation5_spill] sm:$0xff] }
 0x10c   : > { %v2182_v18 = vpop.f32.mrf.mxu0 }
 0x10d   : > { %v2206_v19 = vpop.f32.mrf.mxu1  ;;  %v653_v63 = vadd.f32 %v2182_v18, %v487_v36  ;;  %v506_v18 = vadd.f32 %v2942_v9, %v2941_v8 }
 0x10e   : > { %v620_v20 = vpop.f32.mrf.mxu0 }
 0x10f   : > { %v771_v21 = vpop.f32.mrf.mxu1  ;;  %v651_v47 = vadd.f32 %v620_v20, %v479_v60  ;;  %v804_v15 = vadd.f32 %v2206_v19, %v653_v63 }
 0x110   : > { %v2183_v12 = vpop.f32.mrf.mxu0 }
 0x111   : > { %v2207_v22 = vpop.f32.mrf.mxu1 }
 0x112   : > { %v623_v24 = vpop.f32.mrf.mxu0 }
 0x113   : > { %v774_v25 = vpop.f32.mrf.mxu1 }
 0x114   : > { %v2186_v26 = vpop.f32.mrf.mxu0 }
 0x115   : > { %v2863_v27 = vpop.f32.mrf.mxu1 }
 0x116   : > { %2934 = vst [vmem:[#allocation6_spill] sm:$0xff] %v2863_v27  ;;  %v636_v29 = vpop.f32.mrf.mxu0 }
 0x117   : > { %v787_v32 = vpop.f32.mrf.mxu1 }
 0x118   : > { %v2187_v34 = vpop.f32.mrf.mxu0 }
 0x119   : > { %v2865_v35 = vpop.f32.mrf.mxu1  ;;  %v658_v19 = vadd.f32 %v2187_v34, %v506_v18 }
 0x11a   : > { %2935 = vst [vmem:[#allocation7_spill] sm:$0xff] %v2865_v35  ;;  %v639_v38 = vpop.f32.mrf.mxu0  ;;  %v652_v35 = vadd.f32 %v623_v24, %v482_v62 }
 0x11b   : > { %v790_v41 = vpop.f32.mrf.mxu1  ;;  %v656_v5 = vadd.f32 %v639_v38, %v498_v16 }
 0x11c   : > { %v803_v20 = vadd.f32 %v774_v25, %v652_v35 }
 0x11d   : > { %v2943_v10 = vld [vmem:[#allocation6_spill] sm:$0xff] }
 0x12c   : > { %v2230_v42 = vpop.f32.mrf.mxu0 }
 0x12d   : > { %v2254_v23 = vpop.f32.mrf.mxu1  ;;  %v954_v7 = vadd.f32 %v2230_v42, %v804_v15 }
 0x12e   : > { %v921_v30 = vpop.f32.mrf.mxu0 }
 0x12f   : > { %v1071_v43 = vpop.f32.mrf.mxu1 }
 0x130   : > { %v2231_v45 = vpop.f32.mrf.mxu0 }
 0x131   : > { %v2255_v31 = vpop.f32.mrf.mxu1 }
 0x132   : > { %v924_v37 = vpop.f32.mrf.mxu0 }
 0x133   : > { %v1074_v46 = vpop.f32.mrf.mxu1  ;;  %v953_v6 = vadd.f32 %v924_v37, %v803_v20 }
 0x134   : > { %v2234_v48 = vpop.f32.mrf.mxu0 }
 0x135   : > { %v2867_v49 = vpop.f32.mrf.mxu1  ;;  %v1103_v15 = vadd.f32 %v1074_v46, %v953_v6 }
 0x136   : > { %2936 = vst [vmem:[#allocation8_spill] sm:$0xff] %v2867_v49  ;;  %v937_v40 = vpop.f32.mrf.mxu0  ;;  %v654_v49 = vadd.f32 %v2183_v12, %v490_v61 }
 0x137   : > { %v1087_v50 = vpop.f32.mrf.mxu1 }
 0x138   : > { %v2869_v51 = vpop.f32.mrf.mxu0  ;;  %v805_v4 = vadd.f32 %v2207_v22, %v654_v49 }
 0x139   : > { %2937 = vst [vmem:[#allocation9_spill] sm:$0xff] %v2869_v51  ;;  %v2871_v52 = vpop.f32.mrf.mxu1  ;;  %v802_v51 = vadd.f32 %v771_v21, %v651_v47 }
 0x13a   : > { %2938 = vst [vmem:[#allocation10_spill] sm:$0xff] %v2871_v52  ;;  %v940_v33 = vpop.f32.mrf.mxu0  ;;  %v495_v52 = vadd.f32 %v494_v14, %v381_v13  ;;  %v657_v13 = vadd.f32 %v2186_v26, %v503_v2  ;;  %v955_v12 = vadd.f32 %v2231_v45, %v805_v4  ;;  %v2944_v26 = vld [vmem:[#allocation7_spill] sm:$0xff] }
 0x13b   : > { %v1090_v28 = vpop.f32.mrf.mxu1  ;;  %v952_v11 = vadd.f32 %v921_v30, %v802_v51  ;;  %v1104_v30 = vadd.f32 %v2254_v23, %v954_v7  ;;  %v809_v49 = vadd.f32 %v2944_v26, %v658_v19 }
 0x13c   : > { %v808_v22 = vadd.f32 %v2943_v10, %v657_v13  ;;  %v1105_v16 = vadd.f32 %v2255_v31, %v955_v12 }
 0x13d   : > { %v1102_v24 = vadd.f32 %v1071_v43, %v952_v11 }
 0x140   : > { %v2945_v23 = vld [vmem:[#allocation9_spill] sm:$0xff] }
 0x14c   : > { %v2278_v53 = vpop.f32.mrf.mxu0 }
 0x14d   : > { %v2302_v54 = vpop.f32.mrf.mxu1  ;;  %v1255_v38 = vadd.f32 %v2278_v53, %v1104_v30 }
 0x14e   : > { %v1222_v55 = vpop.f32.mrf.mxu0 }
 0x14f   : > { %v1372_v56 = vpop.f32.mrf.mxu1  ;;  %v1405_v60 = vadd.f32 %v2302_v54, %v1255_v38 }
 0x150   : > { %v2279_v57 = vpop.f32.mrf.mxu0 }
 0x151   : > { %v2873_v58 = vpop.f32.mrf.mxu1  ;;  %v1256_v43 = vadd.f32 %v2279_v57, %v1105_v16 }
 0x152   : > { %2939 = vst [vmem:[#allocation11_spill] sm:$0xff] %v2873_v58  ;;  %v1225_v59 = vpop.f32.mrf.mxu0  ;;  %v655_v58 = vadd.f32 %v636_v29, %v495_v52  ;;  %v807_v29 = vadd.f32 %v790_v41, %v656_v5  ;;  %v1253_v52 = vadd.f32 %v1222_v55, %v1102_v24 }
 0x153   : > { %v1375_v39 = vpop.f32.mrf.mxu1  ;;  %v1254_v34 = vadd.f32 %v1225_v59, %v1103_v15  ;;  %v2948_v59 = vld [vmem:[#allocation10_spill] sm:$0xff] }
 0x154   : > { %v2875_v44 = vpop.f32.mrf.mxu0  ;;  %v806_v21 = vadd.f32 %v787_v32, %v655_v58  ;;  %v957_v35 = vadd.f32 %v940_v33, %v807_v29  ;;  %v958_v32 = vadd.f32 %v2234_v48, %v808_v22  ;;  %v1403_v37 = vadd.f32 %v1372_v56, %v1253_v52  ;;  %v2946_v33 = vld [vmem:[#allocation8_spill] sm:$0xff]  ;;  %v2002_v56 = vld [vmem:[%s2927_s2] ss:$0 sm:$0xff] }
 0x155   : > { %v2877_v0 = vpop.f32.mrf.mxu1  ;;  %v1404_v48 = vadd.f32 %v1375_v39, %v1254_v34 }
 0x156   : > { %v1238_v27 = vpop.f32.mrf.mxu0  ;;  %v956_v51 = vadd.f32 %v937_v40, %v806_v21  ;;  %v959_v40 = vadd.f32 %v2945_v23, %v809_v49  ;;  %v1107_v58 = vadd.f32 %v1090_v28, %v957_v35  ;;  %v1108_v53 = vadd.f32 %v2946_v33, %v958_v32 }
 0x157   : > { %v1388_v3 = vpop.f32.mrf.mxu1 }
 0x158   : > { %v2283_v14 = vpop.f32.mrf.mxu0  ;;  %v1106_v11 = vadd.f32 %v1087_v50, %v956_v51  ;;  %v1109_v1 = vadd.f32 %v2948_v59, %v959_v40  ;;  %v1259_v28 = vadd.f32 %v2875_v44, %v1108_v53 }
 0x159   : > { %v2307_v17 = vpop.f32.mrf.mxu1  ;;  %v2947_v61 = vld [vmem:[#allocation11_spill] sm:$0xff] }
 0x15a   : > { %v1241_v25 = vpop.f32.mrf.mxu0  ;;  %v1257_v36 = vadd.f32 %v1238_v27, %v1106_v11  ;;  %v1406_v62 = vadd.f32 %v2947_v61, %v1256_v43  ;;  %v1260_v5 = vadd.f32 %v2283_v14, %v1109_v1  ;;  %v1409_v13 = vadd.f32 %v2877_v0, %v1259_v28 }
 0x15b   : > { %v1391_v42 = vpop.f32.mrf.mxu1  ;;  %v1258_v63 = vadd.f32 %v1241_v25, %v1107_v58 }
 0x15c   : > { %v1407_v2 = vadd.f32 %v1388_v3, %v1257_v36  ;;  %v1410_v24 = vadd.f32 %v2307_v17, %v1260_v5 }
 0x15d   : > { %v1408_v39 = vadd.f32 %v1391_v42, %v1258_v63 }
 0x16c   : > { %v2326_v45 = vpop.f32.mrf.mxu0 }
 0x16d   : > { %v2330_v41 = vpop.f32.mrf.mxu1  ;;  %v1555_v50 = vadd.f32 %v2326_v45, %v1405_v60 }
 0x16e   : > { %v1522_v55 = vpop.f32.mrf.mxu0  ;;  %v1559_v6 = vadd.f32 %v2330_v41, %v1409_v13 }
 0x16f   : > { %v1553_v31 = vadd.f32 %v1522_v55, %v1403_v37  ;;  %v1538_v46 = vpop.f32.mrf.mxu1  ;;  %v2895_v8 = vadd.f32 %v2002_v56, %v1555_v50 }
 0x170   : > { %v2327_v47 = vpop.f32.mrf.mxu0  ;;  %v1557_v9 = vadd.f32 %v1538_v46, %v1407_v2  ;;  %v1574_v16 = vadd.f32 %v2002_v56, %v1559_v6  ;;  %v2003_v2 = vld [vmem:[%s2928_s3] ss:$0 sm:$0xff] }
 0x171   : > { %v2331_v57 = vpop.f32.mrf.mxu1  ;;  %v2893_v27 = vadd.f32 %v2002_v56, %v1553_v31  ;;  %v1556_v4 = vadd.f32 %v2327_v47, %v1406_v62  ;;  %v1593_v19 = vmul.f32 %v2895_v8, %v2895_v8 }
 0x172   : > { %v1525_v54 = vpop.f32.mrf.mxu0  ;;  %v1572_v29 = vadd.f32 %v2002_v56, %v1557_v9  ;;  %v1560_v51 = vadd.f32 %v2331_v57, %v1410_v24  ;;  %v1597_v32 = vmul.f32 %v1574_v16, %v1574_v16 }
 0x173   : > { %v1554_v20 = vadd.f32 %v1525_v54, %v1404_v48  ;;  %v1541_v7 = vpop.f32.mrf.mxu1  ;;  %v1591_v21 = vmul.f32 %v2893_v27, %v2893_v27  ;;  %v1571_v44 = vadd.f32 %v2002_v56, %v1556_v4 }
 0x174   : > { %v1558_v14 = vadd.f32 %v1541_v7, %v1408_v39  ;;  %v1595_v15 = vmul.f32 %v1572_v29, %v1572_v29  ;;  %v1575_v42 = vadd.f32 %v2002_v56, %v1560_v51 }
 0x175   : > { %v2897_v18 = vadd.f32 %v2002_v56, %v1554_v20  ;;  %v1594_v52 = vmul.f32 %v1571_v44, %v1571_v44 }
 0x176   : > { %v1573_v22 = vadd.f32 %v2002_v56, %v1558_v14  ;;  %v1598_v43 = vmul.f32 %v1575_v42, %v1575_v42 }
 0x177   : > { %v1578_v12 = vadd.f32 %v2897_v18, %v2893_v27  ;;  %v1592_v3 = vmul.f32 %v2897_v18, %v2897_v18 }
 0x178   : > { %v1596_v17 = vmul.f32 %v1573_v22, %v1573_v22 }
 0x179   : > { %v1579_v30 = vadd.f32 %v1578_v12, %v2895_v8  ;;  %v1599_v0 = vadd.f32 %v1592_v3, %v1591_v21 }
 0x17b   : > { %v1600_v10 = vadd.f32 %v1599_v0, %v1593_v19  ;;  %v1580_v25 = vadd.f32 %v1579_v30, %v1571_v44 }
 0x17d   : > { %v1581_v35 = vadd.f32 %v1580_v25, %v1572_v29  ;;  %v1601_v38 = vadd.f32 %v1600_v10, %v1594_v52 }
 0x17f   : > { %v1582_v26 = vadd.f32 %v1581_v35, %v1573_v22  ;;  %v1602_v49 = vadd.f32 %v1601_v38, %v1595_v15 }
 0x181   : > { %v1583_v45 = vadd.f32 %v1582_v26, %v1574_v16  ;;  %v1603_v11 = vadd.f32 %v1602_v49, %v1596_v17 }
 0x183   : > { %v1584_v37 = vadd.f32 %v1583_v45, %v1575_v42  ;;  %v1604_v34 = vadd.f32 %v1603_v11, %v1597_v32 }
 0x185   : > { %v1585_v41 = vrot.slane %v1584_v37, 4  ;;  %v1605_v23 = vadd.f32 %v1604_v34, %v1598_v43 }
 0x187   : > { %v1586_v40 = vadd.f32 %v1585_v41, %v1584_v37  ;;  %v1606_v55 = vrot.slane %v1605_v23, 4 }
 0x189   : > { %v1587_v58 = vrot.slane %v1586_v40, 2  ;;  %v1607_v60 = vadd.f32 %v1606_v55, %v1605_v23 }
 0x18b   : > { %v1588_v36 = vadd.f32 %v1587_v58, %v1586_v40  ;;  %v1608_v31 = vrot.slane %v1607_v60, 2 }
 0x18d   : > { %v1589_v46 = vrot.slane %v1588_v36, 1  ;;  %v1609_v33 = vadd.f32 %v1608_v31, %v1607_v60 }
 0x18f   : > { %v1590_v53 = vadd.f32 %v1589_v46, %v1588_v36  ;;  %v1610_v47 = vrot.slane %v1609_v33, 1 }
 0x191   : > { %v1611_v61 = vadd.f32 %v1610_v47, %v1609_v33  ;;  %v1612_v62 = vmul.f32 0.015625, %v1590_v53 }
 0x193   : > { %v1613_v48 = vmul.f32 0.015625, %v1611_v61  ;;  %v1614_v63 = vmul.f32 %v1612_v62, %v1612_v62  ;;  %v1616_v57 = vsub.f32 %v2893_v27, %v1612_v62  ;;  %v1617_v59 = vsub.f32 %v2897_v18, %v1612_v62  ;;  %v2004_v27 = vld [vmem:[%s2929_s4] ss:$0 sm:$0xff] }
 0x194   : > { %v1618_v1 = vsub.f32 %v2895_v8, %v1612_v62  ;;  %v1619_v28 = vsub.f32 %v1571_v44, %v1612_v62  ;;  %v1620_v4 = vsub.f32 %v1572_v29, %v1612_v62  ;;  %v1621_v20 = vsub.f32 %v1573_v22, %v1612_v62 }
 0x195   : > { %v1615_v50 = vsub.f32 %v1613_v48, %v1614_v63  ;;  %v1622_v5 = vsub.f32 %v1574_v16, %v1612_v62  ;;  %v1623_v7 = vsub.f32 %v1575_v42, %v1612_v62 }
 0x197   : > { %v1624_v56 = vadd.f32 1e-05, %v1615_v50 }
 0x199   : > { %2429 = vrsqrt.f32 %v1624_v56 }
 0x1a6   : > { %v2430_v54 = vpop.eup %2429 }
 0x1a7   : > { %v1626_v39 = vmul.f32 %v2430_v54, %v1616_v57  ;;  %v1627_v9 = vmul.f32 %v2430_v54, %v1617_v59  ;;  %v1628_v13 = vmul.f32 %v2430_v54, %v1618_v1  ;;  %v1629_v21 = vmul.f32 %v2430_v54, %v1619_v28 }
 0x1a8   : > { %v1630_v18 = vmul.f32 %v2430_v54, %v1620_v4  ;;  %v1631_v8 = vmul.f32 %v2430_v54, %v1621_v20  ;;  %v1632_v44 = vmul.f32 %v2430_v54, %v1622_v5  ;;  %v1633_v12 = vmul.f32 %v2430_v54, %v1623_v7 }
 0x1a9   : > { %v1640_v3 = vmul.f32 %v2003_v2, %v1626_v39  ;;  %v1641_v14 = vmul.f32 %v2003_v2, %v1627_v9  ;;  %v1642_v24 = vmul.f32 %v2003_v2, %v1628_v13  ;;  %v1643_v6 = vmul.f32 %v2003_v2, %v1629_v21 }
 0x1aa   : > { %v1644_v19 = vmul.f32 %v2003_v2, %v1630_v18  ;;  %v1645_v29 = vmul.f32 %v2003_v2, %v1631_v8  ;;  %v1646_v30 = vmul.f32 %v2003_v2, %v1632_v44  ;;  %v1647_v0 = vmul.f32 %v2003_v2, %v1633_v12 }
 0x1ab   : > { %v1654_v51 = vadd.f32 %v2004_v27, %v1640_v3  ;;  %v1655_v52 = vadd.f32 %v2004_v27, %v1641_v14  ;;  %v1656_v10 = vadd.f32 %v2004_v27, %v1642_v24  ;;  %v1657_v22 = vadd.f32 %v2004_v27, %v1643_v6 }
 0x1ac   : > { %v1658_v25 = vadd.f32 %v2004_v27, %v1644_v19  ;;  %v1659_v16 = vadd.f32 %v2004_v27, %v1645_v29  ;;  %v1660_v15 = vadd.f32 %v2004_v27, %v1646_v30  ;;  %v1661_v35 = vadd.f32 %v2004_v27, %v1647_v0 }
 0x1ad   : > { %v1662_v38 = vmax.f32 %v1654_v51, 0.0  ;;  %v1663_v42 = vmax.f32 %v1655_v52, 0.0  ;;  %v1664_v26 = vmax.f32 %v1656_v10, 0.0  ;;  %v1665_v17 = vmax.f32 %v1657_v22, 0.0 }
 0x1ae   : > { %v1666_v49 = vmax.f32 %v1658_v25, 0.0  ;;  %v1667_v32 = vmax.f32 %v1659_v16, 0.0  ;;  %v1668_v45 = vmax.f32 %v1660_v15, 0.0  ;;  %v1669_v11 = vmax.f32 %v1661_v35, 0.0 }
 0x1af   : > { %v1670_v43 = vadd.f32 %v1663_v42, %v1662_v38  ;;  %v1671_v37 = vadd.f32 %v1665_v17, %v1664_v26 }
 0x1b0   : > { %v1672_v34 = vadd.f32 %v1667_v32, %v1666_v49  ;;  %v1673_v41 = vadd.f32 %v1669_v11, %v1668_v45 }
 0x1b1   : > { %1674 = vst [vmem:[#allocation2] sm:$0xff] %v1670_v43  ;;  %1675 = vst [vmem:[#allocation2 + $0x8] sm:$0xff] %v1671_v37 }
 0x1b2   : > { %1676 = vst [vmem:[#allocation2 + $0x10] sm:$0xff] %v1672_v34  ;;  %1677 = vst [vmem:[#allocation2 + $0x18] sm:$0xff] %v1673_v41 }
 0x1b8   : > { %v1678_v23 = vld [vmem:[#allocation2] ss:$2 sm:$0xff]  ;;  %v1682_v40 = vld [vmem:[#allocation2 + $0x1] ss:$2 sm:$0xff] }
 0x1b9   : > { %v1680_v55 = vld [vmem:[#allocation2 + $0x10] ss:$2 sm:$0xff]  ;;  %v1684_v58 = vld [vmem:[#allocation2 + $0x11] ss:$2 sm:$0xff]  ;;  %v1685_v60 = vadd.f32 %v1682_v40, %v1678_v23 }
 0x1ba   : > { %v1686_v36 = vadd.f32 %v1684_v58, %v1680_v55 }
 0x1bb   : > { %v1687_v31 = vmul.f32 0.25, %v1685_v60 }
 0x1bc   : > { %v1688_v46 = vmul.f32 0.25, %v1686_v36 }
 0x1bd   : > { %1689 = vst [vmem:[%s224_s21] sm:$0xff] %v1687_v31 }
 0x1be   : > { %1690 = vst [vmem:[%s224_s21 + $0x8] sm:$0xff] %v1688_v46 }
 0x1bf PF: > { %s15_s18 = sadd.s32 1, %s2437_s18  }
 0x1c0   : > { %p12_p4 = scmp.ge.s32.totalorder %s15_s18, 4  }
 0x1c2   :  { %14 = sbr.rel (!%p12_p4) target bundleno = 1 (0x1), region = 83 }

// kernel: convnet_forward.5
= control target key start
LH: loop header
LB: loop body
LE: loop exit
PB: predicated region body
PF: predicated region fallthrough
CT: control target
= control target key end

     0   :  { %s4575_s18 = smov 0   ;;  %s5902_s0 = inlined_call_operand.vmem [shape: f32[2,18,18,128], index: 0, kind: input, shape index: {}]   ;;  %s5903_s1 = inlined_call_operand.vmem [shape: bf16[9,128,128], index: 1, kind: input, shape index: {}]   ;;  %s5904_s2 = inlined_call_operand.vmem [shape: f32[1,128], index: 2, kind: input, shape index: {}]   ;;  %s5905_s3 = inlined_call_operand.vmem [shape: f32[1,128], index: 3, kind: input, shape index: {}]   ;;  %s5906_s4 = inlined_call_operand.vmem [shape: f32[1,128], index: 4, kind: input, shape index: {}]   ;;  %s5907_s5 = inlined_call_operand.vmem [shape: f32[2,64,128], index: 5, kind: output, shape index: {}]  }
   0x1 LB: > { %s3384_s19 = sadd.s32 4294967295, %s4543_s18   ;;  %p3388_p0 = scmp.ge.s32.totalorder %s4543_s18, 1  ;;  %s4543_s18 = sphi %s4575_s18, %s15_s18  }
   0x2   : > { %p187_p1 = scmp.lt.s32.totalorder %s4543_s18, 3 }
   0x4   : > { %p188_p2 = pnand %p3388_p0, %p187_p1 }
   0x6   : > { %191 = sbr.rel (%p188_p2) target bundleno = 626 (0x272), region = 40 }
   0xb   : > { %v4463_v0 = vld [vmem:[%s5903_s1 + $0x78] sm:$0xff]   ;;  %p215_p3 = scmp.lt.s32.totalorder %s3384_s19, 1  ;;  %v4464_v1 = vld [vmem:[%s5903_s1 + $0x70] sm:$0xff]   ;;  %v4465_v2 = vld [vmem:[%s5903_s1 + $0x68] sm:$0xff]  }
   0xc   : > { %4006 = vmatprep.subr.bf16.mxu0 %v4463_v0  ;;  %4438 = vmatprep.subr.bf16.mxu1 %v4463_v0  ;;  %v4466_v3 = vld [vmem:[%s5903_s1 + $0x60] sm:$0xff]   ;;  %v4467_v10 = vld [vmem:[%s5903_s1 + $0x58] sm:$0xff]   ;;  %v4468_v11 = vld [vmem:[%s5903_s1 + $0x50] sm:$0xff]  }
   0xd   : > { %s5937_s19 = smov (!%p215_p3, %s3384_s19), 1  ;;  %4007 = vmatpush3.bf16.msra.mxu0 %v4463_v0  ;;  %4446 = vmatpush3.bf16.msra.mxu1 %v4463_v0  ;;  %v4469_v12 = vld [vmem:[%s5903_s1 + $0x48] sm:$0xff]   ;;  %v4470_v13 = vld [vmem:[%s5903_s1 + $0x40] sm:$0xff]   ;;  %v4471_v18 = vld [vmem:[%s5903_s1 + $0x38] sm:$0xff]  }
   0xe   : > { %4008 = vmatprep.subr.bf16.mxu0 %v4464_v1  ;;  %4439 = vmatprep.subr.bf16.mxu1 %v4464_v1  ;;  %s4454_s26 = smul.u32 432, %s5937_s19  ;;  %v4472_v19 = vld [vmem:[%s5903_s1 + $0xb8] sm:$0xff]   ;;  %v4473_v26 = vld [vmem:[%s5903_s1 + $0x30] sm:$0xff]   ;;  %v4475_v34 = vld [vmem:[%s5903_s1 + $0x28] sm:$0xff]   ;;  %s3789_s16 = sshll.u32 %s5937_s19, 6 }
   0xf   : > { %v4474_v27 = vld [vmem:[%s5903_s1 + $0xb0] sm:$0xff]   ;;  %v4476_v35 = vld [vmem:[%s5903_s1 + $0xa8] sm:$0xff]   ;;  %v4477_v42 = vld [vmem:[%s5903_s1 + $0x20] sm:$0xff]   ;;  %s224_s21 = scalar_lea.vmem %s5907_s5, %s3789_s16 }
  0x10   : > { %s4598_s29 = scalar_lea.vmem %s5902_s0, %s4454_s26  ;;  %v4478_v43 = vld [vmem:[%s5903_s1 + $0xa0] sm:$0xff]   ;;  %v4479_v50 = vld [vmem:[%s5903_s1 + $0x18] sm:$0xff]   ;;  %v4481_v58 = vld [vmem:[%s5903_s1 + $0x10] sm:$0xff]  }
  0x11   : > { %4009 = vmatpush3.bf16.msra.mxu0 %v4464_v1  ;;  %4447 = vmatpush3.bf16.msra.mxu1 %v4464_v1  ;;  %v290_v4 = vld [vmem:[%s4598_s29 + $0x1] sm:$0xff]  ;;  %v291_v5 = vld [vmem:[%s4598_s29 + $0x9] sm:$0xff]  ;;  %v292_v14 = vld [vmem:[%s4598_s29 + $0x19] sm:$0xff] }
  0x12   : > { %4010 = vmatprep.subr.bf16.mxu0 %v4465_v2  ;;  %4440 = vmatprep.subr.bf16.mxu1 %v4465_v2  ;;  %v306_v6 = vld [vmem:[%s4598_s29 + $0xc1] sm:$0xff]  ;;  %v322_v7 = vpack.c.bf16 %v291_v5, %v290_v4  ;;  %v307_v8 = vld [vmem:[%s4598_s29 + $0xc9] sm:$0xff]  ;;  %v308_v16 = vld [vmem:[%s4598_s29 + $0xd9] sm:$0xff] }
  0x13   : > { %v4607_v9 = vpack.c.bf16 %v307_v8, %v306_v6  ;;  %v293_v15 = vld [vmem:[%s4598_s29 + $0x21] sm:$0xff]  ;;  %v294_v20 = vld [vmem:[%s4598_s29 + $0x31] sm:$0xff]  ;;  %v295_v21 = vld [vmem:[%s4598_s29 + $0x39] sm:$0xff] }
  0x14   : > { %4022 = vmatprep.mubr.bf16.mxu0 %v322_v7  ;;  %v309_v17 = vld [vmem:[%s4598_s29 + $0xe1] sm:$0xff]  ;;  %v4634_v22 = vpack.c.bf16 %v293_v15, %v292_v14  ;;  %v310_v24 = vld [vmem:[%s4598_s29 + $0xf1] sm:$0xff]  ;;  %v311_v25 = vld [vmem:[%s4598_s29 + $0xf9] sm:$0xff]  ;;  %v4646_v28 = vpack.c.bf16 %v295_v21, %v294_v20 }
  0x15   : > { %4011 = vmatpush3.bf16.msra.mxu0 %v4465_v2  ;;  %4448 = vmatpush3.bf16.msra.mxu1 %v4465_v2  ;;  %v4636_v23 = vpack.c.bf16 %v309_v17, %v308_v16  ;;  %v4648_v29 = vpack.c.bf16 %v311_v25, %v310_v24  ;;  %v296_v30 = vld [vmem:[%s4598_s29 + $0x49] sm:$0xff]  ;;  %v297_v31 = vld [vmem:[%s4598_s29 + $0x51] sm:$0xff]  ;;  %v298_v36 = vld [vmem:[%s4598_s29 + $0x61] sm:$0xff] }
  0x16   : > { %4012 = vmatprep.subr.bf16.mxu0 %v4466_v3  ;;  %4441 = vmatprep.subr.bf16.mxu1 %v4466_v3  ;;  %v312_v32 = vld [vmem:[%s4598_s29 + $0x109] sm:$0xff]  ;;  %v313_v33 = vld [vmem:[%s4598_s29 + $0x111] sm:$0xff]  ;;  %v314_v38 = vld [vmem:[%s4598_s29 + $0x121] sm:$0xff]  ;;  %v4667_v39 = vpack.c.bf16 %v297_v31, %v296_v30 }
  0x17   : > { %4038 = vmatprep.mubr.bf16.mxu1 %v4607_v9  ;;  %v299_v37 = vld [vmem:[%s4598_s29 + $0x69] sm:$0xff]  ;;  %v4669_v40 = vpack.c.bf16 %v313_v33, %v312_v32  ;;  %v300_v46 = vld [vmem:[%s4598_s29 + $0x79] sm:$0xff]  ;;  %v301_v47 = vld [vmem:[%s4598_s29 + $0x81] sm:$0xff] }
  0x18   : > { %v315_v41 = vld [vmem:[%s4598_s29 + $0x129] sm:$0xff]  ;;  %v4678_v44 = vpack.c.bf16 %v299_v37, %v298_v36  ;;  %v316_v48 = vld [vmem:[%s4598_s29 + $0x139] sm:$0xff]  ;;  %v317_v49 = vld [vmem:[%s4598_s29 + $0x141] sm:$0xff]  ;;  %v4698_v54 = vpack.c.bf16 %v301_v47, %v300_v46 }
  0x19   : > { %4013 = vmatpush3.bf16.msra.mxu0 %v4466_v3  ;;  %4449 = vmatpush3.bf16.msra.mxu1 %v4466_v3  ;;  %v4680_v45 = vpack.c.bf16 %v315_v41, %v314_v38  ;;  %v4480_v51 = vld [vmem:[%s5903_s1 + $0x98] sm:$0xff]   ;;  %v4700_v55 = vpack.c.bf16 %v317_v49, %v316_v48  ;;  %v4482_v59 = vld [vmem:[%s5903_s1 + $0x90] sm:$0xff]   ;;  %v4483_v2 = vld [vmem:[%s5903_s1 + $0x8] sm:$0xff]  }
  0x1a   : > { %4014 = vmatprep.subr.bf16.mxu0 %v4467_v10  ;;  %4442 = vmatprep.subr.bf16.mxu1 %v4467_v10  ;;  %v302_v52 = vld [vmem:[%s4598_s29 + $0x91] sm:$0xff]  ;;  %v303_v53 = vld [vmem:[%s4598_s29 + $0x99] sm:$0xff]  ;;  %v304_v62 = vld [vmem:[%s4598_s29 + $0xa9] sm:$0xff] }
  0x1b   : > { %v318_v56 = vld [vmem:[%s4598_s29 + $0x151] sm:$0xff]  ;;  %v319_v57 = vld [vmem:[%s4598_s29 + $0x159] sm:$0xff]  ;;  %v4710_v60 = vpack.c.bf16 %v303_v53, %v302_v52  ;;  %v320_v0 = vld [vmem:[%s4598_s29 + $0x169] sm:$0xff] }
  0x1c   : > { %v4712_v61 = vpack.c.bf16 %v319_v57, %v318_v56  ;;  %v305_v63 = vld [vmem:[%s4598_s29 + $0xb1] sm:$0xff]  ;;  %v4484_v3 = vld [vmem:[%s5903_s1 + $0x88] sm:$0xff]   ;;  %v226_v4 = vld [vmem:[%s4598_s29] sm:$0xff] }
  0x1d   : > { %4015 = vmatpush3.bf16.msra.mxu0 %v4467_v10  ;;  %4450 = vmatpush3.bf16.msra.mxu1 %v4467_v10  ;;  %v321_v1 = vld [vmem:[%s4598_s29 + $0x171] sm:$0xff]  ;;  %v4729_v5 = vpack.c.bf16 %v305_v63, %v304_v62  ;;  %v227_v7 = vld [vmem:[%s4598_s29 + $0x8] sm:$0xff]  ;;  %v229_v16 = vld [vmem:[%s4598_s29 + $0x20] sm:$0xff] }
  0x1e   : > { %4016 = vmatprep.subr.bf16.mxu0 %v4468_v11  ;;  %4443 = vmatprep.subr.bf16.mxu1 %v4468_v11  ;;  %v4731_v6 = vpack.c.bf16 %v321_v1, %v320_v0  ;;  %v773_v8 = vld [vmem:[%s4598_s29 + $0x2] sm:$0xff]  ;;  %v774_v10 = vld [vmem:[%s4598_s29 + $0xa] sm:$0xff]  ;;  %v228_v15 = vld [vmem:[%s4598_s29 + $0x18] sm:$0xff] }
  0x1f   : > { %v805_v14 = vpack.c.bf16 %v774_v10, %v773_v8  ;;  %v775_v17 = vld [vmem:[%s4598_s29 + $0x1a] sm:$0xff]  ;;  %v230_v21 = vld [vmem:[%s4598_s29 + $0x30] sm:$0xff]  ;;  %v4491_v47 = vld [vmem:[%s5903_s1 + $0xe8] sm:$0xff]  }
  0x20   : > { %v4488_v20 = vld [vmem:[%s5903_s1 + $0x138] sm:$0xff]   ;;  %v4489_v33 = vld [vmem:[%s5903_s1 + $0xf0] sm:$0xff]   ;;  %v234_v41 = vld [vmem:[%s4598_s29 + $0x60] sm:$0xff] }
  0x21   : > { %4017 = vmatpush3.bf16.msra.mxu0 %v4468_v11  ;;  %4451 = vmatpush3.bf16.msra.mxu1 %v4468_v11  ;;  %v4485_v11 = vld [vmem:[%s5903_s1] sm:$0xff]   ;;  %v231_v24 = vld [vmem:[%s4598_s29 + $0x38] sm:$0xff]  ;;  %v779_v36 = vld [vmem:[%s4598_s29 + $0x4a] sm:$0xff] }
  0x22   : > { %4018 = vmatprep.subr.bf16.mxu0 %v4469_v12  ;;  %4444 = vmatprep.subr.bf16.mxu1 %v4469_v12  ;;  %v777_v25 = vld [vmem:[%s4598_s29 + $0x32] sm:$0xff]  ;;  %v4762_v31 = vpack.c.bf16 %v231_v24, %v230_v21  ;;  %v782_v46 = vld [vmem:[%s4598_s29 + $0x6a] sm:$0xff]  ;;  %v4493_v53 = vld [vmem:[%s5903_s1 + $0xe0] sm:$0xff]  }
  0x23   : > { %v4490_v37 = vld [vmem:[%s5903_s1 + $0x130] sm:$0xff]   ;;  %v4492_v48 = vld [vmem:[%s5903_s1 + $0x128] sm:$0xff]   ;;  %v236_v56 = vld [vmem:[%s4598_s29 + $0x78] sm:$0xff] }
  0x24   : > { %v780_v38 = vld [vmem:[%s4598_s29 + $0x52] sm:$0xff]  ;;  %v237_v57 = vld [vmem:[%s4598_s29 + $0x80] sm:$0xff]  ;;  %v790_v21 = vld [vmem:[%s4598_s29 + $0xca] sm:$0xff] }
  0x25   : > { %4019 = vmatpush3.bf16.msra.mxu0 %v4469_v12  ;;  %4452 = vmatpush3.bf16.msra.mxu1 %v4469_v12  ;;  %v4486_v12 = vld [vmem:[%s5903_s1 + $0x80] sm:$0xff]   ;;  %v238_v63 = vld [vmem:[%s4598_s29 + $0x90] sm:$0xff]  ;;  %v239_v0 = vld [vmem:[%s4598_s29 + $0x98] sm:$0xff] }
  0x26   : > { %4020 = vmatprep.subr.bf16.mxu0 %v4470_v13  ;;  %4445 = vmatprep.subr.bf16.mxu1 %v4470_v13  ;;  %v4494_v62 = vld [vmem:[%s5903_s1 + $0x120] sm:$0xff]   ;;  %v785_v1 = vld [vmem:[%s4598_s29 + $0x92] sm:$0xff]  ;;  %v4826_v10 = vpack.c.bf16 %v239_v0, %v238_v63  ;;  %v4499_v24 = vld [vmem:[%s5903_s1 + $0xc8] sm:$0xff]  }
  0x27   : > { %v248_v0 = vld [vmem:[%s4598_s29 + $0x108] sm:$0xff] }
  0x29   : > { %4021 = vmatpush3.bf16.msra.mxu0 %v4470_v13  ;;  %4453 = vmatpush3.bf16.msra.mxu1 %v4470_v13  ;;  %v258_v13 = vpack.c.bf16 %v227_v7, %v226_v4  ;;  %v4496_v4 = vld [vmem:[%s5903_s1 + $0x118] sm:$0xff]   ;;  %v4822_v7 = vpack.c.bf16 %v237_v57, %v236_v56 }
  0x2a   : > { %4054 = vmatprep.subr.bf16.mxu1 %v4471_v18  ;;  %4102 = vmatprep.subr.bf16.mxu0 %v4472_v19  ;;  %v4503_v56 = vld [vmem:[%s5903_s1 + $0x178] sm:$0xff]  }
  0x2b   : > { %v4504_v57 = vld [vmem:[%s5903_s1 + $0x1b8] sm:$0xff]  }
  0x2c   : > { %4023 = vmatmul.mubr.bf16.vlgmr.msra.gmra.mxu0 %v4634_v22  ;;  %4039 = vmatmul.mubr.bf16.vlgmr.msra.gmra.mxu1 %v4636_v23 }
  0x2d   : > { %4055 = vmatpush3.bf16.msra.mxu1 %v4471_v18  ;;  %4103 = vmatpush3.bf16.msra.mxu0 %v4472_v19  ;;  %v776_v18 = vld [vmem:[%s4598_s29 + $0x22] sm:$0xff]  ;;  %v4487_v19 = vld [vmem:[%s5903_s1 + $0xf8] sm:$0xff]  }
  0x2e   : > { %4056 = vmatprep.subr.bf16.mxu1 %v4473_v26  ;;  %4104 = vmatprep.subr.bf16.mxu0 %v4474_v27  ;;  %v4760_v30 = vpack.c.bf16 %v776_v18, %v775_v17  ;;  %v4498_v17 = vld [vmem:[%s5903_s1 + $0x110] sm:$0xff]   ;;  %v242_v18 = vld [vmem:[%s4598_s29 + $0xc0] sm:$0xff] }
  0x2f   : > { %4026 = vmatprep.mubr.bf16.mxu0 %v4646_v28  ;;  %4042 = vmatprep.mubr.bf16.mxu1 %v4648_v29 }
  0x31   : > { %4057 = vmatpush3.bf16.msra.mxu1 %v4473_v26  ;;  %4105 = vmatpush3.bf16.msra.mxu0 %v4474_v27  ;;  %v778_v26 = vld [vmem:[%s4598_s29 + $0x3a] sm:$0xff]  ;;  %v4758_v27 = vpack.c.bf16 %v229_v16, %v228_v15  ;;  %v787_v15 = vld [vmem:[%s4598_s29 + $0xaa] sm:$0xff]  ;;  %v788_v16 = vld [vmem:[%s4598_s29 + $0xb2] sm:$0xff] }
  0x32   : > { %4058 = vmatprep.subr.bf16.mxu1 %v4475_v34  ;;  %4106 = vmatprep.subr.bf16.mxu0 %v4476_v35  ;;  %v4764_v32 = vpack.c.bf16 %v778_v26, %v777_v25  ;;  %v4500_v25 = vld [vmem:[%s5903_s1 + $0x108] sm:$0xff]  }
  0x34   : > { %4027 = vmatmul.mubr.bf16.gmra.mxu0 %v4667_v39  ;;  %4043 = vmatmul.mubr.bf16.gmra.mxu1 %v4669_v40 }
  0x35   : > { %4059 = vmatpush3.bf16.msra.mxu1 %v4475_v34  ;;  %4107 = vmatpush3.bf16.msra.mxu0 %v4476_v35  ;;  %v232_v34 = vld [vmem:[%s4598_s29 + $0x48] sm:$0xff]  ;;  %v233_v35 = vld [vmem:[%s4598_s29 + $0x50] sm:$0xff] }
  0x36   : > { %4060 = vmatprep.subr.bf16.mxu1 %v4477_v42  ;;  %4108 = vmatprep.subr.bf16.mxu0 %v4478_v43  ;;  %v4790_v49 = vpack.c.bf16 %v233_v35, %v232_v34 }
  0x37   : > { %4030 = vmatprep.mubr.bf16.mxu0 %v4678_v44  ;;  %4046 = vmatprep.mubr.bf16.mxu1 %v4680_v45 }
  0x39   : > { %4061 = vmatpush3.bf16.msra.mxu1 %v4477_v42  ;;  %4109 = vmatpush3.bf16.msra.mxu0 %v4478_v43  ;;  %v235_v42 = vld [vmem:[%s4598_s29 + $0x68] sm:$0xff] }
  0x3a   : > { %4062 = vmatprep.subr.bf16.mxu1 %v4479_v50  ;;  %4110 = vmatprep.subr.bf16.mxu0 %v4480_v51  ;;  %v781_v43 = vld [vmem:[%s4598_s29 + $0x62] sm:$0xff] }
  0x3b   : > { %v4796_v52 = vpack.c.bf16 %v782_v46, %v781_v43  ;;  %v4502_v43 = vld [vmem:[%s5903_s1 + $0x100] sm:$0xff]   ;;  %v246_v46 = vld [vmem:[%s4598_s29 + $0xf0] sm:$0xff] }
  0x3c   : > { %4031 = vmatmul.mubr.bf16.gmra.mxu0 %v4698_v54  ;;  %4047 = vmatmul.mubr.bf16.gmra.mxu1 %v4700_v55 }
  0x3d   : > { %4063 = vmatpush3.bf16.msra.mxu1 %v4479_v50  ;;  %4111 = vmatpush3.bf16.msra.mxu0 %v4480_v51  ;;  %v4792_v50 = vpack.c.bf16 %v780_v38, %v779_v36  ;;  %v4794_v51 = vpack.c.bf16 %v235_v42, %v234_v41  ;;  %v4501_v36 = vld [vmem:[%s5903_s1 + $0xc0] sm:$0xff]  }
  0x3e   : > { %4064 = vmatprep.subr.bf16.mxu1 %v4481_v58  ;;  %4112 = vmatprep.subr.bf16.mxu0 %v4482_v59  ;;  %v245_v38 = vld [vmem:[%s4598_s29 + $0xe0] sm:$0xff] }
  0x3f   : > { %4034 = vmatprep.mubr.bf16.mxu0 %v4710_v60  ;;  %4050 = vmatprep.mubr.bf16.mxu1 %v4712_v61  ;;  %v791_v41 = vld [vmem:[%s4598_s29 + $0xda] sm:$0xff]  ;;  %v792_v42 = vld [vmem:[%s4598_s29 + $0xe2] sm:$0xff] }
  0x41   : > { %4065 = vmatpush3.bf16.msra.mxu1 %v4481_v58  ;;  %4113 = vmatpush3.bf16.msra.mxu0 %v4482_v59  ;;  %v783_v58 = vld [vmem:[%s4598_s29 + $0x7a] sm:$0xff]  ;;  %v784_v59 = vld [vmem:[%s4598_s29 + $0x82] sm:$0xff] }
  0x42   : > { %4066 = vmatprep.subr.bf16.mxu1 %v4483_v2  ;;  %4114 = vmatprep.subr.bf16.mxu0 %v4484_v3  ;;  %v4824_v8 = vpack.c.bf16 %v784_v59, %v783_v58  ;;  %v4888_v59 = vpack.c.bf16 %v792_v42, %v791_v41 }
  0x44   : > { %4035 = vmatmul.mubr.bf16.gmra.mxu0 %v4729_v5  ;;  %4051 = vmatmul.mubr.bf16.gmra.mxu1 %v4731_v6 }
  0x45   : > { %4067 = vmatpush3.bf16.msra.mxu1 %v4483_v2  ;;  %4115 = vmatpush3.bf16.msra.mxu0 %v4484_v3  ;;  %v786_v2 = vld [vmem:[%s4598_s29 + $0x9a] sm:$0xff] }
  0x46   : > { %4068 = vmatprep.subr.bf16.mxu1 %v4485_v11  ;;  %4116 = vmatprep.subr.bf16.mxu0 %v4486_v12  ;;  %v4495_v3 = vld [vmem:[%s5903_s1 + $0xd8] sm:$0xff]  }
  0x47   : > { %4070 = vmatprep.mubr.bf16.mxu1 %v258_v13  ;;  %4118 = vmatprep.mubr.bf16.mxu0 %v805_v14  ;;  %v240_v13 = vld [vmem:[%s4598_s29 + $0xa8] sm:$0xff]  ;;  %v241_v14 = vld [vmem:[%s4598_s29 + $0xb0] sm:$0xff] }
  0x48   : > { %v4854_v26 = vpack.c.bf16 %v241_v14, %v240_v13  ;;  %v797_v13 = vld [vmem:[%s4598_s29 + $0x122] sm:$0xff]  ;;  %v798_v14 = vld [vmem:[%s4598_s29 + $0x12a] sm:$0xff] }
  0x49   : > { %4069 = vmatpush3.bf16.msra.mxu1 %v4485_v11  ;;  %4117 = vmatpush3.bf16.msra.mxu0 %v4486_v12  ;;  %v4828_v11 = vpack.c.bf16 %v786_v2, %v785_v1  ;;  %v4497_v12 = vld [vmem:[%s5903_s1 + $0xd0] sm:$0xff]  }
  0x4a   : > { %4150 = vmatprep.subr.bf16.mxu1 %v4487_v19  ;;  %4198 = vmatprep.subr.bf16.mxu0 %v4488_v20  ;;  %v249_v1 = vld [vmem:[%s4598_s29 + $0x110] sm:$0xff] }
  0x4b   : > { %v795_v2 = vld [vmem:[%s4598_s29 + $0x10a] sm:$0xff] }
  0x4c   : > { %4071 = vmatmul.mubr.bf16.vlgmr.msra.gmra.mxu1 %v4758_v27  ;;  %4119 = vmatmul.mubr.bf16.vlgmr.msra.gmra.mxu0 %v4760_v30 }
  0x4d   : > { %4151 = vmatpush3.bf16.msra.mxu1 %v4487_v19  ;;  %4199 = vmatpush3.bf16.msra.mxu0 %v4488_v20  ;;  %v243_v19 = vld [vmem:[%s4598_s29 + $0xc8] sm:$0xff] }
  0x4e   : > { %4074 = vmatprep.mubr.bf16.mxu1 %v4762_v31  ;;  %4122 = vmatprep.mubr.bf16.mxu0 %v4764_v32  ;;  %v789_v20 = vld [vmem:[%s4598_s29 + $0xc2] sm:$0xff]  ;;  %v4858_v34 = vpack.c.bf16 %v243_v19, %v242_v18  ;;  %v4912_v18 = vpack.c.bf16 %v798_v14, %v797_v13  ;;  %v252_v19 = vld [vmem:[%s4598_s29 + $0x138] sm:$0xff] }
  0x4f   : > { %4152 = vmatprep.subr.bf16.mxu1 %v4489_v33  ;;  %4200 = vmatprep.subr.bf16.mxu0 %v4490_v37  ;;  %v4860_v35 = vpack.c.bf16 %v790_v21, %v789_v20  ;;  %v253_v20 = vld [vmem:[%s4598_s29 + $0x140] sm:$0xff]  ;;  %v4516_v13 = vld [vmem:[%s5903_s1 + $0x188] sm:$0xff]   ;;  %v4519_v14 = vld [vmem:[%s5903_s1 + $0x1f8] sm:$0xff]  }
  0x50   : > { %v799_v21 = vld [vmem:[%s4598_s29 + $0x13a] sm:$0xff]  ;;  %v4926_v41 = vpack.c.bf16 %v253_v20, %v252_v19 }
  0x51   : > { %4153 = vmatpush3.bf16.msra.mxu1 %v4489_v33  ;;  %4201 = vmatpush3.bf16.msra.mxu0 %v4490_v37  ;;  %v4856_v33 = vpack.c.bf16 %v788_v16, %v787_v15  ;;  %v244_v37 = vld [vmem:[%s4598_s29 + $0xd8] sm:$0xff]  ;;  %v4906_v15 = vpack.c.bf16 %v249_v1, %v248_v0 }
  0x52   : > { %4154 = vmatprep.subr.bf16.mxu1 %v4491_v47  ;;  %4202 = vmatprep.subr.bf16.mxu0 %v4492_v48  ;;  %v4886_v58 = vpack.c.bf16 %v245_v38, %v244_v37  ;;  %v801_v37 = vld [vmem:[%s4598_s29 + $0x152] sm:$0xff]  ;;  %v802_v38 = vld [vmem:[%s4598_s29 + $0x15a] sm:$0xff] }
  0x53   : > { %v804_v0 = vld [vmem:[%s4598_s29 + $0x172] sm:$0xff] }
  0x54   : > { %4075 = vmatmul.mubr.bf16.gmra.mxu1 %v4790_v49  ;;  %4123 = vmatmul.mubr.bf16.gmra.mxu0 %v4792_v50  ;;  %v4520_v19 = vld [vmem:[%s5903_s1 + $0x238] sm:$0xff]  }
  0x55   : > { %4078 = vmatprep.mubr.bf16.mxu1 %v4794_v51  ;;  %4126 = vmatprep.mubr.bf16.mxu0 %v4796_v52 }
  0x56   : > { %4155 = vmatpush3.bf16.msra.mxu1 %v4491_v47  ;;  %4203 = vmatpush3.bf16.msra.mxu0 %v4492_v48  ;;  %v247_v47 = vld [vmem:[%s4598_s29 + $0xf8] sm:$0xff] }
  0x57   : > { %4156 = vmatprep.subr.bf16.mxu1 %v4493_v53  ;;  %4204 = vmatprep.subr.bf16.mxu0 %v4494_v62  ;;  %v793_v48 = vld [vmem:[%s4598_s29 + $0xf2] sm:$0xff] }
  0x5a   : > { %4157 = vmatpush3.bf16.msra.mxu1 %v4493_v53  ;;  %4205 = vmatpush3.bf16.msra.mxu0 %v4494_v62  ;;  %v794_v53 = vld [vmem:[%s4598_s29 + $0xfa] sm:$0xff]  ;;  %v4890_v62 = vpack.c.bf16 %v247_v47, %v246_v46  ;;  %v4932_v46 = vpack.c.bf16 %v802_v38, %v801_v37  ;;  %v256_v47 = vld [vmem:[%s4598_s29 + $0x168] sm:$0xff] }
  0x5b   : > { %4158 = vmatprep.subr.bf16.mxu1 %v4495_v3  ;;  %4206 = vmatprep.subr.bf16.mxu0 %v4496_v4  ;;  %v4892_v63 = vpack.c.bf16 %v794_v53, %v793_v48  ;;  %v257_v48 = vld [vmem:[%s4598_s29 + $0x170] sm:$0xff] }
  0x5c   : > { %4079 = vmatmul.mubr.bf16.gmra.mxu1 %v4822_v7  ;;  %4127 = vmatmul.mubr.bf16.gmra.mxu0 %v4824_v8  ;;  %v803_v53 = vld [vmem:[%s4598_s29 + $0x16a] sm:$0xff]  ;;  %v4942_v1 = vpack.c.bf16 %v257_v48, %v256_v47  ;;  %v3647_v47 = vld [vmem:[%s4598_s29 + $0x1a0] sm:$0xff] }
  0x5d   : > { %4082 = vmatprep.mubr.bf16.mxu1 %v4826_v10  ;;  %4130 = vmatprep.mubr.bf16.mxu0 %v4828_v11  ;;  %v3672_v48 = vld [vmem:[%s4598_s29 + $0x31] sm:$0xff] }
  0x5e   : > { %4159 = vmatpush3.bf16.msra.mxu1 %v4495_v3  ;;  %4207 = vmatpush3.bf16.msra.mxu0 %v4496_v4  ;;  %v796_v3 = vld [vmem:[%s4598_s29 + $0x112] sm:$0xff]  ;;  %v250_v4 = vld [vmem:[%s4598_s29 + $0x120] sm:$0xff] }
  0x5f   : > { %4160 = vmatprep.subr.bf16.mxu1 %v4497_v12  ;;  %4208 = vmatprep.subr.bf16.mxu0 %v4498_v17  ;;  %v4908_v16 = vpack.c.bf16 %v796_v3, %v795_v2  ;;  %v4944_v2 = vpack.c.bf16 %v804_v0, %v803_v53  ;;  %v4505_v3 = vld [vmem:[%s5903_s1 + $0x170] sm:$0xff]  }
  0x62   : > { %4161 = vmatpush3.bf16.msra.mxu1 %v4497_v12  ;;  %4209 = vmatpush3.bf16.msra.mxu0 %v4498_v17  ;;  %v251_v12 = vld [vmem:[%s4598_s29 + $0x128] sm:$0xff] }
  0x63   : > { %4162 = vmatprep.subr.bf16.mxu1 %v4499_v24  ;;  %4210 = vmatprep.subr.bf16.mxu0 %v4500_v25  ;;  %v4910_v17 = vpack.c.bf16 %v251_v12, %v250_v4  ;;  %v4506_v4 = vld [vmem:[%s5903_s1 + $0x1b0] sm:$0xff]   ;;  %v4515_v12 = vld [vmem:[%s5903_s1 + $0x148] sm:$0xff]  }
  0x64   : > { %4083 = vmatmul.mubr.bf16.gmra.mxu1 %v4854_v26  ;;  %4131 = vmatmul.mubr.bf16.gmra.mxu0 %v4856_v33 }
  0x65   : > { %4086 = vmatprep.mubr.bf16.mxu1 %v4858_v34  ;;  %4134 = vmatprep.mubr.bf16.mxu0 %v4860_v35 }
  0x66   : > { %4163 = vmatpush3.bf16.msra.mxu1 %v4499_v24  ;;  %4211 = vmatpush3.bf16.msra.mxu0 %v4500_v25  ;;  %v800_v24 = vld [vmem:[%s4598_s29 + $0x142] sm:$0xff]  ;;  %v254_v25 = vld [vmem:[%s4598_s29 + $0x150] sm:$0xff] }
  0x67   : > { %4164 = vmatprep.subr.bf16.mxu1 %v4501_v36  ;;  %4212 = vmatprep.subr.bf16.mxu0 %v4502_v43  ;;  %v4928_v42 = vpack.c.bf16 %v800_v24, %v799_v21 }
  0x6a   : > { %4165 = vmatpush3.bf16.msra.mxu1 %v4501_v36  ;;  %4213 = vmatpush3.bf16.msra.mxu0 %v4502_v43  ;;  %v255_v36 = vld [vmem:[%s4598_s29 + $0x158] sm:$0xff] }
  0x6b   : > { %4246 = vmatprep.subr.bf16.mxu1 %v4503_v56  ;;  %4294 = vmatprep.subr.bf16.mxu0 %v4504_v57  ;;  %v4930_v43 = vpack.c.bf16 %v255_v36, %v254_v25 }
  0x6c   : > { %4087 = vmatmul.mubr.bf16.gmra.mxu1 %v4886_v58  ;;  %4135 = vmatmul.mubr.bf16.gmra.mxu0 %v4888_v59 }
  0x6d   : > { %4090 = vmatprep.mubr.bf16.mxu1 %v4890_v62  ;;  %4138 = vmatprep.mubr.bf16.mxu0 %v4892_v63 }
  0x74   : > { %4091 = vmatmul.mubr.bf16.gmra.mxu1 %v4906_v15  ;;  %4139 = vmatmul.mubr.bf16.gmra.mxu0 %v4908_v16 }
  0x75   : > { %4094 = vmatprep.mubr.bf16.mxu1 %v4910_v17  ;;  %4142 = vmatprep.mubr.bf16.mxu0 %v4912_v18 }
  0x7c   : > { %4095 = vmatmul.mubr.bf16.gmra.mxu1 %v4926_v41  ;;  %4143 = vmatmul.mubr.bf16.gmra.mxu0 %v4928_v42 }
  0x7d   : > { %4098 = vmatprep.mubr.bf16.mxu1 %v4930_v43  ;;  %4146 = vmatprep.mubr.bf16.mxu0 %v4932_v46 }
  0x84   : > { %4099 = vmatmul.mubr.bf16.gmra.mxu1 %v4942_v1  ;;  %4147 = vmatmul.mubr.bf16.gmra.mxu0 %v4944_v2 }
  0x85   : > { %4166 = vmatprep.mubr.bf16.mxu1 %v4758_v27  ;;  %4214 = vmatprep.mubr.bf16.mxu0 %v4634_v22  ;;  %v4507_v22 = vld [vmem:[%s5903_s1 + $0x168] sm:$0xff]  }
  0x86   : > { %v4508_v27 = vld [vmem:[%s5903_s1 + $0x1a8] sm:$0xff]  }
  0x8c   : > { %4167 = vmatmul.mubr.bf16.vlgmr.msra.gmra.mxu1 %v4762_v31  ;;  %4215 = vmatmul.mubr.bf16.vlgmr.msra.gmra.mxu0 %v4646_v28  ;;  %v4509_v28 = vld [vmem:[%s5903_s1 + $0x160] sm:$0xff]  }
  0x8d   : > { %4247 = vmatpush3.bf16.msra.mxu1 %v4503_v56  ;;  %4295 = vmatpush3.bf16.msra.mxu0 %v4504_v57  ;;  %v4511_v56 = vld [vmem:[%s5903_s1 + $0x158] sm:$0xff]  }
  0x8e   : > { %4170 = vmatprep.mubr.bf16.mxu1 %v4790_v49  ;;  %4218 = vmatprep.mubr.bf16.mxu0 %v4667_v39  ;;  %v4510_v39 = vld [vmem:[%s5903_s1 + $0x1a0] sm:$0xff]   ;;  %v4512_v57 = vld [vmem:[%s5903_s1 + $0x198] sm:$0xff]  }
  0x8f   : > { %4248 = vmatprep.subr.bf16.mxu1 %v4505_v3  ;;  %4296 = vmatprep.subr.bf16.mxu0 %v4506_v4 }
  0x91   : > { %4249 = vmatpush3.bf16.msra.mxu1 %v4505_v3  ;;  %4297 = vmatpush3.bf16.msra.mxu0 %v4506_v4  ;;  %v3673_v3 = vld [vmem:[%s4598_s29 + $0x39] sm:$0xff] }
  0x92   : > { %4250 = vmatprep.subr.bf16.mxu1 %v4507_v22  ;;  %4298 = vmatprep.subr.bf16.mxu0 %v4508_v27  ;;  %v3728_v4 = vld [vmem:[%s4598_s29 + $0x32] sm:$0xff] }
  0x94   : > { %4171 = vmatmul.mubr.bf16.gmra.mxu1 %v4794_v51  ;;  %4219 = vmatmul.mubr.bf16.gmra.mxu0 %v4678_v44  ;;  %v4513_v44 = vld [vmem:[%s5903_s1 + $0x150] sm:$0xff]  }
  0x95   : > { %4174 = vmatprep.mubr.bf16.mxu1 %v4822_v7  ;;  %4222 = vmatprep.mubr.bf16.mxu0 %v4698_v54  ;;  %v4514_v54 = vld [vmem:[%s5903_s1 + $0x190] sm:$0xff]  }
  0x96   : > { %4251 = vmatpush3.bf16.msra.mxu1 %v4507_v22  ;;  %4299 = vmatpush3.bf16.msra.mxu0 %v4508_v27 }
  0x97   : > { %4252 = vmatprep.subr.bf16.mxu1 %v4509_v28  ;;  %4300 = vmatprep.subr.bf16.mxu0 %v4510_v39 }
  0x9a   : > { %4253 = vmatpush3.bf16.msra.mxu1 %v4509_v28  ;;  %4301 = vmatpush3.bf16.msra.mxu0 %v4510_v39  ;;  %v2337_v28 = vpack.c.bf16 %v3673_v3, %v3672_v48  ;;  %v3736_v48 = vld [vmem:[%s4598_s29 + $0x92] sm:$0xff]  ;;  %v3737_v3 = vld [vmem:[%s4598_s29 + $0x9a] sm:$0xff] }
  0x9b   : > { %4254 = vmatprep.subr.bf16.mxu1 %v4511_v56  ;;  %4302 = vmatprep.subr.bf16.mxu0 %v4512_v57 }
  0x9c   : > { %4175 = vmatmul.mubr.bf16.gmra.mxu1 %v4826_v10  ;;  %4223 = vmatmul.mubr.bf16.gmra.mxu0 %v4710_v60  ;;  %v4517_v60 = vld [vmem:[%s5903_s1 + $0x140] sm:$0xff]  }
  0x9d   : > { %4178 = vmatprep.mubr.bf16.mxu1 %v4854_v26  ;;  %4226 = vmatprep.mubr.bf16.mxu0 %v4729_v5  ;;  %v4518_v5 = vld [vmem:[%s5903_s1 + $0x180] sm:$0xff]  }
  0x9e   : > { %4255 = vmatpush3.bf16.msra.mxu1 %v4511_v56  ;;  %4303 = vmatpush3.bf16.msra.mxu0 %v4512_v57 }
  0x9f   : > { %4256 = vmatprep.subr.bf16.mxu1 %v4513_v44  ;;  %4304 = vmatprep.subr.bf16.mxu0 %v4514_v54 }
  0xa2   : > { %4257 = vmatpush3.bf16.msra.mxu1 %v4513_v44  ;;  %4305 = vmatpush3.bf16.msra.mxu0 %v4514_v54 }
  0xa3   : > { %4258 = vmatprep.subr.bf16.mxu1 %v4515_v12  ;;  %4306 = vmatprep.subr.bf16.mxu0 %v4516_v13 }
  0xa4   : > { %4179 = vmatmul.mubr.bf16.gmra.mxu1 %v4858_v34  ;;  %4227 = vmatmul.mubr.bf16.gmra.mxu0 %v4607_v9  ;;  %v3478_v9 = vld [vmem:[%s4598_s29 + $0x180] sm:$0xff] }
  0xa5   : > { %4182 = vmatprep.mubr.bf16.mxu1 %v4886_v58  ;;  %4230 = vmatprep.mubr.bf16.mxu0 %v4636_v23  ;;  %v3479_v23 = vld [vmem:[%s4598_s29 + $0x188] sm:$0xff] }
  0xa6   : > { %4259 = vmatpush3.bf16.msra.mxu1 %v4515_v12  ;;  %4307 = vmatpush3.bf16.msra.mxu0 %v4516_v13  ;;  %v5030_v20 = vpack.c.bf16 %v3479_v23, %v3478_v9  ;;  %v3674_v12 = vld [vmem:[%s4598_s29 + $0x49] sm:$0xff]  ;;  %v3675_v13 = vld [vmem:[%s4598_s29 + $0x51] sm:$0xff] }
  0xa7   : > { %4260 = vmatprep.subr.bf16.mxu1 %v4517_v60  ;;  %4308 = vmatprep.subr.bf16.mxu0 %v4518_v5  ;;  %v3677_v23 = vld [vmem:[%s4598_s29 + $0x69] sm:$0xff] }
  0xaa   : > { %4261 = vmatpush3.bf16.msra.mxu1 %v4517_v60  ;;  %4309 = vmatpush3.bf16.msra.mxu0 %v4518_v5  ;;  %v3730_v60 = vld [vmem:[%s4598_s29 + $0x4a] sm:$0xff]  ;;  %v3731_v5 = vld [vmem:[%s4598_s29 + $0x52] sm:$0xff] }
  0xab   : > { %4342 = vmatprep.subr.bf16.mxu1 %v4519_v14  ;;  %4390 = vmatprep.subr.bf16.mxu0 %v4520_v19 }
  0xac   : > { %4183 = vmatmul.mubr.bf16.gmra.mxu1 %v4890_v62  ;;  %4231 = vmatmul.mubr.bf16.gmra.mxu0 %v4648_v29  ;;  %v3534_v29 = vld [vmem:[%s4598_s29 + $0x181] sm:$0xff] }
  0xad   : > { %4186 = vmatprep.mubr.bf16.mxu1 %v4906_v15  ;;  %4234 = vmatprep.mubr.bf16.mxu0 %v4669_v40  ;;  %v3535_v40 = vld [vmem:[%s4598_s29 + $0x189] sm:$0xff] }
  0xae   : > { %v5032_v21 = vpack.c.bf16 %v3535_v40, %v3534_v29  ;;  %v3732_v29 = vld [vmem:[%s4598_s29 + $0x62] sm:$0xff]  ;;  %v3733_v40 = vld [vmem:[%s4598_s29 + $0x6a] sm:$0xff] }
  0xb4   : > { %4187 = vmatmul.mubr.bf16.gmra.mxu1 %v4910_v17  ;;  %4235 = vmatmul.mubr.bf16.gmra.mxu0 %v4680_v45  ;;  %v4521_v45 = vld [vmem:[%s5903_s1 + $0x1f0] sm:$0xff]  }
  0xb5   : > { %4190 = vmatprep.mubr.bf16.mxu1 %v4926_v41  ;;  %4238 = vmatprep.mubr.bf16.mxu0 %v4700_v55  ;;  %v4522_v55 = vld [vmem:[%s5903_s1 + $0x230] sm:$0xff]  }
  0xbc   : > { %4191 = vmatmul.mubr.bf16.gmra.mxu1 %v4930_v43  ;;  %4239 = vmatmul.mubr.bf16.gmra.mxu0 %v4712_v61  ;;  %v4523_v61 = vld [vmem:[%s5903_s1 + $0x1e8] sm:$0xff]  }
  0xbd   : > { %4194 = vmatprep.mubr.bf16.mxu1 %v4942_v1  ;;  %4242 = vmatprep.mubr.bf16.mxu0 %v4731_v6  ;;  %v4524_v6 = vld [vmem:[%s5903_s1 + $0x228] sm:$0xff]  }
  0xc4   : > { %4195 = vmatmul.mubr.bf16.gmra.mxu1 %v5030_v20  ;;  %4243 = vmatmul.mubr.bf16.gmra.mxu0 %v5032_v21 }
  0xc5   : > { %4262 = vmatprep.mubr.bf16.mxu1 %v4760_v30  ;;  %4310 = vmatprep.mubr.bf16.mxu0 %v4762_v31  ;;  %v4525_v30 = vld [vmem:[%s5903_s1 + $0x1e0] sm:$0xff]  }
  0xc6   : > { %v4526_v31 = vld [vmem:[%s5903_s1 + $0x220] sm:$0xff]  }
  0xcc   : > { %4263 = vmatmul.mubr.bf16.vlgmr.msra.gmra.mxu1 %v4764_v32  ;;  %4311 = vmatmul.mubr.bf16.vlgmr.msra.gmra.mxu0 %v4790_v49  ;;  %v4527_v32 = vld [vmem:[%s5903_s1 + $0x1d8] sm:$0xff]  }
  0xcd   : > { %4343 = vmatpush3.bf16.msra.mxu1 %v4519_v14  ;;  %4391 = vmatpush3.bf16.msra.mxu0 %v4520_v19  ;;  %v4528_v49 = vld [vmem:[%s5903_s1 + $0x218] sm:$0xff]   ;;  %v3676_v14 = vld [vmem:[%s4598_s29 + $0x61] sm:$0xff] }
  0xce   : > { %4266 = vmatprep.mubr.bf16.mxu1 %v4792_v50  ;;  %4314 = vmatprep.mubr.bf16.mxu0 %v4794_v51  ;;  %v4529_v50 = vld [vmem:[%s5903_s1 + $0x1d0] sm:$0xff]  }
  0xcf   : > { %4344 = vmatprep.subr.bf16.mxu1 %v4521_v45  ;;  %4392 = vmatprep.subr.bf16.mxu0 %v4522_v55  ;;  %v4530_v51 = vld [vmem:[%s5903_s1 + $0x210] sm:$0xff]  }
  0xd1   : > { %4345 = vmatpush3.bf16.msra.mxu1 %v4521_v45  ;;  %4393 = vmatpush3.bf16.msra.mxu0 %v4522_v55  ;;  %v2338_v55 = vpack.c.bf16 %v3675_v13, %v3674_v12 }
  0xd2   : > { %4346 = vmatprep.subr.bf16.mxu1 %v4523_v61  ;;  %4394 = vmatprep.subr.bf16.mxu0 %v4524_v6 }
  0xd4   : > { %4267 = vmatmul.mubr.bf16.gmra.mxu1 %v4796_v52  ;;  %4315 = vmatmul.mubr.bf16.gmra.mxu0 %v4822_v7  ;;  %v4531_v52 = vld [vmem:[%s5903_s1 + $0x1c8] sm:$0xff]  }
  0xd5   : > { %4270 = vmatprep.mubr.bf16.mxu1 %v4824_v8  ;;  %4318 = vmatprep.mubr.bf16.mxu0 %v4826_v10  ;;  %v4532_v7 = vld [vmem:[%s5903_s1 + $0x208] sm:$0xff]   ;;  %v4533_v8 = vld [vmem:[%s5903_s1 + $0x1c0] sm:$0xff]  }
  0xd6   : > { %4347 = vmatpush3.bf16.msra.mxu1 %v4523_v61  ;;  %4395 = vmatpush3.bf16.msra.mxu0 %v4524_v6  ;;  %v4534_v10 = vld [vmem:[%s5903_s1 + $0x200] sm:$0xff]   ;;  %v2644_v61 = vpack.c.bf16 %v3731_v5, %v3730_v60  ;;  %v2339_v6 = vpack.c.bf16 %v3677_v23, %v3676_v14  ;;  %v2647_v5 = vpack.c.bf16 %v3737_v3, %v3736_v48 }
  0xd7   : > { %4348 = vmatprep.subr.bf16.mxu1 %v4525_v30  ;;  %4396 = vmatprep.subr.bf16.mxu0 %v4526_v31 }
  0xda   : > { %4349 = vmatpush3.bf16.msra.mxu1 %v4525_v30  ;;  %4397 = vmatpush3.bf16.msra.mxu0 %v4526_v31  ;;  %v2645_v30 = vpack.c.bf16 %v3733_v40, %v3732_v29 }
  0xdb   : > { %4350 = vmatprep.subr.bf16.mxu1 %v4527_v32  ;;  %4398 = vmatprep.subr.bf16.mxu0 %v4528_v49 }
  0xdc   : > { %4271 = vmatmul.mubr.bf16.gmra.mxu1 %v4828_v11  ;;  %4319 = vmatmul.mubr.bf16.gmra.mxu0 %v4854_v26 }
  0xdd   : > { %4274 = vmatprep.mubr.bf16.mxu1 %v4856_v33  ;;  %4322 = vmatprep.mubr.bf16.mxu0 %v4858_v34 }
  0xde   : > { %4351 = vmatpush3.bf16.msra.mxu1 %v4527_v32  ;;  %4399 = vmatpush3.bf16.msra.mxu0 %v4528_v49 }
  0xdf   : > { %4352 = vmatprep.subr.bf16.mxu1 %v4529_v50  ;;  %4400 = vmatprep.subr.bf16.mxu0 %v4530_v51 }
  0xe2   : > { %4353 = vmatpush3.bf16.msra.mxu1 %v4529_v50  ;;  %4401 = vmatpush3.bf16.msra.mxu0 %v4530_v51  ;;  %v3678_v51 = vld [vmem:[%s4598_s29 + $0x79] sm:$0xff] }
  0xe3   : > { %4354 = vmatprep.subr.bf16.mxu1 %v4531_v52  ;;  %4402 = vmatprep.subr.bf16.mxu0 %v4532_v7 }
  0xe4   : > { %4275 = vmatmul.mubr.bf16.gmra.mxu1 %v4860_v35  ;;  %4323 = vmatmul.mubr.bf16.gmra.mxu0 %v4886_v58 }
  0xe5   : > { %4278 = vmatprep.mubr.bf16.mxu1 %v4888_v59  ;;  %4326 = vmatprep.mubr.bf16.mxu0 %v4890_v62 }
  0xe6   : > { %4355 = vmatpush3.bf16.msra.mxu1 %v4531_v52  ;;  %4403 = vmatpush3.bf16.msra.mxu0 %v4532_v7  ;;  %v3679_v52 = vld [vmem:[%s4598_s29 + $0x81] sm:$0xff] }
  0xe7   : > { %4356 = vmatprep.subr.bf16.mxu1 %v4533_v8  ;;  %4404 = vmatprep.subr.bf16.mxu0 %v4534_v10 }
  0xea   : > { %4357 = vmatpush3.bf16.msra.mxu1 %v4533_v8  ;;  %4405 = vmatpush3.bf16.msra.mxu0 %v4534_v10  ;;  %v3734_v8 = vld [vmem:[%s4598_s29 + $0x7a] sm:$0xff]  ;;  %v3735_v10 = vld [vmem:[%s4598_s29 + $0x82] sm:$0xff] }
  0xec   : > { %v5096_v11 = vpop.f32.mrf.mxu0  ;;  %v5098_v26 = vpop.f32.mrf.mxu1  ;;  %4279 = vmatmul.mubr.bf16.gmra.mxu1 %v4892_v63  ;;  %4327 = vmatmul.mubr.bf16.gmra.mxu0 %v4906_v15 }
  0xed   : > { %4282 = vmatprep.mubr.bf16.mxu1 %v4908_v16  ;;  %4330 = vmatprep.mubr.bf16.mxu0 %v4910_v17 }
  0xee   : > { %v5104_v33 = vpop.f32.mrf.mxu0  ;;  %v5106_v34 = vpop.f32.mrf.mxu1 }
  0xf0   : > { %v5108_v35 = vpop.f32.mrf.mxu0  ;;  %v5110_v58 = vpop.f32.mrf.mxu1 }
  0xf2   : > { %v5112_v59 = vpop.f32.mrf.mxu0  ;;  %v5114_v62 = vpop.f32.mrf.mxu1 }
  0xf4   : > { %v5116_v24 = vpop.f32.mrf.mxu0  ;;  %v5118_v63 = vpop.f32.mrf.mxu1  ;;  %4283 = vmatmul.mubr.bf16.gmra.mxu1 %v4912_v18  ;;  %4331 = vmatmul.mubr.bf16.gmra.mxu0 %v4926_v41  ;;  %v3590_v41 = vld [vmem:[%s4598_s29 + $0x182] sm:$0xff] }
  0xf5   : > { %4286 = vmatprep.mubr.bf16.mxu1 %v4928_v42  ;;  %4334 = vmatprep.mubr.bf16.mxu0 %v4930_v43  ;;  %v3591_v42 = vld [vmem:[%s4598_s29 + $0x18a] sm:$0xff]  ;;  %v3646_v43 = vld [vmem:[%s4598_s29 + $0x198] sm:$0xff] }
  0xf6   : > { %v5124_v15 = vpop.f32.mrf.mxu0  ;;  %v5126_v16 = vpop.f32.mrf.mxu1  ;;  %v2046_v27 = vpack.c.bf16 %v3647_v47, %v3646_v43  ;;  %v3681_v47 = vld [vmem:[%s4598_s29 + $0x99] sm:$0xff] }
  0xf8   : > { %v5128_v17 = vpop.f32.mrf.mxu0  ;;  %v5130_v25 = vpop.f32.mrf.mxu1 }
  0xfa   : > { %v5132_v36 = vpop.f32.mrf.mxu0  ;;  %v5134_v18 = vpop.f32.mrf.mxu1 }
  0xfc   : > { %v5136_v37 = vpop.f32.mrf.mxu0  ;;  %v5138_v38 = vpop.f32.mrf.mxu1  ;;  %4287 = vmatmul.mubr.bf16.gmra.mxu1 %v4932_v46  ;;  %4335 = vmatmul.mubr.bf16.gmra.mxu0 %v4942_v1  ;;  %v3729_v46 = vld [vmem:[%s4598_s29 + $0x3a] sm:$0xff] }
  0xfd   : > { %4290 = vmatprep.mubr.bf16.mxu1 %v4944_v2  ;;  %4338 = vmatprep.mubr.bf16.mxu0 %v5030_v20  ;;  %v5160_v2 = vpack.c.bf16 %v3591_v42, %v3590_v41  ;;  %v2643_v39 = vpack.c.bf16 %v3729_v46, %v3728_v4  ;;  %v3680_v41 = vld [vmem:[%s4598_s29 + $0x91] sm:$0xff] }
  0xfe   : > { %v5149_v53 = vpop.f32.mrf.mxu0  ;;  %v5151_v0 = vpop.f32.mrf.mxu1  ;;  %v2341_v60 = vpack.c.bf16 %v3681_v47, %v3680_v41 }
 0x100   : > { %v5156_v22 = vpop.f32.mrf.mxu0  ;;  %v5158_v1 = vpop.f32.mrf.mxu1 }
 0x102   : > { %v5162_v56 = vpop.f32.mrf.mxu0  ;;  %v5164_v57 = vpop.f32.mrf.mxu1 }
 0x104   : > { %v5166_v44 = vpop.f32.mrf.mxu0  ;;  %v5168_v54 = vpop.f32.mrf.mxu1  ;;  %4291 = vmatmul.mubr.bf16.gmra.mxu1 %v5160_v2  ;;  %4339 = vmatmul.mubr.bf16.gmra.mxu0 %v2046_v27 }
 0x105   : > { %4358 = vmatprep.mubr.bf16.mxu1 %v2337_v28  ;;  %4406 = vmatprep.mubr.bf16.mxu0 %v2643_v39  ;;  %v2340_v39 = vpack.c.bf16 %v3679_v52, %v3678_v51  ;;  %v3684_v51 = vld [vmem:[%s4598_s29 + $0xc1] sm:$0xff] }
 0x106   : > { %v5176_v19 = vpop.f32.mrf.mxu0  ;;  %v5178_v9 = vpop.f32.mrf.mxu1 }
 0x108   : > { %v5183_v20 = vpop.f32.mrf.mxu0  ;;  %v5185_v45 = vpop.f32.mrf.mxu1 }
 0x10a   : > { %v5187_v31 = vpop.f32.mrf.mxu0  ;;  %v5189_v32 = vpop.f32.mrf.mxu1 }
 0x10c   : > { %v4072_v49 = vpop.f32.mrf.mxu1  ;;  %v4120_v50 = vpop.f32.mrf.mxu0  ;;  %4359 = vmatmul.mubr.bf16.vlgmr.msra.gmra.mxu1 %v2338_v55  ;;  %4407 = vmatmul.mubr.bf16.vlgmr.msra.gmra.mxu0 %v2644_v61  ;;  %v3682_v61 = vld [vmem:[%s4598_s29 + $0xa9] sm:$0xff] }
 0x10d   : > { %v655_v7 = vadd.f32 %v4072_v49, %v5096_v11  ;;  %4362 = vmatprep.mubr.bf16.mxu1 %v2339_v6  ;;  %4410 = vmatprep.mubr.bf16.mxu0 %v2645_v30  ;;  %v2646_v11 = vpack.c.bf16 %v3735_v10, %v3734_v8  ;;  %v3738_v49 = vld [vmem:[%s4598_s29 + $0xaa] sm:$0xff]  ;;  %v3740_v8 = vld [vmem:[%s4598_s29 + $0xc2] sm:$0xff] }
 0x10e   : > { %v646_v42 = vpop.f32.mrf.mxu1  ;;  %v920_v43 = vpop.f32.mrf.mxu0  ;;  %v3741_v10 = vld [vmem:[%s4598_s29 + $0xca] sm:$0xff] }
 0x10f   : > { %v5200_v4 = vadd.f32 %v4120_v50, %v655_v7  ;;  %v647_v46 = vadd.f32 %v646_v42, %v5104_v33  ;;  %v3739_v50 = vld [vmem:[%s4598_s29 + $0xb2] sm:$0xff]  ;;  %v3685_v7 = vld [vmem:[%s4598_s29 + $0xc9] sm:$0xff] }
 0x110   : > { %v4073_v27 = vpop.f32.mrf.mxu1  ;;  %v4121_v28 = vpop.f32.mrf.mxu0 }
 0x111   : > { %v5203_v12 = vadd.f32 %v920_v43, %v647_v46  ;;  %v658_v13 = vadd.f32 %v4073_v27, %v5108_v35  ;;  %v3683_v35 = vld [vmem:[%s4598_s29 + $0xb1] sm:$0xff]  ;;  %v2343_v27 = vpack.c.bf16 %v3685_v7, %v3684_v51 }
 0x112   : > { %v649_v14 = vpop.f32.mrf.mxu1  ;;  %v923_v23 = vpop.f32.mrf.mxu0  ;;  %v2342_v48 = vpack.c.bf16 %v3683_v35, %v3682_v61  ;;  %v3688_v61 = vld [vmem:[%s4598_s29 + $0xf1] sm:$0xff] }
 0x113   : > { %v5206_v29 = vadd.f32 %v4121_v28, %v658_v13  ;;  %v650_v33 = vadd.f32 %v649_v14, %v5112_v59  ;;  %v2649_v28 = vpack.c.bf16 %v3741_v10, %v3740_v8  ;;  %v3686_v14 = vld [vmem:[%s4598_s29 + $0xd9] sm:$0xff] }
 0x114   : > { %v4076_v40 = vpop.f32.mrf.mxu1  ;;  %v4124_v55 = vpop.f32.mrf.mxu0  ;;  %4363 = vmatmul.mubr.bf16.gmra.mxu1 %v2340_v39  ;;  %4411 = vmatmul.mubr.bf16.gmra.mxu0 %v2646_v11 }
 0x115   : > { %v5211_v6 = vadd.f32 %v923_v23, %v650_v33  ;;  %v671_v30 = vadd.f32 %v4076_v40, %v5116_v24  ;;  %4366 = vmatprep.mubr.bf16.mxu1 %v2341_v60  ;;  %4414 = vmatprep.mubr.bf16.mxu0 %v2647_v5  ;;  %v2648_v24 = vpack.c.bf16 %v3739_v50, %v3738_v49  ;;  %v3742_v40 = vld [vmem:[%s4598_s29 + $0xda] sm:$0xff]  ;;  %v3744_v49 = vld [vmem:[%s4598_s29 + $0xf2] sm:$0xff] }
 0x116   : > { %v662_v52 = vpop.f32.mrf.mxu1  ;;  %v936_v59 = vpop.f32.mrf.mxu0  ;;  %v3745_v50 = vld [vmem:[%s4598_s29 + $0xfa] sm:$0xff] }
 0x117   : > { %v5220_v41 = vadd.f32 %v4124_v55, %v671_v30  ;;  %v663_v42 = vadd.f32 %v662_v52, %v5124_v15  ;;  %v3743_v55 = vld [vmem:[%s4598_s29 + $0xe2] sm:$0xff]  ;;  %v3689_v30 = vld [vmem:[%s4598_s29 + $0xf9] sm:$0xff] }
 0x118   : > { %v4077_v43 = vpop.f32.mrf.mxu1  ;;  %v4125_v47 = vpop.f32.mrf.mxu0 }
 0x119   : > { %v5223_v3 = vadd.f32 %v936_v59, %v663_v42  ;;  %v674_v46 = vadd.f32 %v4077_v43, %v5128_v17  ;;  %v3687_v17 = vld [vmem:[%s4598_s29 + $0xe1] sm:$0xff]  ;;  %v2345_v43 = vpack.c.bf16 %v3689_v30, %v3688_v61 }
 0x11a   : > { %v665_v39 = vpop.f32.mrf.mxu1  ;;  %v939_v11 = vpop.f32.mrf.mxu0  ;;  %v2344_v8 = vpack.c.bf16 %v3687_v17, %v3686_v14  ;;  %v3692_v14 = vld [vmem:[%s4598_s29 + $0x121] sm:$0xff] }
 0x11b   : > { %v5226_v13 = vadd.f32 %v4125_v47, %v674_v46  ;;  %v666_v15 = vadd.f32 %v665_v39, %v5132_v36  ;;  %v2651_v47 = vpack.c.bf16 %v3745_v50, %v3744_v49  ;;  %v3690_v39 = vld [vmem:[%s4598_s29 + $0x109] sm:$0xff] }
 0x11c   : > { %v4080_v60 = vpop.f32.mrf.mxu1  ;;  %v4128_v5 = vpop.f32.mrf.mxu0  ;;  %4367 = vmatmul.mubr.bf16.gmra.mxu1 %v2342_v48  ;;  %4415 = vmatmul.mubr.bf16.gmra.mxu0 %v2648_v24 }
 0x11d   : > { %v5231_v23 = vadd.f32 %v939_v11, %v666_v15  ;;  %v687_v33 = vadd.f32 %v4080_v60, %v5136_v37  ;;  %4370 = vmatprep.mubr.bf16.mxu1 %v2343_v27  ;;  %4418 = vmatprep.mubr.bf16.mxu0 %v2649_v28  ;;  %v2650_v37 = vpack.c.bf16 %v3743_v55, %v3742_v40  ;;  %v3746_v60 = vld [vmem:[%s4598_s29 + $0x10a] sm:$0xff]  ;;  %v3748_v40 = vld [vmem:[%s4598_s29 + $0x122] sm:$0xff] }
 0x11e   : > { %v678_v35 = vpop.f32.mrf.mxu1  ;;  %v952_v36 = vpop.f32.mrf.mxu0  ;;  %v3749_v55 = vld [vmem:[%s4598_s29 + $0x12a] sm:$0xff] }
 0x11f   : > { %v5240_v51 = vadd.f32 %v4128_v5, %v687_v33  ;;  %v679_v52 = vadd.f32 %v678_v35, %v5149_v53  ;;  %v3747_v5 = vld [vmem:[%s4598_s29 + $0x112] sm:$0xff]  ;;  %v3693_v33 = vld [vmem:[%s4598_s29 + $0x129] sm:$0xff] }
 0x120   : > { %v4081_v59 = vpop.f32.mrf.mxu1  ;;  %v4129_v7 = vpop.f32.mrf.mxu0 }
 0x121   : > { %v5243_v10 = vadd.f32 %v952_v36, %v679_v52  ;;  %v690_v42 = vadd.f32 %v4081_v59, %v5156_v22  ;;  %v3691_v22 = vld [vmem:[%s4598_s29 + $0x111] sm:$0xff]  ;;  %v2347_v59 = vpack.c.bf16 %v3693_v33, %v3692_v14 }
 0x122   : > { %v681_v48 = vpop.f32.mrf.mxu1  ;;  %v955_v24 = vpop.f32.mrf.mxu0  ;;  %v2346_v49 = vpack.c.bf16 %v3691_v22, %v3690_v39  ;;  %v3696_v39 = vld [vmem:[%s4598_s29 + $0x151] sm:$0xff] }
 0x123   : > { %v5246_v46 = vadd.f32 %v4129_v7, %v690_v42  ;;  %v682_v53 = vadd.f32 %v681_v48, %v5162_v56  ;;  %v2653_v7 = vpack.c.bf16 %v3749_v55, %v3748_v40  ;;  %v3694_v48 = vld [vmem:[%s4598_s29 + $0x139] sm:$0xff] }
 0x124   : > { %v4084_v27 = vpop.f32.mrf.mxu1  ;;  %v4132_v28 = vpop.f32.mrf.mxu0  ;;  %4371 = vmatmul.mubr.bf16.gmra.mxu1 %v2344_v8  ;;  %4419 = vmatmul.mubr.bf16.gmra.mxu0 %v2650_v37 }
 0x125   : > { %v5251_v11 = vadd.f32 %v955_v24, %v682_v53  ;;  %v703_v15 = vadd.f32 %v4084_v27, %v5166_v44  ;;  %4374 = vmatprep.mubr.bf16.mxu1 %v2345_v43  ;;  %4422 = vmatprep.mubr.bf16.mxu0 %v2651_v47  ;;  %v2652_v44 = vpack.c.bf16 %v3747_v5, %v3746_v60  ;;  %v3750_v27 = vld [vmem:[%s4598_s29 + $0x13a] sm:$0xff]  ;;  %v3752_v60 = vld [vmem:[%s4598_s29 + $0x152] sm:$0xff] }
 0x126   : > { %v694_v17 = vpop.f32.mrf.mxu1  ;;  %v968_v56 = vpop.f32.mrf.mxu0  ;;  %v3753_v5 = vld [vmem:[%s4598_s29 + $0x15a] sm:$0xff] }
 0x127   : > { %v5260_v61 = vadd.f32 %v4132_v28, %v703_v15  ;;  %v695_v35 = vadd.f32 %v694_v17, %v5176_v19  ;;  %v3751_v28 = vld [vmem:[%s4598_s29 + $0x142] sm:$0xff]  ;;  %v3697_v15 = vld [vmem:[%s4598_s29 + $0x159] sm:$0xff] }
 0x128   : > { %v4085_v36 = vpop.f32.mrf.mxu1  ;;  %v4133_v30 = vpop.f32.mrf.mxu0  ;;  %v2654_v55 = vpack.c.bf16 %v3751_v28, %v3750_v27 }
 0x129   : > { %v5263_v50 = vadd.f32 %v968_v56, %v695_v35  ;;  %v706_v52 = vadd.f32 %v4085_v36, %v5183_v20  ;;  %v3695_v20 = vld [vmem:[%s4598_s29 + $0x141] sm:$0xff]  ;;  %v2349_v36 = vpack.c.bf16 %v3697_v15, %v3696_v39 }
 0x12a   : > { %v697_v8 = vpop.f32.mrf.mxu1  ;;  %v971_v37 = vpop.f32.mrf.mxu0  ;;  %v2348_v40 = vpack.c.bf16 %v3695_v20, %v3694_v48 }
 0x12b   : > { %v5266_v42 = vadd.f32 %v4133_v30, %v706_v52  ;;  %v698_v19 = vadd.f32 %v697_v8, %v5187_v31  ;;  %v2655_v30 = vpack.c.bf16 %v3753_v5, %v3752_v60  ;;  %v3698_v8 = vld [vmem:[%s4598_s29 + $0x169] sm:$0xff] }
 0x12c   : > { %v4088_v43 = vpop.f32.mrf.mxu1  ;;  %v4136_v47 = vpop.f32.mrf.mxu0  ;;  %4375 = vmatmul.mubr.bf16.gmra.mxu1 %v2346_v49  ;;  %4423 = vmatmul.mubr.bf16.gmra.mxu0 %v2652_v44 }
 0x12d   : > { %v5271_v24 = vadd.f32 %v971_v37, %v698_v19  ;;  %v719_v53 = vadd.f32 %v4088_v43, %v5098_v26  ;;  %4378 = vmatprep.mubr.bf16.mxu1 %v2347_v59  ;;  %4426 = vmatprep.mubr.bf16.mxu0 %v2653_v7  ;;  %v3699_v19 = vld [vmem:[%s4598_s29 + $0x171] sm:$0xff] }
 0x12e   : > { %v710_v22 = vpop.f32.mrf.mxu1  ;;  %v984_v31 = vpop.f32.mrf.mxu0  ;;  %v3754_v43 = vld [vmem:[%s4598_s29 + $0x16a] sm:$0xff]  ;;  %v2350_v39 = vpack.c.bf16 %v3699_v19, %v3698_v8 }
 0x12f   : > { %v5280_v14 = vadd.f32 %v4136_v47, %v719_v53  ;;  %v711_v17 = vadd.f32 %v710_v22, %v5106_v34  ;;  %v3755_v47 = vld [vmem:[%s4598_s29 + $0x172] sm:$0xff] }
 0x130   : > { %v4089_v56 = vpop.f32.mrf.mxu1  ;;  %v4137_v33 = vpop.f32.mrf.mxu0  ;;  %v2656_v22 = vpack.c.bf16 %v3755_v47, %v3754_v43 }
 0x131   : > { %v5283_v26 = vadd.f32 %v984_v31, %v711_v17  ;;  %v722_v35 = vadd.f32 %v4089_v56, %v5110_v58 }
 0x132   : > { %v713_v49 = vpop.f32.mrf.mxu1  ;;  %v987_v44 = vpop.f32.mrf.mxu0 }
 0x133   : > { %v5286_v52 = vadd.f32 %v4137_v33, %v722_v35  ;;  %v714_v34 = vadd.f32 %v713_v49, %v5114_v62  ;;  %v3758_v35 = vld [vmem:[%s4598_s29 + $0x19a] sm:$0xff] }
 0x134   : > { %v4092_v59 = vpop.f32.mrf.mxu1  ;;  %v4140_v7 = vpop.f32.mrf.mxu0  ;;  %4379 = vmatmul.mubr.bf16.gmra.mxu1 %v2348_v40  ;;  %4427 = vmatmul.mubr.bf16.gmra.mxu0 %v2654_v55 }
 0x135   : > { %v5290_v37 = vadd.f32 %v987_v44, %v714_v34  ;;  %v735_v58 = vadd.f32 %v4092_v59, %v5118_v63  ;;  %4382 = vmatprep.mubr.bf16.mxu1 %v2349_v36  ;;  %4430 = vmatprep.mubr.bf16.mxu0 %v2655_v30  ;;  %v3759_v36 = vld [vmem:[%s4598_s29 + $0x1a2] sm:$0xff] }
 0x136   : > { %v726_v48 = vpop.f32.mrf.mxu1  ;;  %v1000_v20 = vpop.f32.mrf.mxu0  ;;  %v2658_v8 = vpack.c.bf16 %v3759_v36, %v3758_v35 }
 0x137   : > { %v5296_v53 = vadd.f32 %v4140_v7, %v735_v58  ;;  %v727_v62 = vadd.f32 %v726_v48, %v5126_v16  ;;  %v3702_v16 = vld [vmem:[%s4598_s29 + $0x199] sm:$0xff] }
 0x138   : > { %v4093_v27 = vpop.f32.mrf.mxu1  ;;  %v4141_v28 = vpop.f32.mrf.mxu0 }
 0x139   : > { %v5299_v31 = vadd.f32 %v1000_v20, %v727_v62  ;;  %v738_v63 = vadd.f32 %v4093_v27, %v5130_v25  ;;  %v3703_v25 = vld [vmem:[%s4598_s29 + $0x1a1] sm:$0xff] }
 0x13a   : > { %v729_v15 = vpop.f32.mrf.mxu1  ;;  %v1003_v60 = vpop.f32.mrf.mxu0  ;;  %v2352_v7 = vpack.c.bf16 %v3703_v25, %v3702_v16 }
 0x13b   : > { %v5302_v5 = vadd.f32 %v4141_v28, %v738_v63  ;;  %v730_v17 = vadd.f32 %v729_v15, %v5134_v18 }
 0x13c   : > { %v4096_v56 = vpop.f32.mrf.mxu1  ;;  %v4144_v33 = vpop.f32.mrf.mxu0  ;;  %4383 = vmatmul.mubr.bf16.gmra.mxu1 %v2350_v39  ;;  %4431 = vmatmul.mubr.bf16.gmra.mxu0 %v2656_v22 }
 0x13d   : > { %v5306_v40 = vadd.f32 %v1003_v60, %v730_v17  ;;  %v751_v55 = vadd.f32 %v4096_v56, %v5138_v38  ;;  %4386 = vmatprep.mubr.bf16.mxu1 %v5032_v21  ;;  %4434 = vmatprep.mubr.bf16.mxu0 %v5160_v2 }
 0x13e   : > { %v742_v30 = vpop.f32.mrf.mxu1  ;;  %v1016_v49 = vpop.f32.mrf.mxu0 }
 0x13f   : > { %v5314_v44 = vadd.f32 %v4144_v33, %v751_v55  ;;  %v743_v18 = vadd.f32 %v742_v30, %v5151_v0 }
 0x140   : > { %v4097_v34 = vpop.f32.mrf.mxu1  ;;  %v4145_v59 = vpop.f32.mrf.mxu0 }
 0x141   : > { %v5317_v58 = vadd.f32 %v1016_v49, %v743_v18  ;;  %v754_v38 = vadd.f32 %v4097_v34, %v5158_v1 }
 0x142   : > { %v745_v21 = vpop.f32.mrf.mxu1  ;;  %v1019_v19 = vpop.f32.mrf.mxu0 }
 0x143   : > { %v5320_v2 = vadd.f32 %v4145_v59, %v754_v38  ;;  %v746_v43 = vadd.f32 %v745_v21, %v5164_v57 }
 0x144   : > { %v4100_v47 = vpop.f32.mrf.mxu1  ;;  %v4148_v48 = vpop.f32.mrf.mxu0  ;;  %4387 = vmatmul.mubr.bf16.gmra.mxu1 %v2352_v7  ;;  %4435 = vmatmul.mubr.bf16.gmra.mxu0 %v2658_v8 }
 0x145   : > { %v5323_v20 = vadd.f32 %v1019_v19, %v746_v43  ;;  %v767_v0 = vadd.f32 %v4100_v47, %v5168_v54 }
 0x146   : > { %v758_v62 = vpop.f32.mrf.mxu1  ;;  %v1032_v27 = vpop.f32.mrf.mxu0 }
 0x147   : > { %v5326_v28 = vadd.f32 %v4148_v48, %v767_v0  ;;  %v759_v1 = vadd.f32 %v758_v62, %v5178_v9 }
 0x148   : > { %v4101_v39 = vpop.f32.mrf.mxu1  ;;  %v4149_v22 = vpop.f32.mrf.mxu0 }
 0x149   : > { %v5329_v63 = vadd.f32 %v1032_v27, %v759_v1  ;;  %v770_v57 = vadd.f32 %v4101_v39, %v5185_v45 }
 0x14a   : > { %v761_v15 = vpop.f32.mrf.mxu1  ;;  %v1035_v60 = vpop.f32.mrf.mxu0 }
 0x14b   : > { %v5332_v17 = vadd.f32 %v4149_v22, %v770_v57  ;;  %v762_v56 = vadd.f32 %v761_v15, %v5189_v32 }
 0x14c   : > { %v4168_v33 = vpop.f32.mrf.mxu1  ;;  %v4216_v54 = vpop.f32.mrf.mxu0 }
 0x14d   : > { %v5335_v16 = vadd.f32 %v1035_v60, %v762_v56  ;;  %v1356_v55 = vadd.f32 %v4168_v33, %v5200_v4 }
 0x14e   : > { %v1227_v25 = vpop.f32.mrf.mxu1  ;;  %v1533_v9 = vpop.f32.mrf.mxu0 }
 0x14f   : > { %v5338_v35 = vadd.f32 %v4216_v54, %v1356_v55  ;;  %v1354_v36 = vadd.f32 %v1227_v25, %v5203_v12 }
 0x150   : > { %v4169_v30 = vpop.f32.mrf.mxu1  ;;  %v4217_v45 = vpop.f32.mrf.mxu0 }
 0x151   : > { %v5341_v49 = vadd.f32 %v1533_v9, %v1354_v36  ;;  %v1357_v18 = vadd.f32 %v4169_v30, %v5206_v29 }
 0x152   : > { %v1230_v34 = vpop.f32.mrf.mxu1  ;;  %v1536_v32 = vpop.f32.mrf.mxu0 }
 0x153   : > { %v5344_v59 = vadd.f32 %v4217_v45, %v1357_v18  ;;  %v1355_v7 = vadd.f32 %v1230_v34, %v5211_v6 }
 0x154   : > { %v4172_v8 = vpop.f32.mrf.mxu1  ;;  %v4220_v4 = vpop.f32.mrf.mxu0 }
 0x155   : > { %v5347_v38 = vadd.f32 %v1536_v32, %v1355_v7  ;;  %v1360_v21 = vadd.f32 %v4172_v8, %v5220_v41 }
 0x156   : > { %v1243_v19 = vpop.f32.mrf.mxu1  ;;  %v1549_v12 = vpop.f32.mrf.mxu0 }
 0x157   : > { %v5350_v43 = vadd.f32 %v4220_v4, %v1360_v21  ;;  %v1358_v47 = vadd.f32 %v1243_v19, %v5223_v3 }
 0x158   : > { %v4173_v48 = vpop.f32.mrf.mxu1  ;;  %v4221_v29 = vpop.f32.mrf.mxu0 }
 0x159   : > { %v5353_v0 = vadd.f32 %v1549_v12, %v1358_v47  ;;  %v1361_v62 = vadd.f32 %v4173_v48, %v5226_v13 }
 0x15a   : > { %v1246_v27 = vpop.f32.mrf.mxu1  ;;  %v1552_v6 = vpop.f32.mrf.mxu0 }
 0x15b   : > { %v5356_v1 = vadd.f32 %v4221_v29, %v1361_v62  ;;  %v1359_v39 = vadd.f32 %v1246_v27, %v5231_v23 }
 0x15c   : > { %v4176_v22 = vpop.f32.mrf.mxu1  ;;  %v4224_v41 = vpop.f32.mrf.mxu0 }
 0x15d   : > { %v5359_v57 = vadd.f32 %v1552_v6, %v1359_v39  ;;  %v1364_v15 = vadd.f32 %v4176_v22, %v5240_v51 }
 0x15e   : > { %v1259_v60 = vpop.f32.mrf.mxu1  ;;  %v1565_v3 = vpop.f32.mrf.mxu0 }
 0x15f   : > { %v5362_v56 = vadd.f32 %v4224_v41, %v1364_v15  ;;  %v1362_v33 = vadd.f32 %v1259_v60, %v5243_v10 }
 0x160   : > { %v4177_v54 = vpop.f32.mrf.mxu1  ;;  %v4225_v13 = vpop.f32.mrf.mxu0 }
 0x161   : > { %v5365_v55 = vadd.f32 %v1565_v3, %v1362_v33  ;;  %v1365_v25 = vadd.f32 %v4177_v54, %v5246_v46 }
 0x162   : > { %v1262_v9 = vpop.f32.mrf.mxu1  ;;  %v1568_v23 = vpop.f32.mrf.mxu0 }
 0x163   : > { %v5368_v36 = vadd.f32 %v4225_v13, %v1365_v25  ;;  %v1363_v30 = vadd.f32 %v1262_v9, %v5251_v11 }
 0x164   : > { %v4180_v45 = vpop.f32.mrf.mxu1  ;;  %v4228_v51 = vpop.f32.mrf.mxu0 }
 0x165   : > { %v5371_v18 = vadd.f32 %v1568_v23, %v1363_v30  ;;  %v1368_v34 = vadd.f32 %v4180_v45, %v5260_v61 }
 0x166   : > { %v1275_v32 = vpop.f32.mrf.mxu1  ;;  %v1581_v10 = vpop.f32.mrf.mxu0 }
 0x167   : > { %v5374_v7 = vadd.f32 %v4228_v51, %v1368_v34  ;;  %v1366_v8 = vadd.f32 %v1275_v32, %v5263_v50 }
 0x168   : > { %v4181_v4 = vpop.f32.mrf.mxu1  ;;  %v4229_v46 = vpop.f32.mrf.mxu0 }
 0x169   : > { %v5377_v21 = vadd.f32 %v1581_v10, %v1366_v8  ;;  %v1369_v19 = vadd.f32 %v4181_v4, %v5266_v42 }
 0x16a   : > { %v1278_v12 = vpop.f32.mrf.mxu1  ;;  %v1584_v11 = vpop.f32.mrf.mxu0 }
 0x16b   : > { %v5380_v47 = vadd.f32 %v4229_v46, %v1369_v19  ;;  %v1367_v48 = vadd.f32 %v1278_v12, %v5271_v24 }
 0x16c   : > { %v4184_v29 = vpop.f32.mrf.mxu1  ;;  %v4232_v61 = vpop.f32.mrf.mxu0 }
 0x16d   : > { %v5383_v62 = vadd.f32 %v1584_v11, %v1367_v48  ;;  %v1372_v27 = vadd.f32 %v4184_v29, %v5280_v14 }
 0x16e   : > { %v1291_v6 = vpop.f32.mrf.mxu1  ;;  %v1597_v50 = vpop.f32.mrf.mxu0 }
 0x16f   : > { %v5386_v39 = vadd.f32 %v4232_v61, %v1372_v27  ;;  %v1370_v22 = vadd.f32 %v1291_v6, %v5283_v26 }
 0x170   : > { %v4185_v41 = vpop.f32.mrf.mxu1  ;;  %v4233_v42 = vpop.f32.mrf.mxu0 }
 0x171   : > { %v5389_v15 = vadd.f32 %v1597_v50, %v1370_v22  ;;  %v1373_v60 = vadd.f32 %v4185_v41, %v5286_v52 }
 0x172   : > { %v1294_v3 = vpop.f32.mrf.mxu1  ;;  %v1600_v24 = vpop.f32.mrf.mxu0 }
 0x173   : > { %v5392_v33 = vadd.f32 %v4233_v42, %v1373_v60  ;;  %v1371_v54 = vadd.f32 %v1294_v3, %v5290_v37 }
 0x174   : > { %v4188_v13 = vpop.f32.mrf.mxu1  ;;  %v4236_v14 = vpop.f32.mrf.mxu0 }
 0x175   : > { %v5395_v25 = vadd.f32 %v1600_v24, %v1371_v54  ;;  %v1376_v9 = vadd.f32 %v4188_v13, %v5296_v53 }
 0x176   : > { %v1307_v23 = vpop.f32.mrf.mxu1  ;;  %v1613_v26 = vpop.f32.mrf.mxu0 }
 0x177   : > { %v5398_v30 = vadd.f32 %v4236_v14, %v1376_v9  ;;  %v1374_v45 = vadd.f32 %v1307_v23, %v5299_v31 }
 0x178   : > { %v4189_v51 = vpop.f32.mrf.mxu1  ;;  %v4237_v52 = vpop.f32.mrf.mxu0 }
 0x179   : > { %v5401_v34 = vadd.f32 %v1613_v26, %v1374_v45  ;;  %v1377_v32 = vadd.f32 %v4189_v51, %v5302_v5 }
 0x17a   : > { %v1310_v10 = vpop.f32.mrf.mxu1  ;;  %v1616_v37 = vpop.f32.mrf.mxu0 }
 0x17b   : > { %v5404_v8 = vadd.f32 %v4237_v52, %v1377_v32  ;;  %v1375_v4 = vadd.f32 %v1310_v10, %v5306_v40 }
 0x17c   : > { %v4192_v46 = vpop.f32.mrf.mxu1  ;;  %v4240_v53 = vpop.f32.mrf.mxu0 }
 0x17d   : > { %v5407_v19 = vadd.f32 %v1616_v37, %v1375_v4  ;;  %v1380_v12 = vadd.f32 %v4192_v46, %v5314_v44 }
 0x17e   : > { %v1323_v11 = vpop.f32.mrf.mxu1  ;;  %v1629_v31 = vpop.f32.mrf.mxu0 }
 0x17f   : > { %v5410_v48 = vadd.f32 %v4240_v53, %v1380_v12  ;;  %v1378_v29 = vadd.f32 %v1323_v11, %v5317_v58 }
 0x180   : > { %v4193_v61 = vpop.f32.mrf.mxu1  ;;  %v4241_v5 = vpop.f32.mrf.mxu0 }
 0x181   : > { %v5413_v27 = vadd.f32 %v1629_v31, %v1378_v29  ;;  %v1381_v6 = vadd.f32 %v4193_v61, %v5320_v2 }
 0x182   : > { %v1326_v50 = vpop.f32.mrf.mxu1  ;;  %v1632_v40 = vpop.f32.mrf.mxu0 }
 0x183   : > { %v5416_v22 = vadd.f32 %v4241_v5, %v1381_v6  ;;  %v1379_v41 = vadd.f32 %v1326_v50, %v5323_v20 }
 0x184   : > { %v4196_v42 = vpop.f32.mrf.mxu1  ;;  %v4244_v44 = vpop.f32.mrf.mxu0 }
 0x185   : > { %v5419_v60 = vadd.f32 %v1632_v40, %v1379_v41  ;;  %v1384_v3 = vadd.f32 %v4196_v42, %v5326_v28 }
 0x186   : > { %v1339_v24 = vpop.f32.mrf.mxu1  ;;  %v1645_v58 = vpop.f32.mrf.mxu0 }
 0x187   : > { %5908 = vst [vmem:[#allocation3_spill] sm:$0xff] %v5419_v60  ;;  %v5422_v54 = vadd.f32 %v4244_v44, %v1384_v3  ;;  %v1382_v13 = vadd.f32 %v1339_v24, %v5329_v63 }
 0x188   : > { %v4197_v14 = vpop.f32.mrf.mxu1  ;;  %v4245_v2 = vpop.f32.mrf.mxu0 }
 0x189   : > { %v5425_v9 = vadd.f32 %v1645_v58, %v1382_v13  ;;  %v1385_v23 = vadd.f32 %v4197_v14, %v5332_v17 }
 0x18a   : > { %v1342_v26 = vpop.f32.mrf.mxu1  ;;  %v1648_v20 = vpop.f32.mrf.mxu0 }
 0x18b   : > { %5909 = vst [vmem:[#allocation4_spill] sm:$0xff] %v5425_v9  ;;  %v5428_v45 = vadd.f32 %v4245_v2, %v1385_v23  ;;  %v1383_v51 = vadd.f32 %v1342_v26, %v5335_v16 }
 0x18c   : > { %v4264_v52 = vpop.f32.mrf.mxu1  ;;  %v4312_v28 = vpop.f32.mrf.mxu0 }
 0x18d   : > { %v5431_v32 = vadd.f32 %v1648_v20, %v1383_v51  ;;  %v1968_v10 = vadd.f32 %v4264_v52, %v5338_v35 }
 0x18e   : > { %v1839_v37 = vpop.f32.mrf.mxu1  ;;  %v2146_v63 = vpop.f32.mrf.mxu0 }
 0x18f   : > { %5910 = vst [vmem:[#allocation5_spill] sm:$0xff] %v5431_v32  ;;  %v5434_v4 = vadd.f32 %v4312_v28, %v1968_v10  ;;  %v1966_v46 = vadd.f32 %v1839_v37, %v5341_v49 }
 0x190   : > { %v4265_v53 = vpop.f32.mrf.mxu1  ;;  %v4313_v17 = vpop.f32.mrf.mxu0 }
 0x191   : > { %v5437_v12 = vadd.f32 %v2146_v63, %v1966_v46  ;;  %v1969_v11 = vadd.f32 %v4265_v53, %v5344_v59 }
 0x192   : > { %v5440_v31 = vpop.f32.mrf.mxu1  ;;  %v5442_v16 = vpop.f32.mrf.mxu0 }
 0x193   : > { %v5444_v29 = vadd.f32 %v4313_v17, %v1969_v11 }
 0x194   : > { %v4268_v61 = vpop.f32.mrf.mxu1  ;;  %v4316_v35 = vpop.f32.mrf.mxu0 }
 0x195   : > { %v1972_v5 = vadd.f32 %v4268_v61, %v5350_v43 }
 0x196   : > { %v5447_v6 = vpop.f32.mrf.mxu1  ;;  %v5449_v50 = vpop.f32.mrf.mxu0 }
 0x197   : > { %v5451_v49 = vadd.f32 %v4316_v35, %v1972_v5 }
 0x198   : > { %v4269_v40 = vpop.f32.mrf.mxu1  ;;  %v4317_v41 = vpop.f32.mrf.mxu0 }
 0x199   : > { %v1973_v59 = vadd.f32 %v4269_v40, %v5356_v1 }
 0x19a   : > { %v5454_v42 = vpop.f32.mrf.mxu1  ;;  %v5456_v44 = vpop.f32.mrf.mxu0 }
 0x19b   : > { %v5458_v3 = vadd.f32 %v4317_v41, %v1973_v59 }
 0x19c   : > { %v4272_v24 = vpop.f32.mrf.mxu1  ;;  %v4320_v58 = vpop.f32.mrf.mxu0 }
 0x19d   : > { %v1976_v43 = vadd.f32 %v4272_v24, %v5362_v56 }
 0x19e   : > { %v5461_v13 = vpop.f32.mrf.mxu1  ;;  %v5463_v14 = vpop.f32.mrf.mxu0 }
 0x19f   : > { %v5465_v2 = vadd.f32 %v4320_v58, %v1976_v43 }
 0x1a0   : > { %v4273_v23 = vpop.f32.mrf.mxu1  ;;  %v4321_v26 = vpop.f32.mrf.mxu0 }
 0x1a1   : > { %v1977_v1 = vadd.f32 %v4273_v23, %v5368_v36 }
 0x1a2   : > { %v5468_v20 = vpop.f32.mrf.mxu1  ;;  %v5470_v51 = vpop.f32.mrf.mxu0 }
 0x1a3   : > { %v5472_v52 = vadd.f32 %v4321_v26, %v1977_v1 }
 0x1a4   : > { %v4276_v28 = vpop.f32.mrf.mxu1  ;;  %v4324_v10 = vpop.f32.mrf.mxu0 }
 0x1a5   : > { %v1980_v56 = vadd.f32 %v4276_v28, %v5374_v7 }
 0x1a6   : > { %v5475_v37 = vpop.f32.mrf.mxu1  ;;  %v5477_v63 = vpop.f32.mrf.mxu0 }
 0x1a7   : > { %v5479_v46 = vadd.f32 %v4324_v10, %v1980_v56 }
 0x1a8   : > { %v4277_v53 = vpop.f32.mrf.mxu1  ;;  %v4325_v17 = vpop.f32.mrf.mxu0 }
 0x1a9   : > { %v1981_v36 = vadd.f32 %v4277_v53, %v5380_v47 }
 0x1aa   : > { %v5482_v11 = vpop.f32.mrf.mxu1  ;;  %v5484_v61 = vpop.f32.mrf.mxu0 }
 0x1ab   : > { %v5486_v35 = vadd.f32 %v4325_v17, %v1981_v36 }
 0x1ac   : > { %v4280_v5 = vpop.f32.mrf.mxu1  ;;  %v4328_v40 = vpop.f32.mrf.mxu0 }
 0x1ad   : > { %v1984_v7 = vadd.f32 %v4280_v5, %v5386_v39 }
 0x1ae   : > { %v5489_v41 = vpop.f32.mrf.mxu1  ;;  %v5491_v59 = vpop.f32.mrf.mxu0 }
 0x1af   : > { %v5493_v24 = vadd.f32 %v4328_v40, %v1984_v7 }
 0x1b0   : > { %v4281_v58 = vpop.f32.mrf.mxu1  ;;  %v4329_v43 = vpop.f32.mrf.mxu0 }
 0x1b1   : > { %v1985_v47 = vadd.f32 %v4281_v58, %v5392_v33 }
 0x1b2   : > { %v5496_v23 = vpop.f32.mrf.mxu1  ;;  %v5498_v26 = vpop.f32.mrf.mxu0 }
 0x1b3   : > { %v5500_v1 = vadd.f32 %v4329_v43, %v1985_v47 }
 0x1b4   : > { %v4284_v28 = vpop.f32.mrf.mxu1  ;;  %v4332_v10 = vpop.f32.mrf.mxu0 }
 0x1b5   : > { %v1988_v39 = vadd.f32 %v4284_v28, %v5398_v30 }
 0x1b6   : > { %v5503_v56 = vpop.f32.mrf.mxu1  ;;  %v5505_v53 = vpop.f32.mrf.mxu0 }
 0x1b7   : > { %v5507_v17 = vadd.f32 %v4332_v10, %v1988_v39 }
 0x1b8   : > { %v4285_v36 = vpop.f32.mrf.mxu1  ;;  %v4333_v5 = vpop.f32.mrf.mxu0 }
 0x1b9   : > { %v1989_v33 = vadd.f32 %v4285_v36, %v5404_v8 }
 0x1ba   : > { %v5510_v40 = vpop.f32.mrf.mxu1  ;;  %v5512_v7 = vpop.f32.mrf.mxu0 }
 0x1bb   : > { %v5514_v58 = vadd.f32 %v4333_v5, %v1989_v33 }
 0x1bc   : > { %v4288_v43 = vpop.f32.mrf.mxu1  ;;  %v4336_v47 = vpop.f32.mrf.mxu0 }
 0x1bd   : > { %5911 = vst [vmem:[#allocation6_spill] sm:$0xff] %v5514_v58  ;;  %v1992_v30 = vadd.f32 %v4288_v43, %v5410_v48 }
 0x1be   : > { %v5517_v28 = vpop.f32.mrf.mxu1  ;;  %v5519_v32 = vpop.f32.mrf.mxu0 }
 0x1bf   : > { %5912 = vst [vmem:[#allocation7_spill] sm:$0xff] %v5517_v28  ;;  %v5521_v10 = vadd.f32 %v4336_v47, %v1992_v30 }
 0x1c0   : > { %v4289_v39 = vpop.f32.mrf.mxu1  ;;  %v4337_v9 = vpop.f32.mrf.mxu0 }
 0x1c1   : > { %5913 = vst [vmem:[#allocation8_spill] sm:$0xff] %v5521_v10  ;;  %v1993_v8 = vadd.f32 %v4289_v39, %v5416_v22 }
 0x1c2   : > { %v5524_v36 = vpop.f32.mrf.mxu1  ;;  %v5526_v60 = vpop.f32.mrf.mxu0 }
 0x1c3   : > { %5914 = vst [vmem:[#allocation9_spill] sm:$0xff] %v5524_v36  ;;  %v5528_v5 = vadd.f32 %v4337_v9, %v1993_v8 }
 0x1c4   : > { %v4292_v33 = vpop.f32.mrf.mxu1  ;;  %v4340_v58 = vpop.f32.mrf.mxu0 }
 0x1c5   : > { %5915 = vst [vmem:[#allocation10_spill] sm:$0xff] %v5528_v5  ;;  %v1996_v48 = vadd.f32 %v4292_v33, %v5422_v54  ;;  %v1967_v54 = vadd.f32 %v5440_v31, %v5347_v38  ;;  %v5555_v38 = vld [vmem:[%s5904_s2] ss:$0 sm:$0xff] }
 0x1c6   : > { %v5531_v43 = vpop.f32.mrf.mxu1  ;;  %v5533_v28 = vpop.f32.mrf.mxu0 }
 0x1c7   : > { %5916 = vst [vmem:[#allocation11_spill] sm:$0xff] %v5531_v43  ;;  %5917 = vst [vmem:[#allocation12_spill] sm:$0xff] %v5533_v28  ;;  %v5535_v47 = vadd.f32 %v4340_v58, %v1996_v48 }
 0x1c8   : > { %v4293_v30 = vpop.f32.mrf.mxu1  ;;  %v4341_v10 = vpop.f32.mrf.mxu0 }
 0x1c9   : > { %5918 = vst [vmem:[#allocation13_spill] sm:$0xff] %v5535_v47  ;;  %v1997_v22 = vadd.f32 %v4293_v30, %v5428_v45  ;;  %v2274_v45 = vadd.f32 %v5442_v16, %v1967_v54  ;;  %v1970_v30 = vadd.f32 %v5447_v6, %v5353_v0 }
 0x1ca   : > { %v5538_v39 = vpop.f32.mrf.mxu1  ;;  %v5540_v36 = vpop.f32.mrf.mxu0 }
 0x1cb   : > { %5919 = vst [vmem:[#allocation14_spill] sm:$0xff] %v5538_v39  ;;  %5920 = vst [vmem:[#allocation15_spill] sm:$0xff] %v5540_v36  ;;  %v5542_v9 = vadd.f32 %v4341_v10, %v1997_v22 }
 0x1cc   : > { %v4360_v8 = vpop.f32.mrf.mxu1  ;;  %v4408_v5 = vpop.f32.mrf.mxu0 }
 0x1cd   : > { %5921 = vst [vmem:[#allocation16_spill] sm:$0xff] %v5542_v9  ;;  %v2581_v58 = vadd.f32 %v4360_v8, %v5434_v4  ;;  %v2277_v8 = vadd.f32 %v5449_v50, %v1970_v30 }
 0x1ce   : > { %v2452_v33 = vpop.f32.mrf.mxu1  ;;  %v2758_v43 = vpop.f32.mrf.mxu0 }
 0x1cf   : > { %v2579_v48 = vadd.f32 %v2452_v33, %v5437_v12  ;;  %v2887_v39 = vadd.f32 %v4408_v5, %v2581_v58  ;;  %v1974_v33 = vadd.f32 %v5461_v13, %v5365_v55 }
 0x1d0   : > { %v4361_v47 = vpop.f32.mrf.mxu1  ;;  %v4409_v28 = vpop.f32.mrf.mxu0 }
 0x1d1   : > { %v2885_v10 = vadd.f32 %v2758_v43, %v2579_v48  ;;  %v2582_v22 = vadd.f32 %v4361_v47, %v5444_v29  ;;  %v1971_v29 = vadd.f32 %v5454_v42, %v5359_v57  ;;  %v5564_v47 = vadd.f32 %v5555_v38, %v2887_v39 }
 0x1d2   : > { %v2455_v9 = vpop.f32.mrf.mxu1  ;;  %v2761_v36 = vpop.f32.mrf.mxu0 }
 0x1d3   : > { %v2580_v4 = vadd.f32 %v2455_v9, %v2274_v45  ;;  %v5558_v12 = vadd.f32 %v5555_v38, %v2885_v10  ;;  %v2888_v0 = vadd.f32 %v4409_v28, %v2582_v22  ;;  %v2278_v45 = vadd.f32 %v5456_v44, %v1971_v29 }
 0x1d4   : > { %v4364_v31 = vpop.f32.mrf.mxu1  ;;  %v4412_v16 = vpop.f32.mrf.mxu0  ;;  %v1975_v44 = vadd.f32 %v5468_v20, %v5371_v18 }
 0x1d5   : > { %v2886_v6 = vadd.f32 %v2761_v36, %v2580_v4  ;;  %v2995_v50 = vmul.f32 %v5558_v12, %v5558_v12  ;;  %v2585_v28 = vadd.f32 %v4364_v31, %v5451_v49  ;;  %v5575_v57 = vadd.f32 %v5555_v38, %v2888_v0 }
 0x1d6   : > { %v2468_v43 = vpop.f32.mrf.mxu1  ;;  %v2774_v5 = vpop.f32.mrf.mxu0  ;;  %v2997_v49 = vmul.f32 %v5564_v47, %v5564_v47  ;;  %v2281_v31 = vadd.f32 %v5463_v14, %v1974_v33 }
 0x1d7   : > { %v5567_v54 = vadd.f32 %v5555_v38, %v2886_v6  ;;  %v2583_v9 = vadd.f32 %v2468_v43, %v2277_v8  ;;  %v2891_v8 = vadd.f32 %v4412_v16, %v2585_v28 }
 0x1d8   : > { %v4365_v36 = vpop.f32.mrf.mxu1  ;;  %v4413_v58 = vpop.f32.mrf.mxu0 }
 0x1d9   : > { %v2958_v42 = vadd.f32 %v5567_v54, %v5558_v12  ;;  %v2996_v39 = vmul.f32 %v5567_v54, %v5567_v54  ;;  %v2889_v48 = vadd.f32 %v2774_v5, %v2583_v9  ;;  %v2586_v55 = vadd.f32 %v4365_v36, %v5458_v3 }
 0x1da   : > { %v2471_v13 = vpop.f32.mrf.mxu1  ;;  %v2777_v30 = vpop.f32.mrf.mxu0  ;;  %v2998_v3 = vmul.f32 %v5575_v57, %v5575_v57  ;;  %v5600_v18 = vadd.f32 %v5555_v38, %v2891_v8 }
 0x1db   : > { %v2959_v10 = vadd.f32 %v2958_v42, %v5564_v47  ;;  %v3027_v22 = vadd.f32 %v2996_v39, %v2995_v50  ;;  %v5587_v4 = vadd.f32 %v5555_v38, %v2889_v48  ;;  %v2584_v0 = vadd.f32 %v2471_v13, %v2278_v45 }
 0x1dc   : > { %v4368_v6 = vpop.f32.mrf.mxu1  ;;  %v4416_v43 = vpop.f32.mrf.mxu0  ;;  %v2892_v50 = vadd.f32 %v4413_v58, %v2586_v55  ;;  %v2282_v13 = vadd.f32 %v5470_v51, %v1975_v44  ;;  %v1978_v58 = vadd.f32 %v5475_v37, %v5377_v21  ;;  %v3001_v51 = vmul.f32 %v5600_v18, %v5600_v18 }
 0x1dd   : > { %v3028_v29 = vadd.f32 %v3027_v22, %v2997_v49  ;;  %v2960_v5 = vadd.f32 %v2959_v10, %v5575_v57  ;;  %v2999_v9 = vmul.f32 %v5587_v4, %v5587_v4  ;;  %v2890_v36 = vadd.f32 %v2777_v30, %v2584_v0 }
 0x1de   : > { %v2484_v42 = vpop.f32.mrf.mxu1  ;;  %v2790_v14 = vpop.f32.mrf.mxu0  ;;  %v2589_v28 = vadd.f32 %v4368_v6, %v5465_v2  ;;  %v5609_v49 = vadd.f32 %v5555_v38, %v2892_v50 }
 0x1df   : > { %v2961_v16 = vadd.f32 %v2960_v5, %v5587_v4  ;;  %v3029_v33 = vadd.f32 %v3028_v29, %v2998_v3  ;;  %v2587_v39 = vadd.f32 %v2484_v42, %v2281_v31  ;;  %v5603_v20 = vadd.f32 %v5555_v38, %v2890_v36 }
 0x1e0   : > { %v4369_v48 = vpop.f32.mrf.mxu1  ;;  %v4417_v45 = vpop.f32.mrf.mxu0  ;;  %v2895_v0 = vadd.f32 %v4416_v43, %v2589_v28  ;;  %v2285_v5 = vadd.f32 %v5477_v63, %v1978_v58  ;;  %v3002_v43 = vmul.f32 %v5609_v49, %v5609_v49 }
 0x1e1   : > { %v3030_v55 = vadd.f32 %v3029_v33, %v2999_v9  ;;  %v2893_v30 = vadd.f32 %v2790_v14, %v2587_v39  ;;  %v2962_v2 = vadd.f32 %v2961_v16, %v5603_v20  ;;  %v3000_v10 = vmul.f32 %v5603_v20, %v5603_v20 }
 0x1e2   : > { %v2590_v22 = vadd.f32 %v4369_v48, %v5472_v52  ;;  %v2487_v31 = vpop.f32.mrf.mxu1  ;;  %v2793_v8 = vpop.f32.mrf.mxu0  ;;  %v1979_v52 = vadd.f32 %v5482_v11, %v5383_v62  ;;  %v5628_v33 = vadd.f32 %v5555_v38, %v2895_v0 }
 0x1e3   : > { %v2588_v6 = vadd.f32 %v2487_v31, %v2282_v13  ;;  %v2963_v21 = vadd.f32 %v2962_v2, %v5600_v18  ;;  %v3031_v37 = vadd.f32 %v3030_v55, %v3000_v10  ;;  %v5619_v44 = vadd.f32 %v5555_v38, %v2893_v30 }
 0x1e4   : > { %v4372_v3 = vpop.f32.mrf.mxu1  ;;  %v4420_v29 = vpop.f32.mrf.mxu0  ;;  %v2896_v42 = vadd.f32 %v4417_v45, %v2590_v22  ;;  %v2286_v45 = vadd.f32 %v5484_v61, %v1979_v52  ;;  %v1982_v55 = vadd.f32 %v5489_v41, %v5389_v15  ;;  %v3005_v61 = vmul.f32 %v5628_v33, %v5628_v33 }
 0x1e5   : > { %v2894_v9 = vadd.f32 %v2793_v8, %v2588_v6  ;;  %v3032_v50 = vadd.f32 %v3031_v37, %v3001_v51  ;;  %v2964_v36 = vadd.f32 %v2963_v21, %v5609_v49  ;;  %v3003_v62 = vmul.f32 %v5619_v44, %v5619_v44 }
 0x1e6   : > { %v2500_v14 = vpop.f32.mrf.mxu1  ;;  %v2806_v16 = vpop.f32.mrf.mxu0  ;;  %v2593_v48 = vadd.f32 %v4372_v3, %v5479_v46  ;;  %v5643_v22 = vadd.f32 %v5555_v38, %v2896_v42 }
 0x1e7   : > { %v5631_v28 = vadd.f32 %v5555_v38, %v2894_v9  ;;  %v2591_v63 = vadd.f32 %v2500_v14, %v2285_v5  ;;  %v2965_v39 = vadd.f32 %v2964_v36, %v5619_v44  ;;  %v3033_v11 = vadd.f32 %v3032_v50, %v3002_v43 }
 0x1e8   : > { %v4373_v13 = vpop.f32.mrf.mxu1  ;;  %v4421_v58 = vpop.f32.mrf.mxu0  ;;  %v2899_v51 = vadd.f32 %v4420_v29, %v2593_v48  ;;  %v2289_v5 = vadd.f32 %v5491_v59, %v1982_v55  ;;  %v3006_v9 = vmul.f32 %v5643_v22, %v5643_v22 }
 0x1e9   : > { %v3004_v30 = vmul.f32 %v5631_v28, %v5631_v28  ;;  %v2897_v2 = vadd.f32 %v2806_v16, %v2591_v63  ;;  %v3034_v10 = vadd.f32 %v3033_v11, %v3003_v62  ;;  %v2966_v31 = vadd.f32 %v2965_v39, %v5631_v28 }
 0x1ea   : > { %v2594_v8 = vadd.f32 %v4373_v13, %v5486_v35  ;;  %v2503_v46 = vpop.f32.mrf.mxu1  ;;  %v2809_v0 = vpop.f32.mrf.mxu0  ;;  %v1983_v35 = vadd.f32 %v5496_v23, %v5395_v25  ;;  %v5664_v59 = vadd.f32 %v5555_v38, %v2899_v51  ;;  %v1986_v13 = vadd.f32 %v5503_v56, %v5401_v34 }
 0x1eb   : > { %v2592_v6 = vadd.f32 %v2503_v46, %v2286_v45  ;;  %v2967_v15 = vadd.f32 %v2966_v31, %v5628_v33  ;;  %v3035_v41 = vadd.f32 %v3034_v10, %v3004_v30  ;;  %v5651_v21 = vadd.f32 %v5555_v38, %v2897_v2 }
 0x1ec   : > { %v4376_v37 = vpop.f32.mrf.mxu1  ;;  %v4424_v3 = vpop.f32.mrf.mxu0  ;;  %v2900_v36 = vadd.f32 %v4421_v58, %v2594_v8  ;;  %v2290_v48 = vadd.f32 %v5498_v26, %v1983_v35  ;;  %v3009_v26 = vmul.f32 %v5664_v59, %v5664_v59 }
 0x1ed   : > { %v2898_v52 = vadd.f32 %v2809_v0, %v2592_v6  ;;  %v3036_v43 = vadd.f32 %v3035_v41, %v3005_v61  ;;  %v2968_v50 = vadd.f32 %v2967_v15, %v5643_v22  ;;  %v2597_v16 = vadd.f32 %v4376_v37, %v5493_v24 }
 0x1ee   : > { %v2516_v42 = vpop.f32.mrf.mxu1  ;;  %v2822_v29 = vpop.f32.mrf.mxu0  ;;  %v3007_v23 = vmul.f32 %v5651_v21, %v5651_v21  ;;  %v5675_v55 = vadd.f32 %v5555_v38, %v2900_v36  ;;  %v2293_v15 = vadd.f32 %v5505_v53, %v1986_v13  ;;  %v5923_v13 = vld [vmem:[#allocation6_spill] sm:$0xff] }
 0x1ef   : > { %v5660_v14 = vadd.f32 %v5555_v38, %v2898_v52  ;;  %v2595_v63 = vadd.f32 %v2516_v42, %v2289_v5  ;;  %v2969_v25 = vadd.f32 %v2968_v50, %v5651_v21  ;;  %v3037_v39 = vadd.f32 %v3036_v43, %v3006_v9 }
 0x1f0   : > { %v4377_v62 = vpop.f32.mrf.mxu1  ;;  %v4425_v11 = vpop.f32.mrf.mxu0  ;;  %v2903_v8 = vadd.f32 %v4424_v3, %v2597_v16  ;;  %v3010_v51 = vmul.f32 %v5675_v55, %v5675_v55 }
 0x1f1   : > { %v3008_v24 = vmul.f32 %v5660_v14, %v5660_v14  ;;  %v2901_v58 = vadd.f32 %v2822_v29, %v2595_v63  ;;  %v3038_v45 = vadd.f32 %v3037_v39, %v3007_v23  ;;  %v2970_v30 = vadd.f32 %v2969_v25, %v5660_v14  ;;  %v5922_v63 = vld [vmem:[#allocation7_spill] sm:$0xff] }
 0x1f2   : > { %v2598_v2 = vadd.f32 %v4377_v62, %v5500_v1  ;;  %v2519_v10 = vpop.f32.mrf.mxu1  ;;  %v2825_v31 = vpop.f32.mrf.mxu0  ;;  %v1987_v1 = vadd.f32 %v5510_v40, %v5407_v19  ;;  %v5692_v9 = vadd.f32 %v5555_v38, %v2903_v8  ;;  %v1990_v25 = vadd.f32 %v5922_v63, %v5413_v27 }
 0x1f3   : > { %v2596_v46 = vadd.f32 %v2519_v10, %v2290_v48  ;;  %v2971_v34 = vadd.f32 %v2970_v30, %v5664_v59  ;;  %v3039_v56 = vadd.f32 %v3038_v45, %v3008_v24  ;;  %v5683_v0 = vadd.f32 %v5555_v38, %v2901_v58 }
 0x1f4   : > { %v4380_v61 = vpop.f32.mrf.mxu1  ;;  %v4428_v6 = vpop.f32.mrf.mxu0  ;;  %v2904_v5 = vadd.f32 %v4425_v11, %v2598_v2  ;;  %v2294_v16 = vadd.f32 %v5512_v7, %v1987_v1  ;;  %v3013_v7 = vmul.f32 %v5692_v9, %v5692_v9 }
 0x1f5   : > { %v2902_v41 = vadd.f32 %v2825_v31, %v2596_v46  ;;  %v3040_v37 = vadd.f32 %v3039_v56, %v3009_v26  ;;  %v2972_v3 = vadd.f32 %v2971_v34, %v5675_v55  ;;  %v3011_v19 = vmul.f32 %v5683_v0, %v5683_v0  ;;  %v5924_v26 = vld [vmem:[#allocation3_spill] sm:$0xff]  ;;  %v5925_v34 = vld [vmem:[#allocation9_spill] sm:$0xff] }
 0x1f6   : > { %v2532_v35 = vpop.f32.mrf.mxu1  ;;  %v2838_v52 = vpop.f32.mrf.mxu0  ;;  %v2601_v36 = vadd.f32 %v4380_v61, %v5507_v17  ;;  %v5707_v11 = vadd.f32 %v5555_v38, %v2904_v5  ;;  %v2297_v46 = vadd.f32 %v5519_v32, %v1990_v25  ;;  %v1991_v56 = vadd.f32 %v5925_v34, %v5924_v26  ;;  %v5926_v5 = vld [vmem:[#allocation8_spill] sm:$0xff] }
 0x1f7   : > { %v5695_v43 = vadd.f32 %v5555_v38, %v2902_v41  ;;  %v2599_v53 = vadd.f32 %v2532_v35, %v2293_v15  ;;  %v2973_v50 = vadd.f32 %v2972_v3, %v5683_v0  ;;  %v3041_v40 = vadd.f32 %v3040_v37, %v3010_v51  ;;  %v5930_v26 = vld [vmem:[#allocation12_spill] sm:$0xff] }
 0x1f8   : > { %v4381_v42 = vpop.f32.mrf.mxu1  ;;  %v4429_v29 = vpop.f32.mrf.mxu0  ;;  %v2907_v2 = vadd.f32 %v4428_v6, %v2601_v36  ;;  %v3014_v15 = vmul.f32 %v5707_v11, %v5707_v11 }
 0x1f9   : > { %v3012_v23 = vmul.f32 %v5695_v43, %v5695_v43  ;;  %v2905_v39 = vadd.f32 %v2838_v52, %v2599_v53  ;;  %v3042_v62 = vadd.f32 %v3041_v40, %v3011_v19  ;;  %v2974_v48 = vadd.f32 %v2973_v50, %v5695_v43 }
 0x1fa   : > { %v2602_v24 = vadd.f32 %v4381_v42, %v5923_v13  ;;  %v2535_v17 = vpop.f32.mrf.mxu1  ;;  %v2841_v58 = vpop.f32.mrf.mxu0  ;;  %v5728_v32 = vadd.f32 %v5555_v38, %v2907_v2  ;;  %v2298_v42 = vadd.f32 %v5526_v60, %v1991_v56  ;;  %v5929_v13 = vld [vmem:[#allocation10_spill] sm:$0xff]  ;;  %v5931_v56 = vld [vmem:[#allocation5_spill] sm:$0xff] }
 0x1fb   : > { %v2600_v45 = vadd.f32 %v2535_v17, %v2294_v16  ;;  %v2975_v27 = vadd.f32 %v2974_v48, %v5692_v9  ;;  %v3043_v30 = vadd.f32 %v3042_v62, %v3012_v23  ;;  %v5715_v10 = vadd.f32 %v5555_v38, %v2905_v39  ;;  %v5928_v16 = vld [vmem:[#allocation11_spill] sm:$0xff] }
 0x1fc   : > { %v4384_v31 = vpop.f32.mrf.mxu1  ;;  %v4432_v8 = vpop.f32.mrf.mxu0  ;;  %v2908_v51 = vadd.f32 %v4429_v29, %v2602_v24  ;;  %v5927_v29 = vld [vmem:[#allocation4_spill] sm:$0xff]  ;;  %v3017_v60 = vmul.f32 %v5728_v32, %v5728_v32 }
 0x1fd   : > { %v2906_v61 = vadd.f32 %v2841_v58, %v2600_v45  ;;  %v3044_v1 = vadd.f32 %v3043_v30, %v3013_v7  ;;  %v2976_v41 = vadd.f32 %v2975_v27, %v5707_v11  ;;  %v2605_v35 = vadd.f32 %v4384_v31, %v5926_v5 }
 0x1fe   : > { %v2548_v37 = vpop.f32.mrf.mxu1  ;;  %v2854_v6 = vpop.f32.mrf.mxu0  ;;  %v3015_v50 = vmul.f32 %v5715_v10, %v5715_v10  ;;  %v1994_v63 = vadd.f32 %v5928_v16, %v5927_v29  ;;  %v5739_v62 = vadd.f32 %v5555_v38, %v2908_v51 }
 0x1ff   : > { %v5724_v3 = vadd.f32 %v5555_v38, %v2906_v61  ;;  %v2603_v52 = vadd.f32 %v2548_v37, %v2297_v46  ;;  %v2977_v53 = vadd.f32 %v2976_v41, %v5715_v10  ;;  %v3045_v19 = vadd.f32 %v3044_v1, %v3014_v15  ;;  %v5932_v61 = vld [vmem:[#allocation14_spill] sm:$0xff] }
 0x200   : > { %v4385_v40 = vpop.f32.mrf.mxu1  ;;  %v4433_v36 = vpop.f32.mrf.mxu0  ;;  %v2911_v7 = vadd.f32 %v4432_v8, %v2605_v35  ;;  %v2301_v34 = vadd.f32 %v5930_v26, %v1994_v63  ;;  %v1995_v15 = vadd.f32 %v5932_v61, %v5931_v56  ;;  %v3018_v8 = vmul.f32 %v5739_v62, %v5739_v62 }
 0x201   : > { %v3016_v25 = vmul.f32 %v5724_v3, %v5724_v3  ;;  %v2909_v23 = vadd.f32 %v2854_v6, %v2603_v52  ;;  %v3046_v39 = vadd.f32 %v3045_v19, %v3015_v50  ;;  %v2978_v48 = vadd.f32 %v2977_v53, %v5724_v3 }
 0x202   : > { %v2606_v24 = vadd.f32 %v4385_v40, %v5929_v13  ;;  %v2551_v17 = vpop.f32.mrf.mxu1  ;;  %v2857_v58 = vpop.f32.mrf.mxu0  ;;  %v5756_v35 = vadd.f32 %v5555_v38, %v2911_v7 }
 0x203   : > { %v2604_v45 = vadd.f32 %v2551_v17, %v2298_v42  ;;  %v2979_v27 = vadd.f32 %v2978_v48, %v5728_v32  ;;  %v3047_v30 = vadd.f32 %v3046_v39, %v3016_v25  ;;  %v5747_v2 = vadd.f32 %v5555_v38, %v2909_v23  ;;  %v5933_v42 = vld [vmem:[#allocation13_spill] sm:$0xff]  ;;  %v5935_v17 = vld [vmem:[#allocation16_spill] sm:$0xff] }
 0x204   : > { %v4388_v31 = vpop.f32.mrf.mxu1  ;;  %v4436_v46 = vpop.f32.mrf.mxu0  ;;  %v2912_v37 = vadd.f32 %v4433_v36, %v2606_v24  ;;  %v5934_v36 = vld [vmem:[#allocation15_spill] sm:$0xff] }
 0x205   : > { %v2910_v1 = vadd.f32 %v2857_v58, %v2604_v45  ;;  %v3048_v41 = vadd.f32 %v3047_v30, %v3017_v60  ;;  %v2980_v51 = vadd.f32 %v2979_v27, %v5739_v62  ;;  %v3019_v19 = vmul.f32 %v5747_v2, %v5747_v2 }
 0x206   : > { %v2564_v6 = vpop.f32.mrf.mxu1  ;;  %v2870_v5 = vpop.f32.mrf.mxu0  ;;  %v2609_v29 = vadd.f32 %v4388_v31, %v5933_v42  ;;  %v2302_v25 = vadd.f32 %v5934_v36, %v1995_v15  ;;  %v5769_v13 = vadd.f32 %v5555_v38, %v2912_v37  ;;  %v3021_v45 = vmul.f32 %v5756_v35, %v5756_v35 }
 0x207   : > { %v5759_v52 = vadd.f32 %v5555_v38, %v2910_v1  ;;  %v2607_v53 = vadd.f32 %v2564_v6, %v2301_v34  ;;  %v2981_v50 = vadd.f32 %v2980_v51, %v5747_v2  ;;  %v3049_v40 = vadd.f32 %v3048_v41, %v3018_v8 }
 0x208   : > { %v4389_v16 = vpop.f32.mrf.mxu1  ;;  %v4437_v63 = vpop.f32.mrf.mxu0  ;;  %v2915_v31 = vadd.f32 %v4436_v46, %v2609_v29  ;;  %v3022_v61 = vmul.f32 %v5769_v13, %v5769_v13 }
 0x209   : > { %v3020_v23 = vmul.f32 %v5759_v52, %v5759_v52  ;;  %v2913_v39 = vadd.f32 %v2870_v5, %v2607_v53  ;;  %v3050_v48 = vadd.f32 %v3049_v40, %v3019_v19  ;;  %v2982_v24 = vadd.f32 %v2981_v50, %v5759_v52 }
 0x20a   : > { %v2610_v58 = vadd.f32 %v4389_v16, %v5935_v17  ;;  %v2567_v7 = vpop.f32.mrf.mxu1  ;;  %v2873_v34 = vpop.f32.mrf.mxu0  ;;  %v5786_v51 = vadd.f32 %v5555_v38, %v2915_v31 }
 0x20b   : > { %v2608_v60 = vadd.f32 %v2567_v7, %v2302_v25  ;;  %v2983_v27 = vadd.f32 %v2982_v24, %v5756_v35  ;;  %v3051_v30 = vadd.f32 %v3050_v48, %v3020_v23  ;;  %v5777_v26 = vadd.f32 %v5555_v38, %v2913_v39 }
 0x20c   : > { %v2916_v8 = vadd.f32 %v4437_v63, %v2610_v58  ;;  %v3025_v40 = vmul.f32 %v5786_v51, %v5786_v51 }
 0x20d   : > { %v2914_v56 = vadd.f32 %v2873_v34, %v2608_v60  ;;  %v3052_v15 = vadd.f32 %v3051_v30, %v3021_v45  ;;  %v2984_v1 = vadd.f32 %v2983_v27, %v5769_v13  ;;  %v3023_v37 = vmul.f32 %v5777_v26, %v5777_v26 }
 0x20e   : > { %v5794_v50 = vadd.f32 %v5555_v38, %v2916_v8 }
 0x20f   : > { %v5783_v41 = vadd.f32 %v5555_v38, %v2914_v56  ;;  %v2985_v46 = vadd.f32 %v2984_v1, %v5777_v26  ;;  %v3053_v6 = vadd.f32 %v3052_v15, %v3022_v61 }
 0x210   : > { %v3026_v16 = vmul.f32 %v5794_v50, %v5794_v50 }
 0x211   : > { %v3024_v5 = vmul.f32 %v5783_v41, %v5783_v41  ;;  %v3054_v53 = vadd.f32 %v3053_v6, %v3023_v37  ;;  %v2986_v19 = vadd.f32 %v2985_v46, %v5783_v41 }
 0x213   : > { %v2987_v42 = vadd.f32 %v2986_v19, %v5786_v51  ;;  %v3055_v29 = vadd.f32 %v3054_v53, %v3024_v5 }
 0x215   : > { %v2988_v63 = vadd.f32 %v2987_v42, %v5794_v50  ;;  %v3056_v36 = vadd.f32 %v3055_v29, %v3025_v40 }
 0x217   : > { %v2989_v25 = vrot.slane %v2988_v63, 4  ;;  %v3057_v23 = vadd.f32 %v3056_v36, %v3026_v16 }
 0x219   : > { %v2990_v39 = vadd.f32 %v2989_v25, %v2988_v63  ;;  %v3058_v48 = vrot.slane %v3057_v23, 4 }
 0x21b   : > { %v2991_v38 = vrot.slane %v2990_v39, 2  ;;  %v3059_v24 = vadd.f32 %v3058_v48, %v3057_v23 }
 0x21d   : > { %v2992_v17 = vadd.f32 %v2991_v38, %v2990_v39  ;;  %v3060_v58 = vrot.slane %v3059_v24, 2 }
 0x21f   : > { %v2993_v7 = vrot.slane %v2992_v17, 1  ;;  %v3061_v45 = vadd.f32 %v3060_v58, %v3059_v24  ;;  %v3785_v58 = vld [vmem:[%s5905_s3] ss:$0 sm:$0xff] }
 0x221   : > { %v2994_v60 = vadd.f32 %v2993_v7, %v2992_v17  ;;  %v3062_v27 = vrot.slane %v3061_v45, 1 }
 0x223   : > { %v3063_v30 = vadd.f32 %v3062_v27, %v3061_v45  ;;  %v5803_v31 = vmul.f32 0.00390625, %v2994_v60 }
 0x225   : > { %v3065_v34 = vmul.f32 0.00390625, %v3063_v30  ;;  %v3066_v56 = vmul.f32 %v5803_v31, %v5803_v31  ;;  %v3077_v15 = vsub.f32 %v5631_v28, %v5803_v31  ;;  %v3080_v1 = vsub.f32 %v5651_v21, %v5803_v31 }
 0x226   : > { %v3081_v8 = vsub.f32 %v5660_v14, %v5803_v31  ;;  %v3082_v46 = vsub.f32 %v5664_v59, %v5803_v31  ;;  %v3083_v37 = vsub.f32 %v5675_v55, %v5803_v31  ;;  %v3084_v6 = vsub.f32 %v5683_v0, %v5803_v31 }
 0x227   : > { %v3067_v61 = vsub.f32 %v3065_v34, %v3066_v56  ;;  %v3085_v5 = vsub.f32 %v5695_v43, %v5803_v31  ;;  %v3086_v28 = vsub.f32 %v5692_v9, %v5803_v31  ;;  %v3087_v21 = vsub.f32 %v5707_v11, %v5803_v31 }
 0x228   : > { %v3088_v14 = vsub.f32 %v5715_v10, %v5803_v31  ;;  %v3089_v59 = vsub.f32 %v5724_v3, %v5803_v31  ;;  %v3090_v55 = vsub.f32 %v5728_v32, %v5803_v31  ;;  %v3091_v0 = vsub.f32 %v5739_v62, %v5803_v31 }
 0x229   : > { %v3092_v43 = vsub.f32 %v5747_v2, %v5803_v31  ;;  %v3093_v9 = vsub.f32 %v5759_v52, %v5803_v31  ;;  %v3094_v11 = vsub.f32 %v5756_v35, %v5803_v31  ;;  %v3095_v10 = vsub.f32 %v5769_v13, %v5803_v31 }
 0x22a   : > { %v3096_v3 = vsub.f32 %v5777_v26, %v5803_v31  ;;  %v3097_v32 = vsub.f32 %v5783_v41, %v5803_v31  ;;  %v3098_v62 = vsub.f32 %v5786_v51, %v5803_v31  ;;  %v3099_v2 = vsub.f32 %v5794_v50, %v5803_v31 }
 0x22b   : > { %v3100_v53 = vadd.f32 1e-05, %v3067_v61  ;;  %v3068_v35 = vsub.f32 %v5558_v12, %v5803_v31  ;;  %v3069_v52 = vsub.f32 %v5567_v54, %v5803_v31  ;;  %v3070_v13 = vsub.f32 %v5564_v47, %v5803_v31 }
 0x22c   : > { %v3071_v26 = vsub.f32 %v5575_v57, %v5803_v31  ;;  %v3072_v41 = vsub.f32 %v5587_v4, %v5803_v31  ;;  %v3073_v51 = vsub.f32 %v5603_v20, %v5803_v31  ;;  %v3074_v50 = vsub.f32 %v5600_v18, %v5803_v31 }
 0x22d   : > { %4535 = vrsqrt.f32 %v3100_v53  ;;  %v3075_v12 = vsub.f32 %v5609_v49, %v5803_v31  ;;  %v3076_v54 = vsub.f32 %v5619_v44, %v5803_v31  ;;  %v3078_v47 = vsub.f32 %v5628_v33, %v5803_v31 }
 0x22e   : > { %v3079_v57 = vsub.f32 %v5643_v22, %v5803_v31 }
 0x23a   : > { %v4536_v19 = vpop.eup %4535 }
 0x23b   : > { %v3102_v4 = vmul.f32 %v4536_v19, %v3068_v35  ;;  %v3103_v40 = vmul.f32 %v4536_v19, %v3069_v52  ;;  %v3104_v42 = vmul.f32 %v4536_v19, %v3070_v13  ;;  %v3105_v20 = vmul.f32 %v4536_v19, %v3071_v26  ;;  %v3786_v52 = vld [vmem:[%s5906_s4] ss:$0 sm:$0xff] }
 0x23c   : > { %v3106_v29 = vmul.f32 %v4536_v19, %v3072_v41  ;;  %v3107_v16 = vmul.f32 %v4536_v19, %v3073_v51  ;;  %v3108_v18 = vmul.f32 %v4536_v19, %v3074_v50  ;;  %v3109_v63 = vmul.f32 %v4536_v19, %v3075_v12 }
 0x23d   : > { %v3110_v36 = vmul.f32 %v4536_v19, %v3076_v54  ;;  %v3111_v25 = vmul.f32 %v4536_v19, %v3077_v15  ;;  %v3112_v49 = vmul.f32 %v4536_v19, %v3078_v47  ;;  %v3113_v23 = vmul.f32 %v4536_v19, %v3079_v57 }
 0x23e   : > { %v3114_v39 = vmul.f32 %v4536_v19, %v3080_v1  ;;  %v3115_v44 = vmul.f32 %v4536_v19, %v3081_v8  ;;  %v3116_v48 = vmul.f32 %v4536_v19, %v3082_v46  ;;  %v3117_v38 = vmul.f32 %v4536_v19, %v3083_v37 }
 0x23f   : > { %v3118_v33 = vmul.f32 %v4536_v19, %v3084_v6  ;;  %v3119_v24 = vmul.f32 %v4536_v19, %v3085_v5  ;;  %v3120_v17 = vmul.f32 %v4536_v19, %v3086_v28  ;;  %v3121_v22 = vmul.f32 %v4536_v19, %v3087_v21 }
 0x240   : > { %v3122_v7 = vmul.f32 %v4536_v19, %v3088_v14  ;;  %v3123_v45 = vmul.f32 %v4536_v19, %v3089_v59  ;;  %v3124_v60 = vmul.f32 %v4536_v19, %v3090_v55  ;;  %v3125_v27 = vmul.f32 %v4536_v19, %v3091_v0 }
 0x241   : > { %v3126_v30 = vmul.f32 %v4536_v19, %v3092_v43  ;;  %v3127_v31 = vmul.f32 %v4536_v19, %v3093_v9  ;;  %v3128_v34 = vmul.f32 %v4536_v19, %v3094_v11  ;;  %v3129_v56 = vmul.f32 %v4536_v19, %v3095_v10 }
 0x242   : > { %v3130_v61 = vmul.f32 %v4536_v19, %v3096_v3  ;;  %v3131_v15 = vmul.f32 %v4536_v19, %v3097_v32  ;;  %v3132_v1 = vmul.f32 %v4536_v19, %v3098_v62  ;;  %v3133_v8 = vmul.f32 %v4536_v19, %v3099_v2 }
 0x243   : > { %v3140_v46 = vmul.f32 %v3785_v58, %v3102_v4  ;;  %v3141_v37 = vmul.f32 %v3785_v58, %v3103_v40  ;;  %v3142_v6 = vmul.f32 %v3785_v58, %v3104_v42  ;;  %v3143_v5 = vmul.f32 %v3785_v58, %v3105_v20 }
 0x244   : > { %v3144_v28 = vmul.f32 %v3785_v58, %v3106_v29  ;;  %v3145_v21 = vmul.f32 %v3785_v58, %v3107_v16  ;;  %v3146_v53 = vmul.f32 %v3785_v58, %v3108_v18  ;;  %v3147_v35 = vmul.f32 %v3785_v58, %v3109_v63 }
 0x245   : > { %v3148_v14 = vmul.f32 %v3785_v58, %v3110_v36  ;;  %v3149_v59 = vmul.f32 %v3785_v58, %v3111_v25  ;;  %v3150_v55 = vmul.f32 %v3785_v58, %v3112_v49  ;;  %v3151_v0 = vmul.f32 %v3785_v58, %v3113_v23 }
 0x246   : > { %v3152_v43 = vmul.f32 %v3785_v58, %v3114_v39  ;;  %v3153_v9 = vmul.f32 %v3785_v58, %v3115_v44  ;;  %v3154_v11 = vmul.f32 %v3785_v58, %v3116_v48  ;;  %v3155_v10 = vmul.f32 %v3785_v58, %v3117_v38 }
 0x247   : > { %v3156_v3 = vmul.f32 %v3785_v58, %v3118_v33  ;;  %v3157_v32 = vmul.f32 %v3785_v58, %v3119_v24  ;;  %v3158_v62 = vmul.f32 %v3785_v58, %v3120_v17  ;;  %v3159_v2 = vmul.f32 %v3785_v58, %v3121_v22 }
 0x248   : > { %v3160_v13 = vmul.f32 %v3785_v58, %v3122_v7  ;;  %v3161_v26 = vmul.f32 %v3785_v58, %v3123_v45  ;;  %v3162_v41 = vmul.f32 %v3785_v58, %v3124_v60  ;;  %v3163_v51 = vmul.f32 %v3785_v58, %v3125_v27 }
 0x249   : > { %v3164_v50 = vmul.f32 %v3785_v58, %v3126_v30  ;;  %v3165_v19 = vmul.f32 %v3785_v58, %v3127_v31  ;;  %v3166_v12 = vmul.f32 %v3785_v58, %v3128_v34  ;;  %v3167_v54 = vmul.f32 %v3785_v58, %v3129_v56 }
 0x24a   : > { %v3168_v47 = vmul.f32 %v3785_v58, %v3130_v61  ;;  %v3169_v57 = vmul.f32 %v3785_v58, %v3131_v15  ;;  %v3170_v4 = vmul.f32 %v3785_v58, %v3132_v1  ;;  %v3171_v40 = vmul.f32 %v3785_v58, %v3133_v8 }
 0x24b   : > { %v5877_v42 = vadd.f32 %v3786_v52, %v3140_v46  ;;  %v5879_v20 = vadd.f32 %v3786_v52, %v3141_v37  ;;  %v5881_v29 = vadd.f32 %v3786_v52, %v3142_v6  ;;  %v5883_v16 = vadd.f32 %v3786_v52, %v3143_v5 }
 0x24c   : > { %v5885_v18 = vadd.f32 %v3786_v52, %v3144_v28  ;;  %v5887_v63 = vadd.f32 %v3786_v52, %v3145_v21  ;;  %v3184_v36 = vadd.f32 %v3786_v52, %v3146_v53  ;;  %v3185_v25 = vadd.f32 %v3786_v52, %v3147_v35 }
 0x24d   : > { %v3186_v49 = vadd.f32 %v3786_v52, %v3148_v14  ;;  %v3187_v23 = vadd.f32 %v3786_v52, %v3149_v59  ;;  %v3188_v39 = vadd.f32 %v3786_v52, %v3150_v55  ;;  %v3189_v44 = vadd.f32 %v3786_v52, %v3151_v0 }
 0x24e   : > { %v3190_v48 = vadd.f32 %v3786_v52, %v3152_v43  ;;  %v3191_v38 = vadd.f32 %v3786_v52, %v3153_v9  ;;  %v3192_v33 = vadd.f32 %v3786_v52, %v3154_v11  ;;  %v3193_v24 = vadd.f32 %v3786_v52, %v3155_v10 }
 0x24f   : > { %v3194_v17 = vadd.f32 %v3786_v52, %v3156_v3  ;;  %v3195_v22 = vadd.f32 %v3786_v52, %v3157_v32  ;;  %v3196_v58 = vadd.f32 %v3786_v52, %v3158_v62  ;;  %v3197_v7 = vadd.f32 %v3786_v52, %v3159_v2 }
 0x250   : > { %v3198_v45 = vadd.f32 %v3786_v52, %v3160_v13  ;;  %v3199_v60 = vadd.f32 %v3786_v52, %v3161_v26  ;;  %v3200_v27 = vadd.f32 %v3786_v52, %v3162_v41  ;;  %v3201_v30 = vadd.f32 %v3786_v52, %v3163_v51 }
 0x251   : > { %v3202_v31 = vadd.f32 %v3786_v52, %v3164_v50  ;;  %v3203_v34 = vadd.f32 %v3786_v52, %v3165_v19  ;;  %v3204_v56 = vadd.f32 %v3786_v52, %v3166_v12  ;;  %v3205_v61 = vadd.f32 %v3786_v52, %v3167_v54 }
 0x252   : > { %v3206_v15 = vadd.f32 %v3786_v52, %v3168_v47  ;;  %v3207_v1 = vadd.f32 %v3786_v52, %v3169_v57  ;;  %v3208_v8 = vadd.f32 %v3786_v52, %v3170_v4  ;;  %v3209_v46 = vadd.f32 %v3786_v52, %v3171_v40 }
 0x253   : > { %v3210_v37 = vmax.f32 %v5877_v42, 0.0  ;;  %v3211_v6 = vmax.f32 %v5879_v20, 0.0  ;;  %v3212_v5 = vmax.f32 %v5881_v29, 0.0  ;;  %v3213_v28 = vmax.f32 %v5883_v16, 0.0 }
 0x254   : > { %v3214_v21 = vmax.f32 %v5885_v18, 0.0  ;;  %v3215_v53 = vmax.f32 %v5887_v63, 0.0  ;;  %v3216_v35 = vmax.f32 %v3184_v36, 0.0  ;;  %v3217_v14 = vmax.f32 %v3185_v25, 0.0 }
 0x255   : > { %v3218_v59 = vmax.f32 %v3186_v49, 0.0  ;;  %v3219_v55 = vmax.f32 %v3187_v23, 0.0  ;;  %v3220_v0 = vmax.f32 %v3188_v39, 0.0  ;;  %v3221_v43 = vmax.f32 %v3189_v44, 0.0 }
 0x256   : > { %v3222_v9 = vmax.f32 %v3190_v48, 0.0  ;;  %v3223_v11 = vmax.f32 %v3191_v38, 0.0  ;;  %v3224_v10 = vmax.f32 %v3192_v33, 0.0  ;;  %v3225_v3 = vmax.f32 %v3193_v24, 0.0 }
 0x257   : > { %v3226_v32 = vmax.f32 %v3194_v17, 0.0  ;;  %v3227_v62 = vmax.f32 %v3195_v22, 0.0  ;;  %v3228_v2 = vmax.f32 %v3196_v58, 0.0  ;;  %v3229_v52 = vmax.f32 %v3197_v7, 0.0 }
 0x258   : > { %v3230_v13 = vmax.f32 %v3198_v45, 0.0  ;;  %v3231_v26 = vmax.f32 %v3199_v60, 0.0  ;;  %v3232_v41 = vmax.f32 %v3200_v27, 0.0  ;;  %v3233_v51 = vmax.f32 %v3201_v30, 0.0 }
 0x259   : > { %v3234_v50 = vmax.f32 %v3202_v31, 0.0  ;;  %v3235_v19 = vmax.f32 %v3203_v34, 0.0  ;;  %v3236_v12 = vmax.f32 %v3204_v56, 0.0  ;;  %v3237_v54 = vmax.f32 %v3205_v61, 0.0 }
 0x25a   : > { %v3238_v47 = vmax.f32 %v3206_v15, 0.0  ;;  %v3239_v57 = vmax.f32 %v3207_v1, 0.0  ;;  %v3240_v4 = vmax.f32 %v3208_v8, 0.0  ;;  %v3241_v40 = vmax.f32 %v3209_v46, 0.0 }
 0x25b   : > { %v3242_v42 = vadd.f32 %v3212_v5, %v3210_v37  ;;  %v3243_v20 = vadd.f32 %v3213_v28, %v3211_v6  ;;  %v3244_v29 = vadd.f32 %v3216_v35, %v3214_v21  ;;  %v3245_v16 = vadd.f32 %v3217_v14, %v3215_v53 }
 0x25c   : > { %v3246_v18 = vadd.f32 %v3220_v0, %v3218_v59  ;;  %v3247_v63 = vadd.f32 %v3221_v43, %v3219_v55  ;;  %v3248_v36 = vadd.f32 %v3224_v10, %v3222_v9  ;;  %v3249_v25 = vadd.f32 %v3225_v3, %v3223_v11 }
 0x25d   : > { %v3250_v49 = vadd.f32 %v3228_v2, %v3226_v32  ;;  %v3251_v23 = vadd.f32 %v3229_v52, %v3227_v62  ;;  %v3252_v39 = vadd.f32 %v3232_v41, %v3230_v13  ;;  %v3253_v44 = vadd.f32 %v3233_v51, %v3231_v26  ;;  %3258 = vst [vmem:[#allocation2] sm:$0xff] %v3242_v42 }
 0x25e   : > { %3259 = vst [vmem:[#allocation2 + $0x8] sm:$0xff] %v3243_v20  ;;  %3260 = vst [vmem:[#allocation2 + $0x10] sm:$0xff] %v3244_v29  ;;  %v3254_v48 = vadd.f32 %v3236_v12, %v3234_v50  ;;  %v3255_v38 = vadd.f32 %v3237_v54, %v3235_v19  ;;  %v3256_v33 = vadd.f32 %v3240_v4, %v3238_v47 }
 0x25f   : > { %3261 = vst [vmem:[#allocation2 + $0x18] sm:$0xff] %v3245_v16  ;;  %v3257_v24 = vadd.f32 %v3241_v40, %v3239_v57  ;;  %3262 = vst [vmem:[#allocation2 + $0x20] sm:$0xff] %v3246_v18 }
 0x260   : > { %3263 = vst [vmem:[#allocation2 + $0x28] sm:$0xff] %v3247_v63  ;;  %3264 = vst [vmem:[#allocation2 + $0x30] sm:$0xff] %v3248_v36 }
 0x261   : > { %3265 = vst [vmem:[#allocation2 + $0x38] sm:$0xff] %v3249_v25  ;;  %3266 = vst [vmem:[#allocation2 + $0x40] sm:$0xff] %v3250_v49 }
 0x262   : > { %3267 = vst [vmem:[#allocation2 + $0x48] sm:$0xff] %v3251_v23  ;;  %3268 = vst [vmem:[#allocation2 + $0x50] sm:$0xff] %v3252_v39 }
 0x263   : > { %3269 = vst [vmem:[#allocation2 + $0x58] sm:$0xff] %v3253_v44  ;;  %3270 = vst [vmem:[#allocation2 + $0x60] sm:$0xff] %v3254_v48 }
 0x264   : > { %3271 = vst [vmem:[#allocation2 + $0x68] sm:$0xff] %v3255_v38  ;;  %3272 = vst [vmem:[#allocation2 + $0x70] sm:$0xff] %v3256_v33 }
 0x265   : > { %3273 = vst [vmem:[#allocation2 + $0x78] sm:$0xff] %v3257_v24  ;;  %v3274_v17 = vld [vmem:[#allocation2] ss:$2 sm:$0xff]  ;;  %v3290_v58 = vld [vmem:[#allocation2 + $0x1] ss:$2 sm:$0xff] }
 0x266   : > { %v3276_v22 = vld [vmem:[#allocation2 + $0x10] ss:$2 sm:$0xff]  ;;  %v3292_v60 = vld [vmem:[#allocation2 + $0x11] ss:$2 sm:$0xff]  ;;  %v3305_v27 = vadd.f32 %v3290_v58, %v3274_v17 }
 0x267   : > { %v3278_v7 = vld [vmem:[#allocation2 + $0x20] ss:$2 sm:$0xff]  ;;  %v3294_v34 = vld [vmem:[#allocation2 + $0x21] ss:$2 sm:$0xff]  ;;  %v3306_v56 = vadd.f32 %v3292_v60, %v3276_v22 }
 0x268   : > { %v3280_v45 = vld [vmem:[#allocation2 + $0x30] ss:$2 sm:$0xff]  ;;  %v3296_v1 = vld [vmem:[#allocation2 + $0x31] ss:$2 sm:$0xff]  ;;  %v3307_v8 = vadd.f32 %v3294_v34, %v3278_v7  ;;  %v3313_v14 = vmul.f32 0.25, %v3305_v27 }
 0x269   : > { %v3282_v30 = vld [vmem:[#allocation2 + $0x40] ss:$2 sm:$0xff]  ;;  %v3298_v46 = vld [vmem:[#allocation2 + $0x41] ss:$2 sm:$0xff]  ;;  %v3308_v5 = vadd.f32 %v3296_v1, %v3280_v45  ;;  %v3314_v55 = vmul.f32 0.25, %v3306_v56 }
 0x26a   : > { %v3284_v31 = vld [vmem:[#allocation2 + $0x50] ss:$2 sm:$0xff]  ;;  %v3300_v37 = vld [vmem:[#allocation2 + $0x51] ss:$2 sm:$0xff]  ;;  %v3309_v21 = vadd.f32 %v3298_v46, %v3282_v30  ;;  %v3315_v0 = vmul.f32 0.25, %v3307_v8  ;;  %3321 = vst [vmem:[%s224_s21] sm:$0xff] %v3313_v14 }
 0x26b   : > { %v3286_v61 = vld [vmem:[#allocation2 + $0x60] ss:$2 sm:$0xff]  ;;  %v3302_v6 = vld [vmem:[#allocation2 + $0x61] ss:$2 sm:$0xff]  ;;  %v3310_v53 = vadd.f32 %v3300_v37, %v3284_v31  ;;  %v3316_v43 = vmul.f32 0.25, %v3308_v5  ;;  %3322 = vst [vmem:[%s224_s21 + $0x8] sm:$0xff] %v3314_v55 }
 0x26c   : > { %v3288_v15 = vld [vmem:[#allocation2 + $0x70] ss:$2 sm:$0xff]  ;;  %v3304_v28 = vld [vmem:[#allocation2 + $0x71] ss:$2 sm:$0xff]  ;;  %v3311_v35 = vadd.f32 %v3302_v6, %v3286_v61  ;;  %v3317_v9 = vmul.f32 0.25, %v3309_v21  ;;  %3323 = vst [vmem:[%s224_s21 + $0x10] sm:$0xff] %v3315_v0 }
 0x26d   : > { %v3312_v59 = vadd.f32 %v3304_v28, %v3288_v15  ;;  %v3318_v11 = vmul.f32 0.25, %v3310_v53  ;;  %3324 = vst [vmem:[%s224_s21 + $0x18] sm:$0xff] %v3316_v43 }
 0x26e   : > { %v3319_v10 = vmul.f32 0.25, %v3311_v35  ;;  %3325 = vst [vmem:[%s224_s21 + $0x20] sm:$0xff] %v3317_v9 }
 0x26f   : > { %v3320_v3 = vmul.f32 0.25, %v3312_v59  ;;  %3326 = vst [vmem:[%s224_s21 + $0x28] sm:$0xff] %v3318_v11 }
 0x270   : > { %3327 = vst [vmem:[%s224_s21 + $0x30] sm:$0xff] %v3319_v10 }
 0x271   : > { %3328 = vst [vmem:[%s224_s21 + $0x38] sm:$0xff] %v3320_v3 }
 0x272 PF: > { %s15_s18 = sadd.s32 1, %s4543_s18  }
 0x273   : > { %p12_p4 = scmp.ge.s32.totalorder %s15_s18, 4  }
 0x275   :  { %14 = sbr.rel (!%p12_p4) target bundleno = 1 (0x1), region = 95 }

// kernel: convnet_forward.7
= control target key start
LH: loop header
LB: loop body
LE: loop exit
PB: predicated region body
PF: predicated region fallthrough
CT: control target
= control target key end

     0   :  { %v28_v28 = vlaneseq  ;;  %v1951_v36 = vmov 1983009808   ;;  %s2385_s0 = inlined_call_operand.vmem [shape: f32[2,2048], index: 0, kind: input, shape index: {}]   ;;  %s2386_s1 = inlined_call_operand.vmem [shape: bf16[2048,128], index: 1, kind: input, shape index: {}]   ;;  %s2387_s2 = inlined_call_operand.vmem [shape: f32[1,128], index: 2, kind: input, shape index: {}]   ;;  %s2388_s3 = inlined_call_operand.hbm [shape: f32[2,128], index: 3, kind: output, shape index: {}]  }
   0x1   :  { %v1797_v0 = vld [vmem:[%s2386_s1 + $0x78] sm:$0xff]   ;;  %v1801_v4 = vld [vmem:[%s2386_s1 + $0x70] sm:$0xff]   ;;  %v1805_v8 = vld [vmem:[%s2386_s1 + $0x68] sm:$0xff]   ;;  %v26_v37 = vunpack.c.l.s4 %v1951_v36 }
   0x2   :  { %v1798_v1 = vld [vmem:[%s2386_s1 + $0xf8] sm:$0xff]   ;;  %1619 = vmatprep.subr.bf16.mxu0 %v1797_v0  ;;  %v1802_v5 = vld [vmem:[%s2386_s1 + $0xf0] sm:$0xff]   ;;  %v1806_v9 = vld [vmem:[%s2386_s1 + $0xe8] sm:$0xff]   ;;  %v29_v33 = vshrl.u32 %v28_v28, 7 }
   0x3   :  { %v1799_v2 = vld [vmem:[%s2386_s1 + $0x38] sm:$0xff]   ;;  %1641 = vmatprep.subr.bf16.mxu1 %v1798_v1  ;;  %v1803_v6 = vld [vmem:[%s2386_s1 + $0x30] sm:$0xff]   ;;  %v1807_v10 = vld [vmem:[%s2386_s1 + $0x28] sm:$0xff]   ;;  %v27_v39 = vunpack.c.0.s8 %v26_v37 }
   0x4   :  { %v1800_v3 = vld [vmem:[%s2386_s1 + $0xb8] sm:$0xff]   ;;  %1620 = vmatpush3.bf16.msra.mxu0 %v1799_v2  ;;  %v1804_v7 = vld [vmem:[%s2386_s1 + $0xb0] sm:$0xff]   ;;  %v1808_v11 = vld [vmem:[%s2386_s1 + $0xa8] sm:$0xff]  }
   0x5   :  { %1642 = vmatpush3.bf16.msra.mxu1 %v1800_v3  ;;  %1621 = vmatprep.subr.bf16.mxu0 %v1801_v4  ;;  %v1809_v12 = vld [vmem:[%s2386_s1 + $0x60] sm:$0xff]   ;;  %v1813_v16 = vld [vmem:[%s2386_s1 + $0x58] sm:$0xff]   ;;  %v1817_v20 = vld [vmem:[%s2386_s1 + $0x50] sm:$0xff]   ;;  %v2078_v41 = vsub.s32 %v27_v39, %v29_v33 }
   0x6   :  { %1643 = vmatprep.subr.bf16.mxu1 %v1802_v5  ;;  %v1810_v13 = vld [vmem:[%s2386_s1 + $0xe0] sm:$0xff]   ;;  %v1814_v17 = vld [vmem:[%s2386_s1 + $0xd8] sm:$0xff]   ;;  %v1818_v21 = vld [vmem:[%s2386_s1 + $0xd0] sm:$0xff]  }
   0x7   :  { %v1811_v14 = vld [vmem:[%s2386_s1 + $0x20] sm:$0xff]   ;;  %v1815_v18 = vld [vmem:[%s2386_s1 + $0x18] sm:$0xff]   ;;  %v1819_v22 = vld [vmem:[%s2386_s1 + $0x10] sm:$0xff]  }
   0x8   :  { %1622 = vmatpush3.bf16.msra.mxu0 %v1803_v6  ;;  %v1812_v15 = vld [vmem:[%s2386_s1 + $0xa0] sm:$0xff]   ;;  %v1816_v19 = vld [vmem:[%s2386_s1 + $0x98] sm:$0xff]   ;;  %v1820_v23 = vld [vmem:[%s2386_s1 + $0x90] sm:$0xff]  }
   0x9   :  { %1644 = vmatpush3.bf16.msra.mxu1 %v1804_v7  ;;  %1623 = vmatprep.subr.bf16.mxu0 %v1805_v8  ;;  %v1821_v24 = vld [vmem:[%s2386_s1 + $0x48] sm:$0xff]   ;;  %v1825_v29 = vld [vmem:[%s2386_s1 + $0x40] sm:$0xff]   ;;  %v1830_v35 = vld [vmem:[%s2386_s1 + $0x178] sm:$0xff]  }
   0xa   :  { %1645 = vmatprep.subr.bf16.mxu1 %v1806_v9  ;;  %v1822_v25 = vld [vmem:[%s2386_s1 + $0xc8] sm:$0xff]   ;;  %v1826_v30 = vld [vmem:[%s2386_s1 + $0xc0] sm:$0xff]   ;;  %v1831_v38 = vld [vmem:[%s2386_s1 + $0x1f8] sm:$0xff]  }
   0xb   :  { %v1823_v26 = vld [vmem:[%s2386_s1 + $0x8] sm:$0xff]   ;;  %v1827_v31 = vld [vmem:[%s2386_s1] sm:$0xff]   ;;  %v1832_v46 = vld [vmem:[%s2386_s1 + $0x138] sm:$0xff]  }
   0xc   :  { %1624 = vmatpush3.bf16.msra.mxu0 %v1807_v10  ;;  %v1824_v27 = vld [vmem:[%s2386_s1 + $0x88] sm:$0xff]   ;;  %v1828_v32 = vld [vmem:[%s2386_s1 + $0x80] sm:$0xff]   ;;  %v1833_v49 = vld [vmem:[%s2386_s1 + $0x1b8] sm:$0xff]  }
   0xd   :  { %1646 = vmatpush3.bf16.msra.mxu1 %v1808_v11  ;;  %1625 = vmatprep.subr.bf16.mxu0 %v1809_v12  ;;  %v16_v34 = vld [vmem:[%s2385_s0] sm:$0xff]  ;;  %v1834_v52 = vld [vmem:[%s2386_s1 + $0x170] sm:$0xff]   ;;  %v1838_v56 = vld [vmem:[%s2386_s1 + $0x168] sm:$0xff]  }
   0xe   :  { %1647 = vmatprep.subr.bf16.mxu1 %v1810_v13  ;;  %v24_v40 = vcombine.high %v16_v34, %v16_v34  ;;  %v31_v42 = vrot.slane %v16_v34, %v2078_v41  ;;  %v1835_v53 = vld [vmem:[%s2386_s1 + $0x1f0] sm:$0xff]   ;;  %v1839_v57 = vld [vmem:[%s2386_s1 + $0x1e8] sm:$0xff]   ;;  %v1842_v60 = vld [vmem:[%s2386_s1 + $0x160] sm:$0xff]  }
   0xf   :  { %v1836_v54 = vld [vmem:[%s2386_s1 + $0x130] sm:$0xff]   ;;  %v1840_v58 = vld [vmem:[%s2386_s1 + $0x128] sm:$0xff]   ;;  %v1843_v61 = vld [vmem:[%s2386_s1 + $0x1e0] sm:$0xff]  }
  0x10   :  { %1626 = vmatpush3.bf16.msra.mxu0 %v1811_v14  ;;  %v38_v43 = vrot.slane %v24_v40, %v2078_v41  ;;  %v39_v44 = vcombine.high %v31_v42, %v31_v42  ;;  %v108_v47 = vpack.c.bf16 %v31_v42, %v31_v42  ;;  %v1837_v55 = vld [vmem:[%s2386_s1 + $0x1b0] sm:$0xff]   ;;  %v1841_v59 = vld [vmem:[%s2386_s1 + $0x1a8] sm:$0xff]   ;;  %v1844_v62 = vld [vmem:[%s2386_s1 + $0x120] sm:$0xff]  }
  0x11   :  { %1648 = vmatpush3.bf16.msra.mxu1 %v1812_v15  ;;  %1627 = vmatprep.subr.bf16.mxu0 %v1813_v16  ;;  %v1845_v63 = vld [vmem:[%s2386_s1 + $0x1a0] sm:$0xff]   ;;  %v1846_v0 = vld [vmem:[%s2386_s1 + $0x158] sm:$0xff]   ;;  %v1850_v4 = vld [vmem:[%s2386_s1 + $0x150] sm:$0xff]  }
  0x12   :  { %1649 = vmatprep.subr.bf16.mxu1 %v1814_v17  ;;  %v40_v45 = vcombine.high %v38_v43, %v38_v43  ;;  %v110_v48 = vpack.c.bf16 %v38_v43, %v38_v43  ;;  %v109_v50 = vpack.c.bf16 %v39_v44, %v39_v44  ;;  %v1847_v1 = vld [vmem:[%s2386_s1 + $0x1d8] sm:$0xff]   ;;  %v1851_v5 = vld [vmem:[%s2386_s1 + $0x1d0] sm:$0xff]   ;;  %v1854_v8 = vld [vmem:[%s2386_s1 + $0x148] sm:$0xff]  }
  0x13   :  { %v1848_v2 = vld [vmem:[%s2386_s1 + $0x118] sm:$0xff]   ;;  %v1852_v6 = vld [vmem:[%s2386_s1 + $0x110] sm:$0xff]   ;;  %v1855_v9 = vld [vmem:[%s2386_s1 + $0x1c8] sm:$0xff]  }
  0x14   :  { %1628 = vmatpush3.bf16.msra.mxu0 %v1815_v18  ;;  %v111_v51 = vpack.c.bf16 %v40_v45, %v40_v45  ;;  %1187 = vmatprep.mubr.bf16.mxu0 %v109_v50  ;;  %v1849_v3 = vld [vmem:[%s2386_s1 + $0x198] sm:$0xff]   ;;  %v1853_v7 = vld [vmem:[%s2386_s1 + $0x190] sm:$0xff]   ;;  %v17_v10 = vld [vmem:[%s2385_s0 + $0x8] sm:$0xff] }
  0x15   :  { %1650 = vmatpush3.bf16.msra.mxu1 %v1816_v19  ;;  %1629 = vmatprep.subr.bf16.mxu0 %v1817_v20  ;;  %v1856_v11 = vld [vmem:[%s2386_s1 + $0x108] sm:$0xff]   ;;  %v48_v12 = vrot.slane %v17_v10, %v2078_v41  ;;  %v41_v13 = vcombine.high %v17_v10, %v17_v10  ;;  %v1858_v15 = vld [vmem:[%s2386_s1 + $0x140] sm:$0xff]   ;;  %v1870_v33 = vld [vmem:[%s2386_s1 + $0x2b0] sm:$0xff]  }
  0x16   :  { %1651 = vmatprep.subr.bf16.mxu1 %v1818_v21  ;;  %1227 = vmatprep.mubr.bf16.mxu1 %v111_v51  ;;  %v1857_v14 = vld [vmem:[%s2386_s1 + $0x188] sm:$0xff]   ;;  %v1859_v18 = vld [vmem:[%s2386_s1 + $0x1c0] sm:$0xff]   ;;  %v1879_v43 = vld [vmem:[%s2386_s1 + $0x258] sm:$0xff]  }
  0x17   :  { %v56_v16 = vcombine.high %v48_v12, %v48_v12  ;;  %v55_v17 = vrot.slane %v41_v13, %v2078_v41  ;;  %v1860_v19 = vld [vmem:[%s2386_s1 + $0x100] sm:$0xff]   ;;  %v1871_v34 = vld [vmem:[%s2386_s1 + $0x268] sm:$0xff]   ;;  %v1880_v44 = vld [vmem:[%s2386_s1 + $0x2d8] sm:$0xff]  }
  0x18   :  { %1630 = vmatpush3.bf16.msra.mxu0 %v1819_v22  ;;  %v1861_v22 = vld [vmem:[%s2386_s1 + $0x180] sm:$0xff]   ;;  %v1873_v36 = vld [vmem:[%s2386_s1 + $0x228] sm:$0xff]   ;;  %v1881_v45 = vld [vmem:[%s2386_s1 + $0x218] sm:$0xff]  }
  0x19   :  { %1652 = vmatpush3.bf16.msra.mxu1 %v1820_v23  ;;  %1631 = vmatprep.subr.bf16.mxu0 %v1821_v24  ;;  %v113_v20 = vpack.c.bf16 %v56_v16, %v56_v16  ;;  %v57_v21 = vcombine.high %v55_v17, %v55_v17  ;;  %v1863_v24 = vld [vmem:[%s2386_s1 + $0x278] sm:$0xff]   ;;  %v114_v28 = vpack.c.bf16 %v55_v17, %v55_v17  ;;  %v1874_v37 = vld [vmem:[%s2386_s1 + $0x2a8] sm:$0xff]   ;;  %v1876_v39 = vld [vmem:[%s2386_s1 + $0x2e0] sm:$0xff]  }
  0x1a   :  { %1653 = vmatprep.subr.bf16.mxu1 %v1822_v25  ;;  %v1864_v25 = vld [vmem:[%s2386_s1 + $0x2f8] sm:$0xff]   ;;  %v1877_v40 = vld [vmem:[%s2386_s1 + $0x220] sm:$0xff]   ;;  %v1886_v50 = vld [vmem:[%s2386_s1 + $0x290] sm:$0xff]  }
  0x1b   :  { %v115_v23 = vpack.c.bf16 %v57_v21, %v57_v21  ;;  %v1878_v42 = vld [vmem:[%s2386_s1 + $0x2a0] sm:$0xff]   ;;  %v1887_v51 = vld [vmem:[%s2386_s1 + $0x248] sm:$0xff]   ;;  %v1901_v10 = vld [vmem:[%s2386_s1 + $0x3f0] sm:$0xff]  }
  0x1c   :  { %1632 = vmatpush3.bf16.msra.mxu0 %v1823_v26  ;;  %v1865_v26 = vld [vmem:[%s2386_s1 + $0x238] sm:$0xff]   ;;  %v1904_v13 = vld [vmem:[%s2386_s1 + $0x368] sm:$0xff]   ;;  %v1908_v17 = vld [vmem:[%s2386_s1 + $0x360] sm:$0xff]  }
  0x1d   :  { %1654 = vmatpush3.bf16.msra.mxu1 %v1824_v27  ;;  %1633 = vmatprep.subr.bf16.mxu0 %v1825_v29  ;;  %v112_v27 = vpack.c.bf16 %v48_v12, %v48_v12  ;;  %v1866_v29 = vld [vmem:[%s2386_s1 + $0x2b8] sm:$0xff]   ;;  %v1903_v12 = vld [vmem:[%s2386_s1 + $0x3b0] sm:$0xff]   ;;  %v1907_v16 = vld [vmem:[%s2386_s1 + $0x3a8] sm:$0xff]  }
  0x1e   :  { %1655 = vmatprep.subr.bf16.mxu1 %v1826_v30  ;;  %v1867_v30 = vld [vmem:[%s2386_s1 + $0x270] sm:$0xff]   ;;  %v1912_v21 = vld [vmem:[%s2386_s1 + $0x358] sm:$0xff]  }
  0x20   :  { %1634 = vmatpush3.bf16.msra.mxu0 %v1827_v31  ;;  %v1868_v31 = vld [vmem:[%s2386_s1 + $0x2f0] sm:$0xff]  }
  0x21   :  { %1656 = vmatpush3.bf16.msra.mxu1 %v1828_v32  ;;  %1663 = vmatprep.subr.bf16.mxu0 %v1830_v35  ;;  %v1869_v32 = vld [vmem:[%s2386_s1 + $0x230] sm:$0xff]   ;;  %v1872_v35 = vld [vmem:[%s2386_s1 + $0x2e8] sm:$0xff]  }
  0x22   :  { %1685 = vmatprep.subr.bf16.mxu1 %v1831_v38  ;;  %v1875_v38 = vld [vmem:[%s2386_s1 + $0x260] sm:$0xff]  }
  0x23   :  { %1188 = vmatmul.mubr.bf16.vlgmr.msra.gmra.mxu0 %v108_v47  ;;  %v1883_v47 = vld [vmem:[%s2386_s1 + $0x250] sm:$0xff]  }
  0x24   :  { %1228 = vmatmul.mubr.bf16.vlgmr.msra.gmra.mxu1 %v110_v48  ;;  %1664 = vmatpush3.bf16.msra.mxu0 %v1832_v46  ;;  %v1882_v46 = vld [vmem:[%s2386_s1 + $0x298] sm:$0xff]   ;;  %v1884_v48 = vld [vmem:[%s2386_s1 + $0x2d0] sm:$0xff]  }
  0x25   :  { %1686 = vmatpush3.bf16.msra.mxu1 %v1833_v49  ;;  %1665 = vmatprep.subr.bf16.mxu0 %v1834_v52  ;;  %v1885_v49 = vld [vmem:[%s2386_s1 + $0x210] sm:$0xff]   ;;  %v1888_v52 = vld [vmem:[%s2386_s1 + $0x2c8] sm:$0xff]  }
  0x26   :  { %1687 = vmatprep.subr.bf16.mxu1 %v1835_v53  ;;  %1267 = vmatprep.mubr.bf16.mxu0 %v113_v20  ;;  %v18_v53 = vld [vmem:[%s2385_s0 + $0x10] sm:$0xff]  ;;  %v1911_v20 = vld [vmem:[%s2386_s1 + $0x3a0] sm:$0xff]  }
  0x27   :  { %1307 = vmatprep.mubr.bf16.mxu1 %v115_v23  ;;  %v1914_v23 = vld [vmem:[%s2386_s1 + $0x318] sm:$0xff]  }
  0x28   :  { %1666 = vmatpush3.bf16.msra.mxu0 %v1836_v54  ;;  %v1889_v54 = vld [vmem:[%s2386_s1 + $0x208] sm:$0xff]  }
  0x29   :  { %1688 = vmatpush3.bf16.msra.mxu1 %v1837_v55  ;;  %1667 = vmatprep.subr.bf16.mxu0 %v1838_v56  ;;  %v65_v55 = vrot.slane %v18_v53, %v2078_v41  ;;  %v58_v56 = vcombine.high %v18_v53, %v18_v53 }
  0x2a   :  { %1689 = vmatprep.subr.bf16.mxu1 %v1839_v57  ;;  %v1890_v57 = vld [vmem:[%s2386_s1 + $0x288] sm:$0xff]  }
  0x2c   :  { %1668 = vmatpush3.bf16.msra.mxu0 %v1840_v58  ;;  %v1891_v58 = vld [vmem:[%s2386_s1 + $0x240] sm:$0xff]  }
  0x2d   :  { %1690 = vmatpush3.bf16.msra.mxu1 %v1841_v59  ;;  %1669 = vmatprep.subr.bf16.mxu0 %v1842_v60  ;;  %v73_v59 = vcombine.high %v65_v55, %v65_v55  ;;  %v72_v60 = vrot.slane %v58_v56, %v2078_v41 }
  0x2e   :  { %1691 = vmatprep.subr.bf16.mxu1 %v1843_v61  ;;  %v1892_v61 = vld [vmem:[%s2386_s1 + $0x2c0] sm:$0xff]  }
  0x30   :  { %1670 = vmatpush3.bf16.msra.mxu0 %v1844_v62  ;;  %v1893_v62 = vld [vmem:[%s2386_s1 + $0x200] sm:$0xff]  }
  0x31   :  { %1692 = vmatpush3.bf16.msra.mxu1 %v1845_v63  ;;  %1671 = vmatprep.subr.bf16.mxu0 %v1846_v0  ;;  %v117_v63 = vpack.c.bf16 %v73_v59, %v73_v59  ;;  %v74_v0 = vcombine.high %v72_v60, %v72_v60 }
  0x32   :  { %1693 = vmatprep.subr.bf16.mxu1 %v1847_v1  ;;  %v1894_v1 = vld [vmem:[%s2386_s1 + $0x280] sm:$0xff]  }
  0x34   :  { %1672 = vmatpush3.bf16.msra.mxu0 %v1848_v2  ;;  %v119_v2 = vpack.c.bf16 %v74_v0, %v74_v0 }
  0x35   :  { %1694 = vmatpush3.bf16.msra.mxu1 %v1849_v3  ;;  %1673 = vmatprep.subr.bf16.mxu0 %v1850_v4  ;;  %v1896_v3 = vld [vmem:[%s2386_s1 + $0x378] sm:$0xff]  }
  0x36   :  { %1695 = vmatprep.subr.bf16.mxu1 %v1851_v5  ;;  %v1897_v4 = vld [vmem:[%s2386_s1 + $0x3f8] sm:$0xff]  }
  0x37   :  { %v1898_v5 = vld [vmem:[%s2386_s1 + $0x338] sm:$0xff]  }
  0x38   :  { %1674 = vmatpush3.bf16.msra.mxu0 %v1852_v6  ;;  %v116_v6 = vpack.c.bf16 %v65_v55, %v65_v55 }
  0x39   :  { %1696 = vmatpush3.bf16.msra.mxu1 %v1853_v7  ;;  %1675 = vmatprep.subr.bf16.mxu0 %v1854_v8  ;;  %v118_v7 = vpack.c.bf16 %v72_v60, %v72_v60  ;;  %v1899_v8 = vld [vmem:[%s2386_s1 + $0x3b8] sm:$0xff]  }
  0x3a   :  { %1697 = vmatprep.subr.bf16.mxu1 %v1855_v9  ;;  %v1900_v9 = vld [vmem:[%s2386_s1 + $0x370] sm:$0xff]  }
  0x3c   :  { %1676 = vmatpush3.bf16.msra.mxu0 %v1856_v11  ;;  %v1902_v11 = vld [vmem:[%s2386_s1 + $0x330] sm:$0xff]  }
  0x3d   :  { %1698 = vmatpush3.bf16.msra.mxu1 %v1857_v14  ;;  %1677 = vmatprep.subr.bf16.mxu0 %v1858_v15  ;;  %v1905_v14 = vld [vmem:[%s2386_s1 + $0x3e8] sm:$0xff]  }
  0x3e   :  { %1699 = vmatprep.subr.bf16.mxu1 %v1859_v18  ;;  %v1906_v15 = vld [vmem:[%s2386_s1 + $0x328] sm:$0xff]   ;;  %v1909_v18 = vld [vmem:[%s2386_s1 + $0x3e0] sm:$0xff]  }
  0x40   :  { %1678 = vmatpush3.bf16.msra.mxu0 %v1860_v19  ;;  %v1910_v19 = vld [vmem:[%s2386_s1 + $0x320] sm:$0xff]  }
  0x41   :  { %1700 = vmatpush3.bf16.msra.mxu1 %v1861_v22  ;;  %1707 = vmatprep.subr.bf16.mxu0 %v1863_v24  ;;  %v1913_v22 = vld [vmem:[%s2386_s1 + $0x3d8] sm:$0xff]  }
  0x42   :  { %1729 = vmatprep.subr.bf16.mxu1 %v1864_v25  ;;  %v1915_v24 = vld [vmem:[%s2386_s1 + $0x398] sm:$0xff]   ;;  %v1916_v25 = vld [vmem:[%s2386_s1 + $0x350] sm:$0xff]  }
  0x43   :  { %1268 = vmatmul.mubr.bf16.vlgmr.msra.gmra.mxu0 %v112_v27  ;;  %v1918_v27 = vld [vmem:[%s2386_s1 + $0x310] sm:$0xff]  }
  0x44   :  { %1308 = vmatmul.mubr.bf16.vlgmr.msra.gmra.mxu1 %v114_v28  ;;  %1708 = vmatpush3.bf16.msra.mxu0 %v1865_v26  ;;  %v1917_v26 = vld [vmem:[%s2386_s1 + $0x3d0] sm:$0xff]  }
  0x45   :  { %1730 = vmatpush3.bf16.msra.mxu1 %v1866_v29  ;;  %1709 = vmatprep.subr.bf16.mxu0 %v1867_v30  ;;  %v1919_v28 = vld [vmem:[%s2386_s1 + $0x390] sm:$0xff]   ;;  %v1920_v29 = vld [vmem:[%s2386_s1 + $0x348] sm:$0xff]  }
  0x46   :  { %1731 = vmatprep.subr.bf16.mxu1 %v1868_v31  ;;  %1347 = vmatprep.mubr.bf16.mxu0 %v117_v63  ;;  %v1921_v30 = vld [vmem:[%s2386_s1 + $0x3c8] sm:$0xff]   ;;  %v19_v31 = vld [vmem:[%s2385_s0 + $0x18] sm:$0xff] }
  0x47   :  { %1387 = vmatprep.mubr.bf16.mxu1 %v119_v2 }
  0x48   :  { %1710 = vmatpush3.bf16.msra.mxu0 %v1869_v32 }
  0x49   :  { %1732 = vmatpush3.bf16.msra.mxu1 %v1870_v33  ;;  %1711 = vmatprep.subr.bf16.mxu0 %v1871_v34 }
  0x4a   :  { %1733 = vmatprep.subr.bf16.mxu1 %v1872_v35 }
  0x4c   :  { %1712 = vmatpush3.bf16.msra.mxu0 %v1873_v36 }
  0x4d   :  { %1734 = vmatpush3.bf16.msra.mxu1 %v1874_v37  ;;  %1713 = vmatprep.subr.bf16.mxu0 %v1875_v38 }
  0x4e   :  { %1735 = vmatprep.subr.bf16.mxu1 %v1876_v39 }
  0x50   :  { %1714 = vmatpush3.bf16.msra.mxu0 %v1877_v40 }
  0x51   :  { %1736 = vmatpush3.bf16.msra.mxu1 %v1878_v42  ;;  %1715 = vmatprep.subr.bf16.mxu0 %v1879_v43 }
  0x52   :  { %1737 = vmatprep.subr.bf16.mxu1 %v1880_v44 }
  0x54   :  { %1716 = vmatpush3.bf16.msra.mxu0 %v1881_v45 }
  0x55   :  { %1738 = vmatpush3.bf16.msra.mxu1 %v1882_v46  ;;  %1717 = vmatprep.subr.bf16.mxu0 %v1883_v47 }
  0x56   :  { %1739 = vmatprep.subr.bf16.mxu1 %v1884_v48 }
  0x58   :  { %1718 = vmatpush3.bf16.msra.mxu0 %v1885_v49 }
  0x59   :  { %1740 = vmatpush3.bf16.msra.mxu1 %v1886_v50  ;;  %1719 = vmatprep.subr.bf16.mxu0 %v1887_v51 }
  0x5a   :  { %1741 = vmatprep.subr.bf16.mxu1 %v1888_v52 }
  0x5c   :  { %1720 = vmatpush3.bf16.msra.mxu0 %v1889_v54 }
  0x5d   :  { %1742 = vmatpush3.bf16.msra.mxu1 %v1890_v57  ;;  %1721 = vmatprep.subr.bf16.mxu0 %v1891_v58 }
  0x5e   :  { %1743 = vmatprep.subr.bf16.mxu1 %v1892_v61 }
  0x60   :  { %1722 = vmatpush3.bf16.msra.mxu0 %v1893_v62 }
  0x61   :  { %1744 = vmatpush3.bf16.msra.mxu1 %v1894_v1  ;;  %1751 = vmatprep.subr.bf16.mxu0 %v1896_v3 }
  0x62   :  { %1773 = vmatprep.subr.bf16.mxu1 %v1897_v4 }
  0x63   :  { %1348 = vmatmul.mubr.bf16.vlgmr.msra.gmra.mxu0 %v116_v6 }
  0x64   :  { %1388 = vmatmul.mubr.bf16.vlgmr.msra.gmra.mxu1 %v118_v7  ;;  %1752 = vmatpush3.bf16.msra.mxu0 %v1898_v5 }
  0x65   :  { %1774 = vmatpush3.bf16.msra.mxu1 %v1899_v8  ;;  %1753 = vmatprep.subr.bf16.mxu0 %v1900_v9 }
  0x66   :  { %1775 = vmatprep.subr.bf16.mxu1 %v1901_v10 }
  0x68   :  { %1754 = vmatpush3.bf16.msra.mxu0 %v1902_v11 }
  0x69   :  { %1776 = vmatpush3.bf16.msra.mxu1 %v1903_v12  ;;  %1755 = vmatprep.subr.bf16.mxu0 %v1904_v13 }
  0x6a   :  { %1777 = vmatprep.subr.bf16.mxu1 %v1905_v14 }
  0x6c   :  { %1756 = vmatpush3.bf16.msra.mxu0 %v1906_v15 }
  0x6d   :  { %1778 = vmatpush3.bf16.msra.mxu1 %v1907_v16  ;;  %1757 = vmatprep.subr.bf16.mxu0 %v1908_v17 }
  0x6e   :  { %1779 = vmatprep.subr.bf16.mxu1 %v1909_v18 }
  0x70   :  { %1758 = vmatpush3.bf16.msra.mxu0 %v1910_v19 }
  0x71   :  { %1780 = vmatpush3.bf16.msra.mxu1 %v1911_v20  ;;  %1759 = vmatprep.subr.bf16.mxu0 %v1912_v21 }
  0x72   :  { %1781 = vmatprep.subr.bf16.mxu1 %v1913_v22 }
  0x74   :  { %1760 = vmatpush3.bf16.msra.mxu0 %v1914_v23 }
  0x75   :  { %1782 = vmatpush3.bf16.msra.mxu1 %v1915_v24  ;;  %1761 = vmatprep.subr.bf16.mxu0 %v1916_v25 }
  0x76   :  { %1783 = vmatprep.subr.bf16.mxu1 %v1917_v26 }
  0x77   :  { %8 = vsyncpa [#allocation3], 0  ;;  %v82_v32 = vrot.slane %v19_v31, %v2078_v41  ;;  %v75_v33 = vcombine.high %v19_v31, %v19_v31  ;;  %v1922_v34 = vld [vmem:[%s2386_s1 + $0x308] sm:$0xff]   ;;  %v1924_v36 = vld [vmem:[%s2386_s1 + $0x340] sm:$0xff]  }
  0x78   :  { %1762 = vmatpush3.bf16.msra.mxu0 %v1918_v27  ;;  %v1923_v35 = vld [vmem:[%s2386_s1 + $0x388] sm:$0xff]   ;;  %v1925_v37 = vld [vmem:[%s2386_s1 + $0x3c0] sm:$0xff]  }
  0x79   :  { %1784 = vmatpush3.bf16.msra.mxu1 %v1919_v28  ;;  %1763 = vmatprep.subr.bf16.mxu0 %v1920_v29  ;;  %v90_v38 = vcombine.high %v82_v32, %v82_v32  ;;  %v89_v39 = vrot.slane %v75_v33, %v2078_v41  ;;  %v1926_v43 = vld [vmem:[%s2386_s1 + $0x300] sm:$0xff]   ;;  %v120_v46 = vpack.c.bf16 %v82_v32, %v82_v32 }
  0x7a   :  { %1785 = vmatprep.subr.bf16.mxu1 %v1921_v30  ;;  %v1927_v44 = vld [vmem:[%s2386_s1 + $0x380] sm:$0xff]   ;;  %s1952_s1 = smov [#allocation2]  }
  0x7b   :  { %v121_v40 = vpack.c.bf16 %v90_v38, %v90_v38  ;;  %v91_v42 = vcombine.high %v89_v39, %v89_v39  ;;  %v122_v47 = vpack.c.bf16 %v89_v39, %v89_v39  ;;  %v1490_v49 = vld [vmem:[%s2387_s2] ss:$0 sm:$0xff]  ;;  %s1482_s2 = sshll.u32 %s1952_s1, 4  ;;  %s1483_s2 = int_to_ptr.vmem [resolvable:$true] %s1482_s2 }
  0x7c   :  { %1764 = vmatpush3.bf16.msra.mxu0 %v1922_v34  ;;  %s1929_s7 = scalar_lea.vmem %s1483_s2, 32  ;;  %p1934_p1 = scmp.lt.s32.totalorder %s1483_s2, %s1483_s2 }
  0x7d   :  { %1786 = vmatpush3.bf16.msra.mxu1 %v1923_v35  ;;  %1765 = vmatprep.subr.bf16.mxu0 %v1924_v36  ;;  %v123_v45 = vpack.c.bf16 %v91_v42, %v91_v42  ;;  %p1930_p0 = scmp.ne.s32.totalorder %s1483_s2, %s1929_s7  ;;  %p1935_p2 = scmp.lt.s32.totalorder %s1929_s7, %s1929_s7 }
  0x7e   :  { %1787 = vmatprep.subr.bf16.mxu1 %v1925_v37  ;;  %1427 = vmatprep.mubr.bf16.mxu0 %v121_v40 }
  0x7f   :  { %1467 = vmatprep.mubr.bf16.mxu1 %v123_v45  ;;  %p1936_p3 = por %p1935_p2, %p1934_p1 }
  0x80   :  { %1766 = vmatpush3.bf16.msra.mxu0 %v1926_v43 }
  0x81   :  { %1788 = vmatpush3.bf16.msra.mxu1 %v1927_v44  ;;  %p1937_p4 = pnand %p1936_p3, %p1930_p0 }
  0x83   :  { %1428 = vmatmul.mubr.bf16.vlgmr.msra.gmra.mxu0 %v120_v46 }
  0x84   :  { %1468 = vmatmul.mubr.bf16.vlgmr.msra.gmra.mxu1 %v122_v47 }
  0xe3   :  { %v1635_v41 = vpop.f32.mrf.mxu0 }
  0xe4   :  { %v1657_v48 = vpop.f32.mrf.mxu1 }
  0xe5   :  { %v1636_v50 = vpop.f32.mrf.mxu0 }
  0xe6   :  { %v1658_v51 = vpop.f32.mrf.mxu1  ;;  %v1637_v52 = vadd.f32 %v1636_v50, %v1635_v41 }
  0xe7   :  { %v1659_v53 = vadd.f32 %v1658_v51, %v1657_v48  ;;  %v1638_v54 = vpop.f32.mrf.mxu0 }
  0xe8   :  { %v1660_v55 = vpop.f32.mrf.mxu1  ;;  %v1190_v56 = vadd.f32 %v1637_v52, %v1490_v49 }
  0xe9   :  { %v1639_v57 = vpop.f32.mrf.mxu0 }
  0xea   :  { %v1661_v58 = vpop.f32.mrf.mxu1  ;;  %v1230_v59 = vadd.f32 %v1659_v53, %v1190_v56 }
 0x103   :  { %v1679_v60 = vpop.f32.mrf.mxu0 }
 0x104   :  { %v1701_v61 = vpop.f32.mrf.mxu1 }
 0x105   :  { %v1680_v62 = vpop.f32.mrf.mxu0 }
 0x106   :  { %v1702_v63 = vpop.f32.mrf.mxu1  ;;  %v1681_v12 = vadd.f32 %v1680_v62, %v1679_v60 }
 0x107   :  { %v1682_v0 = vpop.f32.mrf.mxu0  ;;  %v1703_v14 = vadd.f32 %v1702_v63, %v1701_v61 }
 0x108   :  { %v1704_v1 = vpop.f32.mrf.mxu1  ;;  %v1270_v13 = vadd.f32 %v1681_v12, %v1230_v59 }
 0x109   :  { %v1683_v2 = vpop.f32.mrf.mxu0 }
 0x10a   :  { %v1705_v3 = vpop.f32.mrf.mxu1  ;;  %v1310_v16 = vadd.f32 %v1703_v14, %v1270_v13 }
 0x123   :  { %v1723_v4 = vpop.f32.mrf.mxu0 }
 0x124   :  { %v1745_v5 = vpop.f32.mrf.mxu1 }
 0x125   :  { %v1724_v6 = vpop.f32.mrf.mxu0 }
 0x126   :  { %v1746_v7 = vpop.f32.mrf.mxu1  ;;  %v1725_v15 = vadd.f32 %v1724_v6, %v1723_v4 }
 0x127   :  { %v1726_v8 = vpop.f32.mrf.mxu0  ;;  %v1747_v18 = vadd.f32 %v1746_v7, %v1745_v5 }
 0x128   :  { %v1748_v9 = vpop.f32.mrf.mxu1  ;;  %v1350_v17 = vadd.f32 %v1725_v15, %v1310_v16 }
 0x129   :  { %v1727_v10 = vpop.f32.mrf.mxu0 }
 0x12a   :  { %v1749_v11 = vpop.f32.mrf.mxu1  ;;  %v1390_v23 = vadd.f32 %v1747_v18, %v1350_v17 }
 0x143   :  { %v1767_v19 = vpop.f32.mrf.mxu0 }
 0x144   :  { %v1789_v20 = vpop.f32.mrf.mxu1 }
 0x145   :  { %v1768_v21 = vpop.f32.mrf.mxu0 }
 0x146   :  { %v1790_v22 = vpop.f32.mrf.mxu1  ;;  %v1769_v24 = vadd.f32 %v1768_v21, %v1767_v19 }
 0x147   :  { %v1770_v25 = vpop.f32.mrf.mxu0  ;;  %v1791_v28 = vadd.f32 %v1790_v22, %v1789_v20 }
 0x148   :  { %v1792_v26 = vpop.f32.mrf.mxu1  ;;  %v1430_v27 = vadd.f32 %v1769_v24, %v1390_v23 }
 0x149   :  { %v1771_v29 = vpop.f32.mrf.mxu0 }
 0x14a   :  { %v1793_v30 = vpop.f32.mrf.mxu1  ;;  %v1470_v31 = vadd.f32 %v1791_v28, %v1430_v27 }
 0x14c   :  { %1475 = vst [vmem:[#allocation2] sm:$0x3] %v1470_v31 }
 0x14d   :  { %1940 = shalt.err (!%p1937_p4)
}
 0x14e   :  { %1485 = dma.vmem_to_hbm [thread:$0]  %s1483_s2, 32, %s2388_s3, [#allocation3]  }
 0x14f   :  { %1949 = dma.done.wait [#allocation3], 32  }
 0x150   :  { %1950 = vsyncadd [#allocation3], 4294967264 }
 0x151   :  { %1489 = vsyncpa [#allocation3], 1 }

</bundles_post_ra>
